<compile_context>
chip_gen: v5e
topology: v5e:2x2
jax: 0.10.0
libtpu: 0.0.40
codegen_flags: <defaults>
</compile_context>

<pallas_src>
import functools
import math

import numpy as np

import jax
import jax.numpy as jnp
from jax.experimental import pallas as pl
from jax.experimental.pallas import tpu as pltpu


# ----------------------------------------------------------------------------
# Host-side operator setup (cached, independent of the batch input)
# ----------------------------------------------------------------------------

def _round_up(x, m):
    return ((x + m - 1) // m) * m


def _segments(W, steps, geometric):
    # matches: np.linspace(1, W/2, steps+1, dtype=int)  /  np.logspace(..., dtype=int)
    if geometric:
        return np.logspace(np.log10(1), np.log10(W / 2), num=steps + 1, dtype=int)
    return np.linspace(1, W / 2, steps + 1, dtype=int)


def _mask_weights_np(t, W):
    # matches hard_mask(t, W, normalized=True): per-row weight shared by all columns
    ran = np.arange(W, dtype=np.float32) - (W - 1) / 2.0
    m = (np.abs(ran) < t).astype(np.float32)
    return m / m.sum()


def _bilinear_corners(theta_deg, W, xp=np):
    """Corner indices / weights of torch affine_grid+grid_sample rotation
    (bilinear, align_corners=True, padding_mode='zeros') for a W x W image.
    Works with xp=np (host operator build) or xp=jnp (pure-JAX reference)."""
    th = theta_deg * (math.pi / 180.0)
    c, s = xp.cos(th), xp.sin(th)
    base = xp.linspace(-1.0, 1.0, W).astype(xp.float32)  # align_corners=True base grid
    xb = base[None, :]                                   # output column coordinate
    yb = base[:, None]                                   # output row coordinate
    gx = c * xb + s * yb                                 # sample x (width axis)
    gy = -s * xb + c * yb                                # sample y (height axis)
    ix = (gx + 1.0) * 0.5 * (W - 1)
    iy = (gy + 1.0) * 0.5 * (W - 1)
    ix0, iy0 = xp.floor(ix), xp.floor(iy)
    corners = []
    for dy in (0, 1):
        for dx in (0, 1):
            jj = ix0 + dx
            ii = iy0 + dy
            wx = (ix - ix0) if dx == 1 else (1.0 - (ix - ix0))
            wy = (iy - iy0) if dy == 1 else (1.0 - (iy - iy0))
            w = wx * wy
            valid = (jj >= 0) & (jj <= W - 1) & (ii >= 0) & (ii <= W - 1)
            w = xp.where(valid, w, 0.0)                  # zero padding outside image
            ii = xp.clip(ii, 0, W - 1).astype(xp.int32)
            jj = xp.clip(jj, 0, W - 1).astype(xp.int32)
            corners.append((ii, jj, w))
    return corners


def _build_operator_np(theta_deg, W, ts):
    """P (W*W, 2*W*n_theta) with columns ordered (step, position c, angle a):
    col = s*W*n_theta + c*n_theta + a, so the matmul output is already in the final
    (N, 2, W, n_theta) layout after a reshape (output permutation folded into P)."""
    theta_deg = np.asarray(theta_deg, dtype=np.float64)
    n_theta = theta_deg.shape[0]
    masks = [_mask_weights_np(t, W).astype(np.float64) for t in ts]
    P = np.zeros((W * W, 2 * W * n_theta), dtype=np.float64)
    col_c = np.arange(W)[None, :] * n_theta              # (1, W): position offset
    for a in range(n_theta):
        for ii, jj, w in _bilinear_corners(theta_deg[a], W, xp=np):
            rows = ii * W + jj                            # (W, W) flattened source pixel
            for s, m in enumerate(masks):                 # fold normalized hard mask
                vals = m[:, None] * w                     # (W, W) source-pixel weight
                cols = s * W * n_theta + col_c + a        # (1, W) output column
                np.add.at(P, (rows, np.broadcast_to(cols, (W, W))), vals)
    return P.astype(np.float32)


@functools.lru_cache(maxsize=None)
def _cached_operator(W, theta_key, index, steps, geometric):
    seg = _segments(W, steps, geometric)
    ts = (float(seg[4 - index]), float(seg[4 - index + 1]))
    return _build_operator_np(np.asarray(theta_key, dtype=np.float64), W, ts)


# Device-side cache of the padded, dtype-cast operator (built once per config; avoids a
# per-call cast+pad pass over the dominant HBM operand).
_DEVICE_P_CACHE = {}


def _device_operator(W, theta_key, index, steps, geometric, dtype, Kpad, Cpad):
    key = (W, theta_key, index, steps, geometric, jnp.dtype(dtype).name, Kpad, Cpad)
    dev = _DEVICE_P_CACHE.get(key)
    if dev is None:
        P = _cached_operator(W, theta_key, index, steps, geometric)
        K, total = P.shape
        Pp = np.zeros((Kpad, Cpad), dtype=np.float32)
        Pp[:K, :total] = P
        dev = jnp.asarray(Pp).astype(dtype)
        dev = jax.block_until_ready(dev)
        _DEVICE_P_CACHE[key] = dev
    return dev


# ----------------------------------------------------------------------------
# Tile planning
# ----------------------------------------------------------------------------

def _tile_plan(N, K, total, use_bf16, *, m_max=512, col_max=2048):
    """Pick tile sizes.  Large P blocks (multi-MiB) amortize the ~0.35us per-grid-step
    overhead on this HBM-bound kernel; m_tile covers the whole (padded) batch up to 512
    so P streams from HBM once per call; everything stays (8,128)/MXU aligned and the
    double-buffered footprint fits v7x's 64 MiB VMEM with headroom."""
    k_max = 2048 if use_bf16 else 1024          # f32 path: smaller K tile, same budget
    m_tile = min(m_max, _round_up(N, 16))
    k_tile = min(k_max, _round_up(K, 256))
    col_tile = min(col_max, _round_up(total, 256))
    Npad = _round_up(N, m_tile)
    Kpad = _round_up(K, k_tile)
    Cpad = _round_up(total, col_tile)
    # v7x: if batch collapses to a single M tile, keep >=2 column tiles so the column
    # axis (the only remaining "parallel" axis) can feed both TensorCores.
    if Npad // m_tile == 1 and Cpad // col_tile == 1 and total > 512:
        Cpad = _round_up(total, 512)
        col_tile = Cpad // 2                    # multiple of 256 -> lane aligned
    return (int(m_tile), int(col_tile), int(k_tile), int(Npad), int(Kpad), int(Cpad))


# ----------------------------------------------------------------------------
# Pallas kernel: (batch, columns, K)-tiled projection matmul, accumulate in o_ref
# ----------------------------------------------------------------------------

def _radon_matmul_kernel(x_ref, p_ref, o_ref, *, precision):
    # Output block index is constant over the K grid axis, so o_ref stays VMEM-resident
    # across K steps and serves as the f32 accumulator (no scratch needed).
    @pl.when(pl.program_id(2) == 0)
    def _():
        o_ref[...] = jnp.zeros_like(o_ref)

    o_ref[...] += jnp.dot(x_ref[...], p_ref[...],
                          preferred_element_type=jnp.float32,
                          precision=precision)


@functools.partial(jax.jit, static_argnames=("plan", "n_theta", "use_highest"))
def _forward_jit(x, p_dev, *, plan, n_theta, use_highest):
    m_tile, col_tile, k_tile, Npad, Kpad, Cpad = plan
    N, C, W, H = x.shape
    K = W * W

    x_flat = x.reshape(N, K).astype(p_dev.dtype)
    x_p = jnp.pad(x_flat, ((0, Npad - N), (0, Kpad - K)))

    precision = jax.lax.Precision.HIGHEST if use_highest else None
    kernel = functools.partial(_radon_matmul_kernel, precision=precision)

    # VMEM budget: double-buffered x + P blocks plus the resident f32 output block.
    itemsize = p_dev.dtype.itemsize
    vmem_need = 2 * (m_tile * k_tile * itemsize
                     + k_tile * col_tile * itemsize
                     + m_tile * col_tile * 4)
    vmem_limit = int(min(max(vmem_need + (8 << 20), 32 << 20), 56 << 20))

    out = pl.pallas_call(
        kernel,
        out_shape=jax.ShapeDtypeStruct((Npad, Cpad), jnp.float32),
        grid_spec=pltpu.PrefetchScalarGridSpec(
            num_scalar_prefetch=0,
            grid=(Npad // m_tile, Cpad // col_tile, Kpad // k_tile),
            in_specs=[
                pl.BlockSpec((m_tile, k_tile), lambda i, j, k: (i, k)),
                pl.BlockSpec((k_tile, col_tile), lambda i, j, k: (k, j)),
            ],
            out_specs=pl.BlockSpec((m_tile, col_tile), lambda i, j, k: (i, j)),
        ),
        compiler_params=pltpu.CompilerParams(
            dimension_semantics=("parallel", "parallel", "arbitrary"),
            vmem_limit_bytes=vmem_limit,
        ),
    )(x_p, p_dev)

    total = 2 * W * n_theta
    return out[:N, :total].reshape(N, 2, W, n_theta)


# ----------------------------------------------------------------------------
# Module forward equivalent
# ----------------------------------------------------------------------------

def partial_radon_step(x, index, theta_deg=None, steps=8, circle=True,
                       geometric=False, use_bf16=True):
    """JAX/Pallas equivalent of PartialRadonStep.forward (circle=True path).

    x: (N, 1, W, W) float NCHW.  Returns (N, 2, W, n_theta) float32.
    """
    if not circle:
        # TODO(synk): circle=False sqrt(2)-padding path not implemented.
        raise NotImplementedError("circle=False not supported")
    N, C, W, H = x.shape
    assert C == 1 and W == H
    if theta_deg is None:
        theta_np = np.arange(180, dtype=np.float64)
    else:
        theta_np = np.asarray(theta_deg, dtype=np.float64)
    n_theta = int(theta_np.shape[0])
    theta_key = tuple(float(t) for t in theta_np)

    K = W * W
    total = 2 * W * n_theta
    plan = _tile_plan(N, K, total, use_bf16)
    _, _, _, _, Kpad, Cpad = plan

    dtype = jnp.bfloat16 if use_bf16 else jnp.float32
    P_dev = _device_operator(W, theta_key, int(index), int(steps), bool(geometric),
                             dtype, Kpad, Cpad)
    return _forward_jit(x, P_dev, plan=plan, n_theta=n_theta,
                        use_highest=not use_bf16)


# ----------------------------------------------------------------------------
# Pure-JAX reference (explicit gather-based rotation) for correctness check
# ----------------------------------------------------------------------------

def _reference(x, index, theta_deg, steps, geometric=False):
    N, C, W, _ = x.shape
    seg = _segments(W, steps, geometric)
    ts = (float(seg[4 - index]), float(seg[4 - index + 1]))
    img = x[:, 0].astype(jnp.float32)
    masks = [jnp.asarray(_mask_weights_np(t, W)) for t in ts]

    def per_angle(theta):
        rot = jnp.zeros((N, W, W), jnp.float32)
        for ii, jj, w in _bilinear_corners(theta, W, xp=jnp):
            rot = rot + w[None] * img[:, ii, jj]
        return jnp.stack([jnp.einsum('r,nrc->nc', m, rot) for m in masks], axis=1)

    out = jax.vmap(per_angle)(theta_deg.astype(jnp.float32))   # (n_theta, N, 2, W)
    return jnp.transpose(out, (1, 2, 3, 0))                    # (N, 2, W, n_theta)


if __name__ == "__main__":
    key = jax.random.PRNGKey(0)
    N, W = 2, 16
    x = jax.random.normal(key, (N, 1, W, W), dtype=jnp.float32)
    index, steps = 2, 8
    theta = jnp.arange(180, dtype=jnp.float32)

    ref = jax.block_until_ready(_reference(x, index, theta, steps))

    # Exact-semantics check: f32 operand path, precision=HIGHEST, tight tolerance.
    out_f32 = jax.block_until_ready(
        partial_radon_step(x, index=index, steps=steps, use_bf16=False))
    assert out_f32.shape == (N, 2, W, 180), out_f32.shape
    err32 = float(jnp.max(jnp.abs(out_f32 - ref)))
    assert jnp.allclose(out_f32, ref, atol=5e-4, rtol=5e-4), err32

    # Performance path: bf16-streamed operands, f32 accumulation (looser tolerance).
    # NOTE: bf16 tolerance is validated here at W=16 only; re-validate at production W.
    out = jax.block_until_ready(partial_radon_step(x, index=index, steps=steps))
    assert out.shape == (N, 2, W, 180), out.shape
    err16 = float(jnp.max(jnp.abs(out - ref)))
    assert jnp.allclose(out, ref, atol=3e-2, rtol=3e-2), err16

    print("KERNEL_OK")
</pallas_src>

<mosaic_0001>
module attributes {stable_mosaic.version = 11 : i64} {
  func.func @_radon_matmul_kernel(%arg0: i32, %arg1: i32, %arg2: i32, %arg3: memref<16x256xf32, #tpu.memory_space<vmem>>, %arg4: memref<256x2048xf32, #tpu.memory_space<vmem>>, %arg5: memref<16x2048xf32, #tpu.memory_space<vmem>>) attributes {dimension_semantics = [#tpu.dimension_semantics<parallel>, #tpu.dimension_semantics<parallel>, #tpu.dimension_semantics<arbitrary>], iteration_bounds = array<i64: 1, 3, 1>, scalar_prefetch = 0 : i64, scratch_operands = 0 : i64, tpu.core_type = #tpu.core_type<tc>, window_params = [{transform_indices = @transform_0, window_bounds = array<i64: 16, 256>}, {transform_indices = @transform_1, window_bounds = array<i64: 256, 2048>}, {transform_indices = @transform_2, window_bounds = array<i64: 16, 2048>}]} {
    %c0_i32 = arith.constant 0 : i32
    %0 = arith.cmpi eq, %arg2, %c0_i32 : i32
    %1 = arith.extui %0 : i1 to i32
    %c0_i32_0 = arith.constant 0 : i32
    %2 = arith.cmpi ne, %1, %c0_i32_0 : i32
    scf.if %2 {
      %cst_8 = arith.constant 0.000000e+00 : f32
      %9 = vector.broadcast %cst_8 : f32 to vector<16x2048xf32>
      %c0_9 = arith.constant 0 : index
      %c0_10 = arith.constant 0 : index
      %10 = vector.load %arg5[%c0_9, %c0_10] : memref<16x2048xf32, #tpu.memory_space<vmem>>, vector<16x2048xf32>
      tpu.vector_store %arg5[%c0_9, %c0_10], %9 {strides = array<i32>} : memref<16x2048xf32, #tpu.memory_space<vmem>>, vector<16x2048xf32>,
    } else {
    }
    %c0 = arith.constant 0 : index
    %c0_1 = arith.constant 0 : index
    %3 = vector.load %arg5[%c0, %c0_1] : memref<16x2048xf32, #tpu.memory_space<vmem>>, vector<16x2048xf32>
    %c0_2 = arith.constant 0 : index
    %c0_3 = arith.constant 0 : index
    %4 = vector.load %arg3[%c0_2, %c0_3] : memref<16x256xf32, #tpu.memory_space<vmem>>, vector<16x256xf32>
    %c0_4 = arith.constant 0 : index
    %c0_5 = arith.constant 0 : index
    %5 = vector.load %arg4[%c0_4, %c0_5] : memref<256x2048xf32, #tpu.memory_space<vmem>>, vector<256x2048xf32>
    %cst = arith.constant dense<0.000000e+00> : vector<16x2048xf32>
    %6 = tpu.matmul %4, %5, %cst {dimension_numbers = #tpu.dot_dimension_numbers<[1], [0], [0], [1], [0, 0, 1, 1], [], []>, precision = #tpu.contract_precision<fp32>} : vector<16x256xf32>, vector<256x2048xf32>, vector<16x2048xf32> -> vector<16x2048xf32>
    %7 = arith.addf %3, %6 : vector<16x2048xf32>
    %c0_6 = arith.constant 0 : index
    %c0_7 = arith.constant 0 : index
    %8 = vector.load %arg5[%c0_6, %c0_7] : memref<16x2048xf32, #tpu.memory_space<vmem>>, vector<16x2048xf32>
    tpu.vector_store %arg5[%c0_6, %c0_7], %7 {strides = array<i32>} : memref<16x2048xf32, #tpu.memory_space<vmem>>, vector<16x2048xf32>,
    return
  }
  func.func @transform_0(%arg0: i32, %arg1: i32, %arg2: i32) -> (i32, i32) {
    %c0_i32 = arith.constant 0 : i32
    return %arg0, %arg2 : i32, i32
  }
  func.func @transform_1(%arg0: i32, %arg1: i32, %arg2: i32) -> (i32, i32) {
    %c0_i32 = arith.constant 0 : i32
    return %arg2, %arg1 : i32, i32
  }
  func.func @transform_2(%arg0: i32, %arg1: i32, %arg2: i32) -> (i32, i32) {
    %c0_i32 = arith.constant 0 : i32
    return %arg0, %arg1 : i32, i32
  }
}

</mosaic_0001>

<bundles_post_ra>
// kernel: _forward_jit.1
= control target key start
LH: loop header
LB: loop body
LE: loop exit
PB: predicated region body
PF: predicated region fallthrough
CT: control target
= control target key end

     0   :  { %7 = vsyncpa [#allocation3], 0  ;;  %s22200_s0 = inlined_call_operand.vmem [shape: f32[16,256], index: 0, kind: input, shape index: {}]   ;;  %s22201_s1 = inlined_call_operand.hbm [shape: f32[256,6144], index: 1, kind: input, shape index: {}]   ;;  %s22202_s2 = inlined_call_operand.vmem [shape: f32[16,6144], index: 2, kind: output, shape index: {}]  }
   0x1   :  { %9 = vsyncpa [#allocation3 + $0x1], 0  ;;  %s13152_s9 = smov 0   ;;  %s13154_s10 = smov 0  }
   0x2   :  { %s13156_s11 = smov 0   ;;  %s13158_s12 = smov 0  }
   0x3   :  { %s13160_s13 = smov 0   ;;  %s13162_s14 = smov 0  }
   0x4 LB: > { %s12975_s15 = sadd.s32 4294967295, %s13132_s14   ;;  %s30_s16 = sadd.s32 1, %s13128_s13  ;;  %s13132_s14 = sphi %s13162_s14, %s15_s14   ;;  %s13128_s13 = sphi %s13160_s13, %s23354_s13   ;;  %s13124_s12 = sphi %s13158_s12, %s23353_s12   ;;  %s13120_s11 = sphi %s13156_s11, %s23352_s11   ;;  %s13116_s10 = sphi %s13154_s10, %s23351_s10   ;;  %s13112_s9 = sphi %s13152_s9, %s23350_s9  }
   0x5   : > { %p32_p0 = scmp.ge.s32.totalorder %s30_s16, 3  ;;  %s71_s17 = sadd.s32 1, %s13120_s11 }
   0x6   : > { %p78_p1 = scmp.ne.s32.totalorder %s13120_s11, %s13116_s10  ;;  %p79_p2 = scmp.eq.s32.totalorder %s13132_s14, 0 }
   0x7   : > { %s23356_s16 = smov (%p32_p0, %s30_s16), 0  ;;  %p84_p4 = scmp.ne.s32.totalorder %s13116_s10, %s13112_s9 }
   0x8   : > { %p13188_p3 = por %p79_p2, %p78_p1  ;;  %s67_s19 = ssub.s32 %s13128_s13, %s23356_s16 }
   0x9   : > { %p85_p5 = scmp.eq.s32.totalorder %s12975_s15, 0  ;;  %p69_p6 = scmp.eq.s32.totalorder %s67_s19, 0 }
   0xa   : > { %p110_p7 = scmp.eq.s32.totalorder %s12975_s15, 2  ;;  %p12999_p10 = scmp.lt.s32.totalorder %s13132_s14, 3 }
   0xb   : > { %p13195_p8 = por %p85_p5, %p84_p4  ;;  %s151_s23 = sand.u32 1, %s13120_s11  }
   0xc   : > { %s13200_s21 = scalar_select %p69_p6, %s13120_s11, %s71_s17  }
   0xd   : > { %p13202_p9 = por %p110_p7, %p78_p1  ;;  %s12991_s24 = sshll.u32 %s13128_s13, 7 }
   0xe   : > { %s12980_s25 = sshll.u32 %s151_s23, 12  ;;  %s163_s28 = scalar_lea.hbm %s22201_s1, %s12991_s24 }
   0xf   : > { %s164_s29 = sshll.u32 %s163_s28, 4  ;;  %s155_s30 = scalar_lea.vmem [#allocation2], %s12980_s25  ;;  %s165_s29 = int_to_ptr.hbm [resolvable:$true] %s164_s29 }
  0x10   : > { %s166_s3 = sshll.u32 %s155_s30, 4  ;;  %p12996_p11 = pnand %p12999_p10, %p13188_p3  ;;  %s167_s3 = int_to_ptr.vmem [resolvable:$true] %s166_s3 }
  0x11   : > { %p12983_p12 = scmp.ge.s32.totalorder %s13132_s14, 1  ;;  %s152_s4 = scalar_lea.sflag [#allocation3], %s151_s23 }
  0x12   : > { %s13134_s5 = smov 6144   ;;  %s13135_s6 = smov 2048  }
  0x13   : > { %s13136_s7 = smov 128   ;;  %p174_p13 = scmp.lt.s32.totalorder %s13132_s14, 4 }
  0x14   : > { %12998 = dma.hbm_to_vmem [thread:$0]  (!%p12996_p11), %s165_s29, 65536, %s167_s3, %s152_s4, %s13134_s5, %s13135_s6, %s13136_s7  }
  0x15   : > { %p175_p0 = pnand %p12983_p12, %p174_p13 }
  0x17   : > { %178 = sbr.rel (%p175_p0) target bundleno = 1914 (0x77a), region = 28 }
  0x1c   : > { %s13217_s8 = sand.u32 1, %s13116_s10  }
  0x1d   : > { %s12984_s9 = sshll.u32 %s13217_s8, 12  ;;  %s181_s15 = scalar_lea.sflag [#allocation3], %s13217_s8 }
  0x1e   : > { %s13221_s17 = scalar_lea.vmem [#allocation2], %s12984_s9 }
  0x1f   : > { %13107 = dma.done.wait (%p13195_p8), %s181_s15, 65536  }
  0x20   : > { %13109 = vsyncadd (%p13195_p8), %s181_s15, 4294901760  ;;  %v543_v0 = vld [vmem:[%s13221_s17 + $0x780] sm:$0xff]  ;;  %s12985_s28 = sshll.u32 %s13217_s8, 8  ;;  %s12992_s30 = sshll.u32 (%p13202_p9), %s13124_s12, 7 }
  0x21   : > { %v527_v1 = vld [vmem:[%s13221_s17 + $0x700] sm:$0xff]  ;;  %v13230_v3 = vand.u32 4294901760, %v543_v0  ;;  %s14629_s29 = scalar_lea.vmem [#allocation4], %s12985_s28  ;;  %s22118_s5 = scalar_lea.vmem (%p13202_p9), %s22202_s2, %s12992_s30 }
  0x22   : > { %v511_v2 = vld [vmem:[%s13221_s17 + $0x680] sm:$0xff]  ;;  %v13232_v4 = vand.u32 4294901760, %v527_v1 }
  0x23   : > { %v13234_v5 = vand.u32 4294901760, %v511_v2  ;;  %v495_v6 = vld [vmem:[%s13221_s17 + $0x600] sm:$0xff]  ;;  %816 = vmatpush.msra.mxu0 %v13230_v3  ;;  %v13249_v14 = vsub.f32 %v543_v0, %v13230_v3  ;;  %1029 = vmatpush.msra.mxu3 %v13230_v3 }
  0x24   : > { %v479_v7 = vld [vmem:[%s13221_s17 + $0x580] sm:$0xff]  ;;  %v13239_v9 = vand.u32 4294901760, %v495_v6  ;;  %v13252_v15 = vsub.f32 %v527_v1, %v13232_v4 }
  0x25   : > { %v463_v8 = vld [vmem:[%s13221_s17 + $0x500] sm:$0xff]  ;;  %v13241_v10 = vand.u32 4294901760, %v479_v7  ;;  %v13256_v16 = vsub.f32 %v511_v2, %v13234_v5  ;;  %818 = vmatpush.msra.mxu0 %v13232_v4  ;;  %971 = vmatpush.msra.mxu2 %v13249_v14  ;;  %v866_v22 = vand.u32 4294901760, %v13249_v14 }
  0x26   : > { %v13243_v11 = vand.u32 4294901760, %v463_v8  ;;  %v447_v12 = vld [vmem:[%s13221_s17 + $0x480] sm:$0xff]  ;;  %v13262_v19 = vsub.f32 %v495_v6, %v13239_v9  ;;  %v872_v23 = vand.u32 4294901760, %v13252_v15  ;;  %1031 = vmatpush.msra.mxu3 %v13232_v4 }
  0x27   : > { %v431_v13 = vld [vmem:[%s13221_s17 + $0x400] sm:$0xff]  ;;  %v13258_v17 = vand.u32 4294901760, %v447_v12  ;;  %v13265_v20 = vsub.f32 %v479_v7, %v13241_v10  ;;  %v22216_v24 = vand.u32 4294901760, %v13256_v16  ;;  %820 = vmatpush.msra.mxu0 %v13234_v5  ;;  %974 = vmatpush.msra.mxu2 %v13252_v15  ;;  %v867_v30 = vsub.f32 %v13249_v14, %v866_v22 }
  0x28   : > { %v415_v18 = vld [vmem:[%s13221_s17 + $0x380] sm:$0xff]  ;;  %v13267_v21 = vand.u32 4294901760, %v431_v13  ;;  %v13275_v25 = vsub.f32 %v463_v8, %v13243_v11  ;;  %v22215_v27 = vand.u32 4294901760, %v13262_v19  ;;  %v873_v31 = vsub.f32 %v13252_v15, %v872_v23  ;;  %1033 = vmatpush.msra.mxu3 %v13234_v5 }
  0x29   : > { %v399_v26 = vld [vmem:[%s13221_s17 + $0x300] sm:$0xff]  ;;  %v13280_v28 = vand.u32 4294901760, %v415_v18  ;;  %v13283_v29 = vsub.f32 %v447_v12, %v13258_v17  ;;  %v879_v32 = vsub.f32 %v13256_v16, %v22216_v24  ;;  %v22212_v33 = vand.u32 4294901760, %v13265_v20  ;;  %822 = vmatpush.msra.mxu0 %v13239_v9  ;;  %977 = vmatpush.msra.mxu2 %v13256_v16 }
  0x2a   : > { %v13298_v34 = vand.u32 4294901760, %v399_v26  ;;  %v13301_v35 = vsub.f32 %v431_v13, %v13267_v21  ;;  %v383_v36 = vld [vmem:[%s13221_s17 + $0x280] sm:$0xff]  ;;  %v868_v37 = vand.u32 4294901760, %v867_v30  ;;  %v874_v38 = vand.u32 4294901760, %v873_v31  ;;  %1035 = vmatpush.msra.mxu3 %v13239_v9 }
  0x2b   : > { %v885_v39 = vsub.f32 %v13262_v19, %v22215_v27  ;;  %v22211_v40 = vand.u32 4294901760, %v13275_v25  ;;  %v22210_v41 = vand.u32 4294901760, %v13283_v29  ;;  %v367_v42 = vld [vmem:[%s13221_s17 + $0x200] sm:$0xff]  ;;  %824 = vmatpush.msra.mxu0 %v13241_v10  ;;  %v880_v43 = vand.u32 4294901760, %v879_v32  ;;  %980 = vmatpush.msra.mxu2 %v13262_v19 }
  0x2c   : > { %869 = vmatpush.msra.mxu1 %v868_v37  ;;  %v891_v44 = vsub.f32 %v13265_v20, %v22212_v33  ;;  %v13317_v45 = vand.u32 4294901760, %v383_v36  ;;  %v13320_v46 = vsub.f32 %v415_v18, %v13280_v28  ;;  %1037 = vmatpush.msra.mxu3 %v13241_v10  ;;  %v22208_v47 = vand.u32 4294901760, %v13301_v35  ;;  %v351_v48 = vld [vmem:[%s13221_s17 + $0x180] sm:$0xff] }
  0x2d   : > { %826 = vmatpush.msra.mxu0 %v13243_v11  ;;  %v886_v49 = vand.u32 4294901760, %v885_v39  ;;  %v897_v50 = vsub.f32 %v13275_v25, %v22211_v40  ;;  %v13330_v51 = vand.u32 4294901760, %v367_v42  ;;  %v13333_v52 = vsub.f32 %v399_v26, %v13298_v34  ;;  %983 = vmatpush.msra.mxu2 %v13265_v20  ;;  %v335_v54 = vld [vmem:[%s13221_s17 + $0x100] sm:$0xff] }
  0x2e   : > { %875 = vmatpush.msra.mxu1 %v874_v38  ;;  %1039 = vmatpush.msra.mxu3 %v13243_v11  ;;  %v903_v53 = vsub.f32 %v13283_v29, %v22210_v41  ;;  %v892_v55 = vand.u32 4294901760, %v891_v44  ;;  %v13342_v56 = vand.u32 4294901760, %v351_v48  ;;  %v22207_v57 = vand.u32 4294901760, %v13320_v46  ;;  %v799_v59 = vld [vmem:[%s13221_s17 + $0xf80] sm:$0xff] }
  0x2f   : > { %828 = vmatpush.msra.mxu0 %v13258_v17  ;;  %v13346_v58 = vsub.f32 %v383_v36, %v13317_v45  ;;  %986 = vmatpush.msra.mxu2 %v13275_v25  ;;  %v909_v60 = vsub.f32 %v13301_v35, %v22208_v47  ;;  %v319_v61 = vld [vmem:[%s13221_s17 + $0x80] sm:$0xff]  ;;  %v898_v62 = vand.u32 4294901760, %v897_v50  ;;  %v13356_v63 = vand.u32 4294901760, %v335_v54 }
  0x30   : > { %881 = vmatpush.msra.mxu1 %v880_v43  ;;  %1041 = vmatpush.msra.mxu3 %v13258_v17  ;;  %v22205_v0 = vand.u32 4294901760, %v13333_v52  ;;  %v13360_v1 = vsub.f32 %v367_v42, %v13330_v51  ;;  %v783_v2 = vld [vmem:[%s13221_s17 + $0xf00] sm:$0xff]  ;;  %v904_v6 = vand.u32 4294901760, %v903_v53  ;;  %v13366_v8 = vand.u32 4294901760, %v799_v59 }
  0x31   : > { %830 = vmatpush.msra.mxu0 %v13267_v21  ;;  %989 = vmatpush.msra.mxu2 %v13283_v29  ;;  %v303_v7 = vld [vmem:[%s13221_s17] sm:$0xff]  ;;  %v915_v12 = vsub.f32 %v13320_v46, %v22207_v57  ;;  %v13372_v13 = vand.u32 4294901760, %v319_v61  ;;  %v22204_v18 = vand.u32 4294901760, %v13346_v58  ;;  %v13376_v26 = vsub.f32 %v351_v48, %v13342_v56 }
  0x32   : > { %887 = vmatpush.msra.mxu1 %v886_v49  ;;  %1043 = vmatpush.msra.mxu3 %v13267_v21  ;;  %v767_v30 = vld [vmem:[%s13221_s17 + $0xe80] sm:$0xff]  ;;  %v910_v31 = vand.u32 4294901760, %v909_v60  ;;  %v13381_v32 = vand.u32 4294901760, %v783_v2  ;;  %v921_v36 = vsub.f32 %v13333_v52, %v22205_v0  ;;  %v13387_v37 = vand.u32 4294901760, %v303_v7 }
  0x33   : > { %832 = vmatpush.msra.mxu0 %v13280_v28  ;;  %992 = vmatpush.msra.mxu2 %v13301_v35  ;;  %v22203_v38 = vand.u32 4294901760, %v13360_v1  ;;  %v13391_v39 = vsub.f32 %v335_v54, %v13356_v63  ;;  %v751_v42 = vld [vmem:[%s13221_s17 + $0xe00] sm:$0xff]  ;;  %v13397_v43 = vsub.f32 %v799_v59, %v13366_v8  ;;  %v13399_v44 = vand.u32 4294901760, %v767_v30 }
  0x34   : > { %893 = vmatpush.msra.mxu1 %v892_v55  ;;  %1045 = vmatpush.msra.mxu3 %v13280_v28  ;;  %22532 = vst [vmem:[#allocation6_spill] sm:$0xff] %v13387_v37  ;;  %v916_v48 = vand.u32 4294901760, %v915_v12  ;;  %v927_v49 = vsub.f32 %v13346_v58, %v22204_v18  ;;  %v22206_v50 = vand.u32 4294901760, %v13376_v26  ;;  %v13407_v53 = vsub.f32 %v319_v61, %v13372_v13  ;;  %v735_v59 = vld [vmem:[%s13221_s17 + $0xd80] sm:$0xff] }
  0x35   : > { %834 = vmatpush.msra.mxu0 %v13298_v34  ;;  %995 = vmatpush.msra.mxu2 %v13320_v46  ;;  %v13412_v54 = vsub.f32 %v783_v2, %v13381_v32  ;;  %v13414_v55 = vand.u32 4294901760, %v751_v42  ;;  %v922_v60 = vand.u32 4294901760, %v921_v36  ;;  %v933_v61 = vsub.f32 %v13360_v1, %v22203_v38 }
  0x36   : > { %899 = vmatpush.msra.mxu1 %v898_v62  ;;  %1047 = vmatpush.msra.mxu3 %v13298_v34  ;;  %v22209_v62 = vand.u32 4294901760, %v13391_v39  ;;  %v22213_v2 = vand.u32 4294901760, %v13397_v43  ;;  %v13429_v12 = vsub.f32 %v767_v30, %v13399_v44  ;;  %v928_v36 = vand.u32 4294901760, %v927_v49 }
  0x37   : > { %836 = vmatpush.msra.mxu0 %v13317_v45  ;;  %998 = vmatpush.msra.mxu2 %v13333_v52  ;;  %v22214_v38 = vand.u32 4294901760, %v13407_v53  ;;  %v13437_v18 = vand.u32 4294901760, %v735_v59  ;;  %v22217_v30 = vand.u32 4294901760, %v13412_v54  ;;  %v13443_v0 = vsub.f32 %v751_v42, %v13414_v55 }
  0x38   : > { %905 = vmatpush.msra.mxu1 %v904_v6  ;;  %1049 = vmatpush.msra.mxu3 %v13317_v45  ;;  %v13423_v6 = vsub.f32 %v303_v7, %v13387_v37  ;;  %v939_v7 = vsub.f32 %v13376_v26, %v22206_v50  ;;  %v934_v49 = vand.u32 4294901760, %v933_v61  ;;  %v945_v50 = vsub.f32 %v13391_v39, %v22209_v62  ;;  %v687_v61 = vld [vmem:[%s13221_s17 + $0xc00] sm:$0xff] }
  0x39   : > { %838 = vmatpush.msra.mxu0 %v13330_v51  ;;  %1001 = vmatpush.msra.mxu2 %v13346_v58  ;;  %v1239_v42 = vsub.f32 %v13397_v43, %v22213_v2  ;;  %v951_v41 = vsub.f32 %v13407_v53, %v22214_v38  ;;  %v13465_v40 = vsub.f32 %v735_v59, %v13437_v18  ;;  %v13483_v24 = vand.u32 4294901760, %v687_v61 }
  0x3a   : > { %911 = vmatpush.msra.mxu1 %v910_v31  ;;  %1051 = vmatpush.msra.mxu3 %v13330_v51  ;;  %v719_v31 = vld [vmem:[%s13221_s17 + $0xd00] sm:$0xff]  ;;  %v22218_v57 = vand.u32 4294901760, %v13423_v6  ;;  %v940_v62 = vand.u32 4294901760, %v939_v7  ;;  %v1245_v2 = vsub.f32 %v13412_v54, %v22217_v30  ;;  %v946_v38 = vand.u32 4294901760, %v945_v50 }
  0x3b   : > { %840 = vmatpush.msra.mxu0 %v13342_v56  ;;  %1004 = vmatpush.msra.mxu2 %v13360_v1  ;;  %v13451_v47 = vand.u32 4294901760, %v719_v31  ;;  %v671_v7 = vld [vmem:[%s13221_s17 + $0xb80] sm:$0xff]  ;;  %v1240_v30 = vand.u32 4294901760, %v1239_v42  ;;  %v22533_v42 = vand.u32 4294901760, %v13443_v0  ;;  %v22534_v15 = vand.u32 4294901760, %v13256_v16 }
  0x3c   : > { %917 = vmatpush.msra.mxu1 %v916_v48  ;;  %1053 = vmatpush.msra.mxu3 %v13342_v56  ;;  %v703_v48 = vld [vmem:[%s13221_s17 + $0xc80] sm:$0xff]  ;;  %v957_v59 = vsub.f32 %v13423_v6, %v22218_v57  ;;  %v13497_v14 = vand.u32 4294901760, %v671_v7 }
  0x3d   : > { %842 = vmatpush.msra.mxu0 %v13356_v63  ;;  %1007 = vmatpush.msra.mxu2 %v13376_v26  ;;  %v13467_v33 = vand.u32 4294901760, %v703_v48  ;;  %v13481_v27 = vsub.f32 %v719_v31, %v13451_v47  ;;  %v13509_v31 = vsub.f32 %v687_v61, %v13483_v24 }
  0x3e   : > { %923 = vmatpush.msra.mxu1 %v922_v60  ;;  %1055 = vmatpush.msra.mxu3 %v13356_v63  ;;  %v22219_v60 = vand.u32 4294901760, %v13429_v12 }
  0x3f   : > { %844 = vmatpush.msra.mxu0 %v13372_v13  ;;  %1010 = vmatpush.msra.mxu2 %v13391_v39  ;;  %v13495_v57 = vsub.f32 %v703_v48, %v13467_v33  ;;  %v22221_v48 = vand.u32 4294901760, %v13481_v27 }
  0x40   : > { %929 = vmatpush.msra.mxu1 %v928_v36  ;;  %1057 = vmatpush.msra.mxu3 %v13372_v13  ;;  %v1251_v50 = vsub.f32 %v13429_v12, %v22219_v60  ;;  %v952_v36 = vand.u32 4294901760, %v951_v41  ;;  %v639_v41 = vld [vmem:[%s13221_s17 + $0xa80] sm:$0xff]  ;;  %v958_v60 = vand.u32 4294901760, %v957_v59 }
  0x41   : > { %846 = vmatpush.msra.mxu0 %v13387_v37  ;;  %1013 = vmatpush.msra.mxu2 %v13407_v53  ;;  %v13526_v16 = vand.u32 4294901760, %v639_v41  ;;  %v623_v59 = vld [vmem:[%s13221_s17 + $0xa00] sm:$0xff] }
  0x42   : > { %935 = vmatpush.msra.mxu1 %v934_v49  ;;  %v655_v49 = vld [vmem:[%s13221_s17 + $0xb00] sm:$0xff]  ;;  %1059 = vmatpush.msra.mxu3 %v13387_v37 }
  0x43   : > { %1076 = vmatpush.msrb.mxu0 %v866_v22  ;;  %1016 = vmatpush.msra.mxu2 %v13423_v6  ;;  %v1246_v22 = vand.u32 4294901760, %v1245_v2  ;;  %v13511_v37 = vand.u32 4294901760, %v655_v49  ;;  %v299_v2 = vld [vmem:[%s22200_s0] sm:$0xff] }
  0x44   : > { %941 = vmatpush.msra.mxu1 %v940_v62  ;;  %v1257_v62 = vsub.f32 %v13443_v0, %v22533_v42  ;;  %1241 = vmatpush.msrb.mxu3 %v1240_v30  ;;  %v13524_v42 = vsub.f32 %v671_v7, %v13497_v14  ;;  %v22536_v30 = vand.u32 4294901760, %v13262_v19  ;;  %v22538_v19 = vand.u32 4294901760, %v13265_v20 }
  0x45   : > { %1080 = vmatpush.msrb.mxu0 %v872_v23  ;;  %1188 = vmatpush.msrb.mxu2 %v13366_v8  ;;  %v1252_v23 = vand.u32 4294901760, %v1251_v50  ;;  %v13536_v7 = vsub.f32 %v655_v49, %v13511_v37  ;;  %v22540_v20 = vand.u32 4294901760, %v13275_v25  ;;  %v591_v25 = vld [vmem:[%s13221_s17 + $0x900] sm:$0xff] }
  0x46   : > { %947 = vmatpush.msra.mxu1 %v946_v38  ;;  %v22535_v38 = vand.u32 4294901760, %v13465_v40  ;;  %1247 = vmatpush.msrb.mxu3 %v1246_v22  ;;  %v1258_v50 = vand.u32 4294901760, %v1257_v62  ;;  %v22539_v22 = vand.u32 4294901760, %v13495_v57  ;;  %v22223_v49 = vand.u32 4294901760, %v13524_v42 }
  0x47   : > { %1084 = vmatpush.msrb.mxu0 %v22534_v15  ;;  %1190 = vmatpush.msrb.mxu2 %v13381_v32  ;;  %v22224_v15 = vand.u32 4294901760, %v13509_v31 }
  0x48   : > { %953 = vmatpush.msra.mxu1 %v952_v36  ;;  %v1263_v61 = vsub.f32 %v13465_v40, %v22535_v38  ;;  %v1269_v36 = vsub.f32 %v13481_v27, %v22221_v48  ;;  %v13538_v38 = vand.u32 4294901760, %v299_v2  ;;  %1253 = vmatpush.msrb.mxu3 %v1252_v23  ;;  %v1275_v62 = vsub.f32 %v13495_v57, %v22539_v22  ;;  %v607_v48 = vld [vmem:[%s13221_s17 + $0x980] sm:$0xff] }
  0x49   : > { %1088 = vmatpush.msrb.mxu0 %v22536_v30  ;;  %1192 = vmatpush.msrb.mxu2 %v13399_v44  ;;  %v13550_v30 = vsub.f32 %v639_v41, %v13526_v16  ;;  %v22222_v41 = vand.u32 4294901760, %v13536_v7  ;;  %v22541_v22 = vand.u32 4294901760, %v13283_v29 }
  0x4a   : > { %959 = vmatpush.msra.mxu1 %v958_v60  ;;  %22537 = vst [vmem:[#allocation7_spill] sm:$0xff] %v13538_v38  ;;  %v1264_v60 = vand.u32 4294901760, %v1263_v61  ;;  %1259 = vmatpush.msrb.mxu3 %v1258_v50  ;;  %v1270_v23 = vand.u32 4294901760, %v1269_v36  ;;  %v1281_v61 = vsub.f32 %v13509_v31, %v22224_v15  ;;  %v1276_v50 = vand.u32 4294901760, %v1275_v62  ;;  %v559_v15 = vld [vmem:[%s13221_s17 + $0x800] sm:$0xff] }
  0x4b   : > { %1092 = vmatpush.msrb.mxu0 %v22538_v19  ;;  %1194 = vmatpush.msrb.mxu2 %v13414_v55  ;;  %v13564_v19 = vsub.f32 %v299_v2, %v13538_v38  ;;  %v1287_v36 = vsub.f32 %v13524_v42, %v22223_v49  ;;  %v22542_v2 = vand.u32 4294901760, %v13301_v35  ;;  %v1293_v35 = vsub.f32 %v13536_v7, %v22222_v41 }
  0x4c   : > { %1147 = vmatpush.msrb.mxu1 %v13230_v3  ;;  %v13556_v3 = vand.u32 4294901760, %v623_v59  ;;  %1265 = vmatpush.msrb.mxu3 %v1264_v60  ;;  %v301_v60 = vld [vmem:[%s22200_s0 + $0x10] sm:$0xff]  ;;  %v1282_v62 = vand.u32 4294901760, %v1281_v61 }
  0x4d   : > { %1096 = vmatpush.msrb.mxu0 %v22540_v20  ;;  %1196 = vmatpush.msrb.mxu2 %v13437_v18  ;;  %v1298_v20 = vand.u32 4294901760, %v13550_v30  ;;  %v13608_v49 = vand.u32 4294901760, %v301_v60 }
  0x4e   : > { %1149 = vmatpush.msrb.mxu1 %v13232_v4  ;;  %v13570_v4 = vand.u32 4294901760, %v607_v48  ;;  %v13581_v29 = vsub.f32 %v623_v59, %v13556_v3  ;;  %1271 = vmatpush.msrb.mxu3 %v1270_v23  ;;  %v22543_v59 = vand.u32 4294901760, %v13320_v46  ;;  %v1288_v23 = vand.u32 4294901760, %v1287_v36 }
  0x4f   : > { %1100 = vmatpush.msrb.mxu0 %v22541_v22  ;;  %1198 = vmatpush.msrb.mxu2 %v13451_v47  ;;  %v575_v22 = vld [vmem:[%s13221_s17 + $0x880] sm:$0xff]  ;;  %v1299_v61 = vsub.f32 %v13550_v30, %v1298_v20  ;;  %22544 = vst [vmem:[#allocation8_spill] sm:$0xff] %v13608_v49  ;;  %v22545_v46 = vand.u32 4294901760, %v13333_v52 }
  0x50   : > { %1151 = vmatpush.msrb.mxu1 %v13234_v5  ;;  %v13583_v5 = vand.u32 4294901760, %v591_v25  ;;  %1277 = vmatpush.msrb.mxu3 %v1276_v50  ;;  %v13606_v41 = vand.u32 4294901760, %v575_v22  ;;  %v1294_v50 = vand.u32 4294901760, %v1293_v35  ;;  %v22548_v35 = vand.u32 4294901760, %v13360_v1 }
  0x51   : > { %1104 = vmatpush.msrb.mxu0 %v22542_v2  ;;  %1200 = vmatpush.msrb.mxu2 %v13467_v33  ;;  %v13600_v2 = vsub.f32 %v607_v48, %v13570_v4  ;;  %v22549_v1 = vand.u32 4294901760, %v13376_v26  ;;  %v22552_v26 = vand.u32 4294901760, %v13391_v39 }
  0x52   : > { %1153 = vmatpush.msrb.mxu1 %v13239_v9  ;;  %v13594_v9 = vand.u32 4294901760, %v13564_v19  ;;  %v13616_v48 = vsub.f32 %v591_v25, %v13583_v5  ;;  %1283 = vmatpush.msrb.mxu3 %v1282_v62  ;;  %v1300_v25 = vand.u32 4294901760, %v1299_v61  ;;  %v13632_v62 = vsub.f32 %v575_v22, %v13606_v41 }
  0x53   : > { %1108 = vmatpush.msrb.mxu0 %v22543_v59  ;;  %1202 = vmatpush.msrb.mxu2 %v13483_v24  ;;  %v22546_v59 = vand.u32 4294901760, %v13346_v58  ;;  %v1310_v52 = vand.u32 4294901760, %v13600_v2 }
  0x54   : > { %1155 = vmatpush.msrb.mxu1 %v13241_v10  ;;  %v1304_v10 = vand.u32 4294901760, %v13581_v29  ;;  %v850_v36 = vsub.f32 %v13564_v19, %v13594_v9  ;;  %1289 = vmatpush.msrb.mxu3 %v1288_v23  ;;  %v1316_v58 = vand.u32 4294901760, %v13616_v48  ;;  %v300_v23 = vld [vmem:[%s22200_s0 + $0x8] sm:$0xff]  ;;  %v1322_v61 = vand.u32 4294901760, %v13632_v62 }
  0x55   : > { %1112 = vmatpush.msrb.mxu0 %v22545_v46  ;;  %1204 = vmatpush.msrb.mxu2 %v13497_v14  ;;  %v13629_v46 = vsub.f32 %v301_v60, %v13608_v49 }
  0x56   : > { %1157 = vmatpush.msrb.mxu1 %v13243_v11  ;;  %v13625_v11 = vand.u32 4294901760, %v559_v15  ;;  %1295 = vmatpush.msrb.mxu3 %v1294_v50  ;;  %v13645_v22 = vand.u32 4294901760, %v850_v36  ;;  %v13661_v36 = vand.u32 4294901760, %v300_v23 }
  0x57   : > { %1116 = vmatpush.msrb.mxu0 %v22546_v59  ;;  %1206 = vmatpush.msrb.mxu2 %v13511_v37  ;;  %22547 = vst [vmem:[#allocation9_spill] sm:$0xff] %v13629_v46  ;;  %v13659_v50 = vand.u32 4294901760, %v13629_v46  ;;  %v22553_v59 = vand.u32 4294901760, %v13407_v53 }
  0x58   : > { %1159 = vmatpush.msrb.mxu1 %v13258_v17  ;;  %v1305_v17 = vsub.f32 %v13581_v29, %v1304_v10  ;;  %v13654_v60 = vsub.f32 %v559_v15, %v13625_v11  ;;  %1019 = vmatmul.f32.vlgmr.msra.gmra.mxu2 %v13564_v19  ;;  %22551 = vst [vmem:[#allocation11_spill] sm:$0xff] %v13661_v36 }
  0x59   : > { %1120 = vmatpush.msrb.mxu0 %v22548_v35  ;;  %1208 = vmatpush.msrb.mxu2 %v13526_v16  ;;  %22550 = vst [vmem:[#allocation10_spill] sm:$0xff] %v13659_v50  ;;  %v1317_v15 = vsub.f32 %v13616_v48, %v1316_v58  ;;  %v858_v35 = vsub.f32 %v13629_v46, %v13659_v50 }
  0x5a   : > { %1161 = vmatpush.msrb.mxu1 %v13267_v21  ;;  %v1311_v21 = vsub.f32 %v13600_v2, %v1310_v52  ;;  %1301 = vmatpush.msrb.mxu3 %v1300_v25  ;;  %v1328_v39 = vand.u32 4294901760, %v13654_v60 }
  0x5b   : > { %1124 = vmatpush.msrb.mxu0 %v22549_v1  ;;  %1210 = vmatpush.msrb.mxu2 %v13556_v3  ;;  %v1318_v53 = vand.u32 4294901760, %v1317_v15  ;;  %v22555_v1 = vand.u32 4294901760, %v13423_v6  ;;  %v22558_v6 = vand.u32 4294901760, %v13397_v43  ;;  %v22561_v15 = vld [vmem:[#allocation6_spill] sm:$0xff] }
  0x5c   : > { %1163 = vmatpush.msrb.mxu1 %v13280_v28  ;;  %v1306_v28 = vand.u32 4294901760, %v1305_v17  ;;  %852 = vmatmul.f32.vlgmr.msra.gmra.mxu0 %v13645_v22  ;;  %v1312_v25 = vand.u32 4294901760, %v1311_v21  ;;  %v13683_v17 = vsub.f32 %v300_v23, %v13661_v36  ;;  %v13695_v21 = vand.u32 4294901760, %v858_v35  ;;  %v416_v35 = vld [vmem:[%s13221_s17 + $0x388] sm:$0xff] }
  0x5d   : > { %1128 = vmatpush.msrb.mxu0 %v22552_v26  ;;  %1063 = vmatmul.f32.vlgmr.msra.gmra.mxu3 %v13594_v9 }
  0x5e   : > { %1165 = vmatpush.msrb.mxu1 %v13298_v34  ;;  %1212 = vmatpush.msrb.mxu2 %v13570_v4  ;;  %v1323_v34 = vsub.f32 %v13632_v62, %v1322_v61  ;;  %22554 = vst [vmem:[#allocation12_spill] sm:$0xff] %v13683_v17  ;;  %v13698_v26 = vand.u32 4294901760, %v13683_v17 }
  0x5f   : > { %1132 = vmatpush.msrb.mxu0 %v22553_v59  ;;  %1307 = vmatpush.msrb.mxu3 %v1306_v28  ;;  %22556 = vst [vmem:[#allocation13_spill] sm:$0xff] %v13695_v21  ;;  %v22564_v59 = vand.u32 4294901760, %v13443_v0 }
  0x60   : > { %1167 = vmatpush.msrb.mxu1 %v13317_v45  ;;  %1214 = vmatpush.msrb.mxu2 %v13583_v5  ;;  %v1329_v45 = vsub.f32 %v13654_v60, %v1328_v39  ;;  %v1324_v23 = vand.u32 4294901760, %v1323_v34  ;;  %22557 = vst [vmem:[#allocation14_spill] sm:$0xff] %v13698_v26  ;;  %v432_v34 = vld [vmem:[%s13221_s17 + $0x408] sm:$0xff] }
  0x61   : > { %961 = vmatmul.f32.vlgmr.msra.gmra.mxu1 %v13538_v38  ;;  %1136 = vmatpush.msrb.mxu0 %v22555_v1 }
  0x62   : > { %1169 = vmatpush.msrb.mxu1 %v13330_v51  ;;  %1313 = vmatpush.msrb.mxu3 %v1312_v25  ;;  %v1330_v51 = vand.u32 4294901760, %v1329_v45  ;;  %v400_v45 = vld [vmem:[%s13221_s17 + $0x308] sm:$0xff] }
  0x63   : > { %1343 = vmatpush.msra.mxu0 %v13397_v43  ;;  %1216 = vmatpush.msrb.mxu2 %v13606_v41  ;;  %v302_v43 = vld [vmem:[%s22200_s0 + $0x18] sm:$0xff] }
  0x64   : > { %1171 = vmatpush.msrb.mxu1 %v13342_v56  ;;  %1319 = vmatpush.msrb.mxu3 %v1318_v53  ;;  %v1222_v56 = vsub.f32 %v13683_v17, %v13698_v26 }
  0x65   : > { %1024 = vmatmul.f32.gmra.mxu2 %v13629_v46  ;;  %1346 = vmatpush.msra.mxu0 %v13412_v54 }
  0x66   : > { %1173 = vmatpush.msrb.mxu1 %v13356_v63  ;;  %1218 = vmatpush.msrb.mxu2 %v13625_v11  ;;  %v22559_v63 = vand.u32 4294901760, %v13412_v54  ;;  %v13717_v28 = vand.u32 4294901760, %v1222_v56  ;;  %v13731_v54 = vand.u32 4294901760, %v302_v43  ;;  %v13882_v56 = vand.u32 4294901760, %v416_v35 }
  0x67   : > { %1325 = vmatpush.msrb.mxu3 %v1324_v23  ;;  %860 = vmatmul.f32.gmra.mxu0 %v13695_v21 }
  0x68   : > { %1069 = vmatmul.f32.gmra.mxu3 %v13659_v50  ;;  %1349 = vmatpush.msra.mxu0 %v13429_v12  ;;  %22560 = vst [vmem:[#allocation15_spill] sm:$0xff] %v13717_v28  ;;  %v672_v50 = vld [vmem:[%s13221_s17 + $0xb88] sm:$0xff] }
  0x69   : > { %1448 = vmatpush.msra.mxu2 %v22558_v6  ;;  %1175 = vmatpush.msrb.mxu1 %v13372_v13  ;;  %v22562_v13 = vand.u32 4294901760, %v13429_v12  ;;  %22563 = vst [vmem:[#allocation6_spill] sm:$0xff] %v13731_v54  ;;  %v13744_v12 = vsub.f32 %v302_v43, %v13731_v54 }
  0x6a   : > { %1331 = vmatpush.msrb.mxu3 %v1330_v51  ;;  %965 = vmatmul.f32.gmra.mxu1 %v13608_v49 }
  0x6b   : > { %1352 = vmatpush.msra.mxu0 %v13443_v0  ;;  %1452 = vmatpush.msra.mxu2 %v22559_v63  ;;  %22566 = vst [vmem:[#allocation16_spill] sm:$0xff] %v13744_v12  ;;  %v22567_v0 = vand.u32 4294901760, %v13481_v27 }
  0x6c   : > { %1519 = vmatpush.msra.mxu3 %v13366_v8  ;;  %1177 = vmatpush.msrb.mxu1 %v22561_v15  ;;  %v13889_v15 = vand.u32 4294901760, %v400_v45 }
  0x6d   : > { %1355 = vmatpush.msra.mxu0 %v13465_v40  ;;  %1456 = vmatpush.msra.mxu2 %v22562_v13  ;;  %v384_v13 = vld [vmem:[%s13221_s17 + $0x288] sm:$0xff] }
  0x6e   : > { %1401 = vmatpush.msra.mxu1 %v13366_v8  ;;  %1521 = vmatpush.msra.mxu3 %v13381_v32  ;;  %v22565_v8 = vand.u32 4294901760, %v13465_v40  ;;  %v13756_v40 = vand.u32 4294901760, %v13744_v12 }
  0x6f   : > { %1224 = vmatmul.f32.vlgmr.msrb.gmra.mxu2 %v13717_v28  ;;  %1358 = vmatpush.msra.mxu0 %v13481_v27  ;;  %v22570_v27 = vand.u32 4294901760, %v13509_v31 }
  0x70   : > { %1403 = vmatpush.msra.mxu1 %v13381_v32  ;;  %1460 = vmatpush.msra.mxu2 %v22564_v59  ;;  %22568 = vst [vmem:[#allocation17_spill] sm:$0xff] %v13756_v40  ;;  %v22569_v32 = vand.u32 4294901760, %v13495_v57 }
  0x71   : > { %1523 = vmatpush.msra.mxu3 %v13399_v44  ;;  %1138 = vmatmul.f32.vlgmr.msrb.gmra.mxu0 %v13538_v38 }
  0x72   : > { %1333 = vmatmul.f32.vlgmr.msrb.gmra.mxu3 %v13661_v36  ;;  %1361 = vmatpush.msra.mxu0 %v13495_v57  ;;  %v1230_v57 = vsub.f32 %v13744_v12, %v13756_v40 }
  0x73   : > { %1405 = vmatpush.msra.mxu1 %v13399_v44  ;;  %1464 = vmatpush.msra.mxu2 %v22565_v8  ;;  %v22572_v44 = vand.u32 4294901760, %v13536_v7 }
  0x74   : > { %1525 = vmatpush.msra.mxu3 %v13414_v55  ;;  %1179 = vmatmul.f32.vlgmr.msrb.gmra.mxu1 %v13538_v38 }
  0x75   : > { %1364 = vmatpush.msra.mxu0 %v13509_v31  ;;  %1407 = vmatpush.msra.mxu1 %v13414_v55  ;;  %v528_v55 = vld [vmem:[%s13221_s17 + $0x708] sm:$0xff] }
  0x76   : > { %1468 = vmatpush.msra.mxu2 %v22567_v0  ;;  %1527 = vmatpush.msra.mxu3 %v13437_v18  ;;  %v512_v31 = vld [vmem:[%s13221_s17 + $0x688] sm:$0xff] }
  0x77   : > { %1367 = vmatpush.msra.mxu0 %v13524_v42  ;;  %1409 = vmatpush.msra.mxu1 %v13437_v18  ;;  %v22571_v18 = vand.u32 4294901760, %v13524_v42  ;;  %v13801_v42 = vand.u32 4294901760, %v512_v31 }
  0x78   : > { %1472 = vmatpush.msra.mxu2 %v22569_v32  ;;  %1529 = vmatpush.msra.mxu3 %v13451_v47  ;;  %v368_v32 = vld [vmem:[%s13221_s17 + $0x208] sm:$0xff] }
  0x79   : > { %1370 = vmatpush.msra.mxu0 %v13536_v7  ;;  %1411 = vmatpush.msra.mxu1 %v13451_v47  ;;  %v544_v47 = vld [vmem:[%s13221_s17 + $0x788] sm:$0xff] }
  0x7a   : > { %1476 = vmatpush.msra.mxu2 %v22570_v27  ;;  %1531 = vmatpush.msra.mxu3 %v13467_v33  ;;  %v496_v7 = vld [vmem:[%s13221_s17 + $0x608] sm:$0xff]  ;;  %v13908_v27 = vand.u32 4294901760, %v384_v13 }
  0x7b   : > { %1373 = vmatpush.msra.mxu0 %v13550_v30  ;;  %1413 = vmatpush.msra.mxu1 %v13467_v33  ;;  %v13781_v33 = vand.u32 4294901760, %v1230_v57  ;;  %v480_v30 = vld [vmem:[%s13221_s17 + $0x588] sm:$0xff] }
  0x7c   : > { %1480 = vmatpush.msra.mxu2 %v22571_v18  ;;  %1533 = vmatpush.msra.mxu3 %v13483_v24  ;;  %v13912_v18 = vsub.f32 %v416_v35, %v13882_v56  ;;  %v13938_v35 = vsub.f32 %v384_v13, %v13908_v27  ;;  %v320_v13 = vld [vmem:[%s13221_s17 + $0x88] sm:$0xff] }
  0x7d   : > { %1376 = vmatpush.msra.mxu0 %v13581_v29  ;;  %1415 = vmatpush.msra.mxu1 %v13483_v24  ;;  %22573 = vst [vmem:[#allocation18_spill] sm:$0xff] %v13781_v33  ;;  %v13787_v24 = vand.u32 4294901760, %v544_v47  ;;  %v13823_v29 = vand.u32 4294901760, %v480_v30 }
  0x7e   : > { %1484 = vmatpush.msra.mxu2 %v22572_v44  ;;  %1535 = vmatpush.msra.mxu3 %v13497_v14  ;;  %v13917_v44 = vsub.f32 %v400_v45, %v13889_v15 }
  0x7f   : > { %1142 = vmatmul.f32.gmra.mxu0 %v13608_v49  ;;  %1417 = vmatpush.msra.mxu1 %v13497_v14  ;;  %v13795_v14 = vand.u32 4294901760, %v528_v55 }
  0x80   : > { %1379 = vmatpush.msra.mxu0 %v13600_v2  ;;  %1488 = vmatpush.msra.mxu2 %v1298_v20  ;;  %v13819_v20 = vand.u32 4294901760, %v496_v7 }
  0x81   : > { %1537 = vmatpush.msra.mxu3 %v13511_v37  ;;  %1419 = vmatpush.msra.mxu1 %v13511_v37  ;;  %v13804_v37 = vsub.f32 %v544_v47, %v13787_v24 }
  0x82   : > { %1382 = vmatpush.msra.mxu0 %v13616_v48  ;;  %1492 = vmatpush.msra.mxu2 %v1304_v10  ;;  %v13827_v10 = vsub.f32 %v512_v31, %v13801_v42  ;;  %v448_v48 = vld [vmem:[%s13221_s17 + $0x488] sm:$0xff]  ;;  %v13842_v25 = vsub.f32 %v496_v7, %v13819_v20 }
  0x83   : > { %1539 = vmatpush.msra.mxu3 %v13526_v16  ;;  %1232 = vmatmul.f32.gmra.mxu2 %v13781_v33  ;;  %v22234_v2 = vand.u32 4294901760, %v13804_v37 }
  0x84   : > { %1385 = vmatpush.msra.mxu0 %v13632_v62  ;;  %1421 = vmatpush.msra.mxu1 %v13526_v16  ;;  %v13814_v16 = vsub.f32 %v528_v55, %v13795_v14  ;;  %v22232_v62 = vand.u32 4294901760, %v13827_v10  ;;  %v22230_v53 = vand.u32 4294901760, %v13842_v25  ;;  %v352_v55 = vld [vmem:[%s13221_s17 + $0x188] sm:$0xff] }
  0x85   : > { %1496 = vmatpush.msra.mxu2 %v1310_v52  ;;  %1541 = vmatpush.msra.mxu3 %v13556_v3  ;;  %v464_v52 = vld [vmem:[%s13221_s17 + $0x508] sm:$0xff] }
  0x86   : > { %1337 = vmatmul.f32.gmra.mxu3 %v13731_v54  ;;  %1388 = vmatpush.msra.mxu0 %v13654_v60  ;;  %v1623_v51 = vsub.f32 %v13827_v10, %v22232_v62  ;;  %v1629_v59 = vsub.f32 %v13842_v25, %v22230_v53 }
  0x87   : > { %1423 = vmatpush.msra.mxu1 %v13556_v3  ;;  %1500 = vmatpush.msra.mxu2 %v1316_v58  ;;  %v22233_v3 = vand.u32 4294901760, %v13814_v16  ;;  %v13839_v58 = vand.u32 4294901760, %v464_v52 }
  0x88   : > { %1543 = vmatpush.msra.mxu3 %v13570_v4  ;;  %1183 = vmatmul.f32.gmra.mxu1 %v13608_v49  ;;  %v1624_v8 = vand.u32 4294901760, %v1623_v51  ;;  %v1630_v31 = vand.u32 4294901760, %v1629_v59  ;;  %v688_v49 = vld [vmem:[%s13221_s17 + $0xc08] sm:$0xff] }
  0x89   : > { %1391 = vmatmul.f32.vlgmr.msra.gmra.mxu0 %v13683_v17  ;;  %1425 = vmatpush.msra.mxu1 %v13570_v4  ;;  %v1611_v4 = vsub.f32 %v13804_v37, %v22234_v2  ;;  %v1617_v60 = vsub.f32 %v13814_v16, %v22233_v3  ;;  %v13871_v1 = vsub.f32 %v464_v52, %v13839_v58  ;;  %v720_v17 = vld [vmem:[%s13221_s17 + $0xd08] sm:$0xff]  ;;  %v14081_v46 = vand.u32 4294901760, %v688_v49 }
  0x8a   : > { %1560 = vmatpush.msrb.mxu0 %v13787_v24  ;;  %1504 = vmatpush.msra.mxu2 %v1322_v61  ;;  %v13857_v61 = vand.u32 4294901760, %v448_v48  ;;  %v14051_v33 = vand.u32 4294901760, %v720_v17 }
  0x8b   : > { %1545 = vmatpush.msra.mxu3 %v13583_v5  ;;  %1427 = vmatpush.msra.mxu1 %v13583_v5  ;;  %v13853_v5 = vsub.f32 %v480_v30, %v13823_v29  ;;  %v1612_v23 = vand.u32 4294901760, %v1611_v4  ;;  %v1618_v63 = vand.u32 4294901760, %v1617_v60  ;;  %v13925_v30 = vand.u32 4294901760, %v368_v32 }
  0x8c   : > { %1562 = vmatpush.msrb.mxu0 %v13795_v14  ;;  %1508 = vmatpush.msra.mxu2 %v1328_v39  ;;  %v13864_v39 = vand.u32 4294901760, %v432_v34  ;;  %v13885_v6 = vsub.f32 %v448_v48, %v13857_v61  ;;  %v336_v48 = vld [vmem:[%s13221_s17 + $0x108] sm:$0xff]  ;;  %v13934_v4 = vand.u32 4294901760, %v352_v55  ;;  %v22228_v60 = vand.u32 4294901760, %v13912_v18 }
  0x8d   : > { %1547 = vmatpush.msra.mxu3 %v13606_v41  ;;  %1510 = vmatmul.f32.vlgmr.msra.gmra.mxu2 %v13661_v36  ;;  %v13950_v59 = vsub.f32 %v368_v32, %v13925_v30  ;;  %v14079_v21 = vsub.f32 %v720_v17, %v14051_v33 }
  0x8e   : > { %1564 = vmatpush.msrb.mxu0 %v13801_v42  ;;  %1715 = vmatpush.msrb.mxu2 %v13804_v37  ;;  %v13892_v43 = vsub.f32 %v432_v34, %v13864_v39  ;;  %v22226_v57 = vand.u32 4294901760, %v13885_v6  ;;  %v13963_v32 = vsub.f32 %v352_v55, %v13934_v4 }
  0x8f   : > { %1429 = vmatpush.msra.mxu1 %v13606_v41  ;;  %1549 = vmatpush.msra.mxu3 %v13625_v11  ;;  %v22229_v41 = vand.u32 4294901760, %v13853_v5  ;;  %v22236_v55 = vand.u32 4294901760, %v13950_v59 }
  0x90   : > { %1551 = vmatmul.f32.vlgmr.msra.gmra.mxu3 %v13661_v36  ;;  %1566 = vmatpush.msrb.mxu0 %v13819_v20  ;;  %v22225_v47 = vand.u32 4294901760, %v13892_v43  ;;  %v1647_v34 = vsub.f32 %v13885_v6, %v22226_v57 }
  0x91   : > { %1718 = vmatpush.msrb.mxu2 %v13814_v16  ;;  %1773 = vmatpush.msrb.mxu3 %v13787_v24  ;;  %v1635_v0 = vsub.f32 %v13853_v5, %v22229_v41 }
  0x92   : > { %1431 = vmatpush.msra.mxu1 %v13625_v11  ;;  %1568 = vmatpush.msrb.mxu0 %v13823_v29  ;;  %v22227_v11 = vand.u32 4294901760, %v13871_v1  ;;  %v1653_v45 = vsub.f32 %v13892_v43, %v22225_v47  ;;  %v22235_v47 = vand.u32 4294901760, %v13938_v35 }
  0x93   : > { %1435 = vmatmul.f32.vlgmr.msra.gmra.mxu1 %v13698_v26  ;;  %1721 = vmatpush.msrb.mxu2 %v13827_v10  ;;  %v1636_v52 = vand.u32 4294901760, %v1635_v0  ;;  %v800_v0 = vld [vmem:[%s13221_s17 + $0xf88] sm:$0xff] }
  0x94   : > { %1613 = vmatpush.msrb.mxu1 %v1612_v23  ;;  %1775 = vmatpush.msrb.mxu3 %v13795_v14  ;;  %v1641_v7 = vsub.f32 %v13871_v1, %v22227_v11  ;;  %v22231_v23 = vand.u32 4294901760, %v13917_v44  ;;  %v1654_v57 = vand.u32 4294901760, %v1653_v45  ;;  %v13980_v53 = vand.u32 4294901760, %v800_v0 }
  0x95   : > { %1570 = vmatpush.msrb.mxu0 %v13839_v58  ;;  %1724 = vmatpush.msrb.mxu2 %v13842_v25 }
  0x96   : > { %1619 = vmatpush.msrb.mxu1 %v1618_v63  ;;  %1777 = vmatpush.msrb.mxu3 %v13801_v42  ;;  %v1642_v51 = vand.u32 4294901760, %v1641_v7  ;;  %v13947_v63 = vand.u32 4294901760, %v336_v48  ;;  %v1659_v7 = vsub.f32 %v13912_v18, %v22228_v60  ;;  %v1665_v11 = vsub.f32 %v13917_v44, %v22231_v23 }
  0x97   : > { %1396 = vmatmul.f32.gmra.mxu0 %v13744_v12  ;;  %1514 = vmatmul.f32.gmra.mxu2 %v13731_v54  ;;  %v14006_v23 = vsub.f32 %v800_v0, %v13980_v53  ;;  %v736_v0 = vld [vmem:[%s13221_s17 + $0xd88] sm:$0xff] }
  0x98   : > { %1572 = vmatpush.msrb.mxu0 %v13857_v61  ;;  %1625 = vmatpush.msrb.mxu1 %v1624_v8  ;;  %22574 = vst [vmem:[#allocation19_spill] sm:$0xff] %v13947_v63  ;;  %v304_v8 = vld [vmem:[%s13221_s17 + $0x8] sm:$0xff]  ;;  %v13978_v41 = vsub.f32 %v336_v48, %v13947_v63  ;;  %v1660_v45 = vand.u32 4294901760, %v1659_v7  ;;  %v1666_v3 = vand.u32 4294901760, %v1665_v11 }
  0x99   : > { %1727 = vmatpush.msrb.mxu2 %v13853_v5  ;;  %1779 = vmatpush.msrb.mxu3 %v13819_v20  ;;  %v13974_v60 = vand.u32 4294901760, %v304_v8  ;;  %v768_v48 = vld [vmem:[%s13221_s17 + $0xe88] sm:$0xff] }
  0x9a   : > { %1555 = vmatmul.f32.gmra.mxu3 %v13731_v54  ;;  %1574 = vmatpush.msrb.mxu0 %v13864_v39  ;;  %v752_v11 = vld [vmem:[%s13221_s17 + $0xe08] sm:$0xff]  ;;  %v14038_v54 = vand.u32 4294901760, %v736_v0 }
  0x9b   : > { %1631 = vmatpush.msrb.mxu1 %v1630_v31  ;;  %1730 = vmatpush.msrb.mxu2 %v13871_v1  ;;  %v1648_v31 = vand.u32 4294901760, %v1647_v34  ;;  %v784_v34 = vld [vmem:[%s13221_s17 + $0xf08] sm:$0xff]  ;;  %22575 = vst [vmem:[#allocation20_spill] sm:$0xff] %v13974_v60  ;;  %v14024_v12 = vand.u32 4294901760, %v752_v11 }
  0x9c   : > { %1781 = vmatpush.msrb.mxu3 %v13823_v29  ;;  %1441 = vmatmul.f32.gmra.mxu1 %v13756_v40  ;;  %v13989_v62 = vand.u32 4294901760, %v784_v34 }
  0x9d   : > { %1576 = vmatpush.msrb.mxu0 %v13882_v56  ;;  %1637 = vmatpush.msrb.mxu1 %v1636_v52  ;;  %v13970_v52 = vand.u32 4294901760, %v320_v13 }
  0x9e   : > { %1733 = vmatpush.msrb.mxu2 %v13885_v6  ;;  %1783 = vmatpush.msrb.mxu3 %v13839_v58  ;;  %v14018_v7 = vsub.f32 %v784_v34, %v13989_v62 }
  0x9f   : > { %1578 = vmatpush.msrb.mxu0 %v13889_v15  ;;  %1643 = vmatpush.msrb.mxu1 %v1642_v51  ;;  %v1671_v51 = vsub.f32 %v13938_v35, %v22235_v47  ;;  %v13995_v2 = vsub.f32 %v320_v13, %v13970_v52  ;;  %v14003_v47 = vsub.f32 %v304_v8, %v13974_v60  ;;  %v14011_v13 = vand.u32 4294901760, %v768_v48 }
  0xa0   : > { %1736 = vmatpush.msrb.mxu2 %v13892_v43  ;;  %1785 = vmatpush.msrb.mxu3 %v13857_v61 }
  0xa1   : > { %1580 = vmatpush.msrb.mxu0 %v13908_v27  ;;  %1649 = vmatpush.msrb.mxu1 %v1648_v31  ;;  %v1677_v31 = vsub.f32 %v13950_v59, %v22236_v55  ;;  %v22576_v55 = vand.u32 4294901760, %v13963_v32  ;;  %v14036_v40 = vsub.f32 %v768_v48, %v14011_v13  ;;  %v22578_v26 = vand.u32 4294901760, %v13995_v2 }
  0xa2   : > { %1739 = vmatpush.msrb.mxu2 %v13912_v18  ;;  %1787 = vmatpush.msrb.mxu3 %v13864_v39  ;;  %v14049_v48 = vsub.f32 %v752_v11, %v14024_v12  ;;  %v22580_v36 = vand.u32 4294901760, %v14003_v47  ;;  %v14065_v11 = vsub.f32 %v736_v0, %v14038_v54 }
  0xa3   : > { %1582 = vmatpush.msrb.mxu0 %v13925_v30  ;;  %1655 = vmatpush.msrb.mxu1 %v1654_v57  ;;  %v1672_v57 = vand.u32 4294901760, %v1671_v51  ;;  %v1683_v8 = vsub.f32 %v13963_v32, %v22576_v55  ;;  %v22577_v51 = vand.u32 4294901760, %v13978_v41  ;;  %v1695_v34 = vsub.f32 %v13995_v2, %v22578_v26 }
  0xa4   : > { %1742 = vmatpush.msrb.mxu2 %v13917_v44  ;;  %1789 = vmatpush.msrb.mxu3 %v13882_v56  ;;  %v1701_v28 = vsub.f32 %v14003_v47, %v22580_v36 }
  0xa5   : > { %1584 = vmatpush.msrb.mxu0 %v13934_v4  ;;  %1661 = vmatpush.msrb.mxu1 %v1660_v45  ;;  %v1678_v45 = vand.u32 4294901760, %v1677_v31  ;;  %v1689_v55 = vsub.f32 %v13978_v41, %v22577_v51  ;;  %v704_v51 = vld [vmem:[%s13221_s17 + $0xc88] sm:$0xff]  ;;  %v1696_v26 = vand.u32 4294901760, %v1695_v34  ;;  %v22584_v34 = vand.u32 4294901760, %v14036_v40 }
  0xa6   : > { %1745 = vmatpush.msrb.mxu2 %v13938_v35  ;;  %1791 = vmatpush.msrb.mxu3 %v13889_v15 }
  0xa7   : > { %1586 = vmatpush.msrb.mxu0 %v13947_v63  ;;  %1667 = vmatpush.msrb.mxu1 %v1666_v3  ;;  %v1684_v3 = vand.u32 4294901760, %v1683_v8  ;;  %v22579_v8 = vand.u32 4294901760, %v14006_v23  ;;  %v1995_v0 = vsub.f32 %v14036_v40, %v22584_v34 }
  0xa8   : > { %1748 = vmatpush.msrb.mxu2 %v13950_v59  ;;  %1793 = vmatpush.msrb.mxu3 %v13908_v27 }
  0xa9   : > { %1588 = vmatpush.msrb.mxu0 %v13970_v52  ;;  %1673 = vmatpush.msrb.mxu1 %v1672_v57  ;;  %v1690_v57 = vand.u32 4294901760, %v1689_v55  ;;  %v1983_v31 = vsub.f32 %v14006_v23, %v22579_v8  ;;  %v22581_v55 = vand.u32 4294901760, %v13804_v37  ;;  %v22582_v8 = vand.u32 4294901760, %v14018_v7 }
  0xaa   : > { %1751 = vmatpush.msrb.mxu2 %v13963_v32  ;;  %1795 = vmatpush.msrb.mxu3 %v13925_v30  ;;  %v22583_v37 = vand.u32 4294901760, %v13814_v16  ;;  %v14095_v16 = vand.u32 4294901760, %v672_v50 }
  0xab   : > { %1590 = vmatpush.msrb.mxu0 %v13974_v60  ;;  %1679 = vmatpush.msrb.mxu1 %v1678_v45  ;;  %v14067_v45 = vand.u32 4294901760, %v704_v51  ;;  %v1989_v36 = vsub.f32 %v14018_v7, %v22582_v8  ;;  %v656_v8 = vld [vmem:[%s13221_s17 + $0xb08] sm:$0xff] }
  0xac   : > { %1754 = vmatpush.msrb.mxu2 %v13978_v41  ;;  %1797 = vmatpush.msrb.mxu3 %v13934_v4  ;;  %v14108_v17 = vand.u32 4294901760, %v656_v8 }
  0xad   : > { %1820 = vmatpush.msra.mxu0 %v22581_v55  ;;  %1685 = vmatpush.msrb.mxu1 %v1684_v3  ;;  %v1984_v3 = vand.u32 4294901760, %v1983_v31  ;;  %v1702_v55 = vand.u32 4294901760, %v1701_v28  ;;  %v22585_v31 = vand.u32 4294901760, %v13827_v10  ;;  %v1990_v28 = vand.u32 4294901760, %v1989_v36  ;;  %v640_v10 = vld [vmem:[%s13221_s17 + $0xa88] sm:$0xff] }
  0xae   : > { %1757 = vmatpush.msrb.mxu2 %v13995_v2  ;;  %1799 = vmatpush.msrb.mxu3 %v13947_v63  ;;  %v14093_v63 = vsub.f32 %v704_v51, %v14067_v45  ;;  %v14106_v51 = vsub.f32 %v688_v49, %v14081_v46  ;;  %v22588_v36 = vand.u32 4294901760, %v14065_v11  ;;  %v14119_v49 = vsub.f32 %v672_v50, %v14095_v16 }
  0xaf   : > { %1824 = vmatpush.msra.mxu0 %v22583_v37  ;;  %1691 = vmatpush.msrb.mxu1 %v1690_v57  ;;  %v22586_v57 = vand.u32 4294901760, %v14049_v48 }
  0xb0   : > { %1760 = vmatpush.msrb.mxu2 %v14003_v47  ;;  %1801 = vmatpush.msrb.mxu3 %v13970_v52  ;;  %v22263_v34 = vand.u32 4294901760, %v14093_v63  ;;  %v2024_v50 = vand.u32 4294901760, %v14106_v51 }
  0xb1   : > { %1828 = vmatpush.msra.mxu0 %v22585_v31  ;;  %1697 = vmatpush.msrb.mxu1 %v1696_v26  ;;  %v2001_v37 = vsub.f32 %v14049_v48, %v22586_v57  ;;  %v22587_v31 = vand.u32 4294901760, %v13842_v25  ;;  %v1996_v26 = vand.u32 4294901760, %v1995_v0  ;;  %v2007_v57 = vsub.f32 %v14065_v11, %v22588_v36 }
  0xb2   : > { %1932 = vmatpush.msra.mxu2 %v13980_v53  ;;  %1803 = vmatpush.msrb.mxu3 %v13974_v60  ;;  %v22589_v60 = vand.u32 4294901760, %v13853_v5  ;;  %v14124_v25 = vand.u32 4294901760, %v640_v10  ;;  %v14133_v36 = vsub.f32 %v656_v8, %v14108_v17  ;;  %v22591_v5 = vand.u32 4294901760, %v13871_v1  ;;  %v592_v1 = vld [vmem:[%s13221_s17 + $0x908] sm:$0xff] }
  0xb3   : > { %1832 = vmatpush.msra.mxu0 %v22587_v31  ;;  %1703 = vmatpush.msrb.mxu1 %v1702_v55  ;;  %v2002_v0 = vand.u32 4294901760, %v2001_v37  ;;  %v22590_v55 = vand.u32 4294901760, %v14079_v21  ;;  %v2030_v37 = vand.u32 4294901760, %v14119_v49  ;;  %v22592_v8 = vand.u32 4294901760, %v13885_v6 }
  0xb4   : > { %1934 = vmatpush.msra.mxu2 %v13989_v62  ;;  %1985 = vmatpush.msra.mxu3 %v1984_v3  ;;  %v624_v3 = vld [vmem:[%s13221_s17 + $0xa08] sm:$0xff]  ;;  %v22593_v6 = vand.u32 4294901760, %v13892_v43  ;;  %v22594_v43 = vand.u32 4294901760, %v13912_v18 }
  0xb5   : > { %1836 = vmatpush.msra.mxu0 %v22589_v60  ;;  %1891 = vmatpush.msra.mxu1 %v13787_v24  ;;  %v2013_v31 = vsub.f32 %v14079_v21, %v22590_v55  ;;  %v608_v24 = vld [vmem:[%s13221_s17 + $0x988] sm:$0xff]  ;;  %v2008_v60 = vand.u32 4294901760, %v2007_v57  ;;  %v14144_v55 = vand.u32 4294901760, %v624_v3  ;;  %v2025_v57 = vsub.f32 %v14106_v51, %v2024_v50 }
  0xb6   : > { %1936 = vmatpush.msra.mxu2 %v14011_v13  ;;  %1991 = vmatpush.msra.mxu3 %v1990_v28  ;;  %v2019_v28 = vsub.f32 %v14093_v63, %v22263_v34  ;;  %v14158_v34 = vand.u32 4294901760, %v608_v24 }
  0xb7   : > { %1840 = vmatpush.msra.mxu0 %v22591_v5  ;;  %1893 = vmatpush.msra.mxu1 %v13795_v14  ;;  %v14150_v14 = vsub.f32 %v640_v10, %v14124_v25  ;;  %v2036_v5 = vand.u32 4294901760, %v14133_v36  ;;  %v2031_v10 = vsub.f32 %v14119_v49, %v2030_v37 }
  0xb8   : > { %1938 = vmatpush.msra.mxu2 %v14024_v12  ;;  %1997 = vmatpush.msra.mxu3 %v1996_v26  ;;  %v2014_v26 = vand.u32 4294901760, %v2013_v31  ;;  %v14170_v31 = vand.u32 4294901760, %v592_v1 }
  0xb9   : > { %1844 = vmatpush.msra.mxu0 %v22592_v8  ;;  %1895 = vmatpush.msra.mxu1 %v13801_v42  ;;  %v2020_v42 = vand.u32 4294901760, %v2019_v28  ;;  %v576_v8 = vld [vmem:[%s13221_s17 + $0x888] sm:$0xff]  ;;  %v2037_v28 = vsub.f32 %v14133_v36, %v2036_v5 }
  0xba   : > { %1940 = vmatpush.msra.mxu2 %v14038_v54  ;;  %2003 = vmatpush.msra.mxu3 %v2002_v0  ;;  %v14168_v0 = vsub.f32 %v624_v3, %v14144_v55  ;;  %v14182_v3 = vsub.f32 %v608_v24, %v14158_v34  ;;  %v14187_v18 = vand.u32 4294901760, %v576_v8  ;;  %v22596_v24 = vand.u32 4294901760, %v13938_v35 }
  0xbb   : > { %1848 = vmatpush.msra.mxu0 %v22593_v6  ;;  %1897 = vmatpush.msra.mxu1 %v13819_v20  ;;  %v2042_v20 = vand.u32 4294901760, %v14150_v14  ;;  %v22595_v6 = vand.u32 4294901760, %v13917_v44  ;;  %v2038_v44 = vand.u32 4294901760, %v2037_v28  ;;  %v22598_v28 = vand.u32 4294901760, %v13963_v32 }
  0xbc   : > { %1942 = vmatpush.msra.mxu2 %v14051_v33  ;;  %2009 = vmatpush.msra.mxu3 %v2008_v60  ;;  %v2026_v60 = vand.u32 4294901760, %v2025_v57  ;;  %v2048_v57 = vand.u32 4294901760, %v14168_v0  ;;  %v14209_v35 = vsub.f32 %v576_v8, %v14187_v18 }
  0xbd   : > { %1852 = vmatpush.msra.mxu0 %v22594_v43  ;;  %1899 = vmatpush.msra.mxu1 %v13823_v29  ;;  %v560_v29 = vld [vmem:[%s13221_s17 + $0x808] sm:$0xff]  ;;  %v14193_v43 = vsub.f32 %v592_v1, %v14170_v31  ;;  %v22597_v1 = vand.u32 4294901760, %v13950_v59 }
  0xbe   : > { %1944 = vmatpush.msra.mxu2 %v14067_v45  ;;  %2015 = vmatpush.msra.mxu3 %v2014_v26  ;;  %v2032_v26 = vand.u32 4294901760, %v2031_v10  ;;  %v14203_v10 = vand.u32 4294901760, %v560_v29  ;;  %v2066_v32 = vand.u32 4294901760, %v14209_v35 }
  0xbf   : > { %1856 = vmatpush.msra.mxu0 %v22595_v6  ;;  %1901 = vmatpush.msra.mxu1 %v13839_v58  ;;  %v2043_v58 = vsub.f32 %v14150_v14, %v2042_v20  ;;  %v22599_v6 = vand.u32 4294901760, %v13978_v41 }
  0xc0   : > { %1946 = vmatpush.msra.mxu2 %v14081_v46  ;;  %2021 = vmatpush.msra.mxu3 %v2020_v42  ;;  %v2054_v42 = vand.u32 4294901760, %v14182_v3  ;;  %v14224_v8 = vsub.f32 %v560_v29, %v14203_v10  ;;  %v22600_v29 = vand.u32 4294901760, %v13995_v2 }
  0xc1   : > { %1860 = vmatpush.msra.mxu0 %v22596_v24  ;;  %1903 = vmatpush.msra.mxu1 %v13857_v61  ;;  %v2049_v61 = vsub.f32 %v14168_v0, %v2048_v57  ;;  %v2044_v59 = vand.u32 4294901760, %v2043_v58 }
  0xc2   : > { %1948 = vmatpush.msra.mxu2 %v14095_v16  ;;  %2027 = vmatpush.msra.mxu3 %v2026_v60  ;;  %v2060_v60 = vand.u32 4294901760, %v14193_v43  ;;  %v2072_v24 = vand.u32 4294901760, %v14224_v8 }
  0xc3   : > { %1864 = vmatpush.msra.mxu0 %v22597_v1  ;;  %1905 = vmatpush.msra.mxu1 %v13864_v39  ;;  %v2055_v39 = vsub.f32 %v14182_v3, %v2054_v42  ;;  %v22602_v1 = vld [vmem:[#allocation9_spill] sm:$0xff] }
  0xc4   : > { %1950 = vmatpush.msra.mxu2 %v14108_v17  ;;  %2033 = vmatpush.msra.mxu3 %v2032_v26  ;;  %v2061_v26 = vsub.f32 %v14193_v43, %v2060_v60  ;;  %v2073_v2 = vsub.f32 %v14224_v8, %v2072_v24 }
  0xc5   : > { %1868 = vmatpush.msra.mxu0 %v22598_v28  ;;  %1907 = vmatpush.msra.mxu1 %v13882_v56  ;;  %v2050_v56 = vand.u32 4294901760, %v2049_v61  ;;  %v2056_v41 = vand.u32 4294901760, %v2055_v39  ;;  %v22604_v61 = vld [vmem:[#allocation13_spill] sm:$0xff]  ;;  %v22605_v28 = vld [vmem:[#allocation10_spill] sm:$0xff]  ;;  %v22608_v39 = vand.u32 4294901760, %v14018_v7 }
  0xc6   : > { %1952 = vmatpush.msra.mxu2 %v14124_v25  ;;  %2039 = vmatpush.msra.mxu3 %v2038_v44  ;;  %v2062_v58 = vand.u32 4294901760, %v2061_v26  ;;  %v22601_v44 = vand.u32 4294901760, %v14003_v47  ;;  %v22603_v47 = vld [vmem:[#allocation19_spill] sm:$0xff] }
  0xc7   : > { %1763 = vmatmul.f32.vlgmr.msrb.gmra.mxu2 %v13564_v19  ;;  %1872 = vmatpush.msra.mxu0 %v22599_v6  ;;  %v22609_v6 = vld [vmem:[#allocation20_spill] sm:$0xff] }
  0xc8   : > { %1909 = vmatpush.msra.mxu1 %v13889_v15  ;;  %1954 = vmatpush.msra.mxu2 %v14144_v55  ;;  %v2067_v15 = vsub.f32 %v14209_v35, %v2066_v32 }
  0xc9   : > { %2045 = vmatpush.msra.mxu3 %v2044_v59  ;;  %1596 = vmatmul.f32.vlgmr.msrb.gmra.mxu0 %v13645_v22  ;;  %v22607_v59 = vld [vmem:[#allocation8_spill] sm:$0xff] }
  0xca   : > { %1807 = vmatmul.f32.vlgmr.msrb.gmra.mxu3 %v13594_v9  ;;  %1876 = vmatpush.msra.mxu0 %v22600_v29 }
  0xcb   : > { %1911 = vmatpush.msra.mxu1 %v13908_v27  ;;  %1956 = vmatpush.msra.mxu2 %v14158_v34  ;;  %v2068_v27 = vand.u32 4294901760, %v2067_v15 }
  0xcc   : > { %2051 = vmatpush.msra.mxu3 %v2050_v56  ;;  %1705 = vmatmul.f32.vlgmr.msrb.gmra.mxu1 %v13538_v38  ;;  %v22613_v56 = vld [vmem:[#allocation11_spill] sm:$0xff] }
  0xcd   : > { %1880 = vmatpush.msra.mxu0 %v22601_v44  ;;  %1913 = vmatpush.msra.mxu1 %v13925_v30  ;;  %v2074_v30 = vand.u32 4294901760, %v2073_v2  ;;  %v417_v44 = vld [vmem:[%s13221_s17 + $0x390] sm:$0xff] }
  0xce   : > { %1958 = vmatpush.msra.mxu2 %v14170_v31  ;;  %2057 = vmatpush.msra.mxu3 %v2056_v41 }
  0xcf   : > { %2087 = vmatpush.msrb.mxu0 %v14006_v23  ;;  %1915 = vmatpush.msra.mxu1 %v13934_v4  ;;  %v22606_v4 = vand.u32 4294901760, %v14006_v23  ;;  %v22610_v23 = vand.u32 4294901760, %v14036_v40 }
  0xd0   : > { %1960 = vmatpush.msra.mxu2 %v14187_v18  ;;  %2063 = vmatpush.msra.mxu3 %v2062_v58 }
  0xd1   : > { %1768 = vmatmul.f32.gmra.mxu2 %v22602_v1  ;;  %2090 = vmatpush.msrb.mxu0 %v14018_v7  ;;  %v22612_v7 = vand.u32 4294901760, %v14049_v48 }
  0xd2   : > { %1917 = vmatpush.msra.mxu1 %v22603_v47  ;;  %1962 = vmatpush.msra.mxu2 %v14203_v10 }
  0xd3   : > { %2069 = vmatpush.msra.mxu3 %v2068_v27  ;;  %1604 = vmatmul.f32.gmra.mxu0 %v22604_v61 }
  0xd4   : > { %1813 = vmatmul.f32.gmra.mxu3 %v22605_v28  ;;  %2093 = vmatpush.msrb.mxu0 %v14036_v40  ;;  %v22614_v40 = vand.u32 4294901760, %v14065_v11  ;;  %v721_v28 = vld [vmem:[%s13221_s17 + $0xd10] sm:$0xff] }
  0xd5   : > { %2192 = vmatpush.msrb.mxu2 %v22606_v4  ;;  %1919 = vmatpush.msra.mxu1 %v13970_v52  ;;  %v22611_v52 = vld [vmem:[#allocation15_spill] sm:$0xff] }
  0xd6   : > { %2075 = vmatpush.msra.mxu3 %v2074_v30  ;;  %1709 = vmatmul.f32.gmra.mxu1 %v22607_v59  ;;  %v401_v30 = vld [vmem:[%s13221_s17 + $0x310] sm:$0xff] }
  0xd7   : > { %2096 = vmatpush.msrb.mxu0 %v14049_v48  ;;  %2196 = vmatpush.msrb.mxu2 %v22608_v39  ;;  %v513_v48 = vld [vmem:[%s13221_s17 + $0x690] sm:$0xff] }
  0xd8   : > { %2263 = vmatpush.msrb.mxu3 %v13980_v53  ;;  %1921 = vmatpush.msra.mxu1 %v22609_v6 }
  0xd9   : > { %2099 = vmatpush.msrb.mxu0 %v14065_v11  ;;  %2200 = vmatpush.msrb.mxu2 %v22610_v23 }
  0xda   : > { %2145 = vmatpush.msrb.mxu1 %v13980_v53  ;;  %2265 = vmatpush.msrb.mxu3 %v13989_v62  ;;  %v22616_v53 = vand.u32 4294901760, %v14093_v63 }
  0xdb   : > { %1968 = vmatmul.f32.vlgmr.msra.gmra.mxu2 %v22611_v52  ;;  %2102 = vmatpush.msrb.mxu0 %v14079_v21 }
  0xdc   : > { %2147 = vmatpush.msrb.mxu1 %v13989_v62  ;;  %2204 = vmatpush.msrb.mxu2 %v22612_v7  ;;  %v22615_v62 = vand.u32 4294901760, %v14079_v21  ;;  %v853_v21 = vpop.f32.mrf.mxu0  ;;  %v14423_v7 = vand.u32 4294901760, %v417_v44 }
  0xdd   : > { %2267 = vmatpush.msrb.mxu3 %v14011_v13  ;;  %1882 = vmatmul.f32.vlgmr.msra.gmra.mxu0 %v13538_v38 }
  0xde   : > { %2077 = vmatmul.f32.vlgmr.msra.gmra.mxu3 %v22613_v56  ;;  %2105 = vmatpush.msrb.mxu0 %v14093_v63  ;;  %v529_v63 = vld [vmem:[%s13221_s17 + $0x710] sm:$0xff] }
  0xdf   : > { %2149 = vmatpush.msrb.mxu1 %v14011_v13  ;;  %2208 = vmatpush.msrb.mxu2 %v22614_v40  ;;  %v14333_v11 = vand.u32 4294901760, %v529_v63 }
  0xe0   : > { %2269 = vmatpush.msrb.mxu3 %v14024_v12  ;;  %1923 = vmatmul.f32.vlgmr.msra.gmra.mxu1 %v13538_v38  ;;  %v14327_v13 = vpop.f32.mrf.mxu3  ;;  %v657_v38 = vld [vmem:[%s13221_s17 + $0xb10] sm:$0xff] }
  0xe1   : > { %2108 = vmatpush.msrb.mxu0 %v14106_v51  ;;  %2151 = vmatpush.msrb.mxu1 %v14024_v12  ;;  %v962_v12 = vpop.f32.mrf.mxu1 }
  0xe2   : > { %2212 = vmatpush.msrb.mxu2 %v22615_v62  ;;  %2271 = vmatpush.msrb.mxu3 %v14038_v54  ;;  %v385_v62 = vld [vmem:[%s13221_s17 + $0x290] sm:$0xff] }
  0xe3   : > { %2111 = vmatpush.msrb.mxu0 %v14119_v49  ;;  %2153 = vmatpush.msrb.mxu1 %v14038_v54  ;;  %v545_v54 = vld [vmem:[%s13221_s17 + $0x790] sm:$0xff] }
  0xe4   : > { %2216 = vmatpush.msrb.mxu2 %v22616_v53  ;;  %2273 = vmatpush.msrb.mxu3 %v14051_v33  ;;  %v861_v51 = vpop.f32.mrf.mxu0  ;;  %v497_v49 = vld [vmem:[%s13221_s17 + $0x610] sm:$0xff] }
  0xe5   : > { %2114 = vmatpush.msrb.mxu0 %v14133_v36  ;;  %2155 = vmatpush.msrb.mxu1 %v14051_v33  ;;  %v1020_v33 = vpop.f32.mrf.mxu2  ;;  %v22618_v36 = vld [vmem:[#allocation6_spill] sm:$0xff] }
  0xe6   : > { %2220 = vmatpush.msrb.mxu2 %v2024_v50  ;;  %2275 = vmatpush.msrb.mxu3 %v14067_v45  ;;  %v481_v50 = vld [vmem:[%s13221_s17 + $0x590] sm:$0xff] }
  0xe7   : > { %2117 = vmatpush.msrb.mxu0 %v14150_v14  ;;  %2157 = vmatpush.msrb.mxu1 %v14067_v45  ;;  %v22617_v45 = vld [vmem:[#allocation18_spill] sm:$0xff] }
  0xe8   : > { %2224 = vmatpush.msrb.mxu2 %v2030_v37  ;;  %2277 = vmatpush.msrb.mxu3 %v14081_v46  ;;  %v14357_v37 = vand.u32 4294901760, %v497_v49 }
  0xe9   : > { %2120 = vmatpush.msrb.mxu0 %v14168_v0  ;;  %2159 = vmatpush.msrb.mxu1 %v14081_v46  ;;  %v14323_v46 = vand.u32 4294901760, %v545_v54  ;;  %v966_v14 = vpop.f32.mrf.mxu1 }
  0xea   : > { %2228 = vmatpush.msrb.mxu2 %v2036_v5  ;;  %2279 = vmatpush.msrb.mxu3 %v14095_v16  ;;  %v14361_v5 = vand.u32 4294901760, %v481_v50  ;;  %v14380_v29 = vsub.f32 %v497_v49, %v14357_v37  ;;  %v967_v4 = vadd.f32 %v966_v14, %v861_v51  ;;  %v14449_v14 = vand.u32 4294901760, %v385_v62 }
  0xeb   : > { %1886 = vmatmul.f32.gmra.mxu0 %v22607_v59  ;;  %2161 = vmatpush.msrb.mxu1 %v14095_v16  ;;  %v14342_v16 = vsub.f32 %v545_v54, %v14323_v46  ;;  %v14382_v41 = vpop.f32.mrf.mxu3 }
  0xec   : > { %2123 = vmatpush.msrb.mxu0 %v14182_v3  ;;  %2232 = vmatpush.msrb.mxu2 %v2042_v20  ;;  %v22267_v27 = vand.u32 4294901760, %v14380_v29 }
  0xed   : > { %2281 = vmatpush.msrb.mxu3 %v14108_v17  ;;  %2163 = vmatpush.msrb.mxu1 %v14108_v17  ;;  %v14339_v17 = vand.u32 4294901760, %v513_v48  ;;  %v22270_v0 = vand.u32 4294901760, %v14342_v16  ;;  %v1025_v3 = vpop.f32.mrf.mxu2 }
  0xee   : > { %2126 = vmatpush.msrb.mxu0 %v14193_v43  ;;  %2236 = vmatpush.msrb.mxu2 %v2048_v57  ;;  %v963_v57 = vadd.f32 %v962_v12, %v853_v21  ;;  %v22619_v43 = vld [vmem:[#allocation12_spill] sm:$0xff]  ;;  %v14433_v12 = vand.u32 4294901760, %v401_v30  ;;  %v1026_v51 = vadd.f32 %v1025_v3, %v967_v4 }
  0xef   : > { %2283 = vmatpush.msrb.mxu3 %v14124_v25  ;;  %1976 = vmatmul.f32.gmra.mxu2 %v22617_v45  ;;  %v14365_v20 = vsub.f32 %v513_v48, %v14339_v17  ;;  %v369_v48 = vld [vmem:[%s13221_s17 + $0x210] sm:$0xff] }
  0xf0   : > { %2129 = vmatpush.msrb.mxu0 %v14209_v35  ;;  %2165 = vmatpush.msrb.mxu1 %v14124_v25  ;;  %v14352_v25 = vsub.f32 %v529_v63, %v14333_v11  ;;  %v1021_v15 = vadd.f32 %v1020_v33, %v963_v57  ;;  %v22620_v33 = vld [vmem:[#allocation14_spill] sm:$0xff]  ;;  %v2373_v63 = vsub.f32 %v14380_v29, %v22267_v27  ;;  %v14460_v3 = vand.u32 4294901760, %v369_v48  ;;  %v22622_v4 = vld [vmem:[#allocation16_spill] sm:$0xff] }
  0xf1   : > { %2240 = vmatpush.msrb.mxu2 %v2054_v42  ;;  %2285 = vmatpush.msrb.mxu3 %v14144_v55  ;;  %v22268_v35 = vand.u32 4294901760, %v14365_v20  ;;  %v1180_v21 = vpop.f32.mrf.mxu1  ;;  %v321_v27 = vld [vmem:[%s13221_s17 + $0x90] sm:$0xff] }
  0xf2   : > { %2081 = vmatmul.f32.gmra.mxu3 %v22618_v36  ;;  %2132 = vmatpush.msrb.mxu0 %v14224_v8  ;;  %v22269_v42 = vand.u32 4294901760, %v14352_v25  ;;  %v1065_v23 = vadd.f32 %v14327_v13, %v1021_v15  ;;  %22621 = vst [vmem:[#allocation19_spill] sm:$0xff] %v14460_v3 }
  0xf3   : > { %2167 = vmatpush.msrb.mxu1 %v14144_v55  ;;  %2244 = vmatpush.msrb.mxu2 %v2060_v60  ;;  %v465_v55 = vld [vmem:[%s13221_s17 + $0x510] sm:$0xff] }
  0xf4   : > { %2287 = vmatpush.msrb.mxu3 %v14158_v34  ;;  %1927 = vmatmul.f32.gmra.mxu1 %v22607_v59  ;;  %v449_v60 = vld [vmem:[%s13221_s17 + $0x490] sm:$0xff]  ;;  %v14377_v26 = vand.u32 4294901760, %v465_v55  ;;  %v2361_v8 = vsub.f32 %v14352_v25, %v22269_v42 }
  0xf5   : > { %2135 = vmatmul.f32.vlgmr.msrb.gmra.mxu0 %v22619_v43  ;;  %2169 = vmatpush.msrb.mxu1 %v14158_v34  ;;  %v2355_v34 = vsub.f32 %v14342_v16, %v22270_v0  ;;  %v14397_v58 = vand.u32 4294901760, %v449_v60  ;;  %v14431_v54 = vpop.f32.mrf.mxu2  ;;  %v14453_v57 = vpop.f32.mrf.mxu3  ;;  %v769_v43 = vld [vmem:[%s13221_s17 + $0xe90] sm:$0xff] }
  0xf6   : > { %2304 = vmatpush.msra.mxu0 %v14323_v46  ;;  %2248 = vmatpush.msrb.mxu2 %v2066_v32  ;;  %v433_v32 = vld [vmem:[%s13221_s17 + $0x410] sm:$0xff]  ;;  %v14411_v47 = vsub.f32 %v465_v55, %v14377_v26  ;;  %v2362_v53 = vand.u32 4294901760, %v2361_v8 }
  0xf7   : > { %2289 = vmatpush.msrb.mxu3 %v14170_v31  ;;  %2171 = vmatpush.msrb.mxu1 %v14170_v31  ;;  %v14392_v31 = vsub.f32 %v481_v50, %v14361_v5  ;;  %v14407_v2 = vand.u32 4294901760, %v433_v32  ;;  %v2356_v39 = vand.u32 4294901760, %v2355_v34  ;;  %v14426_v40 = vsub.f32 %v449_v60, %v14397_v58  ;;  %v353_v8 = vld [vmem:[%s13221_s17 + $0x190] sm:$0xff] }
  0xf8   : > { %2306 = vmatpush.msra.mxu0 %v14333_v11  ;;  %2252 = vmatpush.msrb.mxu2 %v2072_v24  ;;  %v1139_v24 = vpop.f32.mrf.mxu0  ;;  %v22264_v13 = vand.u32 4294901760, %v14411_v47  ;;  %v14457_v34 = vsub.f32 %v417_v44, %v14423_v7  ;;  %v737_v59 = vld [vmem:[%s13221_s17 + $0xd90] sm:$0xff] }
  0xf9   : > { %2291 = vmatpush.msrb.mxu3 %v14187_v18  ;;  %2254 = vmatmul.f32.vlgmr.msrb.gmra.mxu2 %v22613_v56  ;;  %v22265_v6 = vand.u32 4294901760, %v14392_v31  ;;  %v1140_v55 = vadd.f32 %v1139_v24, %v1065_v23  ;;  %v22266_v60 = vand.u32 4294901760, %v14426_v40  ;;  %v2374_v24 = vand.u32 4294901760, %v2373_v63 }
  0xfa   : > { %2308 = vmatpush.msra.mxu0 %v14339_v17  ;;  %2459 = vmatpush.msra.mxu2 %v14342_v16  ;;  %v2385_v44 = vsub.f32 %v14411_v47, %v22264_v13  ;;  %v1071_v23 = vadd.f32 %v14382_v41, %v1026_v51  ;;  %v22272_v41 = vand.u32 4294901760, %v14457_v34  ;;  %v801_v51 = vld [vmem:[%s13221_s17 + $0xf90] sm:$0xff] }
  0xfb   : > { %2173 = vmatpush.msrb.mxu1 %v14187_v18  ;;  %2293 = vmatpush.msrb.mxu3 %v14203_v10  ;;  %v2367_v18 = vsub.f32 %v14365_v20, %v22268_v35  ;;  %v2379_v50 = vsub.f32 %v14392_v31, %v22265_v6  ;;  %v1181_v63 = vadd.f32 %v1180_v21, %v1140_v55  ;;  %v14483_v6 = vand.u32 4294901760, %v353_v8  ;;  %v22624_v35 = vld [vmem:[#allocation17_spill] sm:$0xff] }
  0xfc   : > { %2295 = vmatmul.f32.vlgmr.msrb.gmra.mxu3 %v22613_v56  ;;  %2310 = vmatpush.msra.mxu0 %v14357_v37  ;;  %v2391_v13 = vsub.f32 %v14426_v40, %v22266_v60  ;;  %v14492_v21 = vsub.f32 %v369_v48, %v14460_v3  ;;  %v2386_v55 = vand.u32 4294901760, %v2385_v44  ;;  %v305_v48 = vld [vmem:[%s13221_s17 + $0x10] sm:$0xff]  ;;  %v14529_v0 = vand.u32 4294901760, %v801_v51 }
  0xfd   : > { %2462 = vmatpush.msra.mxu2 %v14352_v25  ;;  %2517 = vmatpush.msra.mxu3 %v14323_v46  ;;  %v2368_v49 = vand.u32 4294901760, %v2367_v18  ;;  %v337_v18 = vld [vmem:[%s13221_s17 + $0x110] sm:$0xff]  ;;  %22623 = vst [vmem:[#allocation20_spill] sm:$0xff] %v14483_v6 }
  0xfe   : > { %2175 = vmatpush.msrb.mxu1 %v14203_v10  ;;  %2312 = vmatpush.msra.mxu0 %v14361_v5  ;;  %v14442_v10 = vsub.f32 %v433_v32, %v14407_v2  ;;  %v14463_v32 = vsub.f32 %v401_v30, %v14433_v12  ;;  %v2380_v30 = vand.u32 4294901760, %v2379_v50  ;;  %v2392_v44 = vand.u32 4294901760, %v2391_v13 }
  0xff   : > { %2179 = vmatmul.f32.vlgmr.msrb.gmra.mxu1 %v22620_v33  ;;  %2465 = vmatpush.msra.mxu2 %v14365_v20 }
 0x100   : > { %2357 = vmatpush.msra.mxu1 %v2356_v39  ;;  %2519 = vmatpush.msra.mxu3 %v14333_v11  ;;  %v1143_v15 = vpop.f32.mrf.mxu0  ;;  %v22271_v39 = vand.u32 4294901760, %v14442_v10 }
 0x101   : > { %2314 = vmatpush.msra.mxu0 %v14377_v26  ;;  %2468 = vmatpush.msra.mxu2 %v14380_v29  ;;  %v1144_v42 = vadd.f32 %v1143_v15, %v1071_v23  ;;  %v22625_v15 = vand.u32 4294901760, %v14463_v32 }
 0x102   : > { %2363 = vmatpush.msra.mxu1 %v2362_v53  ;;  %2521 = vmatpush.msra.mxu3 %v14339_v17  ;;  %v14476_v53 = vsub.f32 %v385_v62, %v14449_v14  ;;  %v14488_v62 = vand.u32 4294901760, %v337_v18  ;;  %v2397_v60 = vsub.f32 %v14442_v10, %v22271_v39  ;;  %v2403_v39 = vsub.f32 %v14457_v34, %v22272_v41 }
 0x103   : > { %2140 = vmatmul.f32.gmra.mxu0 %v22622_v4  ;;  %2258 = vmatmul.f32.gmra.mxu2 %v22618_v36  ;;  %v14510_v4 = vsub.f32 %v353_v8, %v14483_v6  ;;  %v2409_v23 = vsub.f32 %v14463_v32, %v22625_v15  ;;  %v785_v8 = vld [vmem:[%s13221_s17 + $0xf10] sm:$0xff]  ;;  %v14527_v41 = vand.u32 4294901760, %v305_v48 }
 0x104   : > { %2316 = vmatpush.msra.mxu0 %v14397_v58  ;;  %2369 = vmatpush.msra.mxu1 %v2368_v49  ;;  %v22626_v15 = vand.u32 4294901760, %v14476_v53  ;;  %v14540_v45 = vand.u32 4294901760, %v785_v8 }
 0x105   : > { %2471 = vmatpush.msra.mxu2 %v14392_v31  ;;  %2523 = vmatpush.msra.mxu3 %v14357_v37  ;;  %v1184_v49 = vpop.f32.mrf.mxu1  ;;  %v2410_v56 = vand.u32 4294901760, %v2409_v23  ;;  %v14557_v23 = vsub.f32 %v801_v51, %v14529_v0 }
 0x106   : > { %2299 = vmatmul.f32.gmra.mxu3 %v22618_v36  ;;  %2318 = vmatpush.msra.mxu0 %v14407_v2  ;;  %v1233_v50 = vpop.f32.mrf.mxu2  ;;  %v2415_v13 = vsub.f32 %v14476_v53, %v22626_v15  ;;  %v22627_v15 = vand.u32 4294901760, %v14492_v21  ;;  %v14568_v51 = vsub.f32 %v785_v8, %v14540_v45  ;;  %v705_v8 = vld [vmem:[%s13221_s17 + $0xc90] sm:$0xff] }
 0x107   : > { %2375 = vmatpush.msra.mxu1 %v2374_v24  ;;  %2474 = vmatpush.msra.mxu2 %v14411_v47  ;;  %v1226_v24 = vadd.f32 %v14431_v54, %v1181_v63  ;;  %v14519_v54 = vand.u32 4294901760, %v321_v27  ;;  %v2398_v63 = vand.u32 4294901760, %v2397_v60  ;;  %v2404_v60 = vand.u32 4294901760, %v2403_v39  ;;  %22628 = vst [vmem:[#allocation21_spill] sm:$0xff] %v14557_v23 }
 0x108   : > { %2525 = vmatpush.msra.mxu3 %v14361_v5  ;;  %2185 = vmatmul.f32.gmra.mxu1 %v22624_v35  ;;  %v1392_v33 = vpop.f32.mrf.mxu0  ;;  %22630 = vst [vmem:[#allocation22_spill] sm:$0xff] %v14568_v51 }
 0x109   : > { %2320 = vmatpush.msra.mxu0 %v14423_v7  ;;  %2381 = vmatpush.msra.mxu1 %v2380_v30  ;;  %v14512_v35 = vpop.f32.mrf.mxu3  ;;  %v14523_v30 = vsub.f32 %v337_v18, %v14488_v62  ;;  %v1185_v18 = vadd.f32 %v1184_v49, %v1144_v42  ;;  %v1335_v36 = vadd.f32 %v14453_v57, %v1226_v24  ;;  %v753_v24 = vld [vmem:[%s13221_s17 + $0xe10] sm:$0xff] }
 0x10a   : > { %2477 = vmatpush.msra.mxu2 %v14426_v40  ;;  %2527 = vmatpush.msra.mxu3 %v14377_v26  ;;  %v2421_v42 = vsub.f32 %v14492_v21, %v22627_v15  ;;  %v14548_v49 = vsub.f32 %v321_v27, %v14519_v54  ;;  %v2416_v27 = vand.u32 4294901760, %v2415_v13 }
 0x10b   : > { %2322 = vmatpush.msra.mxu0 %v14433_v12  ;;  %2387 = vmatpush.msra.mxu1 %v2386_v55  ;;  %v1393_v39 = vadd.f32 %v1392_v33, %v1335_v36  ;;  %v14559_v55 = vand.u32 4294901760, %v769_v43  ;;  %v1234_v15 = vadd.f32 %v1233_v50, %v1185_v18  ;;  %v22629_v36 = vand.u32 4294901760, %v14510_v4 }
 0x10c   : > { %2480 = vmatpush.msra.mxu2 %v14442_v10  ;;  %2529 = vmatpush.msra.mxu3 %v14397_v58  ;;  %v2422_v50 = vand.u32 4294901760, %v2421_v42  ;;  %v22631_v13 = vand.u32 4294901760, %v14523_v30 }
 0x10d   : > { %2324 = vmatpush.msra.mxu0 %v14449_v14  ;;  %2393 = vmatpush.msra.mxu1 %v2392_v44  ;;  %v14554_v44 = vsub.f32 %v305_v48, %v14527_v41  ;;  %v2427_v33 = vsub.f32 %v14510_v4, %v22629_v36 }
 0x10e   : > { %2483 = vmatpush.msra.mxu2 %v14457_v34  ;;  %2531 = vmatpush.msra.mxu3 %v14407_v2  ;;  %v2433_v18 = vsub.f32 %v14523_v30, %v22631_v13  ;;  %v1339_v13 = vadd.f32 %v14512_v35, %v1234_v15  ;;  %v22632_v15 = vand.u32 4294901760, %v14548_v49 }
 0x10f   : > { %2326 = vmatpush.msra.mxu0 %v14460_v3  ;;  %2399 = vmatpush.msra.mxu1 %v2398_v63  ;;  %v14570_v63 = vand.u32 4294901760, %v753_v24 }
 0x110   : > { %2486 = vmatpush.msra.mxu2 %v14463_v32  ;;  %2533 = vmatpush.msra.mxu3 %v14423_v7  ;;  %v1436_v57 = vpop.f32.mrf.mxu1  ;;  %v1511_v52 = vpop.f32.mrf.mxu2  ;;  %v2434_v35 = vand.u32 4294901760, %v2433_v18  ;;  %v2439_v61 = vsub.f32 %v14548_v49, %v22632_v15  ;;  %v22637_v18 = vand.u32 4294901760, %v14352_v25 }
 0x111   : > { %2328 = vmatpush.msra.mxu0 %v14483_v6  ;;  %2405 = vmatpush.msra.mxu1 %v2404_v60  ;;  %v1437_v48 = vadd.f32 %v1436_v57, %v1393_v39  ;;  %v14583_v39 = vsub.f32 %v769_v43, %v14559_v55  ;;  %v14590_v60 = vand.u32 4294901760, %v737_v59  ;;  %v689_v43 = vld [vmem:[%s13221_s17 + $0xc10] sm:$0xff] }
 0x112   : > { %2489 = vmatpush.msra.mxu2 %v14476_v53  ;;  %2535 = vmatpush.msra.mxu3 %v14433_v12 }
 0x113   : > { %2330 = vmatpush.msra.mxu0 %v14488_v62  ;;  %2411 = vmatpush.msra.mxu1 %v2410_v56  ;;  %v1512_v36 = vadd.f32 %v1511_v52, %v1437_v48  ;;  %v1552_v42 = vpop.f32.mrf.mxu3  ;;  %v2428_v56 = vand.u32 4294901760, %v2427_v33  ;;  %v14595_v52 = vsub.f32 %v753_v24, %v14570_v63  ;;  %v22633_v24 = vand.u32 4294901760, %v14557_v23 }
 0x114   : > { %2492 = vmatpush.msra.mxu2 %v14492_v21  ;;  %2537 = vmatpush.msra.mxu3 %v14449_v14  ;;  %v1397_v48 = vpop.f32.mrf.mxu0  ;;  %v14617_v1 = vsub.f32 %v737_v59, %v14590_v60 }
 0x115   : > { %2332 = vmatpush.msra.mxu0 %v14519_v54  ;;  %2417 = vmatpush.msra.mxu1 %v2416_v27  ;;  %v1553_v57 = vadd.f32 %v1552_v42, %v1512_v36  ;;  %v14603_v27 = vand.u32 4294901760, %v721_v28  ;;  %v2727_v33 = vsub.f32 %v14557_v23, %v22633_v24  ;;  %v22634_v36 = vand.u32 4294901760, %v14554_v44 }
 0x116   : > { %2495 = vmatpush.msra.mxu2 %v14510_v4  ;;  %2539 = vmatpush.msra.mxu3 %v14460_v3  ;;  %v1398_v15 = vadd.f32 %v1397_v48, %v1339_v13  ;;  %v22635_v24 = vand.u32 4294901760, %v14342_v16  ;;  %v22636_v23 = vand.u32 4294901760, %v14568_v51  ;;  %v673_v13 = vld [vmem:[%s13221_s17 + $0xb90] sm:$0xff]  ;;  %v2440_v16 = vand.u32 4294901760, %v2439_v61 }
 0x117   : > { %2334 = vmatpush.msra.mxu0 %v14527_v41  ;;  %2423 = vmatpush.msra.mxu1 %v2422_v50  ;;  %v2445_v42 = vsub.f32 %v14554_v44, %v22634_v36  ;;  %v14619_v50 = vand.u32 4294901760, %v705_v8  ;;  %12751 = vst [vmem:[%s14629_s29] sm:$0xff] %v1553_v57  ;;  %v2750_v61 = vand.u32 4294901760, %v14617_v1 }
 0x118   : > { %2498 = vmatpush.msra.mxu2 %v14523_v30  ;;  %2541 = vmatpush.msra.mxu3 %v14483_v6  ;;  %v2733_v36 = vsub.f32 %v14568_v51, %v22636_v23  ;;  %v14638_v23 = vand.u32 4294901760, %v689_v43  ;;  %v2728_v51 = vand.u32 4294901760, %v2727_v33  ;;  %v22638_v6 = vand.u32 4294901760, %v14583_v39 }
 0x119   : > { %2564 = vmatpush.msrb.mxu0 %v22635_v24  ;;  %2429 = vmatpush.msra.mxu1 %v2428_v56  ;;  %v1442_v59 = vpop.f32.mrf.mxu1  ;;  %v14636_v56 = vsub.f32 %v721_v28, %v14603_v27  ;;  %v2446_v57 = vand.u32 4294901760, %v2445_v42  ;;  %v14650_v28 = vsub.f32 %v705_v8, %v14619_v50  ;;  %v22640_v33 = vand.u32 4294901760, %v14595_v52 }
 0x11a   : > { %2501 = vmatpush.msra.mxu2 %v14548_v49  ;;  %2543 = vmatpush.msra.mxu3 %v14488_v62  ;;  %v1443_v48 = vadd.f32 %v1442_v59, %v1398_v15  ;;  %v1515_v24 = vpop.f32.mrf.mxu2  ;;  %v2739_v3 = vsub.f32 %v14583_v39, %v22638_v6  ;;  %v2734_v6 = vand.u32 4294901760, %v2733_v36  ;;  %v14663_v59 = vsub.f32 %v689_v43, %v14638_v23 }
 0x11b   : > { %2568 = vmatpush.msrb.mxu0 %v22637_v18  ;;  %2435 = vmatpush.msra.mxu1 %v2434_v35  ;;  %v14652_v18 = vand.u32 4294901760, %v673_v13  ;;  %v22639_v35 = vand.u32 4294901760, %v14365_v20  ;;  %v2745_v42 = vsub.f32 %v14595_v52, %v22640_v33  ;;  %v2756_v8 = vand.u32 4294901760, %v14636_v56 }
 0x11c   : > { %2504 = vmatpush.msra.mxu2 %v14554_v44  ;;  %2545 = vmatpush.msra.mxu3 %v14519_v54  ;;  %v1516_v25 = vadd.f32 %v1515_v24, %v1443_v48  ;;  %v14665_v20 = vand.u32 4294901760, %v657_v38  ;;  %v641_v24 = vld [vmem:[%s13221_s17 + $0xa90] sm:$0xff]  ;;  %v22641_v36 = vand.u32 4294901760, %v14380_v29  ;;  %v2762_v43 = vand.u32 4294901760, %v14650_v28 }
 0x11d   : > { %2572 = vmatpush.msrb.mxu0 %v22639_v35  ;;  %v1556_v15 = vpop.f32.mrf.mxu3  ;;  %2441 = vmatpush.msra.mxu1 %v2440_v16  ;;  %v2740_v35 = vand.u32 4294901760, %v2739_v3  ;;  %v2751_v16 = vsub.f32 %v14617_v1, %v2750_v61  ;;  %v22642_v33 = vand.u32 4294901760, %v14392_v31  ;;  %v14681_v29 = vand.u32 4294901760, %v641_v24  ;;  %v625_v3 = vld [vmem:[%s13221_s17 + $0xa10] sm:$0xff] }
 0x11e   : > { %2676 = vmatpush.msrb.mxu2 %v14529_v0  ;;  %2547 = vmatpush.msra.mxu3 %v14527_v41  ;;  %v1557_v48 = vadd.f32 %v1556_v15, %v1516_v25  ;;  %v14676_v25 = vsub.f32 %v673_v13, %v14652_v18  ;;  %v2768_v13 = vand.u32 4294901760, %v14663_v59  ;;  %v14691_v31 = vsub.f32 %v657_v38, %v14665_v20  ;;  %v609_v15 = vld [vmem:[%s13221_s17 + $0x990] sm:$0xff] }
 0x11f   : > { %2576 = vmatpush.msrb.mxu0 %v22641_v36  ;;  %2447 = vmatpush.msra.mxu1 %v2446_v57  ;;  %v2757_v57 = vsub.f32 %v14636_v56, %v2756_v8  ;;  %v22644_v38 = vand.u32 4294901760, %v14426_v40  ;;  %v22645_v40 = vand.u32 4294901760, %v14442_v10  ;;  %v22646_v10 = vand.u32 4294901760, %v14457_v34 }
 0x120   : > { %2678 = vmatpush.msrb.mxu2 %v14540_v45  ;;  %2729 = vmatpush.msrb.mxu3 %v2728_v51  ;;  %v2746_v51 = vand.u32 4294901760, %v2745_v42  ;;  %12767 = vst [vmem:[%s14629_s29 + $0x80] sm:$0xff] %v1557_v48  ;;  %v2763_v42 = vsub.f32 %v14650_v28, %v2762_v43  ;;  %v2774_v36 = vand.u32 4294901760, %v14676_v25  ;;  %v14702_v48 = vand.u32 4294901760, %v625_v3 }
 0x121   : > { %2580 = vmatpush.msrb.mxu0 %v22642_v33  ;;  %2635 = vmatpush.msrb.mxu1 %v14323_v46  ;;  %v22643_v46 = vand.u32 4294901760, %v14411_v47  ;;  %v593_v47 = vld [vmem:[%s13221_s17 + $0x910] sm:$0xff]  ;;  %v2780_v33 = vand.u32 4294901760, %v14691_v31 }
 0x122   : > { %2680 = vmatpush.msrb.mxu2 %v14559_v55  ;;  %2735 = vmatpush.msrb.mxu3 %v2734_v6  ;;  %v2752_v6 = vand.u32 4294901760, %v2751_v16  ;;  %v2769_v16 = vsub.f32 %v14663_v59, %v2768_v13 }
 0x123   : > { %2584 = vmatpush.msrb.mxu0 %v22643_v46  ;;  %2637 = vmatpush.msrb.mxu1 %v14333_v11  ;;  %v14708_v11 = vsub.f32 %v641_v24, %v14681_v29  ;;  %v14716_v46 = vand.u32 4294901760, %v609_v15  ;;  %v2775_v24 = vsub.f32 %v14676_v25, %v2774_v36 }
 0x124   : > { %2682 = vmatpush.msrb.mxu2 %v14570_v63  ;;  %2741 = vmatpush.msrb.mxu3 %v2740_v35  ;;  %v2758_v35 = vand.u32 4294901760, %v2757_v57  ;;  %v14728_v57 = vand.u32 4294901760, %v593_v47 }
 0x125   : > { %2588 = vmatpush.msrb.mxu0 %v22644_v38  ;;  %2639 = vmatpush.msrb.mxu1 %v14339_v17  ;;  %v2764_v17 = vand.u32 4294901760, %v2763_v42  ;;  %v577_v38 = vld [vmem:[%s13221_s17 + $0x890] sm:$0xff]  ;;  %v2781_v42 = vsub.f32 %v14691_v31, %v2780_v33 }
 0x126   : > { %2684 = vmatpush.msrb.mxu2 %v14590_v60  ;;  %2747 = vmatpush.msrb.mxu3 %v2746_v51  ;;  %v14726_v51 = vsub.f32 %v625_v3, %v14702_v48  ;;  %v14740_v3 = vsub.f32 %v609_v15, %v14716_v46  ;;  %v14745_v34 = vand.u32 4294901760, %v577_v38  ;;  %v22648_v15 = vand.u32 4294901760, %v14476_v53 }
 0x127   : > { %2592 = vmatpush.msrb.mxu0 %v22645_v40  ;;  %2641 = vmatpush.msrb.mxu1 %v14357_v37  ;;  %v2786_v37 = vand.u32 4294901760, %v14708_v11  ;;  %v22647_v40 = vand.u32 4294901760, %v14463_v32  ;;  %v2782_v32 = vand.u32 4294901760, %v2781_v42  ;;  %v22650_v42 = vand.u32 4294901760, %v14510_v4 }
 0x128   : > { %2686 = vmatpush.msrb.mxu2 %v14603_v27  ;;  %2753 = vmatpush.msrb.mxu3 %v2752_v6  ;;  %v2770_v6 = vand.u32 4294901760, %v2769_v16  ;;  %v2792_v16 = vand.u32 4294901760, %v14726_v51  ;;  %v14767_v53 = vsub.f32 %v577_v38, %v14745_v34 }
 0x129   : > { %2596 = vmatpush.msrb.mxu0 %v22646_v10  ;;  %2643 = vmatpush.msrb.mxu1 %v14361_v5  ;;  %v561_v5 = vld [vmem:[%s13221_s17 + $0x810] sm:$0xff]  ;;  %v14751_v10 = vsub.f32 %v593_v47, %v14728_v57  ;;  %v22649_v47 = vand.u32 4294901760, %v14492_v21 }
 0x12a   : > { %2688 = vmatpush.msrb.mxu2 %v14619_v50  ;;  %2759 = vmatpush.msrb.mxu3 %v2758_v35  ;;  %v2776_v35 = vand.u32 4294901760, %v2775_v24  ;;  %v14761_v24 = vand.u32 4294901760, %v561_v5  ;;  %v2810_v4 = vand.u32 4294901760, %v14767_v53 }
 0x12b   : > { %2600 = vmatpush.msrb.mxu0 %v22647_v40  ;;  %2645 = vmatpush.msrb.mxu1 %v14377_v26  ;;  %v2787_v26 = vsub.f32 %v14708_v11, %v2786_v37  ;;  %v22651_v40 = vand.u32 4294901760, %v14523_v30 }
 0x12c   : > { %2690 = vmatpush.msrb.mxu2 %v14638_v23  ;;  %2765 = vmatpush.msrb.mxu3 %v2764_v17  ;;  %v2798_v17 = vand.u32 4294901760, %v14740_v3  ;;  %v14782_v38 = vsub.f32 %v561_v5, %v14761_v24  ;;  %v22652_v5 = vand.u32 4294901760, %v14548_v49  ;;  %v22655_v49 = vld [vmem:[#allocation19_spill] sm:$0xff] }
 0x12d   : > { %2604 = vmatpush.msrb.mxu0 %v22648_v15  ;;  %2647 = vmatpush.msrb.mxu1 %v14397_v58  ;;  %v2793_v58 = vsub.f32 %v14726_v51, %v2792_v16  ;;  %v2788_v21 = vand.u32 4294901760, %v2787_v26  ;;  %v22653_v26 = vld [vmem:[#allocation7_spill] sm:$0xff] }
 0x12e   : > { %2692 = vmatpush.msrb.mxu2 %v14652_v18  ;;  %2771 = vmatpush.msrb.mxu3 %v2770_v6  ;;  %v2804_v6 = vand.u32 4294901760, %v14751_v10  ;;  %v2816_v15 = vand.u32 4294901760, %v14782_v38 }
 0x12f   : > { %2608 = vmatpush.msrb.mxu0 %v22649_v47  ;;  %2649 = vmatpush.msrb.mxu1 %v14407_v2  ;;  %v2799_v2 = vsub.f32 %v14740_v3, %v2798_v17  ;;  %v22654_v47 = vand.u32 4294901760, %v14554_v44  ;;  %v22659_v44 = vld [vmem:[#allocation22_spill] sm:$0xff] }
 0x130   : > { %2694 = vmatpush.msrb.mxu2 %v14665_v20  ;;  %2777 = vmatpush.msrb.mxu3 %v2776_v35  ;;  %v2805_v35 = vsub.f32 %v14751_v10, %v2804_v6 }
 0x131   : > { %2612 = vmatpush.msrb.mxu0 %v22650_v42  ;;  %2651 = vmatpush.msrb.mxu1 %v14423_v7  ;;  %v2794_v7 = vand.u32 4294901760, %v2793_v58  ;;  %v2800_v30 = vand.u32 4294901760, %v2799_v2  ;;  %v22656_v58 = vld [vmem:[#allocation21_spill] sm:$0xff]  ;;  %v22657_v42 = vld [vmem:[#allocation20_spill] sm:$0xff] }
 0x132   : > { %2696 = vmatpush.msrb.mxu2 %v14681_v29  ;;  %2783 = vmatpush.msrb.mxu3 %v2782_v32  ;;  %v2806_v32 = vand.u32 4294901760, %v2805_v35  ;;  %v22658_v2 = vld [vmem:[#allocation9_spill] sm:$0xff]  ;;  %v22661_v35 = vld [vmem:[#allocation10_spill] sm:$0xff] }
 0x133   : > { %2507 = vmatmul.f32.vlgmr.msra.gmra.mxu2 %v13564_v19  ;;  %2616 = vmatpush.msrb.mxu0 %v22651_v40 }
 0x134   : > { %2653 = vmatpush.msrb.mxu1 %v14433_v12  ;;  %2698 = vmatpush.msrb.mxu2 %v14702_v48  ;;  %v2811_v12 = vsub.f32 %v14767_v53, %v2810_v4 }
 0x135   : > { %2789 = vmatpush.msrb.mxu3 %v2788_v21  ;;  %2340 = vmatmul.f32.vlgmr.msra.gmra.mxu0 %v13645_v22 }
 0x136   : > { %2551 = vmatmul.f32.vlgmr.msra.gmra.mxu3 %v13594_v9  ;;  %2620 = vmatpush.msrb.mxu0 %v22652_v5  ;;  %v2812_v21 = vand.u32 4294901760, %v2811_v12  ;;  %v22662_v5 = vand.u32 4294901760, %v22656_v58  ;;  %v22665_v12 = vand.u32 4294901760, %v14583_v39 }
 0x137   : > { %2655 = vmatpush.msrb.mxu1 %v14449_v14  ;;  %2700 = vmatpush.msrb.mxu2 %v14716_v46  ;;  %v2817_v14 = vsub.f32 %v14782_v38, %v2816_v15 }
 0x138   : > { %2795 = vmatpush.msrb.mxu3 %v2794_v7  ;;  %2449 = vmatmul.f32.vlgmr.msra.gmra.mxu1 %v22653_v26  ;;  %v22660_v7 = vld [vmem:[#allocation13_spill] sm:$0xff] }
 0x139   : > { %2624 = vmatpush.msrb.mxu0 %v22654_v47  ;;  %2657 = vmatpush.msrb.mxu1 %v22655_v49  ;;  %v2818_v40 = vand.u32 4294901760, %v2817_v14 }
 0x13a   : > { %2702 = vmatpush.msrb.mxu2 %v14728_v57  ;;  %2801 = vmatpush.msrb.mxu3 %v2800_v30  ;;  %v22663_v30 = vld [vmem:[#allocation8_spill] sm:$0xff] }
 0x13b   : > { %2831 = vmatpush.msra.mxu0 %v22656_v58  ;;  %2659 = vmatpush.msrb.mxu1 %v22657_v42  ;;  %v402_v58 = vld [vmem:[%s13221_s17 + $0x318] sm:$0xff] }
 0x13c   : > { %2704 = vmatpush.msrb.mxu2 %v14745_v34  ;;  %2807 = vmatpush.msrb.mxu3 %v2806_v32  ;;  %v22667_v32 = vand.u32 4294901760, %v14595_v52 }
 0x13d   : > { %2512 = vmatmul.f32.gmra.mxu2 %v22658_v2  ;;  %2834 = vmatpush.msra.mxu0 %v22659_v44 }
 0x13e   : > { %2661 = vmatpush.msrb.mxu1 %v14488_v62  ;;  %2706 = vmatpush.msrb.mxu2 %v14761_v24  ;;  %v22664_v62 = vand.u32 4294901760, %v22659_v44 }
 0x13f   : > { %2813 = vmatpush.msrb.mxu3 %v2812_v21  ;;  %2348 = vmatmul.f32.gmra.mxu0 %v22660_v7 }
 0x140   : > { %2557 = vmatmul.f32.gmra.mxu3 %v22661_v35  ;;  %2837 = vmatpush.msra.mxu0 %v14583_v39 }
 0x141   : > { %2936 = vmatpush.msra.mxu2 %v22662_v5  ;;  %2663 = vmatpush.msrb.mxu1 %v14519_v54  ;;  %v22666_v54 = vld [vmem:[#allocation15_spill] sm:$0xff] }
 0x142   : > { %2819 = vmatpush.msrb.mxu3 %v2818_v40  ;;  %2453 = vmatmul.f32.gmra.mxu1 %v22663_v30 }
 0x143   : > { %2840 = vmatpush.msra.mxu0 %v14595_v52  ;;  %2940 = vmatpush.msra.mxu2 %v22664_v62  ;;  %v514_v52 = vld [vmem:[%s13221_s17 + $0x698] sm:$0xff] }
 0x144   : > { %3007 = vmatpush.msra.mxu3 %v14529_v0  ;;  %2665 = vmatpush.msrb.mxu1 %v14527_v41  ;;  %v22668_v41 = vld [vmem:[#allocation11_spill] sm:$0xff] }
 0x145   : > { %2843 = vmatpush.msra.mxu0 %v14617_v1  ;;  %2944 = vmatpush.msra.mxu2 %v22665_v12  ;;  %v386_v12 = vld [vmem:[%s13221_s17 + $0x298] sm:$0xff] }
 0x146   : > { %2889 = vmatpush.msra.mxu1 %v14529_v0  ;;  %3009 = vmatpush.msra.mxu3 %v14540_v45  ;;  %v1597_v1 = vpop.f32.mrf.mxu0 }
 0x147   : > { %2712 = vmatmul.f32.vlgmr.msrb.gmra.mxu2 %v22666_v54  ;;  %2846 = vmatpush.msra.mxu0 %v14636_v56  ;;  %v14897_v56 = vand.u32 4294901760, %v514_v52 }
 0x148   : > { %2891 = vmatpush.msra.mxu1 %v14540_v45  ;;  %2948 = vmatpush.msra.mxu2 %v22667_v32  ;;  %v546_v45 = vld [vmem:[%s13221_s17 + $0x798] sm:$0xff] }
 0x149   : > { %3011 = vmatpush.msra.mxu3 %v14559_v55  ;;  %2626 = vmatmul.f32.vlgmr.msrb.gmra.mxu0 %v22653_v26  ;;  %v1706_v0 = vpop.f32.mrf.mxu1 }
 0x14a   : > { %2821 = vmatmul.f32.vlgmr.msrb.gmra.mxu3 %v22668_v41  ;;  %2849 = vmatpush.msra.mxu0 %v14650_v28  ;;  %v498_v28 = vld [vmem:[%s13221_s17 + $0x618] sm:$0xff] }
 0x14b   : > { %2893 = vmatpush.msra.mxu1 %v14559_v55  ;;  %2952 = vmatpush.msra.mxu2 %v2750_v61  ;;  %v1764_v55 = vpop.f32.mrf.mxu2 }
 0x14c   : > { %3013 = vmatpush.msra.mxu3 %v14570_v63  ;;  %2667 = vmatmul.f32.vlgmr.msrb.gmra.mxu1 %v22653_v26  ;;  %v658_v26 = vld [vmem:[%s13221_s17 + $0xb18] sm:$0xff] }
 0x14d   : > { %2852 = vmatpush.msra.mxu0 %v14663_v59  ;;  %2895 = vmatpush.msra.mxu1 %v14570_v63  ;;  %v530_v63 = vld [vmem:[%s13221_s17 + $0x718] sm:$0xff]  ;;  %v14885_v39 = vpop.f32.mrf.mxu3 }
 0x14e   : > { %2956 = vmatpush.msra.mxu2 %v2756_v8  ;;  %3015 = vmatpush.msra.mxu3 %v14590_v60  ;;  %v22670_v8 = vld [vmem:[#allocation6_spill] sm:$0xff] }
 0x14f   : > { %2855 = vmatpush.msra.mxu0 %v14676_v25  ;;  %2897 = vmatpush.msra.mxu1 %v14590_v60  ;;  %v14881_v60 = vand.u32 4294901760, %v546_v45 }
 0x150   : > { %2960 = vmatpush.msra.mxu2 %v2762_v43  ;;  %3017 = vmatpush.msra.mxu3 %v14603_v27  ;;  %v1605_v61 = vpop.f32.mrf.mxu0 }
 0x151   : > { %2858 = vmatpush.msra.mxu0 %v14691_v31  ;;  %2899 = vmatpush.msra.mxu1 %v14603_v27  ;;  %v14891_v27 = vand.u32 4294901760, %v530_v63 }
 0x152   : > { %2964 = vmatpush.msra.mxu2 %v2768_v13  ;;  %3019 = vmatpush.msra.mxu3 %v14619_v50  ;;  %v14923_v13 = vsub.f32 %v514_v52, %v14897_v56  ;;  %v370_v52 = vld [vmem:[%s13221_s17 + $0x218] sm:$0xff] }
 0x153   : > { %2861 = vmatpush.msra.mxu0 %v14708_v11  ;;  %2901 = vmatpush.msra.mxu1 %v14619_v50  ;;  %v22669_v50 = vld [vmem:[#allocation18_spill] sm:$0xff]  ;;  %v14910_v59 = vsub.f32 %v530_v63, %v14891_v27  ;;  %v1710_v43 = vpop.f32.mrf.mxu1  ;;  %v22671_v11 = vld [vmem:[#allocation12_spill] sm:$0xff] }
 0x154   : > { %2968 = vmatpush.msra.mxu2 %v2774_v36  ;;  %3021 = vmatpush.msra.mxu3 %v14638_v23  ;;  %v1769_v31 = vpop.f32.mrf.mxu2  ;;  %v466_v36 = vld [vmem:[%s13221_s17 + $0x518] sm:$0xff]  ;;  %v1711_v42 = vadd.f32 %v1710_v43, %v1605_v61  ;;  %v15007_v43 = vand.u32 4294901760, %v386_v12 }
 0x155   : > { %2864 = vmatpush.msra.mxu0 %v14726_v51  ;;  %2903 = vmatpush.msra.mxu1 %v14638_v23  ;;  %v14900_v23 = vsub.f32 %v546_v45, %v14881_v60  ;;  %v450_v51 = vld [vmem:[%s13221_s17 + $0x498] sm:$0xff] }
 0x156   : > { %2972 = vmatpush.msra.mxu2 %v2780_v33  ;;  %3023 = vmatpush.msra.mxu3 %v14652_v18  ;;  %v22289_v33 = vand.u32 4294901760, %v14910_v59  ;;  %v1770_v61 = vadd.f32 %v1769_v31, %v1711_v42  ;;  %v15018_v31 = vand.u32 4294901760, %v370_v52  ;;  %v22674_v42 = vld [vmem:[#allocation16_spill] sm:$0xff] }
 0x157   : > { %2630 = vmatmul.f32.gmra.mxu0 %v22663_v30  ;;  %2905 = vmatpush.msra.mxu1 %v14652_v18  ;;  %v482_v18 = vld [vmem:[%s13221_s17 + $0x598] sm:$0xff] }
 0x158   : > { %2867 = vmatpush.msra.mxu0 %v14740_v3  ;;  %2976 = vmatpush.msra.mxu2 %v2786_v37  ;;  %v14919_v25 = vand.u32 4294901760, %v482_v18  ;;  %v14935_v37 = vand.u32 4294901760, %v466_v36  ;;  %22673 = vst [vmem:[#allocation19_spill] sm:$0xff] %v15018_v31 }
 0x159   : > { %3025 = vmatpush.msra.mxu3 %v14665_v20  ;;  %2907 = vmatpush.msra.mxu1 %v14665_v20  ;;  %v14915_v20 = vand.u32 4294901760, %v498_v28 }
 0x15a   : > { %2870 = vmatpush.msra.mxu0 %v14751_v10  ;;  %2980 = vmatpush.msra.mxu2 %v2792_v16  ;;  %v14940_v16 = vpop.f32.mrf.mxu3  ;;  %v22288_v10 = vand.u32 4294901760, %v14923_v13  ;;  %v14969_v14 = vsub.f32 %v466_v36, %v14935_v37 }
 0x15b   : > { %3027 = vmatpush.msra.mxu3 %v14681_v29  ;;  %2720 = vmatmul.f32.gmra.mxu2 %v22669_v50  ;;  %v14938_v3 = vsub.f32 %v498_v28, %v14915_v20 }
 0x15c   : > { %2873 = vmatpush.msra.mxu0 %v14767_v53  ;;  %2909 = vmatpush.msra.mxu1 %v14681_v29  ;;  %v22290_v29 = vand.u32 4294901760, %v14900_v23 }
 0x15d   : > { %2984 = vmatpush.msra.mxu2 %v2798_v17  ;;  %3029 = vmatpush.msra.mxu3 %v14702_v48  ;;  %v434_v17 = vld [vmem:[%s13221_s17 + $0x418] sm:$0xff]  ;;  %v22287_v49 = vand.u32 4294901760, %v14938_v3 }
 0x15e   : > { %2825 = vmatmul.f32.gmra.mxu3 %v22670_v8  ;;  %2876 = vmatpush.msra.mxu0 %v14782_v38  ;;  %v3105_v38 = vsub.f32 %v14910_v59, %v22289_v33  ;;  %v14965_v47 = vand.u32 4294901760, %v434_v17  ;;  %v14989_v45 = vpop.f32.mrf.mxu2 }
 0x15f   : > { %2911 = vmatpush.msra.mxu1 %v14702_v48  ;;  %2988 = vmatpush.msra.mxu2 %v2804_v6  ;;  %v1707_v48 = vadd.f32 %v1706_v0, %v1597_v1  ;;  %v14955_v6 = vand.u32 4294901760, %v450_v51  ;;  %v1924_v1 = vpop.f32.mrf.mxu1  ;;  %v14991_v0 = vand.u32 4294901760, %v402_v58  ;;  %v3117_v63 = vsub.f32 %v14938_v3, %v22287_v49  ;;  %v322_v49 = vld [vmem:[%s13221_s17 + $0x98] sm:$0xff] }
 0x160   : > { %3031 = vmatpush.msra.mxu3 %v14716_v46  ;;  %2671 = vmatmul.f32.gmra.mxu1 %v22663_v30  ;;  %v3106_v32 = vand.u32 4294901760, %v3105_v38  ;;  %v354_v38 = vld [vmem:[%s13221_s17 + $0x198] sm:$0xff] }
 0x161   : > { %2879 = vmatmul.f32.vlgmr.msra.gmra.mxu0 %v22671_v11  ;;  %2913 = vmatpush.msra.mxu1 %v14716_v46  ;;  %v3099_v46 = vsub.f32 %v14900_v23, %v22290_v29  ;;  %v1765_v53 = vadd.f32 %v1764_v55, %v1707_v48  ;;  %v14984_v62 = vsub.f32 %v450_v51, %v14955_v6  ;;  %v22672_v55 = vld [vmem:[#allocation14_spill] sm:$0xff]  ;;  %v770_v11 = vld [vmem:[%s13221_s17 + $0xe98] sm:$0xff] }
 0x162   : > { %3048 = vmatpush.msrb.mxu0 %v14881_v60  ;;  %2992 = vmatpush.msra.mxu2 %v2810_v4  ;;  %v1883_v4 = vpop.f32.mrf.mxu0  ;;  %v15011_v48 = vpop.f32.mrf.mxu3  ;;  %v738_v30 = vld [vmem:[%s13221_s17 + $0xd98] sm:$0xff] }
 0x163   : > { %3033 = vmatpush.msra.mxu3 %v14728_v57  ;;  %2915 = vmatpush.msra.mxu1 %v14728_v57  ;;  %v14950_v57 = vsub.f32 %v482_v18, %v14919_v25  ;;  %v3100_v21 = vand.u32 4294901760, %v3099_v46  ;;  %v1809_v40 = vadd.f32 %v14885_v39, %v1765_v53  ;;  %v22284_v39 = vand.u32 4294901760, %v14969_v14 }
 0x164   : > { %3050 = vmatpush.msrb.mxu0 %v14891_v27  ;;  %2996 = vmatpush.msra.mxu2 %v2816_v15  ;;  %v418_v15 = vld [vmem:[%s13221_s17 + $0x398] sm:$0xff]  ;;  %v22286_v51 = vand.u32 4294901760, %v14984_v62 }
 0x165   : > { %3035 = vmatpush.msra.mxu3 %v14745_v34  ;;  %2998 = vmatmul.f32.vlgmr.msra.gmra.mxu2 %v22668_v41  ;;  %v22285_v44 = vand.u32 4294901760, %v14950_v57  ;;  %v14981_v5 = vand.u32 4294901760, %v418_v15  ;;  %v1884_v36 = vadd.f32 %v1883_v4, %v1809_v40  ;;  %v3118_v4 = vand.u32 4294901760, %v3117_v63 }
 0x166   : > { %3052 = vmatpush.msrb.mxu0 %v14897_v56  ;;  %3203 = vmatpush.msrb.mxu2 %v14900_v23  ;;  %v1815_v40 = vadd.f32 %v14940_v16, %v1770_v61  ;;  %v802_v61 = vld [vmem:[%s13221_s17 + $0xf98] sm:$0xff] }
 0x167   : > { %2917 = vmatpush.msra.mxu1 %v14745_v34  ;;  %3037 = vmatpush.msra.mxu3 %v14761_v24  ;;  %v3111_v34 = vsub.f32 %v14923_v13, %v22288_v10  ;;  %v3123_v18 = vsub.f32 %v14950_v57, %v22285_v44  ;;  %v15015_v46 = vsub.f32 %v418_v15, %v14981_v5  ;;  %v15041_v44 = vand.u32 4294901760, %v354_v38  ;;  %v22676_v10 = vld [vmem:[#allocation17_spill] sm:$0xff] }
 0x168   : > { %3039 = vmatmul.f32.vlgmr.msra.gmra.mxu3 %v22668_v41  ;;  %3054 = vmatpush.msrb.mxu0 %v14915_v20  ;;  %v3129_v15 = vsub.f32 %v14969_v14, %v22284_v39  ;;  %v1925_v63 = vadd.f32 %v1924_v1, %v1884_v36  ;;  %v3135_v39 = vsub.f32 %v14984_v62, %v22286_v51  ;;  %v15087_v29 = vand.u32 4294901760, %v802_v61 }
 0x169   : > { %3206 = vmatpush.msrb.mxu2 %v14910_v59  ;;  %3261 = vmatpush.msrb.mxu3 %v14881_v60  ;;  %v3112_v28 = vand.u32 4294901760, %v3111_v34  ;;  %v338_v34 = vld [vmem:[%s13221_s17 + $0x118] sm:$0xff]  ;;  %22675 = vst [vmem:[#allocation21_spill] sm:$0xff] %v15041_v44  ;;  %v22292_v16 = vand.u32 4294901760, %v15015_v46  ;;  %v15050_v1 = vsub.f32 %v370_v52, %v15018_v31 }
 0x16a   : > { %2919 = vmatpush.msra.mxu1 %v14761_v24  ;;  %3056 = vmatpush.msrb.mxu0 %v14919_v25  ;;  %v15000_v24 = vsub.f32 %v434_v17, %v14965_v47  ;;  %v15021_v17 = vsub.f32 %v402_v58, %v14991_v0  ;;  %v1887_v53 = vpop.f32.mrf.mxu0  ;;  %v3124_v58 = vand.u32 4294901760, %v3123_v18  ;;  %v3130_v36 = vand.u32 4294901760, %v3129_v15  ;;  %v306_v52 = vld [vmem:[%s13221_s17 + $0x18] sm:$0xff] }
 0x16b   : > { %2923 = vmatmul.f32.vlgmr.msra.gmra.mxu1 %v22672_v55  ;;  %3209 = vmatpush.msrb.mxu2 %v14923_v13  ;;  %v1888_v33 = vadd.f32 %v1887_v53, %v1815_v40  ;;  %v3136_v15 = vand.u32 4294901760, %v3135_v39 }
 0x16c   : > { %3101 = vmatpush.msrb.mxu1 %v3100_v21  ;;  %3263 = vmatpush.msrb.mxu3 %v14891_v27  ;;  %v22291_v21 = vand.u32 4294901760, %v15000_v24  ;;  %v22677_v53 = vand.u32 4294901760, %v15021_v17 }
 0x16d   : > { %3058 = vmatpush.msrb.mxu0 %v14935_v37  ;;  %3212 = vmatpush.msrb.mxu2 %v14938_v3 }
 0x16e   : > { %3107 = vmatpush.msrb.mxu1 %v3106_v32  ;;  %3265 = vmatpush.msrb.mxu3 %v14897_v56  ;;  %v15034_v32 = vsub.f32 %v386_v12, %v15007_v43  ;;  %v15046_v12 = vand.u32 4294901760, %v338_v34  ;;  %v3141_v51 = vsub.f32 %v15000_v24, %v22291_v21  ;;  %v3147_v21 = vsub.f32 %v15015_v46, %v22292_v16 }
 0x16f   : > { %2884 = vmatmul.f32.gmra.mxu0 %v22674_v42  ;;  %3002 = vmatmul.f32.gmra.mxu2 %v22670_v8  ;;  %v15068_v42 = vsub.f32 %v354_v38, %v15041_v44  ;;  %v3153_v40 = vsub.f32 %v15021_v17, %v22677_v53  ;;  %v786_v38 = vld [vmem:[%s13221_s17 + $0xf18] sm:$0xff]  ;;  %v15085_v16 = vand.u32 4294901760, %v306_v52 }
 0x170   : > { %3060 = vmatpush.msrb.mxu0 %v14955_v6  ;;  %3113 = vmatpush.msrb.mxu1 %v3112_v28  ;;  %v22678_v53 = vand.u32 4294901760, %v15034_v32  ;;  %v15098_v50 = vand.u32 4294901760, %v786_v38 }
 0x171   : > { %3215 = vmatpush.msrb.mxu2 %v14950_v57  ;;  %3267 = vmatpush.msrb.mxu3 %v14915_v20  ;;  %v1928_v28 = vpop.f32.mrf.mxu1  ;;  %v3154_v41 = vand.u32 4294901760, %v3153_v40  ;;  %v15115_v40 = vsub.f32 %v802_v61, %v15087_v29 }
 0x172   : > { %3043 = vmatmul.f32.gmra.mxu3 %v22670_v8  ;;  %3062 = vmatpush.msrb.mxu0 %v14965_v47  ;;  %v1977_v18 = vpop.f32.mrf.mxu2  ;;  %v3159_v39 = vsub.f32 %v15034_v32, %v22678_v53  ;;  %v2136_v55 = vpop.f32.mrf.mxu0  ;;  %v22679_v53 = vand.u32 4294901760, %v15050_v1  ;;  %v15126_v61 = vsub.f32 %v786_v38, %v15098_v50  ;;  %v706_v38 = vld [vmem:[%s13221_s17 + $0xc98] sm:$0xff] }
 0x173   : > { %3119 = vmatpush.msrb.mxu1 %v3118_v4  ;;  %3218 = vmatpush.msrb.mxu2 %v14969_v14  ;;  %v1970_v4 = vadd.f32 %v14989_v45, %v1925_v63  ;;  %v15077_v45 = vand.u32 4294901760, %v322_v49  ;;  %v3142_v63 = vand.u32 4294901760, %v3141_v51  ;;  %v3148_v51 = vand.u32 4294901760, %v3147_v21  ;;  %22680 = vst [vmem:[#allocation20_spill] sm:$0xff] %v15115_v40 }
 0x174   : > { %3269 = vmatpush.msrb.mxu3 %v14919_v25  ;;  %2929 = vmatmul.f32.gmra.mxu1 %v22676_v10  ;;  %22682 = vst [vmem:[#allocation22_spill] sm:$0xff] %v15126_v61 }
 0x175   : > { %3064 = vmatpush.msrb.mxu0 %v14981_v5  ;;  %3125 = vmatpush.msrb.mxu1 %v3124_v58  ;;  %v15070_v10 = vpop.f32.mrf.mxu3  ;;  %v15081_v58 = vsub.f32 %v338_v34, %v15046_v12  ;;  %v1929_v34 = vadd.f32 %v1928_v28, %v1888_v33  ;;  %v2079_v8 = vadd.f32 %v15011_v48, %v1970_v4  ;;  %v754_v4 = vld [vmem:[%s13221_s17 + $0xe18] sm:$0xff] }
 0x176   : > { %3221 = vmatpush.msrb.mxu2 %v14984_v62  ;;  %3271 = vmatpush.msrb.mxu3 %v14935_v37  ;;  %v3165_v33 = vsub.f32 %v15050_v1, %v22679_v53  ;;  %v15106_v28 = vsub.f32 %v322_v49, %v15077_v45  ;;  %v3160_v49 = vand.u32 4294901760, %v3159_v39 }
 0x177   : > { %3066 = vmatpush.msrb.mxu0 %v14991_v0  ;;  %3131 = vmatpush.msrb.mxu1 %v3130_v36  ;;  %v2137_v21 = vadd.f32 %v2136_v55, %v2079_v8  ;;  %v15117_v36 = vand.u32 4294901760, %v770_v11  ;;  %v1978_v53 = vadd.f32 %v1977_v18, %v1929_v34  ;;  %v22681_v8 = vand.u32 4294901760, %v15068_v42 }
 0x178   : > { %3224 = vmatpush.msrb.mxu2 %v15000_v24  ;;  %3273 = vmatpush.msrb.mxu3 %v14955_v6  ;;  %v3166_v18 = vand.u32 4294901760, %v3165_v33  ;;  %v22683_v39 = vand.u32 4294901760, %v15081_v58  ;;  %v722_v33 = vld [vmem:[%s13221_s17 + $0xd18] sm:$0xff] }
 0x179   : > { %3068 = vmatpush.msrb.mxu0 %v15007_v43  ;;  %3137 = vmatpush.msrb.mxu1 %v3136_v15  ;;  %v15112_v15 = vsub.f32 %v306_v52, %v15085_v16  ;;  %v3171_v55 = vsub.f32 %v15068_v42, %v22681_v8 }
 0x17a   : > { %3227 = vmatpush.msrb.mxu2 %v15015_v46  ;;  %3275 = vmatpush.msrb.mxu3 %v14965_v47  ;;  %v3177_v34 = vsub.f32 %v15081_v58, %v22683_v39  ;;  %v2083_v39 = vadd.f32 %v15070_v10, %v1978_v53  ;;  %v22684_v53 = vand.u32 4294901760, %v15106_v28 }
 0x17b   : > { %3070 = vmatpush.msrb.mxu0 %v15018_v31  ;;  %3143 = vmatpush.msrb.mxu1 %v3142_v63  ;;  %v15128_v63 = vand.u32 4294901760, %v754_v4 }
 0x17c   : > { %3230 = vmatpush.msrb.mxu2 %v15021_v17  ;;  %3277 = vmatpush.msrb.mxu3 %v14981_v5  ;;  %v2180_v48 = vpop.f32.mrf.mxu1  ;;  %v2255_v54 = vpop.f32.mrf.mxu2  ;;  %v3178_v10 = vand.u32 4294901760, %v3177_v34  ;;  %v3183_v7 = vsub.f32 %v15106_v28, %v22684_v53 }
 0x17d   : > { %3072 = vmatpush.msrb.mxu0 %v15041_v44  ;;  %3149 = vmatpush.msrb.mxu1 %v3148_v51  ;;  %v2181_v52 = vadd.f32 %v2180_v48, %v2137_v21  ;;  %v15141_v21 = vsub.f32 %v770_v11, %v15117_v36  ;;  %v15147_v51 = vand.u32 4294901760, %v738_v30  ;;  %v15152_v11 = vsub.f32 %v754_v4, %v15128_v63  ;;  %v690_v48 = vld [vmem:[%s13221_s17 + $0xc18] sm:$0xff] }
 0x17e   : > { %3233 = vmatpush.msrb.mxu2 %v15034_v32  ;;  %3279 = vmatpush.msrb.mxu3 %v14991_v0  ;;  %v22685_v4 = vand.u32 4294901760, %v15115_v40 }
 0x17f   : > { %3074 = vmatpush.msrb.mxu0 %v15046_v12  ;;  %3155 = vmatpush.msrb.mxu1 %v3154_v41  ;;  %v2256_v8 = vadd.f32 %v2255_v54, %v2181_v52  ;;  %v2296_v35 = vpop.f32.mrf.mxu3  ;;  %v3172_v41 = vand.u32 4294901760, %v3171_v55  ;;  %v22686_v55 = vand.u32 4294901760, %v15112_v15  ;;  %v15174_v2 = vsub.f32 %v738_v30, %v15147_v51 }
 0x180   : > { %3236 = vmatpush.msrb.mxu2 %v15050_v1  ;;  %3281 = vmatpush.msrb.mxu3 %v15007_v43  ;;  %v2141_v54 = vpop.f32.mrf.mxu0  ;;  %v3184_v30 = vand.u32 4294901760, %v3183_v7  ;;  %v22690_v34 = vand.u32 4294901760, %v15141_v21 }
 0x181   : > { %3076 = vmatpush.msrb.mxu0 %v15077_v45  ;;  %3161 = vmatpush.msrb.mxu1 %v3160_v49  ;;  %v2297_v52 = vadd.f32 %v2296_v35, %v2256_v8  ;;  %v15160_v49 = vand.u32 4294901760, %v722_v33  ;;  %v3471_v35 = vsub.f32 %v15115_v40, %v22685_v4  ;;  %v3189_v8 = vsub.f32 %v15112_v15, %v22686_v55 }
 0x182   : > { %3239 = vmatpush.msrb.mxu2 %v15068_v42  ;;  %3283 = vmatpush.msrb.mxu3 %v15018_v31  ;;  %v2142_v53 = vadd.f32 %v2141_v54, %v2083_v39  ;;  %v22687_v31 = vand.u32 4294901760, %v14900_v23  ;;  %v22688_v4 = vand.u32 4294901760, %v15126_v61  ;;  %v22689_v54 = vand.u32 4294901760, %v14910_v59 }
 0x183   : > { %3078 = vmatpush.msrb.mxu0 %v15085_v16  ;;  %3167 = vmatpush.msrb.mxu1 %v3166_v18  ;;  %v15176_v18 = vand.u32 4294901760, %v706_v38  ;;  %12752 = vst [vmem:[%s14629_s29 + $0x8] sm:$0xff] %v2297_v52  ;;  %v15189_v39 = vsub.f32 %v722_v33, %v15160_v49  ;;  %v3190_v52 = vand.u32 4294901760, %v3189_v8  ;;  %v3494_v7 = vand.u32 4294901760, %v15174_v2 }
 0x184   : > { %3242 = vmatpush.msrb.mxu2 %v15081_v58  ;;  %3285 = vmatpush.msrb.mxu3 %v15041_v44  ;;  %v3477_v55 = vsub.f32 %v15126_v61, %v22688_v4  ;;  %v674_v44 = vld [vmem:[%s13221_s17 + $0xb98] sm:$0xff]  ;;  %v3472_v4 = vand.u32 4294901760, %v3471_v35  ;;  %v3483_v61 = vsub.f32 %v15141_v21, %v22690_v34  ;;  %v22692_v8 = vand.u32 4294901760, %v15152_v11 }
 0x185   : > { %3308 = vmatpush.msra.mxu0 %v22687_v31  ;;  %3173 = vmatpush.msrb.mxu1 %v3172_v41  ;;  %v2186_v40 = vpop.f32.mrf.mxu1  ;;  %v15191_v31 = vand.u32 4294901760, %v690_v48  ;;  %v15205_v33 = vand.u32 4294901760, %v674_v44 }
 0x186   : > { %3245 = vmatpush.msrb.mxu2 %v15106_v28  ;;  %3287 = vmatpush.msrb.mxu3 %v15046_v12  ;;  %v2187_v23 = vadd.f32 %v2186_v40, %v2142_v53  ;;  %v2259_v41 = vpop.f32.mrf.mxu2  ;;  %v15203_v40 = vsub.f32 %v706_v38, %v15176_v18  ;;  %v3478_v35 = vand.u32 4294901760, %v3477_v55  ;;  %v3489_v34 = vsub.f32 %v15152_v11, %v22692_v8 }
 0x187   : > { %3312 = vmatpush.msra.mxu0 %v22689_v54  ;;  %3179 = vmatpush.msrb.mxu1 %v3178_v10  ;;  %v22691_v10 = vand.u32 4294901760, %v14923_v13  ;;  %v3500_v38 = vand.u32 4294901760, %v15189_v39  ;;  %v15218_v13 = vand.u32 4294901760, %v658_v26  ;;  %v642_v54 = vld [vmem:[%s13221_s17 + $0xa98] sm:$0xff]  ;;  %v22693_v55 = vand.u32 4294901760, %v14938_v3 }
 0x188   : > { %3248 = vmatpush.msrb.mxu2 %v15112_v15  ;;  %3289 = vmatpush.msrb.mxu3 %v15077_v45  ;;  %v2260_v59 = vadd.f32 %v2259_v41, %v2187_v23  ;;  %v15216_v23 = vsub.f32 %v690_v48, %v15191_v31  ;;  %v3506_v48 = vand.u32 4294901760, %v15203_v40  ;;  %v22694_v8 = vand.u32 4294901760, %v14950_v57 }
 0x189   : > { %3316 = vmatpush.msra.mxu0 %v22691_v10  ;;  %v2300_v53 = vpop.f32.mrf.mxu3  ;;  %3185 = vmatpush.msrb.mxu1 %v3184_v30  ;;  %v3484_v10 = vand.u32 4294901760, %v3483_v61  ;;  %v3495_v30 = vsub.f32 %v15174_v2, %v3494_v7  ;;  %v15234_v3 = vand.u32 4294901760, %v642_v54  ;;  %v626_v61 = vld [vmem:[%s13221_s17 + $0xa18] sm:$0xff]  ;;  %v15244_v57 = vsub.f32 %v658_v26, %v15218_v13 }
 0x18a   : > { %3420 = vmatpush.msra.mxu2 %v15087_v29  ;;  %3291 = vmatpush.msrb.mxu3 %v15085_v16  ;;  %v2301_v41 = vadd.f32 %v2300_v53, %v2260_v59  ;;  %v15229_v59 = vsub.f32 %v674_v44, %v15205_v33  ;;  %v3512_v44 = vand.u32 4294901760, %v15216_v23  ;;  %v610_v53 = vld [vmem:[%s13221_s17 + $0x998] sm:$0xff]  ;;  %v22696_v26 = vand.u32 4294901760, %v14984_v62 }
 0x18b   : > { %3320 = vmatpush.msra.mxu0 %v22693_v55  ;;  %3191 = vmatpush.msrb.mxu1 %v3190_v52  ;;  %v3501_v52 = vsub.f32 %v15189_v39, %v3500_v38  ;;  %v22697_v62 = vand.u32 4294901760, %v15000_v24  ;;  %v22698_v24 = vand.u32 4294901760, %v15015_v46 }
 0x18c   : > { %3422 = vmatpush.msra.mxu2 %v15098_v50  ;;  %3473 = vmatpush.msra.mxu3 %v3472_v4  ;;  %v3490_v4 = vand.u32 4294901760, %v3489_v34  ;;  %12768 = vst [vmem:[%s14629_s29 + $0x88] sm:$0xff] %v2301_v41  ;;  %v3507_v34 = vsub.f32 %v15203_v40, %v3506_v48  ;;  %v3518_v55 = vand.u32 4294901760, %v15229_v59  ;;  %v15255_v41 = vand.u32 4294901760, %v626_v61 }
 0x18d   : > { %3324 = vmatpush.msra.mxu0 %v22694_v8  ;;  %3379 = vmatpush.msra.mxu1 %v14881_v60  ;;  %v22695_v60 = vand.u32 4294901760, %v14969_v14  ;;  %v594_v14 = vld [vmem:[%s13221_s17 + $0x918] sm:$0xff]  ;;  %v3524_v8 = vand.u32 4294901760, %v15244_v57 }
 0x18e   : > { %3424 = vmatpush.msra.mxu2 %v15117_v36  ;;  %3479 = vmatpush.msra.mxu3 %v3478_v35  ;;  %v3496_v35 = vand.u32 4294901760, %v3495_v30  ;;  %v3513_v30 = vsub.f32 %v15216_v23, %v3512_v44 }
 0x18f   : > { %3328 = vmatpush.msra.mxu0 %v22695_v60  ;;  %3381 = vmatpush.msra.mxu1 %v14891_v27  ;;  %v15261_v27 = vsub.f32 %v642_v54, %v15234_v3  ;;  %v15269_v60 = vand.u32 4294901760, %v610_v53  ;;  %v3519_v54 = vsub.f32 %v15229_v59, %v3518_v55 }
 0x190   : > { %3426 = vmatpush.msra.mxu2 %v15128_v63  ;;  %3485 = vmatpush.msra.mxu3 %v3484_v10  ;;  %v3502_v10 = vand.u32 4294901760, %v3501_v52  ;;  %v15281_v52 = vand.u32 4294901760, %v594_v14 }
 0x191   : > { %3332 = vmatpush.msra.mxu0 %v22696_v26  ;;  %3383 = vmatpush.msra.mxu1 %v14897_v56  ;;  %v3508_v56 = vand.u32 4294901760, %v3507_v34  ;;  %v578_v26 = vld [vmem:[%s13221_s17 + $0x898] sm:$0xff]  ;;  %v3525_v34 = vsub.f32 %v15244_v57, %v3524_v8 }
 0x192   : > { %3428 = vmatpush.msra.mxu2 %v15147_v51  ;;  %3491 = vmatpush.msra.mxu3 %v3490_v4  ;;  %v15279_v4 = vsub.f32 %v626_v61, %v15255_v41  ;;  %v15293_v61 = vsub.f32 %v610_v53, %v15269_v60  ;;  %v15298_v46 = vand.u32 4294901760, %v578_v26  ;;  %v22700_v53 = vand.u32 4294901760, %v15034_v32 }
 0x193   : > { %3336 = vmatpush.msra.mxu0 %v22697_v62  ;;  %3385 = vmatpush.msra.mxu1 %v14915_v20  ;;  %v3530_v20 = vand.u32 4294901760, %v15261_v27  ;;  %v22699_v62 = vand.u32 4294901760, %v15021_v17  ;;  %v3526_v17 = vand.u32 4294901760, %v3525_v34  ;;  %v22702_v34 = vand.u32 4294901760, %v15068_v42 }
 0x194   : > { %3430 = vmatpush.msra.mxu2 %v15160_v49  ;;  %3497 = vmatpush.msra.mxu3 %v3496_v35  ;;  %v3514_v35 = vand.u32 4294901760, %v3513_v30  ;;  %v3536_v30 = vand.u32 4294901760, %v15279_v4  ;;  %v15320_v32 = vsub.f32 %v578_v26, %v15298_v46 }
 0x195   : > { %3340 = vmatpush.msra.mxu0 %v22698_v24  ;;  %3387 = vmatpush.msra.mxu1 %v14919_v25  ;;  %v562_v25 = vld [vmem:[%s13221_s17 + $0x818] sm:$0xff]  ;;  %v15304_v24 = vsub.f32 %v594_v14, %v15281_v52  ;;  %v22701_v14 = vand.u32 4294901760, %v15050_v1 }
 0x196   : > { %3432 = vmatpush.msra.mxu2 %v15176_v18  ;;  %3503 = vmatpush.msra.mxu3 %v3502_v10  ;;  %v3520_v10 = vand.u32 4294901760, %v3519_v54  ;;  %v15314_v54 = vand.u32 4294901760, %v562_v25  ;;  %v3554_v42 = vand.u32 4294901760, %v15320_v32 }
 0x197   : > { %3344 = vmatpush.msra.mxu0 %v22699_v62  ;;  %3389 = vmatpush.msra.mxu1 %v14935_v37  ;;  %v3531_v37 = vsub.f32 %v15261_v27, %v3530_v20  ;;  %v22703_v62 = vand.u32 4294901760, %v15081_v58 }
 0x198   : > { %3434 = vmatpush.msra.mxu2 %v15191_v31  ;;  %3509 = vmatpush.msra.mxu3 %v3508_v56  ;;  %v3542_v56 = vand.u32 4294901760, %v15293_v61  ;;  %v15335_v26 = vsub.f32 %v562_v25, %v15314_v54  ;;  %v22704_v25 = vand.u32 4294901760, %v15106_v28  ;;  %v22707_v28 = vld [vmem:[#allocation19_spill] sm:$0xff] }
 0x199   : > { %3348 = vmatpush.msra.mxu0 %v22700_v53  ;;  %3391 = vmatpush.msra.mxu1 %v14955_v6  ;;  %v3537_v6 = vsub.f32 %v15279_v4, %v3536_v30  ;;  %v3532_v1 = vand.u32 4294901760, %v3531_v37  ;;  %v22705_v37 = vld [vmem:[#allocation7_spill] sm:$0xff] }
 0x19a   : > { %3436 = vmatpush.msra.mxu2 %v15205_v33  ;;  %3515 = vmatpush.msra.mxu3 %v3514_v35  ;;  %v3548_v35 = vand.u32 4294901760, %v15304_v24  ;;  %v3560_v53 = vand.u32 4294901760, %v15335_v26 }
 0x19b   : > { %3352 = vmatpush.msra.mxu0 %v22701_v14  ;;  %3393 = vmatpush.msra.mxu1 %v14965_v47  ;;  %v3543_v47 = vsub.f32 %v15293_v61, %v3542_v56  ;;  %v22706_v14 = vand.u32 4294901760, %v15112_v15  ;;  %v22711_v15 = vld [vmem:[#allocation22_spill] sm:$0xff] }
 0x19c   : > { %3438 = vmatpush.msra.mxu2 %v15218_v13  ;;  %3521 = vmatpush.msra.mxu3 %v3520_v10  ;;  %v3549_v10 = vsub.f32 %v15304_v24, %v3548_v35 }
 0x19d   : > { %3356 = vmatpush.msra.mxu0 %v22702_v34  ;;  %3395 = vmatpush.msra.mxu1 %v14981_v5  ;;  %v3538_v5 = vand.u32 4294901760, %v3537_v6  ;;  %v3544_v58 = vand.u32 4294901760, %v3543_v47  ;;  %v22708_v6 = vld [vmem:[#allocation20_spill] sm:$0xff]  ;;  %v22709_v34 = vld [vmem:[#allocation21_spill] sm:$0xff] }
 0x19e   : > { %3440 = vmatpush.msra.mxu2 %v15234_v3  ;;  %3527 = vmatpush.msra.mxu3 %v3526_v17  ;;  %v3550_v17 = vand.u32 4294901760, %v3549_v10  ;;  %v22710_v47 = vld [vmem:[#allocation9_spill] sm:$0xff]  ;;  %v22713_v10 = vld [vmem:[#allocation10_spill] sm:$0xff] }
 0x19f   : > { %3251 = vmatmul.f32.vlgmr.msrb.gmra.mxu2 %v13564_v19  ;;  %3360 = vmatpush.msra.mxu0 %v22703_v62 }
 0x1a0   : > { %3397 = vmatpush.msra.mxu1 %v14991_v0  ;;  %3442 = vmatpush.msra.mxu2 %v15255_v41  ;;  %v3555_v0 = vsub.f32 %v15320_v32, %v3554_v42 }
 0x1a1   : > { %3533 = vmatpush.msra.mxu3 %v3532_v1  ;;  %3084 = vmatmul.f32.vlgmr.msrb.gmra.mxu0 %v13645_v22 }
 0x1a2   : > { %3295 = vmatmul.f32.vlgmr.msrb.gmra.mxu3 %v13594_v9  ;;  %3364 = vmatpush.msra.mxu0 %v22704_v25  ;;  %v3556_v1 = vand.u32 4294901760, %v3555_v0  ;;  %v22714_v25 = vand.u32 4294901760, %v22708_v6  ;;  %v22717_v0 = vand.u32 4294901760, %v15141_v21 }
 0x1a3   : > { %3399 = vmatpush.msra.mxu1 %v15007_v43  ;;  %3444 = vmatpush.msra.mxu2 %v15269_v60  ;;  %v3561_v43 = vsub.f32 %v15335_v26, %v3560_v53 }
 0x1a4   : > { %3539 = vmatpush.msra.mxu3 %v3538_v5  ;;  %3193 = vmatmul.f32.vlgmr.msrb.gmra.mxu1 %v22705_v37  ;;  %v22712_v5 = vld [vmem:[#allocation13_spill] sm:$0xff] }
 0x1a5   : > { %3368 = vmatpush.msra.mxu0 %v22706_v14  ;;  %3401 = vmatpush.msra.mxu1 %v22707_v28  ;;  %v3562_v62 = vand.u32 4294901760, %v3561_v43 }
 0x1a6   : > { %3446 = vmatpush.msra.mxu2 %v15281_v52  ;;  %3545 = vmatpush.msra.mxu3 %v3544_v58  ;;  %v22715_v58 = vld [vmem:[#allocation8_spill] sm:$0xff] }
 0x1a7   : > { %3575 = vmatpush.msrb.mxu0 %v22708_v6  ;;  %3403 = vmatpush.msra.mxu1 %v22709_v34  ;;  %v403_v6 = vld [vmem:[%s13221_s17 + $0x320] sm:$0xff] }
 0x1a8   : > { %3448 = vmatpush.msra.mxu2 %v15298_v46  ;;  %3551 = vmatpush.msra.mxu3 %v3550_v17  ;;  %v22719_v17 = vand.u32 4294901760, %v15152_v11 }
 0x1a9   : > { %3256 = vmatmul.f32.gmra.mxu2 %v22710_v47  ;;  %3578 = vmatpush.msrb.mxu0 %v22711_v15 }
 0x1aa   : > { %3405 = vmatpush.msra.mxu1 %v15046_v12  ;;  %3450 = vmatpush.msra.mxu2 %v15314_v54  ;;  %v22716_v12 = vand.u32 4294901760, %v22711_v15 }
 0x1ab   : > { %3557 = vmatpush.msra.mxu3 %v3556_v1  ;;  %3092 = vmatmul.f32.gmra.mxu0 %v22712_v5 }
 0x1ac   : > { %3301 = vmatmul.f32.gmra.mxu3 %v22713_v10  ;;  %3581 = vmatpush.msrb.mxu0 %v15141_v21 }
 0x1ad   : > { %3680 = vmatpush.msrb.mxu2 %v22714_v25  ;;  %3407 = vmatpush.msra.mxu1 %v15077_v45  ;;  %v22718_v45 = vld [vmem:[#allocation15_spill] sm:$0xff] }
 0x1ae   : > { %3563 = vmatpush.msra.mxu3 %v3562_v62  ;;  %3197 = vmatmul.f32.gmra.mxu1 %v22715_v58 }
 0x1af   : > { %3584 = vmatpush.msrb.mxu0 %v15152_v11  ;;  %3684 = vmatpush.msrb.mxu2 %v22716_v12  ;;  %v515_v11 = vld [vmem:[%s13221_s17 + $0x6a0] sm:$0xff] }
 0x1b0   : > { %3751 = vmatpush.msrb.mxu3 %v15087_v29  ;;  %3409 = vmatpush.msra.mxu1 %v15085_v16  ;;  %v22720_v16 = vld [vmem:[#allocation11_spill] sm:$0xff] }
 0x1b1   : > { %3587 = vmatpush.msrb.mxu0 %v15174_v2  ;;  %3688 = vmatpush.msrb.mxu2 %v22717_v0  ;;  %v387_v0 = vld [vmem:[%s13221_s17 + $0x2a0] sm:$0xff] }
 0x1b2   : > { %3633 = vmatpush.msrb.mxu1 %v15087_v29  ;;  %3753 = vmatpush.msrb.mxu3 %v15098_v50  ;;  %v2341_v2 = vpop.f32.mrf.mxu0 }
 0x1b3   : > { %3456 = vmatmul.f32.vlgmr.msra.gmra.mxu2 %v22718_v45  ;;  %3590 = vmatpush.msrb.mxu0 %v15189_v39  ;;  %v15450_v39 = vand.u32 4294901760, %v515_v11 }
 0x1b4   : > { %3635 = vmatpush.msrb.mxu1 %v15098_v50  ;;  %3692 = vmatpush.msrb.mxu2 %v22719_v17  ;;  %v547_v50 = vld [vmem:[%s13221_s17 + $0x7a0] sm:$0xff] }
 0x1b5   : > { %3755 = vmatpush.msrb.mxu3 %v15117_v36  ;;  %3370 = vmatmul.f32.vlgmr.msra.gmra.mxu0 %v22705_v37  ;;  %v2450_v29 = vpop.f32.mrf.mxu1 }
 0x1b6   : > { %3565 = vmatmul.f32.vlgmr.msra.gmra.mxu3 %v22720_v16  ;;  %3593 = vmatpush.msrb.mxu0 %v15203_v40  ;;  %v499_v40 = vld [vmem:[%s13221_s17 + $0x620] sm:$0xff] }
 0x1b7   : > { %3637 = vmatpush.msrb.mxu1 %v15117_v36  ;;  %3696 = vmatpush.msrb.mxu2 %v3494_v7  ;;  %v2508_v36 = vpop.f32.mrf.mxu2 }
 0x1b8   : > { %3757 = vmatpush.msrb.mxu3 %v15128_v63  ;;  %3411 = vmatmul.f32.vlgmr.msra.gmra.mxu1 %v22705_v37  ;;  %v659_v37 = vld [vmem:[%s13221_s17 + $0xb20] sm:$0xff] }
 0x1b9   : > { %3596 = vmatpush.msrb.mxu0 %v15216_v23  ;;  %3639 = vmatpush.msrb.mxu1 %v15128_v63  ;;  %v531_v63 = vld [vmem:[%s13221_s17 + $0x720] sm:$0xff]  ;;  %v15438_v21 = vpop.f32.mrf.mxu3 }
 0x1ba   : > { %3700 = vmatpush.msrb.mxu2 %v3500_v38  ;;  %3759 = vmatpush.msrb.mxu3 %v15147_v51  ;;  %v22722_v38 = vld [vmem:[#allocation6_spill] sm:$0xff] }
 0x1bb   : > { %3599 = vmatpush.msrb.mxu0 %v15229_v59  ;;  %3641 = vmatpush.msrb.mxu1 %v15147_v51  ;;  %v15434_v51 = vand.u32 4294901760, %v547_v50 }
 0x1bc   : > { %3704 = vmatpush.msrb.mxu2 %v3506_v48  ;;  %3761 = vmatpush.msrb.mxu3 %v15160_v49  ;;  %v2349_v7 = vpop.f32.mrf.mxu0 }
 0x1bd   : > { %3602 = vmatpush.msrb.mxu0 %v15244_v57  ;;  %3643 = vmatpush.msrb.mxu1 %v15160_v49  ;;  %v15444_v49 = vand.u32 4294901760, %v531_v63 }
 0x1be   : > { %3708 = vmatpush.msrb.mxu2 %v3512_v44  ;;  %3763 = vmatpush.msrb.mxu3 %v15176_v18  ;;  %v15476_v44 = vsub.f32 %v515_v11, %v15450_v39  ;;  %v371_v11 = vld [vmem:[%s13221_s17 + $0x220] sm:$0xff] }
 0x1bf   : > { %3605 = vmatpush.msrb.mxu0 %v15261_v27  ;;  %3645 = vmatpush.msrb.mxu1 %v15176_v18  ;;  %v22721_v18 = vld [vmem:[#allocation18_spill] sm:$0xff]  ;;  %v15463_v23 = vsub.f32 %v531_v63, %v15444_v49  ;;  %v2454_v48 = vpop.f32.mrf.mxu1  ;;  %v22723_v27 = vld [vmem:[#allocation12_spill] sm:$0xff] }
 0x1c0   : > { %3712 = vmatpush.msrb.mxu2 %v3518_v55  ;;  %3765 = vmatpush.msrb.mxu3 %v15191_v31  ;;  %v2513_v57 = vpop.f32.mrf.mxu2  ;;  %v467_v55 = vld [vmem:[%s13221_s17 + $0x520] sm:$0xff]  ;;  %v2455_v34 = vadd.f32 %v2454_v48, %v2349_v7  ;;  %v15560_v48 = vand.u32 4294901760, %v387_v0 }
 0x1c1   : > { %3608 = vmatpush.msrb.mxu0 %v15279_v4  ;;  %3647 = vmatpush.msrb.mxu1 %v15191_v31  ;;  %v15453_v31 = vsub.f32 %v547_v50, %v15434_v51  ;;  %v451_v4 = vld [vmem:[%s13221_s17 + $0x4a0] sm:$0xff] }
 0x1c2   : > { %3716 = vmatpush.msrb.mxu2 %v3524_v8  ;;  %3767 = vmatpush.msrb.mxu3 %v15205_v33  ;;  %v22308_v8 = vand.u32 4294901760, %v15463_v23  ;;  %v2514_v7 = vadd.f32 %v2513_v57, %v2455_v34  ;;  %v15571_v57 = vand.u32 4294901760, %v371_v11  ;;  %v22726_v34 = vld [vmem:[#allocation16_spill] sm:$0xff] }
 0x1c3   : > { %3374 = vmatmul.f32.gmra.mxu0 %v22715_v58  ;;  %3649 = vmatpush.msrb.mxu1 %v15205_v33  ;;  %v483_v33 = vld [vmem:[%s13221_s17 + $0x5a0] sm:$0xff] }
 0x1c4   : > { %3611 = vmatpush.msrb.mxu0 %v15293_v61  ;;  %3720 = vmatpush.msrb.mxu2 %v3530_v20  ;;  %v15472_v59 = vand.u32 4294901760, %v483_v33  ;;  %v15488_v20 = vand.u32 4294901760, %v467_v55  ;;  %22725 = vst [vmem:[#allocation19_spill] sm:$0xff] %v15571_v57 }
 0x1c5   : > { %3769 = vmatpush.msrb.mxu3 %v15218_v13  ;;  %3651 = vmatpush.msrb.mxu1 %v15218_v13  ;;  %v15468_v13 = vand.u32 4294901760, %v499_v40 }
 0x1c6   : > { %3614 = vmatpush.msrb.mxu0 %v15304_v24  ;;  %3724 = vmatpush.msrb.mxu2 %v3536_v30  ;;  %v15493_v30 = vpop.f32.mrf.mxu3  ;;  %v22307_v24 = vand.u32 4294901760, %v15476_v44  ;;  %v15522_v43 = vsub.f32 %v467_v55, %v15488_v20 }
 0x1c7   : > { %3771 = vmatpush.msrb.mxu3 %v15234_v3  ;;  %3464 = vmatmul.f32.gmra.mxu2 %v22721_v18  ;;  %v15491_v61 = vsub.f32 %v499_v40, %v15468_v13 }
 0x1c8   : > { %3617 = vmatpush.msrb.mxu0 %v15320_v32  ;;  %3653 = vmatpush.msrb.mxu1 %v15234_v3  ;;  %v22309_v3 = vand.u32 4294901760, %v15453_v31 }
 0x1c9   : > { %3728 = vmatpush.msrb.mxu2 %v3542_v56  ;;  %3773 = vmatpush.msrb.mxu3 %v15255_v41  ;;  %v435_v56 = vld [vmem:[%s13221_s17 + $0x420] sm:$0xff]  ;;  %v22306_v28 = vand.u32 4294901760, %v15491_v61 }
 0x1ca   : > { %3569 = vmatmul.f32.gmra.mxu3 %v22722_v38  ;;  %3620 = vmatpush.msrb.mxu0 %v15335_v26  ;;  %v3849_v26 = vsub.f32 %v15463_v23, %v22308_v8  ;;  %v15518_v14 = vand.u32 4294901760, %v435_v56  ;;  %v15542_v50 = vpop.f32.mrf.mxu2 }
 0x1cb   : > { %3655 = vmatpush.msrb.mxu1 %v15255_v41  ;;  %3732 = vmatpush.msrb.mxu2 %v3548_v35  ;;  %v2451_v41 = vadd.f32 %v2450_v29, %v2341_v2  ;;  %v15508_v35 = vand.u32 4294901760, %v451_v4  ;;  %v2668_v2 = vpop.f32.mrf.mxu1  ;;  %v15544_v29 = vand.u32 4294901760, %v403_v6  ;;  %v3861_v63 = vsub.f32 %v15491_v61, %v22306_v28  ;;  %v323_v28 = vld [vmem:[%s13221_s17 + $0xa0] sm:$0xff] }
 0x1cc   : > { %3775 = vmatpush.msrb.mxu3 %v15269_v60  ;;  %3415 = vmatmul.f32.gmra.mxu1 %v22715_v58  ;;  %v3850_v17 = vand.u32 4294901760, %v3849_v26  ;;  %v355_v26 = vld [vmem:[%s13221_s17 + $0x1a0] sm:$0xff] }
 0x1cd   : > { %3623 = vmatmul.f32.vlgmr.msrb.gmra.mxu0 %v22723_v27  ;;  %3657 = vmatpush.msrb.mxu1 %v15269_v60  ;;  %v3843_v60 = vsub.f32 %v15453_v31, %v22309_v3  ;;  %v2509_v32 = vadd.f32 %v2508_v36, %v2451_v41  ;;  %v15537_v12 = vsub.f32 %v451_v4, %v15508_v35  ;;  %v22724_v36 = vld [vmem:[#allocation14_spill] sm:$0xff] }
 0x1ce   : > { %3792 = vmatpush.msra.mxu0 %v15434_v51  ;;  %3736 = vmatpush.msrb.mxu2 %v3554_v42  ;;  %v2627_v42 = vpop.f32.mrf.mxu0  ;;  %v15564_v41 = vpop.f32.mrf.mxu3  ;;  %v771_v27 = vld [vmem:[%s13221_s17 + $0xea0] sm:$0xff] }
 0x1cf   : > { %3777 = vmatpush.msrb.mxu3 %v15281_v52  ;;  %3659 = vmatpush.msrb.mxu1 %v15281_v52  ;;  %v15503_v52 = vsub.f32 %v483_v33, %v15472_v59  ;;  %v3844_v1 = vand.u32 4294901760, %v3843_v60  ;;  %v2553_v62 = vadd.f32 %v15438_v21, %v2509_v32  ;;  %v22303_v21 = vand.u32 4294901760, %v15522_v43  ;;  %v739_v58 = vld [vmem:[%s13221_s17 + $0xda0] sm:$0xff] }
 0x1d0   : > { %3794 = vmatpush.msra.mxu0 %v15444_v49  ;;  %3740 = vmatpush.msrb.mxu2 %v3560_v53  ;;  %v419_v53 = vld [vmem:[%s13221_s17 + $0x3a0] sm:$0xff]  ;;  %v22305_v4 = vand.u32 4294901760, %v15537_v12 }
 0x1d1   : > { %3779 = vmatpush.msrb.mxu3 %v15298_v46  ;;  %3742 = vmatmul.f32.vlgmr.msrb.gmra.mxu2 %v22720_v16  ;;  %v22304_v15 = vand.u32 4294901760, %v15503_v52  ;;  %v15534_v25 = vand.u32 4294901760, %v419_v53  ;;  %v2628_v55 = vadd.f32 %v2627_v42, %v2553_v62  ;;  %v3862_v42 = vand.u32 4294901760, %v3861_v63 }
 0x1d2   : > { %3796 = vmatpush.msra.mxu0 %v15450_v39  ;;  %3947 = vmatpush.msra.mxu2 %v15453_v31  ;;  %v2559_v62 = vadd.f32 %v15493_v30, %v2514_v7  ;;  %v803_v7 = vld [vmem:[%s13221_s17 + $0xfa0] sm:$0xff] }
 0x1d3   : > { %3661 = vmatpush.msrb.mxu1 %v15298_v46  ;;  %3781 = vmatpush.msrb.mxu3 %v15314_v54  ;;  %v3855_v46 = vsub.f32 %v15476_v44, %v22307_v24  ;;  %v3867_v33 = vsub.f32 %v15503_v52, %v22304_v15  ;;  %v15568_v60 = vsub.f32 %v419_v53, %v15534_v25  ;;  %v15594_v15 = vand.u32 4294901760, %v355_v26  ;;  %v22728_v24 = vld [vmem:[#allocation17_spill] sm:$0xff] }
 0x1d4   : > { %3783 = vmatmul.f32.vlgmr.msrb.gmra.mxu3 %v22720_v16  ;;  %3798 = vmatpush.msra.mxu0 %v15468_v13  ;;  %v3873_v53 = vsub.f32 %v15522_v43, %v22303_v21  ;;  %v2669_v63 = vadd.f32 %v2668_v2, %v2628_v55  ;;  %v3879_v21 = vsub.f32 %v15537_v12, %v22305_v4  ;;  %v15640_v3 = vand.u32 4294901760, %v803_v7 }
 0x1d5   : > { %3950 = vmatpush.msra.mxu2 %v15463_v23  ;;  %4005 = vmatpush.msra.mxu3 %v15434_v51  ;;  %v3856_v40 = vand.u32 4294901760, %v3855_v46  ;;  %v339_v46 = vld [vmem:[%s13221_s17 + $0x120] sm:$0xff]  ;;  %22727 = vst [vmem:[#allocation20_spill] sm:$0xff] %v15594_v15  ;;  %v22311_v30 = vand.u32 4294901760, %v15568_v60  ;;  %v15603_v2 = vsub.f32 %v371_v11, %v15571_v57 }
 0x1d6   : > { %3663 = vmatpush.msrb.mxu1 %v15314_v54  ;;  %3800 = vmatpush.msra.mxu0 %v15472_v59  ;;  %v15553_v54 = vsub.f32 %v435_v56, %v15518_v14  ;;  %v15574_v56 = vsub.f32 %v403_v6, %v15544_v29  ;;  %v2631_v32 = vpop.f32.mrf.mxu0  ;;  %v3868_v6 = vand.u32 4294901760, %v3867_v33  ;;  %v3874_v55 = vand.u32 4294901760, %v3873_v53  ;;  %v307_v11 = vld [vmem:[%s13221_s17 + $0x20] sm:$0xff] }
 0x1d7   : > { %3667 = vmatmul.f32.vlgmr.msrb.gmra.mxu1 %v22724_v36  ;;  %3953 = vmatpush.msra.mxu2 %v15476_v44  ;;  %v2632_v8 = vadd.f32 %v2631_v32, %v2559_v62  ;;  %v3880_v53 = vand.u32 4294901760, %v3879_v21 }
 0x1d8   : > { %3845 = vmatpush.msra.mxu1 %v3844_v1  ;;  %4007 = vmatpush.msra.mxu3 %v15444_v49  ;;  %v22310_v1 = vand.u32 4294901760, %v15553_v54  ;;  %v22729_v32 = vand.u32 4294901760, %v15574_v56 }
 0x1d9   : > { %3802 = vmatpush.msra.mxu0 %v15488_v20  ;;  %3956 = vmatpush.msra.mxu2 %v15491_v61 }
 0x1da   : > { %3851 = vmatpush.msra.mxu1 %v3850_v17  ;;  %4009 = vmatpush.msra.mxu3 %v15450_v39  ;;  %v15587_v17 = vsub.f32 %v387_v0, %v15560_v48  ;;  %v15599_v0 = vand.u32 4294901760, %v339_v46  ;;  %v3885_v4 = vsub.f32 %v15553_v54, %v22310_v1  ;;  %v3891_v1 = vsub.f32 %v15568_v60, %v22311_v30 }
 0x1db   : > { %3628 = vmatmul.f32.gmra.mxu0 %v22726_v34  ;;  %3746 = vmatmul.f32.gmra.mxu2 %v22722_v38  ;;  %v15621_v34 = vsub.f32 %v355_v26, %v15594_v15  ;;  %v3897_v62 = vsub.f32 %v15574_v56, %v22729_v32  ;;  %v787_v26 = vld [vmem:[%s13221_s17 + $0xf20] sm:$0xff]  ;;  %v15638_v30 = vand.u32 4294901760, %v307_v11 }
 0x1dc   : > { %3804 = vmatpush.msra.mxu0 %v15508_v35  ;;  %3857 = vmatpush.msra.mxu1 %v3856_v40  ;;  %v22730_v32 = vand.u32 4294901760, %v15587_v17  ;;  %v15651_v18 = vand.u32 4294901760, %v787_v26 }
 0x1dd   : > { %3959 = vmatpush.msra.mxu2 %v15503_v52  ;;  %4011 = vmatpush.msra.mxu3 %v15468_v13  ;;  %v2672_v40 = vpop.f32.mrf.mxu1  ;;  %v3898_v16 = vand.u32 4294901760, %v3897_v62  ;;  %v15668_v62 = vsub.f32 %v803_v7, %v15640_v3 }
 0x1de   : > { %3787 = vmatmul.f32.gmra.mxu3 %v22722_v38  ;;  %3806 = vmatpush.msra.mxu0 %v15518_v14  ;;  %v2721_v33 = vpop.f32.mrf.mxu2  ;;  %v3903_v21 = vsub.f32 %v15587_v17, %v22730_v32  ;;  %v2880_v36 = vpop.f32.mrf.mxu0  ;;  %v22731_v32 = vand.u32 4294901760, %v15603_v2  ;;  %v15679_v7 = vsub.f32 %v787_v26, %v15651_v18  ;;  %v707_v26 = vld [vmem:[%s13221_s17 + $0xca0] sm:$0xff] }
 0x1df   : > { %3863 = vmatpush.msra.mxu1 %v3862_v42  ;;  %3962 = vmatpush.msra.mxu2 %v15522_v43  ;;  %v2714_v42 = vadd.f32 %v15542_v50, %v2669_v63  ;;  %v15630_v50 = vand.u32 4294901760, %v323_v28  ;;  %v3886_v63 = vand.u32 4294901760, %v3885_v4  ;;  %v3892_v4 = vand.u32 4294901760, %v3891_v1  ;;  %22732 = vst [vmem:[#allocation21_spill] sm:$0xff] %v15668_v62 }
 0x1e0   : > { %4013 = vmatpush.msra.mxu3 %v15472_v59  ;;  %3673 = vmatmul.f32.gmra.mxu1 %v22728_v24  ;;  %22734 = vst [vmem:[#allocation22_spill] sm:$0xff] %v15679_v7 }
 0x1e1   : > { %3808 = vmatpush.msra.mxu0 %v15534_v25  ;;  %3869 = vmatpush.msra.mxu1 %v3868_v6  ;;  %v15623_v24 = vpop.f32.mrf.mxu3  ;;  %v15634_v6 = vsub.f32 %v339_v46, %v15599_v0  ;;  %v2673_v46 = vadd.f32 %v2672_v40, %v2632_v8  ;;  %v2823_v38 = vadd.f32 %v15564_v41, %v2714_v42  ;;  %v755_v42 = vld [vmem:[%s13221_s17 + $0xe20] sm:$0xff] }
 0x1e2   : > { %3965 = vmatpush.msra.mxu2 %v15537_v12  ;;  %4015 = vmatpush.msra.mxu3 %v15488_v20  ;;  %v3909_v8 = vsub.f32 %v15603_v2, %v22731_v32  ;;  %v15659_v40 = vsub.f32 %v323_v28, %v15630_v50  ;;  %v3904_v28 = vand.u32 4294901760, %v3903_v21 }
 0x1e3   : > { %3810 = vmatpush.msra.mxu0 %v15544_v29  ;;  %3875 = vmatpush.msra.mxu1 %v3874_v55  ;;  %v2881_v1 = vadd.f32 %v2880_v36, %v2823_v38  ;;  %v15670_v55 = vand.u32 4294901760, %v771_v27  ;;  %v2722_v32 = vadd.f32 %v2721_v33, %v2673_v46  ;;  %v22733_v38 = vand.u32 4294901760, %v15621_v34 }
 0x1e4   : > { %3968 = vmatpush.msra.mxu2 %v15553_v54  ;;  %4017 = vmatpush.msra.mxu3 %v15508_v35  ;;  %v3910_v33 = vand.u32 4294901760, %v3909_v8  ;;  %v22735_v21 = vand.u32 4294901760, %v15634_v6  ;;  %v723_v8 = vld [vmem:[%s13221_s17 + $0xd20] sm:$0xff] }
 0x1e5   : > { %3812 = vmatpush.msra.mxu0 %v15560_v48  ;;  %3881 = vmatpush.msra.mxu1 %v3880_v53  ;;  %v15665_v53 = vsub.f32 %v307_v11, %v15638_v30  ;;  %v3915_v36 = vsub.f32 %v15621_v34, %v22733_v38 }
 0x1e6   : > { %3971 = vmatpush.msra.mxu2 %v15568_v60  ;;  %4019 = vmatpush.msra.mxu3 %v15518_v14  ;;  %v3921_v46 = vsub.f32 %v15634_v6, %v22735_v21  ;;  %v2827_v21 = vadd.f32 %v15623_v24, %v2722_v32  ;;  %v22736_v32 = vand.u32 4294901760, %v15659_v40 }
 0x1e7   : > { %3814 = vmatpush.msra.mxu0 %v15571_v57  ;;  %3887 = vmatpush.msra.mxu1 %v3886_v63  ;;  %v15681_v63 = vand.u32 4294901760, %v755_v42 }
 0x1e8   : > { %3974 = vmatpush.msra.mxu2 %v15574_v56  ;;  %4021 = vmatpush.msra.mxu3 %v15534_v25  ;;  %v2924_v41 = vpop.f32.mrf.mxu1  ;;  %v2999_v45 = vpop.f32.mrf.mxu2  ;;  %v3922_v24 = vand.u32 4294901760, %v3921_v46  ;;  %v3927_v5 = vsub.f32 %v15659_v40, %v22736_v32 }
 0x1e9   : > { %3816 = vmatpush.msra.mxu0 %v15594_v15  ;;  %3893 = vmatpush.msra.mxu1 %v3892_v4  ;;  %v2925_v11 = vadd.f32 %v2924_v41, %v2881_v1  ;;  %v15694_v1 = vsub.f32 %v771_v27, %v15670_v55  ;;  %v15700_v4 = vand.u32 4294901760, %v739_v58  ;;  %v15705_v27 = vsub.f32 %v755_v42, %v15681_v63  ;;  %v691_v41 = vld [vmem:[%s13221_s17 + $0xc20] sm:$0xff] }
 0x1ea   : > { %3977 = vmatpush.msra.mxu2 %v15587_v17  ;;  %4023 = vmatpush.msra.mxu3 %v15544_v29  ;;  %v22737_v42 = vand.u32 4294901760, %v15668_v62 }
 0x1eb   : > { %3818 = vmatpush.msra.mxu0 %v15599_v0  ;;  %3899 = vmatpush.msra.mxu1 %v3898_v16  ;;  %v3000_v38 = vadd.f32 %v2999_v45, %v2925_v11  ;;  %v3040_v10 = vpop.f32.mrf.mxu3  ;;  %v3916_v16 = vand.u32 4294901760, %v3915_v36  ;;  %v22738_v36 = vand.u32 4294901760, %v15665_v53  ;;  %v15727_v47 = vsub.f32 %v739_v58, %v15700_v4 }
 0x1ec   : > { %3980 = vmatpush.msra.mxu2 %v15603_v2  ;;  %4025 = vmatpush.msra.mxu3 %v15560_v48  ;;  %v2885_v45 = vpop.f32.mrf.mxu0  ;;  %v3928_v58 = vand.u32 4294901760, %v3927_v5  ;;  %v22742_v46 = vand.u32 4294901760, %v15694_v1 }
 0x1ed   : > { %3820 = vmatpush.msra.mxu0 %v15630_v50  ;;  %3905 = vmatpush.msra.mxu1 %v3904_v28  ;;  %v3041_v11 = vadd.f32 %v3040_v10, %v3000_v38  ;;  %v15713_v28 = vand.u32 4294901760, %v723_v8  ;;  %v4215_v10 = vsub.f32 %v15668_v62, %v22737_v42  ;;  %v3933_v38 = vsub.f32 %v15665_v53, %v22738_v36 }
 0x1ee   : > { %3983 = vmatpush.msra.mxu2 %v15621_v34  ;;  %4027 = vmatpush.msra.mxu3 %v15571_v57  ;;  %v2886_v32 = vadd.f32 %v2885_v45, %v2827_v21  ;;  %v22739_v57 = vand.u32 4294901760, %v15453_v31  ;;  %v22740_v42 = vand.u32 4294901760, %v15679_v7  ;;  %v22741_v45 = vand.u32 4294901760, %v15463_v23 }
 0x1ef   : > { %3822 = vmatpush.msra.mxu0 %v15638_v30  ;;  %3911 = vmatpush.msra.mxu1 %v3910_v33  ;;  %v15729_v33 = vand.u32 4294901760, %v707_v26  ;;  %12753 = vst [vmem:[%s14629_s29 + $0x10] sm:$0xff] %v3041_v11  ;;  %v15742_v21 = vsub.f32 %v723_v8, %v15713_v28  ;;  %v3934_v11 = vand.u32 4294901760, %v3933_v38  ;;  %v4238_v5 = vand.u32 4294901760, %v15727_v47 }
 0x1f0   : > { %3986 = vmatpush.msra.mxu2 %v15634_v6  ;;  %4029 = vmatpush.msra.mxu3 %v15594_v15  ;;  %v4221_v36 = vsub.f32 %v15679_v7, %v22740_v42  ;;  %v675_v15 = vld [vmem:[%s13221_s17 + $0xba0] sm:$0xff]  ;;  %v4216_v42 = vand.u32 4294901760, %v4215_v10  ;;  %v4227_v7 = vsub.f32 %v15694_v1, %v22742_v46  ;;  %v22744_v38 = vand.u32 4294901760, %v15705_v27 }
 0x1f1   : > { %4052 = vmatpush.msrb.mxu0 %v22739_v57  ;;  %3917 = vmatpush.msra.mxu1 %v3916_v16  ;;  %v2930_v62 = vpop.f32.mrf.mxu1  ;;  %v15744_v57 = vand.u32 4294901760, %v691_v41  ;;  %v15758_v8 = vand.u32 4294901760, %v675_v15 }
 0x1f2   : > { %3989 = vmatpush.msra.mxu2 %v15659_v40  ;;  %4031 = vmatpush.msra.mxu3 %v15599_v0  ;;  %v2931_v31 = vadd.f32 %v2930_v62, %v2886_v32  ;;  %v3003_v16 = vpop.f32.mrf.mxu2  ;;  %v15756_v62 = vsub.f32 %v707_v26, %v15729_v33  ;;  %v4222_v10 = vand.u32 4294901760, %v4221_v36  ;;  %v4233_v46 = vsub.f32 %v15705_v27, %v22744_v38 }
 0x1f3   : > { %4056 = vmatpush.msrb.mxu0 %v22741_v45  ;;  %3923 = vmatpush.msra.mxu1 %v3922_v24  ;;  %v22743_v24 = vand.u32 4294901760, %v15476_v44  ;;  %v4244_v26 = vand.u32 4294901760, %v15742_v21  ;;  %v15771_v44 = vand.u32 4294901760, %v659_v37  ;;  %v643_v45 = vld [vmem:[%s13221_s17 + $0xaa0] sm:$0xff]  ;;  %v22745_v36 = vand.u32 4294901760, %v15491_v61 }
 0x1f4   : > { %3992 = vmatpush.msra.mxu2 %v15665_v53  ;;  %4033 = vmatpush.msra.mxu3 %v15630_v50  ;;  %v3004_v23 = vadd.f32 %v3003_v16, %v2931_v31  ;;  %v15769_v31 = vsub.f32 %v691_v41, %v15744_v57  ;;  %v4250_v41 = vand.u32 4294901760, %v15756_v62  ;;  %v22746_v38 = vand.u32 4294901760, %v15503_v52 }
 0x1f5   : > { %4060 = vmatpush.msrb.mxu0 %v22743_v24  ;;  %v3044_v32 = vpop.f32.mrf.mxu3  ;;  %3929 = vmatpush.msra.mxu1 %v3928_v58  ;;  %v4228_v24 = vand.u32 4294901760, %v4227_v7  ;;  %v4239_v58 = vsub.f32 %v15727_v47, %v4238_v5  ;;  %v15787_v61 = vand.u32 4294901760, %v643_v45  ;;  %v627_v7 = vld [vmem:[%s13221_s17 + $0xa20] sm:$0xff]  ;;  %v15797_v52 = vsub.f32 %v659_v37, %v15771_v44 }
 0x1f6   : > { %4164 = vmatpush.msrb.mxu2 %v15640_v3  ;;  %4035 = vmatpush.msra.mxu3 %v15638_v30  ;;  %v3045_v16 = vadd.f32 %v3044_v32, %v3004_v23  ;;  %v15782_v23 = vsub.f32 %v675_v15, %v15758_v8  ;;  %v4256_v15 = vand.u32 4294901760, %v15769_v31  ;;  %v611_v32 = vld [vmem:[%s13221_s17 + $0x9a0] sm:$0xff]  ;;  %v22748_v37 = vand.u32 4294901760, %v15537_v12 }
 0x1f7   : > { %4064 = vmatpush.msrb.mxu0 %v22745_v36  ;;  %3935 = vmatpush.msra.mxu1 %v3934_v11  ;;  %v4245_v11 = vsub.f32 %v15742_v21, %v4244_v26  ;;  %v22749_v12 = vand.u32 4294901760, %v15553_v54  ;;  %v22750_v54 = vand.u32 4294901760, %v15568_v60 }
 0x1f8   : > { %4166 = vmatpush.msrb.mxu2 %v15651_v18  ;;  %4217 = vmatpush.msrb.mxu3 %v4216_v42  ;;  %v4234_v42 = vand.u32 4294901760, %v4233_v46  ;;  %12769 = vst [vmem:[%s14629_s29 + $0x90] sm:$0xff] %v3045_v16  ;;  %v4251_v46 = vsub.f32 %v15756_v62, %v4250_v41  ;;  %v4262_v36 = vand.u32 4294901760, %v15782_v23  ;;  %v15808_v16 = vand.u32 4294901760, %v627_v7 }
 0x1f9   : > { %4068 = vmatpush.msrb.mxu0 %v22746_v38  ;;  %4123 = vmatpush.msrb.mxu1 %v15434_v51  ;;  %v22747_v51 = vand.u32 4294901760, %v15522_v43  ;;  %v595_v43 = vld [vmem:[%s13221_s17 + $0x920] sm:$0xff]  ;;  %v4268_v38 = vand.u32 4294901760, %v15797_v52 }
 0x1fa   : > { %4168 = vmatpush.msrb.mxu2 %v15670_v55  ;;  %4223 = vmatpush.msrb.mxu3 %v4222_v10  ;;  %v4240_v10 = vand.u32 4294901760, %v4239_v58  ;;  %v4257_v58 = vsub.f32 %v15769_v31, %v4256_v15 }
 0x1fb   : > { %4072 = vmatpush.msrb.mxu0 %v22747_v51  ;;  %4125 = vmatpush.msrb.mxu1 %v15444_v49  ;;  %v15814_v49 = vsub.f32 %v643_v45, %v15787_v61  ;;  %v15822_v51 = vand.u32 4294901760, %v611_v32  ;;  %v4263_v45 = vsub.f32 %v15782_v23, %v4262_v36 }
 0x1fc   : > { %4170 = vmatpush.msrb.mxu2 %v15681_v63  ;;  %4229 = vmatpush.msrb.mxu3 %v4228_v24  ;;  %v4246_v24 = vand.u32 4294901760, %v4245_v11  ;;  %v15834_v11 = vand.u32 4294901760, %v595_v43 }
 0x1fd   : > { %4076 = vmatpush.msrb.mxu0 %v22748_v37  ;;  %4127 = vmatpush.msrb.mxu1 %v15450_v39  ;;  %v4252_v39 = vand.u32 4294901760, %v4251_v46  ;;  %v579_v37 = vld [vmem:[%s13221_s17 + $0x8a0] sm:$0xff]  ;;  %v4269_v46 = vsub.f32 %v15797_v52, %v4268_v38 }
 0x1fe   : > { %4172 = vmatpush.msrb.mxu2 %v15700_v4  ;;  %4235 = vmatpush.msrb.mxu3 %v4234_v42  ;;  %v15832_v42 = vsub.f32 %v627_v7, %v15808_v16  ;;  %v15846_v7 = vsub.f32 %v611_v32, %v15822_v51  ;;  %v15851_v60 = vand.u32 4294901760, %v579_v37  ;;  %v22752_v32 = vand.u32 4294901760, %v15587_v17 }
 0x1ff   : > { %4080 = vmatpush.msrb.mxu0 %v22749_v12  ;;  %4129 = vmatpush.msrb.mxu1 %v15468_v13  ;;  %v4274_v13 = vand.u32 4294901760, %v15814_v49  ;;  %v22751_v12 = vand.u32 4294901760, %v15574_v56  ;;  %v4270_v56 = vand.u32 4294901760, %v4269_v46  ;;  %v22754_v46 = vand.u32 4294901760, %v15621_v34 }
 0x200   : > { %4174 = vmatpush.msrb.mxu2 %v15713_v28  ;;  %4241 = vmatpush.msrb.mxu3 %v4240_v10  ;;  %v4258_v10 = vand.u32 4294901760, %v4257_v58  ;;  %v4280_v58 = vand.u32 4294901760, %v15832_v42  ;;  %v15873_v17 = vsub.f32 %v579_v37, %v15851_v60 }
 0x201   : > { %4084 = vmatpush.msrb.mxu0 %v22750_v54  ;;  %4131 = vmatpush.msrb.mxu1 %v15472_v59  ;;  %v563_v59 = vld [vmem:[%s13221_s17 + $0x820] sm:$0xff]  ;;  %v15857_v54 = vsub.f32 %v595_v43, %v15834_v11  ;;  %v22753_v43 = vand.u32 4294901760, %v15603_v2 }
 0x202   : > { %4176 = vmatpush.msrb.mxu2 %v15729_v33  ;;  %4247 = vmatpush.msrb.mxu3 %v4246_v24  ;;  %v4264_v24 = vand.u32 4294901760, %v4263_v45  ;;  %v15867_v45 = vand.u32 4294901760, %v563_v59  ;;  %v4298_v34 = vand.u32 4294901760, %v15873_v17 }
 0x203   : > { %4088 = vmatpush.msrb.mxu0 %v22751_v12  ;;  %4133 = vmatpush.msrb.mxu1 %v15488_v20  ;;  %v4275_v20 = vsub.f32 %v15814_v49, %v4274_v13  ;;  %v22755_v12 = vand.u32 4294901760, %v15634_v6 }
 0x204   : > { %4178 = vmatpush.msrb.mxu2 %v15744_v57  ;;  %4253 = vmatpush.msrb.mxu3 %v4252_v39  ;;  %v4286_v39 = vand.u32 4294901760, %v15846_v7  ;;  %v15888_v37 = vsub.f32 %v563_v59, %v15867_v45  ;;  %v22756_v59 = vand.u32 4294901760, %v15659_v40  ;;  %v22759_v40 = vld [vmem:[#allocation19_spill] sm:$0xff] }
 0x205   : > { %4092 = vmatpush.msrb.mxu0 %v22752_v32  ;;  %4135 = vmatpush.msrb.mxu1 %v15508_v35  ;;  %v4281_v35 = vsub.f32 %v15832_v42, %v4280_v58  ;;  %v4276_v2 = vand.u32 4294901760, %v4275_v20  ;;  %v22757_v20 = vld [vmem:[#allocation7_spill] sm:$0xff] }
 0x206   : > { %4180 = vmatpush.msrb.mxu2 %v15758_v8  ;;  %4259 = vmatpush.msrb.mxu3 %v4258_v10  ;;  %v4292_v10 = vand.u32 4294901760, %v15857_v54  ;;  %v4304_v32 = vand.u32 4294901760, %v15888_v37 }
 0x207   : > { %4096 = vmatpush.msrb.mxu0 %v22753_v43  ;;  %4137 = vmatpush.msrb.mxu1 %v15518_v14  ;;  %v4287_v14 = vsub.f32 %v15846_v7, %v4286_v39  ;;  %v22758_v43 = vand.u32 4294901760, %v15665_v53  ;;  %v22763_v53 = vld [vmem:[#allocation22_spill] sm:$0xff] }
 0x208   : > { %4182 = vmatpush.msrb.mxu2 %v15771_v44  ;;  %4265 = vmatpush.msrb.mxu3 %v4264_v24  ;;  %v4293_v24 = vsub.f32 %v15857_v54, %v4292_v10 }
 0x209   : > { %4100 = vmatpush.msrb.mxu0 %v22754_v46  ;;  %4139 = vmatpush.msrb.mxu1 %v15534_v25  ;;  %v4282_v25 = vand.u32 4294901760, %v4281_v35  ;;  %v4288_v6 = vand.u32 4294901760, %v4287_v14  ;;  %v22760_v35 = vld [vmem:[#allocation21_spill] sm:$0xff]  ;;  %v22761_v46 = vld [vmem:[#allocation20_spill] sm:$0xff] }
 0x20a   : > { %4184 = vmatpush.msrb.mxu2 %v15787_v61  ;;  %4271 = vmatpush.msrb.mxu3 %v4270_v56  ;;  %v4294_v56 = vand.u32 4294901760, %v4293_v24  ;;  %v22762_v14 = vld [vmem:[#allocation9_spill] sm:$0xff]  ;;  %v22765_v24 = vld [vmem:[#allocation10_spill] sm:$0xff] }
 0x20b   : > { %3995 = vmatmul.f32.vlgmr.msra.gmra.mxu2 %v13564_v19  ;;  %4104 = vmatpush.msrb.mxu0 %v22755_v12 }
 0x20c   : > { %4141 = vmatpush.msrb.mxu1 %v15544_v29  ;;  %4186 = vmatpush.msrb.mxu2 %v15808_v16  ;;  %v4299_v29 = vsub.f32 %v15873_v17, %v4298_v34 }
 0x20d   : > { %4277 = vmatpush.msrb.mxu3 %v4276_v2  ;;  %3828 = vmatmul.f32.vlgmr.msra.gmra.mxu0 %v13645_v22 }
 0x20e   : > { %4039 = vmatmul.f32.vlgmr.msra.gmra.mxu3 %v13594_v9  ;;  %4108 = vmatpush.msrb.mxu0 %v22756_v59  ;;  %v4300_v2 = vand.u32 4294901760, %v4299_v29  ;;  %v22766_v59 = vand.u32 4294901760, %v22760_v35  ;;  %v22769_v29 = vand.u32 4294901760, %v15694_v1 }
 0x20f   : > { %4143 = vmatpush.msrb.mxu1 %v15560_v48  ;;  %4188 = vmatpush.msrb.mxu2 %v15822_v51  ;;  %v4305_v48 = vsub.f32 %v15888_v37, %v4304_v32 }
 0x210   : > { %4283 = vmatpush.msrb.mxu3 %v4282_v25  ;;  %3937 = vmatmul.f32.vlgmr.msra.gmra.mxu1 %v22757_v20  ;;  %v22764_v25 = vld [vmem:[#allocation13_spill] sm:$0xff] }
 0x211   : > { %4112 = vmatpush.msrb.mxu0 %v22758_v43  ;;  %4145 = vmatpush.msrb.mxu1 %v22759_v40  ;;  %v4306_v12 = vand.u32 4294901760, %v4305_v48 }
 0x212   : > { %4190 = vmatpush.msrb.mxu2 %v15834_v11  ;;  %4289 = vmatpush.msrb.mxu3 %v4288_v6  ;;  %v22767_v6 = vld [vmem:[#allocation8_spill] sm:$0xff] }
 0x213   : > { %4319 = vmatpush.msra.mxu0 %v22760_v35  ;;  %4147 = vmatpush.msrb.mxu1 %v22761_v46  ;;  %v404_v35 = vld [vmem:[%s13221_s17 + $0x328] sm:$0xff] }
 0x214   : > { %4192 = vmatpush.msrb.mxu2 %v15851_v60  ;;  %4295 = vmatpush.msrb.mxu3 %v4294_v56  ;;  %v22771_v56 = vand.u32 4294901760, %v15705_v27 }
 0x215   : > { %4000 = vmatmul.f32.gmra.mxu2 %v22762_v14  ;;  %4322 = vmatpush.msra.mxu0 %v22763_v53 }
 0x216   : > { %4149 = vmatpush.msrb.mxu1 %v15599_v0  ;;  %4194 = vmatpush.msrb.mxu2 %v15867_v45  ;;  %v22768_v0 = vand.u32 4294901760, %v22763_v53 }
 0x217   : > { %4301 = vmatpush.msrb.mxu3 %v4300_v2  ;;  %3836 = vmatmul.f32.gmra.mxu0 %v22764_v25 }
 0x218   : > { %4045 = vmatmul.f32.gmra.mxu3 %v22765_v24  ;;  %4325 = vmatpush.msra.mxu0 %v15694_v1 }
 0x219   : > { %4424 = vmatpush.msra.mxu2 %v22766_v59  ;;  %4151 = vmatpush.msrb.mxu1 %v15630_v50  ;;  %v22770_v50 = vld [vmem:[#allocation15_spill] sm:$0xff] }
 0x21a   : > { %4307 = vmatpush.msrb.mxu3 %v4306_v12  ;;  %3941 = vmatmul.f32.gmra.mxu1 %v22767_v6 }
 0x21b   : > { %4328 = vmatpush.msra.mxu0 %v15705_v27  ;;  %4428 = vmatpush.msra.mxu2 %v22768_v0  ;;  %v516_v27 = vld [vmem:[%s13221_s17 + $0x6a8] sm:$0xff] }
 0x21c   : > { %4495 = vmatpush.msra.mxu3 %v15640_v3  ;;  %4153 = vmatpush.msrb.mxu1 %v15638_v30  ;;  %v22772_v30 = vld [vmem:[#allocation11_spill] sm:$0xff] }
 0x21d   : > { %4331 = vmatpush.msra.mxu0 %v15727_v47  ;;  %4432 = vmatpush.msra.mxu2 %v22769_v29  ;;  %v388_v29 = vld [vmem:[%s13221_s17 + $0x2a8] sm:$0xff] }
 0x21e   : > { %4377 = vmatpush.msra.mxu1 %v15640_v3  ;;  %4497 = vmatpush.msra.mxu3 %v15651_v18  ;;  %v3085_v47 = vpop.f32.mrf.mxu0 }
 0x21f   : > { %4200 = vmatmul.f32.vlgmr.msrb.gmra.mxu2 %v22770_v50  ;;  %4334 = vmatpush.msra.mxu0 %v15742_v21  ;;  %v16003_v21 = vand.u32 4294901760, %v516_v27 }
 0x220   : > { %4379 = vmatpush.msra.mxu1 %v15651_v18  ;;  %4436 = vmatpush.msra.mxu2 %v22771_v56  ;;  %v548_v18 = vld [vmem:[%s13221_s17 + $0x7a8] sm:$0xff] }
 0x221   : > { %4499 = vmatpush.msra.mxu3 %v15670_v55  ;;  %4114 = vmatmul.f32.vlgmr.msrb.gmra.mxu0 %v22757_v20  ;;  %v3194_v3 = vpop.f32.mrf.mxu1 }
 0x222   : > { %4309 = vmatmul.f32.vlgmr.msrb.gmra.mxu3 %v22772_v30  ;;  %4337 = vmatpush.msra.mxu0 %v15756_v62  ;;  %v500_v62 = vld [vmem:[%s13221_s17 + $0x628] sm:$0xff] }
 0x223   : > { %4381 = vmatpush.msra.mxu1 %v15670_v55  ;;  %4440 = vmatpush.msra.mxu2 %v4238_v5  ;;  %v3252_v55 = vpop.f32.mrf.mxu2 }
 0x224   : > { %4501 = vmatpush.msra.mxu3 %v15681_v63  ;;  %4155 = vmatmul.f32.vlgmr.msrb.gmra.mxu1 %v22757_v20  ;;  %v660_v20 = vld [vmem:[%s13221_s17 + $0xb28] sm:$0xff] }
 0x225   : > { %4340 = vmatpush.msra.mxu0 %v15769_v31  ;;  %4383 = vmatpush.msra.mxu1 %v15681_v63  ;;  %v532_v63 = vld [vmem:[%s13221_s17 + $0x728] sm:$0xff]  ;;  %v15991_v1 = vpop.f32.mrf.mxu3 }
 0x226   : > { %4444 = vmatpush.msra.mxu2 %v4244_v26  ;;  %4503 = vmatpush.msra.mxu3 %v15700_v4  ;;  %v22774_v26 = vld [vmem:[#allocation6_spill] sm:$0xff] }
 0x227   : > { %4343 = vmatpush.msra.mxu0 %v15782_v23  ;;  %4385 = vmatpush.msra.mxu1 %v15700_v4  ;;  %v15987_v4 = vand.u32 4294901760, %v548_v18 }
 0x228   : > { %4448 = vmatpush.msra.mxu2 %v4250_v41  ;;  %4505 = vmatpush.msra.mxu3 %v15713_v28  ;;  %v3093_v5 = vpop.f32.mrf.mxu0 }
 0x229   : > { %4346 = vmatpush.msra.mxu0 %v15797_v52  ;;  %4387 = vmatpush.msra.mxu1 %v15713_v28  ;;  %v15997_v28 = vand.u32 4294901760, %v532_v63 }
 0x22a   : > { %4452 = vmatpush.msra.mxu2 %v4256_v15  ;;  %4507 = vmatpush.msra.mxu3 %v15729_v33  ;;  %v16029_v15 = vsub.f32 %v516_v27, %v16003_v21  ;;  %v372_v27 = vld [vmem:[%s13221_s17 + $0x228] sm:$0xff] }
 0x22b   : > { %4349 = vmatpush.msra.mxu0 %v15814_v49  ;;  %4389 = vmatpush.msra.mxu1 %v15729_v33  ;;  %v22773_v33 = vld [vmem:[#allocation18_spill] sm:$0xff]  ;;  %v16016_v31 = vsub.f32 %v532_v63, %v15997_v28  ;;  %v3198_v41 = vpop.f32.mrf.mxu1  ;;  %v22775_v49 = vld [vmem:[#allocation12_spill] sm:$0xff] }
 0x22c   : > { %4456 = vmatpush.msra.mxu2 %v4262_v36  ;;  %4509 = vmatpush.msra.mxu3 %v15744_v57  ;;  %v3257_v52 = vpop.f32.mrf.mxu2  ;;  %v468_v36 = vld [vmem:[%s13221_s17 + $0x528] sm:$0xff]  ;;  %v3199_v46 = vadd.f32 %v3198_v41, %v3093_v5  ;;  %v16113_v41 = vand.u32 4294901760, %v388_v29 }
 0x22d   : > { %4352 = vmatpush.msra.mxu0 %v15832_v42  ;;  %4391 = vmatpush.msra.mxu1 %v15744_v57  ;;  %v16006_v57 = vsub.f32 %v548_v18, %v15987_v4  ;;  %v452_v42 = vld [vmem:[%s13221_s17 + $0x4a8] sm:$0xff] }
 0x22e   : > { %4460 = vmatpush.msra.mxu2 %v4268_v38  ;;  %4511 = vmatpush.msra.mxu3 %v15758_v8  ;;  %v22327_v38 = vand.u32 4294901760, %v16016_v31  ;;  %v3258_v5 = vadd.f32 %v3257_v52, %v3199_v46  ;;  %v16124_v52 = vand.u32 4294901760, %v372_v27  ;;  %v22778_v46 = vld [vmem:[#allocation16_spill] sm:$0xff] }
 0x22f   : > { %4118 = vmatmul.f32.gmra.mxu0 %v22767_v6  ;;  %4393 = vmatpush.msra.mxu1 %v15758_v8  ;;  %v484_v8 = vld [vmem:[%s13221_s17 + $0x5a8] sm:$0xff] }
 0x230   : > { %4355 = vmatpush.msra.mxu0 %v15846_v7  ;;  %4464 = vmatpush.msra.mxu2 %v4274_v13  ;;  %v16025_v23 = vand.u32 4294901760, %v484_v8  ;;  %v16041_v13 = vand.u32 4294901760, %v468_v36  ;;  %22777 = vst [vmem:[#allocation19_spill] sm:$0xff] %v16124_v52 }
 0x231   : > { %4513 = vmatpush.msra.mxu3 %v15771_v44  ;;  %4395 = vmatpush.msra.mxu1 %v15771_v44  ;;  %v16021_v44 = vand.u32 4294901760, %v500_v62 }
 0x232   : > { %4358 = vmatpush.msra.mxu0 %v15857_v54  ;;  %4468 = vmatpush.msra.mxu2 %v4280_v58  ;;  %v16046_v58 = vpop.f32.mrf.mxu3  ;;  %v22326_v54 = vand.u32 4294901760, %v16029_v15  ;;  %v16075_v48 = vsub.f32 %v468_v36, %v16041_v13 }
 0x233   : > { %4515 = vmatpush.msra.mxu3 %v15787_v61  ;;  %4208 = vmatmul.f32.gmra.mxu2 %v22773_v33  ;;  %v16044_v7 = vsub.f32 %v500_v62, %v16021_v44 }
 0x234   : > { %4361 = vmatpush.msra.mxu0 %v15873_v17  ;;  %4397 = vmatpush.msra.mxu1 %v15787_v61  ;;  %v22328_v61 = vand.u32 4294901760, %v16006_v57 }
 0x235   : > { %4472 = vmatpush.msra.mxu2 %v4286_v39  ;;  %4517 = vmatpush.msra.mxu3 %v15808_v16  ;;  %v436_v39 = vld [vmem:[%s13221_s17 + $0x428] sm:$0xff]  ;;  %v22325_v40 = vand.u32 4294901760, %v16044_v7 }
 0x236   : > { %4313 = vmatmul.f32.gmra.mxu3 %v22774_v26  ;;  %4364 = vmatpush.msra.mxu0 %v15888_v37  ;;  %v4593_v37 = vsub.f32 %v16016_v31, %v22327_v38  ;;  %v16071_v43 = vand.u32 4294901760, %v436_v39  ;;  %v16095_v18 = vpop.f32.mrf.mxu2 }
 0x237   : > { %4399 = vmatpush.msra.mxu1 %v15808_v16  ;;  %4476 = vmatpush.msra.mxu2 %v4292_v10  ;;  %v3195_v16 = vadd.f32 %v3194_v3, %v3085_v47  ;;  %v16061_v10 = vand.u32 4294901760, %v452_v42  ;;  %v3412_v47 = vpop.f32.mrf.mxu1  ;;  %v16097_v3 = vand.u32 4294901760, %v404_v35  ;;  %v4605_v63 = vsub.f32 %v16044_v7, %v22325_v40  ;;  %v324_v40 = vld [vmem:[%s13221_s17 + $0xa8] sm:$0xff] }
 0x238   : > { %4519 = vmatpush.msra.mxu3 %v15822_v51  ;;  %4159 = vmatmul.f32.gmra.mxu1 %v22767_v6  ;;  %v4594_v56 = vand.u32 4294901760, %v4593_v37  ;;  %v356_v37 = vld [vmem:[%s13221_s17 + $0x1a8] sm:$0xff] }
 0x239   : > { %4367 = vmatmul.f32.vlgmr.msra.gmra.mxu0 %v22775_v49  ;;  %4401 = vmatpush.msra.mxu1 %v15822_v51  ;;  %v4587_v51 = vsub.f32 %v16006_v57, %v22328_v61  ;;  %v3253_v17 = vadd.f32 %v3252_v55, %v3195_v16  ;;  %v16090_v0 = vsub.f32 %v452_v42, %v16061_v10  ;;  %v22776_v55 = vld [vmem:[#allocation14_spill] sm:$0xff]  ;;  %v772_v49 = vld [vmem:[%s13221_s17 + $0xea8] sm:$0xff] }
 0x23a   : > { %4536 = vmatpush.msrb.mxu0 %v15987_v4  ;;  %4480 = vmatpush.msra.mxu2 %v4298_v34  ;;  %v3371_v34 = vpop.f32.mrf.mxu0  ;;  %v16117_v16 = vpop.f32.mrf.mxu3  ;;  %v740_v6 = vld [vmem:[%s13221_s17 + $0xda8] sm:$0xff] }
 0x23b   : > { %4521 = vmatpush.msra.mxu3 %v15834_v11  ;;  %4403 = vmatpush.msra.mxu1 %v15834_v11  ;;  %v16056_v11 = vsub.f32 %v484_v8, %v16025_v23  ;;  %v4588_v2 = vand.u32 4294901760, %v4587_v51  ;;  %v3297_v12 = vadd.f32 %v15991_v1, %v3253_v17  ;;  %v22322_v1 = vand.u32 4294901760, %v16075_v48 }
 0x23c   : > { %4538 = vmatpush.msrb.mxu0 %v15997_v28  ;;  %4484 = vmatpush.msra.mxu2 %v4304_v32  ;;  %v420_v32 = vld [vmem:[%s13221_s17 + $0x3a8] sm:$0xff]  ;;  %v22324_v42 = vand.u32 4294901760, %v16090_v0 }
 0x23d   : > { %4523 = vmatpush.msra.mxu3 %v15851_v60  ;;  %4486 = vmatmul.f32.vlgmr.msra.gmra.mxu2 %v22772_v30  ;;  %v22323_v53 = vand.u32 4294901760, %v16056_v11  ;;  %v16087_v59 = vand.u32 4294901760, %v420_v32  ;;  %v3372_v36 = vadd.f32 %v3371_v34, %v3297_v12  ;;  %v4606_v34 = vand.u32 4294901760, %v4605_v63 }
 0x23e   : > { %4540 = vmatpush.msrb.mxu0 %v16003_v21  ;;  %4691 = vmatpush.msrb.mxu2 %v16006_v57  ;;  %v3303_v12 = vadd.f32 %v16046_v58, %v3258_v5  ;;  %v804_v5 = vld [vmem:[%s13221_s17 + $0xfa8] sm:$0xff] }
 0x23f   : > { %4405 = vmatpush.msra.mxu1 %v15851_v60  ;;  %4525 = vmatpush.msra.mxu3 %v15867_v45  ;;  %v4599_v60 = vsub.f32 %v16029_v15, %v22326_v54  ;;  %v4611_v8 = vsub.f32 %v16056_v11, %v22323_v53  ;;  %v16121_v51 = vsub.f32 %v420_v32, %v16087_v59  ;;  %v16147_v53 = vand.u32 4294901760, %v356_v37  ;;  %v22780_v54 = vld [vmem:[#allocation17_spill] sm:$0xff] }
 0x240   : > { %4527 = vmatmul.f32.vlgmr.msra.gmra.mxu3 %v22772_v30  ;;  %4542 = vmatpush.msrb.mxu0 %v16021_v44  ;;  %v4617_v32 = vsub.f32 %v16075_v48, %v22322_v1  ;;  %v3413_v63 = vadd.f32 %v3412_v47, %v3372_v36  ;;  %v4623_v1 = vsub.f32 %v16090_v0, %v22324_v42  ;;  %v16193_v61 = vand.u32 4294901760, %v804_v5 }
 0x241   : > { %4694 = vmatpush.msrb.mxu2 %v16016_v31  ;;  %4749 = vmatpush.msrb.mxu3 %v15987_v4  ;;  %v4600_v62 = vand.u32 4294901760, %v4599_v60  ;;  %v340_v60 = vld [vmem:[%s13221_s17 + $0x128] sm:$0xff]  ;;  %22779 = vst [vmem:[#allocation21_spill] sm:$0xff] %v16147_v53  ;;  %v22330_v58 = vand.u32 4294901760, %v16121_v51  ;;  %v16156_v47 = vsub.f32 %v372_v27, %v16124_v52 }
 0x242   : > { %4407 = vmatpush.msra.mxu1 %v15867_v45  ;;  %4544 = vmatpush.msrb.mxu0 %v16025_v23  ;;  %v16106_v45 = vsub.f32 %v436_v39, %v16071_v43  ;;  %v16127_v39 = vsub.f32 %v404_v35, %v16097_v3  ;;  %v3375_v17 = vpop.f32.mrf.mxu0  ;;  %v4612_v35 = vand.u32 4294901760, %v4611_v8  ;;  %v4618_v36 = vand.u32 4294901760, %v4617_v32  ;;  %v308_v27 = vld [vmem:[%s13221_s17 + $0x28] sm:$0xff] }
 0x243   : > { %4411 = vmatmul.f32.vlgmr.msra.gmra.mxu1 %v22776_v55  ;;  %4697 = vmatpush.msrb.mxu2 %v16029_v15  ;;  %v3376_v38 = vadd.f32 %v3375_v17, %v3303_v12  ;;  %v4624_v32 = vand.u32 4294901760, %v4623_v1 }
 0x244   : > { %4589 = vmatpush.msrb.mxu1 %v4588_v2  ;;  %4751 = vmatpush.msrb.mxu3 %v15997_v28  ;;  %v22329_v2 = vand.u32 4294901760, %v16106_v45  ;;  %v22781_v17 = vand.u32 4294901760, %v16127_v39 }
 0x245   : > { %4546 = vmatpush.msrb.mxu0 %v16041_v13  ;;  %4700 = vmatpush.msrb.mxu2 %v16044_v7 }
 0x246   : > { %4595 = vmatpush.msrb.mxu1 %v4594_v56  ;;  %4753 = vmatpush.msrb.mxu3 %v16003_v21  ;;  %v16140_v56 = vsub.f32 %v388_v29, %v16113_v41  ;;  %v16152_v29 = vand.u32 4294901760, %v340_v60  ;;  %v4629_v42 = vsub.f32 %v16106_v45, %v22329_v2  ;;  %v4635_v2 = vsub.f32 %v16121_v51, %v22330_v58 }
 0x247   : > { %4372 = vmatmul.f32.gmra.mxu0 %v22778_v46  ;;  %4490 = vmatmul.f32.gmra.mxu2 %v22774_v26  ;;  %v16174_v46 = vsub.f32 %v356_v37, %v16147_v53  ;;  %v4641_v12 = vsub.f32 %v16127_v39, %v22781_v17  ;;  %v788_v37 = vld [vmem:[%s13221_s17 + $0xf28] sm:$0xff]  ;;  %v16191_v58 = vand.u32 4294901760, %v308_v27 }
 0x248   : > { %4548 = vmatpush.msrb.mxu0 %v16061_v10  ;;  %4601 = vmatpush.msrb.mxu1 %v4600_v62  ;;  %v22782_v17 = vand.u32 4294901760, %v16140_v56  ;;  %v16204_v33 = vand.u32 4294901760, %v788_v37 }
 0x249   : > { %4703 = vmatpush.msrb.mxu2 %v16056_v11  ;;  %4755 = vmatpush.msrb.mxu3 %v16021_v44  ;;  %v3416_v62 = vpop.f32.mrf.mxu1  ;;  %v4642_v30 = vand.u32 4294901760, %v4641_v12  ;;  %v16221_v12 = vsub.f32 %v804_v5, %v16193_v61 }
 0x24a   : > { %4531 = vmatmul.f32.gmra.mxu3 %v22774_v26  ;;  %4550 = vmatpush.msrb.mxu0 %v16071_v43  ;;  %v3465_v8 = vpop.f32.mrf.mxu2  ;;  %v4647_v1 = vsub.f32 %v16140_v56, %v22782_v17  ;;  %v3624_v55 = vpop.f32.mrf.mxu0  ;;  %v22783_v17 = vand.u32 4294901760, %v16156_v47  ;;  %v16232_v5 = vsub.f32 %v788_v37, %v16204_v33  ;;  %v708_v37 = vld [vmem:[%s13221_s17 + $0xca8] sm:$0xff] }
 0x24b   : > { %4607 = vmatpush.msrb.mxu1 %v4606_v34  ;;  %4706 = vmatpush.msrb.mxu2 %v16075_v48  ;;  %v3458_v34 = vadd.f32 %v16095_v18, %v3413_v63  ;;  %v16183_v18 = vand.u32 4294901760, %v324_v40  ;;  %v4630_v63 = vand.u32 4294901760, %v4629_v42  ;;  %v4636_v42 = vand.u32 4294901760, %v4635_v2  ;;  %22784 = vst [vmem:[#allocation20_spill] sm:$0xff] %v16221_v12 }
 0x24c   : > { %4757 = vmatpush.msrb.mxu3 %v16025_v23  ;;  %4417 = vmatmul.f32.gmra.mxu1 %v22780_v54  ;;  %22786 = vst [vmem:[#allocation22_spill] sm:$0xff] %v16232_v5 }
 0x24d   : > { %4552 = vmatpush.msrb.mxu0 %v16087_v59  ;;  %4613 = vmatpush.msrb.mxu1 %v4612_v35  ;;  %v16176_v54 = vpop.f32.mrf.mxu3  ;;  %v16187_v35 = vsub.f32 %v340_v60, %v16152_v29  ;;  %v3417_v60 = vadd.f32 %v3416_v62, %v3376_v38  ;;  %v3567_v26 = vadd.f32 %v16117_v16, %v3458_v34  ;;  %v756_v34 = vld [vmem:[%s13221_s17 + $0xe28] sm:$0xff] }
 0x24e   : > { %4709 = vmatpush.msrb.mxu2 %v16090_v0  ;;  %4759 = vmatpush.msrb.mxu3 %v16041_v13  ;;  %v4653_v38 = vsub.f32 %v16156_v47, %v22783_v17  ;;  %v16212_v62 = vsub.f32 %v324_v40, %v16183_v18  ;;  %v4648_v40 = vand.u32 4294901760, %v4647_v1 }
 0x24f   : > { %4554 = vmatpush.msrb.mxu0 %v16097_v3  ;;  %4619 = vmatpush.msrb.mxu1 %v4618_v36  ;;  %v3625_v2 = vadd.f32 %v3624_v55, %v3567_v26  ;;  %v16223_v36 = vand.u32 4294901760, %v772_v49  ;;  %v3466_v17 = vadd.f32 %v3465_v8, %v3417_v60  ;;  %v22785_v26 = vand.u32 4294901760, %v16174_v46 }
 0x250   : > { %4712 = vmatpush.msrb.mxu2 %v16106_v45  ;;  %4761 = vmatpush.msrb.mxu3 %v16061_v10  ;;  %v4654_v8 = vand.u32 4294901760, %v4653_v38  ;;  %v22787_v1 = vand.u32 4294901760, %v16187_v35  ;;  %v724_v38 = vld [vmem:[%s13221_s17 + $0xd28] sm:$0xff] }
 0x251   : > { %4556 = vmatpush.msrb.mxu0 %v16113_v41  ;;  %4625 = vmatpush.msrb.mxu1 %v4624_v32  ;;  %v16218_v32 = vsub.f32 %v308_v27, %v16191_v58  ;;  %v4659_v55 = vsub.f32 %v16174_v46, %v22785_v26 }
 0x252   : > { %4715 = vmatpush.msrb.mxu2 %v16121_v51  ;;  %4763 = vmatpush.msrb.mxu3 %v16071_v43  ;;  %v4665_v60 = vsub.f32 %v16187_v35, %v22787_v1  ;;  %v3571_v1 = vadd.f32 %v16176_v54, %v3466_v17  ;;  %v22788_v17 = vand.u32 4294901760, %v16212_v62 }
 0x253   : > { %4558 = vmatpush.msrb.mxu0 %v16124_v52  ;;  %4631 = vmatpush.msrb.mxu1 %v4630_v63  ;;  %v16234_v63 = vand.u32 4294901760, %v756_v34 }
 0x254   : > { %4718 = vmatpush.msrb.mxu2 %v16127_v39  ;;  %4765 = vmatpush.msrb.mxu3 %v16087_v59  ;;  %v3668_v16 = vpop.f32.mrf.mxu1  ;;  %v3743_v50 = vpop.f32.mrf.mxu2  ;;  %v4666_v54 = vand.u32 4294901760, %v4665_v60  ;;  %v4671_v25 = vsub.f32 %v16212_v62, %v22788_v17 }
 0x255   : > { %4560 = vmatpush.msrb.mxu0 %v16147_v53  ;;  %4637 = vmatpush.msrb.mxu1 %v4636_v42  ;;  %v3669_v27 = vadd.f32 %v3668_v16, %v3625_v2  ;;  %v16247_v2 = vsub.f32 %v772_v49, %v16223_v36  ;;  %v16253_v42 = vand.u32 4294901760, %v740_v6  ;;  %v16258_v49 = vsub.f32 %v756_v34, %v16234_v63  ;;  %v692_v16 = vld [vmem:[%s13221_s17 + $0xc28] sm:$0xff] }
 0x256   : > { %4721 = vmatpush.msrb.mxu2 %v16140_v56  ;;  %4767 = vmatpush.msrb.mxu3 %v16097_v3  ;;  %v22789_v34 = vand.u32 4294901760, %v16221_v12 }
 0x257   : > { %4562 = vmatpush.msrb.mxu0 %v16152_v29  ;;  %4643 = vmatpush.msrb.mxu1 %v4642_v30  ;;  %v3744_v26 = vadd.f32 %v3743_v50, %v3669_v27  ;;  %v3784_v24 = vpop.f32.mrf.mxu3  ;;  %v4660_v30 = vand.u32 4294901760, %v4659_v55  ;;  %v22790_v55 = vand.u32 4294901760, %v16218_v32  ;;  %v16280_v14 = vsub.f32 %v740_v6, %v16253_v42 }
 0x258   : > { %4724 = vmatpush.msrb.mxu2 %v16156_v47  ;;  %4769 = vmatpush.msrb.mxu3 %v16113_v41  ;;  %v3629_v50 = vpop.f32.mrf.mxu0  ;;  %v4672_v6 = vand.u32 4294901760, %v4671_v25  ;;  %v22794_v60 = vand.u32 4294901760, %v16247_v2 }
 0x259   : > { %4564 = vmatpush.msrb.mxu0 %v16183_v18  ;;  %4649 = vmatpush.msrb.mxu1 %v4648_v40  ;;  %v3785_v27 = vadd.f32 %v3784_v24, %v3744_v26  ;;  %v16266_v40 = vand.u32 4294901760, %v724_v38  ;;  %v4959_v24 = vsub.f32 %v16221_v12, %v22789_v34  ;;  %v4677_v26 = vsub.f32 %v16218_v32, %v22790_v55 }
 0x25a   : > { %4727 = vmatpush.msrb.mxu2 %v16174_v46  ;;  %4771 = vmatpush.msrb.mxu3 %v16124_v52  ;;  %v3630_v17 = vadd.f32 %v3629_v50, %v3571_v1  ;;  %v22791_v52 = vand.u32 4294901760, %v16006_v57  ;;  %v22792_v34 = vand.u32 4294901760, %v16232_v5  ;;  %v22793_v50 = vand.u32 4294901760, %v16016_v31 }
 0x25b   : > { %4566 = vmatpush.msrb.mxu0 %v16191_v58  ;;  %4655 = vmatpush.msrb.mxu1 %v4654_v8  ;;  %v16282_v8 = vand.u32 4294901760, %v708_v37  ;;  %12754 = vst [vmem:[%s14629_s29 + $0x18] sm:$0xff] %v3785_v27  ;;  %v16295_v1 = vsub.f32 %v724_v38, %v16266_v40  ;;  %v4678_v27 = vand.u32 4294901760, %v4677_v26  ;;  %v4982_v25 = vand.u32 4294901760, %v16280_v14 }
 0x25c   : > { %4730 = vmatpush.msrb.mxu2 %v16187_v35  ;;  %4773 = vmatpush.msrb.mxu3 %v16147_v53  ;;  %v4965_v55 = vsub.f32 %v16232_v5, %v22792_v34  ;;  %v676_v53 = vld [vmem:[%s13221_s17 + $0xba8] sm:$0xff]  ;;  %v4960_v34 = vand.u32 4294901760, %v4959_v24  ;;  %v4971_v5 = vsub.f32 %v16247_v2, %v22794_v60  ;;  %v22796_v26 = vand.u32 4294901760, %v16258_v49 }
 0x25d   : > { %4796 = vmatpush.msra.mxu0 %v22791_v52  ;;  %4661 = vmatpush.msrb.mxu1 %v4660_v30  ;;  %v3674_v12 = vpop.f32.mrf.mxu1  ;;  %v16297_v52 = vand.u32 4294901760, %v692_v16  ;;  %v16311_v38 = vand.u32 4294901760, %v676_v53 }
 0x25e   : > { %4733 = vmatpush.msrb.mxu2 %v16212_v62  ;;  %4775 = vmatpush.msrb.mxu3 %v16152_v29  ;;  %v3675_v57 = vadd.f32 %v3674_v12, %v3630_v17  ;;  %v3747_v30 = vpop.f32.mrf.mxu2  ;;  %v16309_v12 = vsub.f32 %v708_v37, %v16282_v8  ;;  %v4966_v24 = vand.u32 4294901760, %v4965_v55  ;;  %v4977_v60 = vsub.f32 %v16258_v49, %v22796_v26 }
 0x25f   : > { %4800 = vmatpush.msra.mxu0 %v22793_v50  ;;  %4667 = vmatpush.msrb.mxu1 %v4666_v54  ;;  %v22795_v54 = vand.u32 4294901760, %v16029_v15  ;;  %v4988_v37 = vand.u32 4294901760, %v16295_v1  ;;  %v16324_v15 = vand.u32 4294901760, %v660_v20  ;;  %v644_v50 = vld [vmem:[%s13221_s17 + $0xaa8] sm:$0xff]  ;;  %v22797_v55 = vand.u32 4294901760, %v16044_v7 }
 0x260   : > { %4736 = vmatpush.msrb.mxu2 %v16218_v32  ;;  %4777 = vmatpush.msrb.mxu3 %v16183_v18  ;;  %v3748_v31 = vadd.f32 %v3747_v30, %v3675_v57  ;;  %v16322_v57 = vsub.f32 %v692_v16, %v16297_v52  ;;  %v4994_v16 = vand.u32 4294901760, %v16309_v12  ;;  %v22798_v26 = vand.u32 4294901760, %v16056_v11 }
 0x261   : > { %4804 = vmatpush.msra.mxu0 %v22795_v54  ;;  %v3788_v17 = vpop.f32.mrf.mxu3  ;;  %4673 = vmatpush.msrb.mxu1 %v4672_v6  ;;  %v4972_v54 = vand.u32 4294901760, %v4971_v5  ;;  %v4983_v6 = vsub.f32 %v16280_v14, %v4982_v25  ;;  %v16340_v7 = vand.u32 4294901760, %v644_v50  ;;  %v628_v5 = vld [vmem:[%s13221_s17 + $0xa28] sm:$0xff]  ;;  %v16350_v11 = vsub.f32 %v660_v20, %v16324_v15 }
 0x262   : > { %4908 = vmatpush.msra.mxu2 %v16193_v61  ;;  %4779 = vmatpush.msrb.mxu3 %v16191_v58  ;;  %v3789_v30 = vadd.f32 %v3788_v17, %v3748_v31  ;;  %v16335_v31 = vsub.f32 %v676_v53, %v16311_v38  ;;  %v5000_v53 = vand.u32 4294901760, %v16322_v57  ;;  %v612_v17 = vld [vmem:[%s13221_s17 + $0x9a8] sm:$0xff]  ;;  %v22800_v20 = vand.u32 4294901760, %v16090_v0 }
 0x263   : > { %4808 = vmatpush.msra.mxu0 %v22797_v55  ;;  %4679 = vmatpush.msrb.mxu1 %v4678_v27  ;;  %v4989_v27 = vsub.f32 %v16295_v1, %v4988_v37  ;;  %v22801_v0 = vand.u32 4294901760, %v16106_v45  ;;  %v22802_v45 = vand.u32 4294901760, %v16121_v51 }
 0x264   : > { %4910 = vmatpush.msra.mxu2 %v16204_v33  ;;  %4961 = vmatpush.msra.mxu3 %v4960_v34  ;;  %v4978_v34 = vand.u32 4294901760, %v4977_v60  ;;  %12770 = vst [vmem:[%s14629_s29 + $0x98] sm:$0xff] %v3789_v30  ;;  %v4995_v60 = vsub.f32 %v16309_v12, %v4994_v16  ;;  %v5006_v55 = vand.u32 4294901760, %v16335_v31  ;;  %v16361_v30 = vand.u32 4294901760, %v628_v5 }
 0x265   : > { %4812 = vmatpush.msra.mxu0 %v22798_v26  ;;  %4867 = vmatpush.msra.mxu1 %v15987_v4  ;;  %v22799_v4 = vand.u32 4294901760, %v16075_v48  ;;  %v596_v48 = vld [vmem:[%s13221_s17 + $0x928] sm:$0xff]  ;;  %v5012_v26 = vand.u32 4294901760, %v16350_v11 }
 0x266   : > { %4912 = vmatpush.msra.mxu2 %v16223_v36  ;;  %4967 = vmatpush.msra.mxu3 %v4966_v24  ;;  %v4984_v24 = vand.u32 4294901760, %v4983_v6  ;;  %v5001_v6 = vsub.f32 %v16322_v57, %v5000_v53 }
 0x267   : > { %4816 = vmatpush.msra.mxu0 %v22799_v4  ;;  %4869 = vmatpush.msra.mxu1 %v15997_v28  ;;  %v16367_v28 = vsub.f32 %v644_v50, %v16340_v7  ;;  %v16375_v4 = vand.u32 4294901760, %v612_v17  ;;  %v5007_v50 = vsub.f32 %v16335_v31, %v5006_v55 }
 0x268   : > { %4914 = vmatpush.msra.mxu2 %v16234_v63  ;;  %4973 = vmatpush.msra.mxu3 %v4972_v54  ;;  %v4990_v54 = vand.u32 4294901760, %v4989_v27  ;;  %v16387_v27 = vand.u32 4294901760, %v596_v48 }
 0x269   : > { %4820 = vmatpush.msra.mxu0 %v22800_v20  ;;  %4871 = vmatpush.msra.mxu1 %v16003_v21  ;;  %v4996_v21 = vand.u32 4294901760, %v4995_v60  ;;  %v580_v20 = vld [vmem:[%s13221_s17 + $0x8a8] sm:$0xff]  ;;  %v5013_v60 = vsub.f32 %v16350_v11, %v5012_v26 }
 0x26a   : > { %4916 = vmatpush.msra.mxu2 %v16253_v42  ;;  %4979 = vmatpush.msra.mxu3 %v4978_v34  ;;  %v16385_v34 = vsub.f32 %v628_v5, %v16361_v30  ;;  %v16399_v5 = vsub.f32 %v612_v17, %v16375_v4  ;;  %v16404_v51 = vand.u32 4294901760, %v580_v20  ;;  %v22804_v17 = vand.u32 4294901760, %v16140_v56 }
 0x26b   : > { %4824 = vmatpush.msra.mxu0 %v22801_v0  ;;  %4873 = vmatpush.msra.mxu1 %v16021_v44  ;;  %v5018_v44 = vand.u32 4294901760, %v16367_v28  ;;  %v22803_v0 = vand.u32 4294901760, %v16127_v39  ;;  %v5014_v39 = vand.u32 4294901760, %v5013_v60  ;;  %v22806_v60 = vand.u32 4294901760, %v16174_v46 }
 0x26c   : > { %4918 = vmatpush.msra.mxu2 %v16266_v40  ;;  %4985 = vmatpush.msra.mxu3 %v4984_v24  ;;  %v5002_v24 = vand.u32 4294901760, %v5001_v6  ;;  %v5024_v6 = vand.u32 4294901760, %v16385_v34  ;;  %v16426_v56 = vsub.f32 %v580_v20, %v16404_v51 }
 0x26d   : > { %4828 = vmatpush.msra.mxu0 %v22802_v45  ;;  %4875 = vmatpush.msra.mxu1 %v16025_v23  ;;  %v564_v23 = vld [vmem:[%s13221_s17 + $0x828] sm:$0xff]  ;;  %v16410_v45 = vsub.f32 %v596_v48, %v16387_v27  ;;  %v22805_v48 = vand.u32 4294901760, %v16156_v47 }
 0x26e   : > { %4920 = vmatpush.msra.mxu2 %v16282_v8  ;;  %4991 = vmatpush.msra.mxu3 %v4990_v54  ;;  %v5008_v54 = vand.u32 4294901760, %v5007_v50  ;;  %v16420_v50 = vand.u32 4294901760, %v564_v23  ;;  %v5042_v46 = vand.u32 4294901760, %v16426_v56 }
 0x26f   : > { %4832 = vmatpush.msra.mxu0 %v22803_v0  ;;  %4877 = vmatpush.msra.mxu1 %v16041_v13  ;;  %v5019_v13 = vsub.f32 %v16367_v28, %v5018_v44  ;;  %v22807_v0 = vand.u32 4294901760, %v16187_v35 }
 0x270   : > { %4922 = vmatpush.msra.mxu2 %v16297_v52  ;;  %4997 = vmatpush.msra.mxu3 %v4996_v21  ;;  %v5030_v21 = vand.u32 4294901760, %v16399_v5  ;;  %v16441_v20 = vsub.f32 %v564_v23, %v16420_v50  ;;  %v22808_v23 = vand.u32 4294901760, %v16212_v62  ;;  %v22811_v62 = vld [vmem:[#allocation19_spill] sm:$0xff] }
 0x271   : > { %4836 = vmatpush.msra.mxu0 %v22804_v17  ;;  %4879 = vmatpush.msra.mxu1 %v16061_v10  ;;  %v5025_v10 = vsub.f32 %v16385_v34, %v5024_v6  ;;  %v5020_v47 = vand.u32 4294901760, %v5019_v13  ;;  %v22809_v13 = vld [vmem:[#allocation7_spill] sm:$0xff] }
 0x272   : > { %4924 = vmatpush.msra.mxu2 %v16311_v38  ;;  %5003 = vmatpush.msra.mxu3 %v5002_v24  ;;  %v5036_v24 = vand.u32 4294901760, %v16410_v45  ;;  %v5048_v17 = vand.u32 4294901760, %v16441_v20 }
 0x273   : > { %4840 = vmatpush.msra.mxu0 %v22805_v48  ;;  %4881 = vmatpush.msra.mxu1 %v16071_v43  ;;  %v5031_v43 = vsub.f32 %v16399_v5, %v5030_v21  ;;  %v22810_v48 = vand.u32 4294901760, %v16218_v32  ;;  %v22815_v32 = vld [vmem:[#allocation22_spill] sm:$0xff] }
 0x274   : > { %4926 = vmatpush.msra.mxu2 %v16324_v15  ;;  %5009 = vmatpush.msra.mxu3 %v5008_v54  ;;  %v5037_v54 = vsub.f32 %v16410_v45, %v5036_v24 }
 0x275   : > { %4844 = vmatpush.msra.mxu0 %v22806_v60  ;;  %4883 = vmatpush.msra.mxu1 %v16087_v59  ;;  %v5026_v59 = vand.u32 4294901760, %v5025_v10  ;;  %v5032_v35 = vand.u32 4294901760, %v5031_v43  ;;  %v22812_v10 = vld [vmem:[#allocation20_spill] sm:$0xff]  ;;  %v22813_v60 = vld [vmem:[#allocation21_spill] sm:$0xff] }
 0x276   : > { %4928 = vmatpush.msra.mxu2 %v16340_v7  ;;  %5015 = vmatpush.msra.mxu3 %v5014_v39  ;;  %v5038_v39 = vand.u32 4294901760, %v5037_v54  ;;  %v22814_v43 = vld [vmem:[#allocation9_spill] sm:$0xff]  ;;  %v22817_v54 = vld [vmem:[#allocation10_spill] sm:$0xff] }
 0x277   : > { %4739 = vmatmul.f32.vlgmr.msrb.gmra.mxu2 %v13564_v19  ;;  %4848 = vmatpush.msra.mxu0 %v22807_v0 }
 0x278   : > { %4885 = vmatpush.msra.mxu1 %v16097_v3  ;;  %4930 = vmatpush.msra.mxu2 %v16361_v30  ;;  %v5043_v3 = vsub.f32 %v16426_v56, %v5042_v46 }
 0x279   : > { %5021 = vmatpush.msra.mxu3 %v5020_v47  ;;  %4572 = vmatmul.f32.vlgmr.msrb.gmra.mxu0 %v13645_v22 }
 0x27a   : > { %4783 = vmatmul.f32.vlgmr.msrb.gmra.mxu3 %v13594_v9  ;;  %4852 = vmatpush.msra.mxu0 %v22808_v23  ;;  %v5044_v47 = vand.u32 4294901760, %v5043_v3  ;;  %v22818_v23 = vand.u32 4294901760, %v22812_v10  ;;  %v22821_v3 = vand.u32 4294901760, %v16247_v2 }
 0x27b   : > { %4887 = vmatpush.msra.mxu1 %v16113_v41  ;;  %4932 = vmatpush.msra.mxu2 %v16375_v4  ;;  %v5049_v41 = vsub.f32 %v16441_v20, %v5048_v17 }
 0x27c   : > { %5027 = vmatpush.msra.mxu3 %v5026_v59  ;;  %4681 = vmatmul.f32.vlgmr.msrb.gmra.mxu1 %v22809_v13  ;;  %v22816_v59 = vld [vmem:[#allocation13_spill] sm:$0xff] }
 0x27d   : > { %4856 = vmatpush.msra.mxu0 %v22810_v48  ;;  %4889 = vmatpush.msra.mxu1 %v22811_v62  ;;  %v5050_v0 = vand.u32 4294901760, %v5049_v41 }
 0x27e   : > { %4934 = vmatpush.msra.mxu2 %v16387_v27  ;;  %5033 = vmatpush.msra.mxu3 %v5032_v35  ;;  %v22819_v35 = vld [vmem:[#allocation8_spill] sm:$0xff] }
 0x27f   : > { %5063 = vmatpush.msrb.mxu0 %v22812_v10  ;;  %4891 = vmatpush.msra.mxu1 %v22813_v60  ;;  %v405_v10 = vld [vmem:[%s13221_s17 + $0x330] sm:$0xff] }
 0x280   : > { %4936 = vmatpush.msra.mxu2 %v16404_v51  ;;  %5039 = vmatpush.msra.mxu3 %v5038_v39  ;;  %v22823_v39 = vand.u32 4294901760, %v16258_v49 }
 0x281   : > { %4744 = vmatmul.f32.gmra.mxu2 %v22814_v43  ;;  %5066 = vmatpush.msrb.mxu0 %v22815_v32 }
 0x282   : > { %4893 = vmatpush.msra.mxu1 %v16152_v29  ;;  %4938 = vmatpush.msra.mxu2 %v16420_v50  ;;  %v22820_v29 = vand.u32 4294901760, %v22815_v32 }
 0x283   : > { %5045 = vmatpush.msra.mxu3 %v5044_v47  ;;  %4580 = vmatmul.f32.gmra.mxu0 %v22816_v59 }
 0x284   : > { %4789 = vmatmul.f32.gmra.mxu3 %v22817_v54  ;;  %5069 = vmatpush.msrb.mxu0 %v16247_v2 }
 0x285   : > { %5168 = vmatpush.msrb.mxu2 %v22818_v23  ;;  %4895 = vmatpush.msra.mxu1 %v16183_v18  ;;  %v22822_v18 = vld [vmem:[#allocation15_spill] sm:$0xff] }
 0x286   : > { %5051 = vmatpush.msra.mxu3 %v5050_v0  ;;  %4685 = vmatmul.f32.gmra.mxu1 %v22819_v35 }
 0x287   : > { %5072 = vmatpush.msrb.mxu0 %v16258_v49  ;;  %5172 = vmatpush.msrb.mxu2 %v22820_v29  ;;  %v517_v49 = vld [vmem:[%s13221_s17 + $0x6b0] sm:$0xff] }
 0x288   : > { %5239 = vmatpush.msrb.mxu3 %v16193_v61  ;;  %4897 = vmatpush.msra.mxu1 %v16191_v58  ;;  %v22824_v58 = vld [vmem:[#allocation11_spill] sm:$0xff] }
 0x289   : > { %5075 = vmatpush.msrb.mxu0 %v16280_v14  ;;  %5176 = vmatpush.msrb.mxu2 %v22821_v3  ;;  %v389_v3 = vld [vmem:[%s13221_s17 + $0x2b0] sm:$0xff] }
 0x28a   : > { %5121 = vmatpush.msrb.mxu1 %v16193_v61  ;;  %5241 = vmatpush.msrb.mxu3 %v16204_v33  ;;  %v3829_v14 = vpop.f32.mrf.mxu0 }
 0x28b   : > { %4944 = vmatmul.f32.vlgmr.msra.gmra.mxu2 %v22822_v18  ;;  %5078 = vmatpush.msrb.mxu0 %v16295_v1  ;;  %v16556_v1 = vand.u32 4294901760, %v517_v49 }
 0x28c   : > { %5123 = vmatpush.msrb.mxu1 %v16204_v33  ;;  %5180 = vmatpush.msrb.mxu2 %v22823_v39  ;;  %v549_v33 = vld [vmem:[%s13221_s17 + $0x7b0] sm:$0xff] }
 0x28d   : > { %5243 = vmatpush.msrb.mxu3 %v16223_v36  ;;  %4858 = vmatmul.f32.vlgmr.msra.gmra.mxu0 %v22809_v13  ;;  %v3938_v61 = vpop.f32.mrf.mxu1 }
 0x28e   : > { %5053 = vmatmul.f32.vlgmr.msra.gmra.mxu3 %v22824_v58  ;;  %5081 = vmatpush.msrb.mxu0 %v16309_v12  ;;  %v501_v12 = vld [vmem:[%s13221_s17 + $0x630] sm:$0xff] }
 0x28f   : > { %5125 = vmatpush.msrb.mxu1 %v16223_v36  ;;  %5184 = vmatpush.msrb.mxu2 %v4982_v25  ;;  %v3996_v36 = vpop.f32.mrf.mxu2 }
 0x290   : > { %5245 = vmatpush.msrb.mxu3 %v16234_v63  ;;  %4899 = vmatmul.f32.vlgmr.msra.gmra.mxu1 %v22809_v13  ;;  %v661_v13 = vld [vmem:[%s13221_s17 + $0xb30] sm:$0xff] }
 0x291   : > { %5084 = vmatpush.msrb.mxu0 %v16322_v57  ;;  %5127 = vmatpush.msrb.mxu1 %v16234_v63  ;;  %v533_v63 = vld [vmem:[%s13221_s17 + $0x730] sm:$0xff]  ;;  %v16544_v2 = vpop.f32.mrf.mxu3 }
 0x292   : > { %5188 = vmatpush.msrb.mxu2 %v4988_v37  ;;  %5247 = vmatpush.msrb.mxu3 %v16253_v42  ;;  %v22826_v37 = vld [vmem:[#allocation6_spill] sm:$0xff] }
 0x293   : > { %5087 = vmatpush.msrb.mxu0 %v16335_v31  ;;  %5129 = vmatpush.msrb.mxu1 %v16253_v42  ;;  %v16540_v42 = vand.u32 4294901760, %v549_v33 }
 0x294   : > { %5192 = vmatpush.msrb.mxu2 %v4994_v16  ;;  %5249 = vmatpush.msrb.mxu3 %v16266_v40  ;;  %v3837_v25 = vpop.f32.mrf.mxu0 }
 0x295   : > { %5090 = vmatpush.msrb.mxu0 %v16350_v11  ;;  %5131 = vmatpush.msrb.mxu1 %v16266_v40  ;;  %v16550_v40 = vand.u32 4294901760, %v533_v63 }
 0x296   : > { %5196 = vmatpush.msrb.mxu2 %v5000_v53  ;;  %5251 = vmatpush.msrb.mxu3 %v16282_v8  ;;  %v16582_v53 = vsub.f32 %v517_v49, %v16556_v1  ;;  %v373_v49 = vld [vmem:[%s13221_s17 + $0x230] sm:$0xff] }
 0x297   : > { %5093 = vmatpush.msrb.mxu0 %v16367_v28  ;;  %5133 = vmatpush.msrb.mxu1 %v16282_v8  ;;  %v22825_v8 = vld [vmem:[#allocation18_spill] sm:$0xff]  ;;  %v16569_v57 = vsub.f32 %v533_v63, %v16550_v40  ;;  %v3942_v16 = vpop.f32.mrf.mxu1  ;;  %v22827_v28 = vld [vmem:[#allocation12_spill] sm:$0xff] }
 0x298   : > { %5200 = vmatpush.msrb.mxu2 %v5006_v55  ;;  %5253 = vmatpush.msrb.mxu3 %v16297_v52  ;;  %v4001_v11 = vpop.f32.mrf.mxu2  ;;  %v469_v55 = vld [vmem:[%s13221_s17 + $0x530] sm:$0xff]  ;;  %v3943_v60 = vadd.f32 %v3942_v16, %v3837_v25  ;;  %v16666_v16 = vand.u32 4294901760, %v389_v3 }
 0x299   : > { %5096 = vmatpush.msrb.mxu0 %v16385_v34  ;;  %5135 = vmatpush.msrb.mxu1 %v16297_v52  ;;  %v16559_v52 = vsub.f32 %v549_v33, %v16540_v42  ;;  %v453_v34 = vld [vmem:[%s13221_s17 + $0x4b0] sm:$0xff] }
 0x29a   : > { %5204 = vmatpush.msrb.mxu2 %v5012_v26  ;;  %5255 = vmatpush.msrb.mxu3 %v16311_v38  ;;  %v22346_v26 = vand.u32 4294901760, %v16569_v57  ;;  %v4002_v25 = vadd.f32 %v4001_v11, %v3943_v60  ;;  %v16677_v11 = vand.u32 4294901760, %v373_v49  ;;  %v22830_v60 = vld [vmem:[#allocation16_spill] sm:$0xff] }
 0x29b   : > { %4862 = vmatmul.f32.gmra.mxu0 %v22819_v35  ;;  %5137 = vmatpush.msrb.mxu1 %v16311_v38  ;;  %v485_v38 = vld [vmem:[%s13221_s17 + $0x5b0] sm:$0xff] }
 0x29c   : > { %5099 = vmatpush.msrb.mxu0 %v16399_v5  ;;  %5208 = vmatpush.msrb.mxu2 %v5018_v44  ;;  %v16578_v31 = vand.u32 4294901760, %v485_v38  ;;  %v16594_v44 = vand.u32 4294901760, %v469_v55  ;;  %22829 = vst [vmem:[#allocation19_spill] sm:$0xff] %v16677_v11 }
 0x29d   : > { %5257 = vmatpush.msrb.mxu3 %v16324_v15  ;;  %5139 = vmatpush.msrb.mxu1 %v16324_v15  ;;  %v16574_v15 = vand.u32 4294901760, %v501_v12 }
 0x29e   : > { %5102 = vmatpush.msrb.mxu0 %v16410_v45  ;;  %5212 = vmatpush.msrb.mxu2 %v5024_v6  ;;  %v16599_v6 = vpop.f32.mrf.mxu3  ;;  %v22345_v45 = vand.u32 4294901760, %v16582_v53  ;;  %v16628_v41 = vsub.f32 %v469_v55, %v16594_v44 }
 0x29f   : > { %5259 = vmatpush.msrb.mxu3 %v16340_v7  ;;  %4952 = vmatmul.f32.gmra.mxu2 %v22825_v8  ;;  %v16597_v5 = vsub.f32 %v501_v12, %v16574_v15 }
 0x2a0   : > { %5105 = vmatpush.msrb.mxu0 %v16426_v56  ;;  %5141 = vmatpush.msrb.mxu1 %v16340_v7  ;;  %v22347_v7 = vand.u32 4294901760, %v16559_v52 }
 0x2a1   : > { %5216 = vmatpush.msrb.mxu2 %v5030_v21  ;;  %5261 = vmatpush.msrb.mxu3 %v16361_v30  ;;  %v437_v21 = vld [vmem:[%s13221_s17 + $0x430] sm:$0xff]  ;;  %v22344_v62 = vand.u32 4294901760, %v16597_v5 }
 0x2a2   : > { %5057 = vmatmul.f32.gmra.mxu3 %v22826_v37  ;;  %5108 = vmatpush.msrb.mxu0 %v16441_v20  ;;  %v5337_v20 = vsub.f32 %v16569_v57, %v22346_v26  ;;  %v16624_v48 = vand.u32 4294901760, %v437_v21  ;;  %v16648_v33 = vpop.f32.mrf.mxu2 }
 0x2a3   : > { %5143 = vmatpush.msrb.mxu1 %v16361_v30  ;;  %5220 = vmatpush.msrb.mxu2 %v5036_v24  ;;  %v3939_v30 = vadd.f32 %v3938_v61, %v3829_v14  ;;  %v16614_v24 = vand.u32 4294901760, %v453_v34  ;;  %v4156_v14 = vpop.f32.mrf.mxu1  ;;  %v16650_v61 = vand.u32 4294901760, %v405_v10  ;;  %v5349_v63 = vsub.f32 %v16597_v5, %v22344_v62  ;;  %v325_v62 = vld [vmem:[%s13221_s17 + $0xb0] sm:$0xff] }
 0x2a4   : > { %5263 = vmatpush.msrb.mxu3 %v16375_v4  ;;  %4903 = vmatmul.f32.gmra.mxu1 %v22819_v35  ;;  %v5338_v39 = vand.u32 4294901760, %v5337_v20  ;;  %v357_v20 = vld [vmem:[%s13221_s17 + $0x1b0] sm:$0xff] }
 0x2a5   : > { %5111 = vmatmul.f32.vlgmr.msrb.gmra.mxu0 %v22827_v28  ;;  %5145 = vmatpush.msrb.mxu1 %v16375_v4  ;;  %v5331_v4 = vsub.f32 %v16559_v52, %v22347_v7  ;;  %v3997_v56 = vadd.f32 %v3996_v36, %v3939_v30  ;;  %v16643_v29 = vsub.f32 %v453_v34, %v16614_v24  ;;  %v22828_v36 = vld [vmem:[#allocation14_spill] sm:$0xff]  ;;  %v773_v28 = vld [vmem:[%s13221_s17 + $0xeb0] sm:$0xff] }
 0x2a6   : > { %5280 = vmatpush.msra.mxu0 %v16540_v42  ;;  %5224 = vmatpush.msrb.mxu2 %v5042_v46  ;;  %v4115_v46 = vpop.f32.mrf.mxu0  ;;  %v16670_v30 = vpop.f32.mrf.mxu3  ;;  %v741_v35 = vld [vmem:[%s13221_s17 + $0xdb0] sm:$0xff] }
 0x2a7   : > { %5265 = vmatpush.msrb.mxu3 %v16387_v27  ;;  %5147 = vmatpush.msrb.mxu1 %v16387_v27  ;;  %v16609_v27 = vsub.f32 %v485_v38, %v16578_v31  ;;  %v5332_v47 = vand.u32 4294901760, %v5331_v4  ;;  %v4041_v0 = vadd.f32 %v16544_v2, %v3997_v56  ;;  %v22341_v2 = vand.u32 4294901760, %v16628_v41 }
 0x2a8   : > { %5282 = vmatpush.msra.mxu0 %v16550_v40  ;;  %5228 = vmatpush.msrb.mxu2 %v5048_v17  ;;  %v421_v17 = vld [vmem:[%s13221_s17 + $0x3b0] sm:$0xff]  ;;  %v22343_v34 = vand.u32 4294901760, %v16643_v29 }
 0x2a9   : > { %5267 = vmatpush.msrb.mxu3 %v16404_v51  ;;  %5230 = vmatmul.f32.vlgmr.msrb.gmra.mxu2 %v22824_v58  ;;  %v22342_v32 = vand.u32 4294901760, %v16609_v27  ;;  %v16640_v23 = vand.u32 4294901760, %v421_v17  ;;  %v4116_v55 = vadd.f32 %v4115_v46, %v4041_v0  ;;  %v5350_v46 = vand.u32 4294901760, %v5349_v63 }
 0x2aa   : > { %5284 = vmatpush.msra.mxu0 %v16556_v1  ;;  %5435 = vmatpush.msra.mxu2 %v16559_v52  ;;  %v4047_v0 = vadd.f32 %v16599_v6, %v4002_v25  ;;  %v805_v25 = vld [vmem:[%s13221_s17 + $0xfb0] sm:$0xff] }
 0x2ab   : > { %5149 = vmatpush.msrb.mxu1 %v16404_v51  ;;  %5269 = vmatpush.msrb.mxu3 %v16420_v50  ;;  %v5343_v51 = vsub.f32 %v16582_v53, %v22345_v45  ;;  %v5355_v38 = vsub.f32 %v16609_v27, %v22342_v32  ;;  %v16674_v4 = vsub.f32 %v421_v17, %v16640_v23  ;;  %v16700_v32 = vand.u32 4294901760, %v357_v20  ;;  %v22832_v45 = vld [vmem:[#allocation17_spill] sm:$0xff] }
 0x2ac   : > { %5271 = vmatmul.f32.vlgmr.msrb.gmra.mxu3 %v22824_v58  ;;  %5286 = vmatpush.msra.mxu0 %v16574_v15  ;;  %v5361_v17 = vsub.f32 %v16628_v41, %v22341_v2  ;;  %v4157_v63 = vadd.f32 %v4156_v14, %v4116_v55  ;;  %v5367_v2 = vsub.f32 %v16643_v29, %v22343_v34  ;;  %v16746_v7 = vand.u32 4294901760, %v805_v25 }
 0x2ad   : > { %5438 = vmatpush.msra.mxu2 %v16569_v57  ;;  %5493 = vmatpush.msra.mxu3 %v16540_v42  ;;  %v5344_v12 = vand.u32 4294901760, %v5343_v51  ;;  %v341_v51 = vld [vmem:[%s13221_s17 + $0x130] sm:$0xff]  ;;  %22831 = vst [vmem:[#allocation20_spill] sm:$0xff] %v16700_v32  ;;  %v22349_v6 = vand.u32 4294901760, %v16674_v4  ;;  %v16709_v14 = vsub.f32 %v373_v49, %v16677_v11 }
 0x2ae   : > { %5151 = vmatpush.msrb.mxu1 %v16420_v50  ;;  %5288 = vmatpush.msra.mxu0 %v16578_v31  ;;  %v16659_v50 = vsub.f32 %v437_v21, %v16624_v48  ;;  %v16680_v21 = vsub.f32 %v405_v10, %v16650_v61  ;;  %v4119_v56 = vpop.f32.mrf.mxu0  ;;  %v5356_v10 = vand.u32 4294901760, %v5355_v38  ;;  %v5362_v55 = vand.u32 4294901760, %v5361_v17  ;;  %v309_v49 = vld [vmem:[%s13221_s17 + $0x30] sm:$0xff] }
 0x2af   : > { %5155 = vmatmul.f32.vlgmr.msrb.gmra.mxu1 %v22828_v36  ;;  %5441 = vmatpush.msra.mxu2 %v16582_v53  ;;  %v4120_v26 = vadd.f32 %v4119_v56, %v4047_v0  ;;  %v5368_v17 = vand.u32 4294901760, %v5367_v2 }
 0x2b0   : > { %5333 = vmatpush.msra.mxu1 %v5332_v47  ;;  %5495 = vmatpush.msra.mxu3 %v16550_v40  ;;  %v22348_v47 = vand.u32 4294901760, %v16659_v50  ;;  %v22833_v56 = vand.u32 4294901760, %v16680_v21 }
 0x2b1   : > { %5290 = vmatpush.msra.mxu0 %v16594_v44  ;;  %5444 = vmatpush.msra.mxu2 %v16597_v5 }
 0x2b2   : > { %5339 = vmatpush.msra.mxu1 %v5338_v39  ;;  %5497 = vmatpush.msra.mxu3 %v16556_v1  ;;  %v16693_v39 = vsub.f32 %v389_v3, %v16666_v16  ;;  %v16705_v3 = vand.u32 4294901760, %v341_v51  ;;  %v5373_v34 = vsub.f32 %v16659_v50, %v22348_v47  ;;  %v5379_v47 = vsub.f32 %v16674_v4, %v22349_v6 }
 0x2b3   : > { %5116 = vmatmul.f32.gmra.mxu0 %v22830_v60  ;;  %5234 = vmatmul.f32.gmra.mxu2 %v22826_v37  ;;  %v16727_v60 = vsub.f32 %v357_v20, %v16700_v32  ;;  %v5385_v0 = vsub.f32 %v16680_v21, %v22833_v56  ;;  %v789_v20 = vld [vmem:[%s13221_s17 + $0xf30] sm:$0xff]  ;;  %v16744_v6 = vand.u32 4294901760, %v309_v49 }
 0x2b4   : > { %5292 = vmatpush.msra.mxu0 %v16614_v24  ;;  %5345 = vmatpush.msra.mxu1 %v5344_v12  ;;  %v22834_v56 = vand.u32 4294901760, %v16693_v39  ;;  %v16757_v8 = vand.u32 4294901760, %v789_v20 }
 0x2b5   : > { %5447 = vmatpush.msra.mxu2 %v16609_v27  ;;  %5499 = vmatpush.msra.mxu3 %v16574_v15  ;;  %v4160_v12 = vpop.f32.mrf.mxu1  ;;  %v5386_v58 = vand.u32 4294901760, %v5385_v0  ;;  %v16774_v0 = vsub.f32 %v805_v25, %v16746_v7 }
 0x2b6   : > { %5275 = vmatmul.f32.gmra.mxu3 %v22826_v37  ;;  %5294 = vmatpush.msra.mxu0 %v16624_v48  ;;  %v4209_v38 = vpop.f32.mrf.mxu2  ;;  %v5391_v2 = vsub.f32 %v16693_v39, %v22834_v56  ;;  %v4368_v36 = vpop.f32.mrf.mxu0  ;;  %v22835_v56 = vand.u32 4294901760, %v16709_v14  ;;  %v16785_v25 = vsub.f32 %v789_v20, %v16757_v8  ;;  %v709_v20 = vld [vmem:[%s13221_s17 + $0xcb0] sm:$0xff] }
 0x2b7   : > { %5351 = vmatpush.msra.mxu1 %v5350_v46  ;;  %5450 = vmatpush.msra.mxu2 %v16628_v41  ;;  %v4202_v46 = vadd.f32 %v16648_v33, %v4157_v63  ;;  %v16736_v33 = vand.u32 4294901760, %v325_v62  ;;  %v5374_v63 = vand.u32 4294901760, %v5373_v34  ;;  %v5380_v34 = vand.u32 4294901760, %v5379_v47  ;;  %22836 = vst [vmem:[#allocation21_spill] sm:$0xff] %v16774_v0 }
 0x2b8   : > { %5501 = vmatpush.msra.mxu3 %v16578_v31  ;;  %5161 = vmatmul.f32.gmra.mxu1 %v22832_v45  ;;  %22838 = vst [vmem:[#allocation22_spill] sm:$0xff] %v16785_v25 }
 0x2b9   : > { %5296 = vmatpush.msra.mxu0 %v16640_v23  ;;  %5357 = vmatpush.msra.mxu1 %v5356_v10  ;;  %v16729_v45 = vpop.f32.mrf.mxu3  ;;  %v16740_v10 = vsub.f32 %v341_v51, %v16705_v3  ;;  %v4161_v51 = vadd.f32 %v4160_v12, %v4120_v26  ;;  %v4311_v37 = vadd.f32 %v16670_v30, %v4202_v46  ;;  %v757_v46 = vld [vmem:[%s13221_s17 + $0xe30] sm:$0xff] }
 0x2ba   : > { %5453 = vmatpush.msra.mxu2 %v16643_v29  ;;  %5503 = vmatpush.msra.mxu3 %v16594_v44  ;;  %v5397_v26 = vsub.f32 %v16709_v14, %v22835_v56  ;;  %v16765_v12 = vsub.f32 %v325_v62, %v16736_v33  ;;  %v5392_v62 = vand.u32 4294901760, %v5391_v2 }
 0x2bb   : > { %5298 = vmatpush.msra.mxu0 %v16650_v61  ;;  %5363 = vmatpush.msra.mxu1 %v5362_v55  ;;  %v4369_v47 = vadd.f32 %v4368_v36, %v4311_v37  ;;  %v16776_v55 = vand.u32 4294901760, %v773_v28  ;;  %v4210_v56 = vadd.f32 %v4209_v38, %v4161_v51  ;;  %v22837_v37 = vand.u32 4294901760, %v16727_v60 }
 0x2bc   : > { %5456 = vmatpush.msra.mxu2 %v16659_v50  ;;  %5505 = vmatpush.msra.mxu3 %v16614_v24  ;;  %v5398_v38 = vand.u32 4294901760, %v5397_v26  ;;  %v22839_v2 = vand.u32 4294901760, %v16740_v10  ;;  %v725_v26 = vld [vmem:[%s13221_s17 + $0xd30] sm:$0xff] }
 0x2bd   : > { %5300 = vmatpush.msra.mxu0 %v16666_v16  ;;  %5369 = vmatpush.msra.mxu1 %v5368_v17  ;;  %v16771_v17 = vsub.f32 %v309_v49, %v16744_v6  ;;  %v5403_v36 = vsub.f32 %v16727_v60, %v22837_v37 }
 0x2be   : > { %5459 = vmatpush.msra.mxu2 %v16674_v4  ;;  %5507 = vmatpush.msra.mxu3 %v16624_v48  ;;  %v5409_v51 = vsub.f32 %v16740_v10, %v22839_v2  ;;  %v4315_v2 = vadd.f32 %v16729_v45, %v4210_v56  ;;  %v22840_v56 = vand.u32 4294901760, %v16765_v12 }
 0x2bf   : > { %5302 = vmatpush.msra.mxu0 %v16677_v11  ;;  %5375 = vmatpush.msra.mxu1 %v5374_v63  ;;  %v16787_v63 = vand.u32 4294901760, %v757_v46 }
 0x2c0   : > { %5462 = vmatpush.msra.mxu2 %v16680_v21  ;;  %5509 = vmatpush.msra.mxu3 %v16640_v23  ;;  %v4412_v30 = vpop.f32.mrf.mxu1  ;;  %v4487_v18 = vpop.f32.mrf.mxu2  ;;  %v5410_v45 = vand.u32 4294901760, %v5409_v51  ;;  %v5415_v59 = vsub.f32 %v16765_v12, %v22840_v56 }
 0x2c1   : > { %5304 = vmatpush.msra.mxu0 %v16700_v32  ;;  %5381 = vmatpush.msra.mxu1 %v5380_v34  ;;  %v4413_v49 = vadd.f32 %v4412_v30, %v4369_v47  ;;  %v16800_v47 = vsub.f32 %v773_v28, %v16776_v55  ;;  %v16806_v34 = vand.u32 4294901760, %v741_v35  ;;  %v16811_v28 = vsub.f32 %v757_v46, %v16787_v63  ;;  %v693_v30 = vld [vmem:[%s13221_s17 + $0xc30] sm:$0xff] }
 0x2c2   : > { %5465 = vmatpush.msra.mxu2 %v16693_v39  ;;  %5511 = vmatpush.msra.mxu3 %v16650_v61  ;;  %v22841_v46 = vand.u32 4294901760, %v16774_v0 }
 0x2c3   : > { %5306 = vmatpush.msra.mxu0 %v16705_v3  ;;  %5387 = vmatpush.msra.mxu1 %v5386_v58  ;;  %v4488_v37 = vadd.f32 %v4487_v18, %v4413_v49  ;;  %v4528_v54 = vpop.f32.mrf.mxu3  ;;  %v5404_v58 = vand.u32 4294901760, %v5403_v36  ;;  %v22842_v36 = vand.u32 4294901760, %v16771_v17  ;;  %v16833_v43 = vsub.f32 %v741_v35, %v16806_v34 }
 0x2c4   : > { %5468 = vmatpush.msra.mxu2 %v16709_v14  ;;  %5513 = vmatpush.msra.mxu3 %v16666_v16  ;;  %v4373_v18 = vpop.f32.mrf.mxu0  ;;  %v5416_v35 = vand.u32 4294901760, %v5415_v59  ;;  %v22846_v51 = vand.u32 4294901760, %v16800_v47 }
 0x2c5   : > { %5308 = vmatpush.msra.mxu0 %v16736_v33  ;;  %5393 = vmatpush.msra.mxu1 %v5392_v62  ;;  %v4529_v49 = vadd.f32 %v4528_v54, %v4488_v37  ;;  %v16819_v62 = vand.u32 4294901760, %v725_v26  ;;  %v5703_v54 = vsub.f32 %v16774_v0, %v22841_v46  ;;  %v5421_v37 = vsub.f32 %v16771_v17, %v22842_v36 }
 0x2c6   : > { %5471 = vmatpush.msra.mxu2 %v16727_v60  ;;  %5515 = vmatpush.msra.mxu3 %v16677_v11  ;;  %v4374_v56 = vadd.f32 %v4373_v18, %v4315_v2  ;;  %v22843_v11 = vand.u32 4294901760, %v16559_v52  ;;  %v22844_v46 = vand.u32 4294901760, %v16785_v25  ;;  %v22845_v18 = vand.u32 4294901760, %v16569_v57 }
 0x2c7   : > { %5310 = vmatpush.msra.mxu0 %v16744_v6  ;;  %5399 = vmatpush.msra.mxu1 %v5398_v38  ;;  %v16835_v38 = vand.u32 4294901760, %v709_v20  ;;  %12755 = vst [vmem:[%s14629_s29 + $0x20] sm:$0xff] %v4529_v49  ;;  %v16848_v2 = vsub.f32 %v725_v26, %v16819_v62  ;;  %v5422_v49 = vand.u32 4294901760, %v5421_v37  ;;  %v5726_v59 = vand.u32 4294901760, %v16833_v43 }
 0x2c8   : > { %5474 = vmatpush.msra.mxu2 %v16740_v10  ;;  %5517 = vmatpush.msra.mxu3 %v16700_v32  ;;  %v5709_v36 = vsub.f32 %v16785_v25, %v22844_v46  ;;  %v677_v32 = vld [vmem:[%s13221_s17 + $0xbb0] sm:$0xff]  ;;  %v5704_v46 = vand.u32 4294901760, %v5703_v54  ;;  %v5715_v25 = vsub.f32 %v16800_v47, %v22846_v51  ;;  %v22848_v37 = vand.u32 4294901760, %v16811_v28 }
 0x2c9   : > { %5540 = vmatpush.msrb.mxu0 %v22843_v11  ;;  %5405 = vmatpush.msra.mxu1 %v5404_v58  ;;  %v4418_v0 = vpop.f32.mrf.mxu1  ;;  %v16850_v11 = vand.u32 4294901760, %v693_v30  ;;  %v16864_v26 = vand.u32 4294901760, %v677_v32 }
 0x2ca   : > { %5477 = vmatpush.msra.mxu2 %v16765_v12  ;;  %5519 = vmatpush.msra.mxu3 %v16705_v3  ;;  %v4419_v52 = vadd.f32 %v4418_v0, %v4374_v56  ;;  %v4491_v58 = vpop.f32.mrf.mxu2  ;;  %v16862_v0 = vsub.f32 %v709_v20, %v16835_v38  ;;  %v5710_v54 = vand.u32 4294901760, %v5709_v36  ;;  %v5721_v51 = vsub.f32 %v16811_v28, %v22848_v37 }
 0x2cb   : > { %5544 = vmatpush.msrb.mxu0 %v22845_v18  ;;  %5411 = vmatpush.msra.mxu1 %v5410_v45  ;;  %v22847_v45 = vand.u32 4294901760, %v16582_v53  ;;  %v5732_v20 = vand.u32 4294901760, %v16848_v2  ;;  %v16877_v53 = vand.u32 4294901760, %v661_v13  ;;  %v645_v18 = vld [vmem:[%s13221_s17 + $0xab0] sm:$0xff]  ;;  %v22849_v36 = vand.u32 4294901760, %v16597_v5 }
 0x2cc   : > { %5480 = vmatpush.msra.mxu2 %v16771_v17  ;;  %5521 = vmatpush.msra.mxu3 %v16736_v33  ;;  %v4492_v57 = vadd.f32 %v4491_v58, %v4419_v52  ;;  %v16875_v52 = vsub.f32 %v693_v30, %v16850_v11  ;;  %v5738_v30 = vand.u32 4294901760, %v16862_v0  ;;  %v22850_v37 = vand.u32 4294901760, %v16609_v27 }
 0x2cd   : > { %5548 = vmatpush.msrb.mxu0 %v22847_v45  ;;  %v4532_v56 = vpop.f32.mrf.mxu3  ;;  %5417 = vmatpush.msra.mxu1 %v5416_v35  ;;  %v5716_v45 = vand.u32 4294901760, %v5715_v25  ;;  %v5727_v35 = vsub.f32 %v16833_v43, %v5726_v59  ;;  %v16893_v5 = vand.u32 4294901760, %v645_v18  ;;  %v629_v25 = vld [vmem:[%s13221_s17 + $0xa30] sm:$0xff]  ;;  %v16903_v27 = vsub.f32 %v661_v13, %v16877_v53 }
 0x2ce   : > { %5652 = vmatpush.msrb.mxu2 %v16746_v7  ;;  %5523 = vmatpush.msra.mxu3 %v16744_v6  ;;  %v4533_v58 = vadd.f32 %v4532_v56, %v4492_v57  ;;  %v16888_v57 = vsub.f32 %v677_v32, %v16864_v26  ;;  %v5744_v32 = vand.u32 4294901760, %v16875_v52  ;;  %v613_v56 = vld [vmem:[%s13221_s17 + $0x9b0] sm:$0xff]  ;;  %v22852_v13 = vand.u32 4294901760, %v16643_v29 }
 0x2cf   : > { %5552 = vmatpush.msrb.mxu0 %v22849_v36  ;;  %5423 = vmatpush.msra.mxu1 %v5422_v49  ;;  %v5733_v49 = vsub.f32 %v16848_v2, %v5732_v20  ;;  %v22853_v29 = vand.u32 4294901760, %v16659_v50  ;;  %v22854_v50 = vand.u32 4294901760, %v16674_v4 }
 0x2d0   : > { %5654 = vmatpush.msrb.mxu2 %v16757_v8  ;;  %5705 = vmatpush.msrb.mxu3 %v5704_v46  ;;  %v5722_v46 = vand.u32 4294901760, %v5721_v51  ;;  %12771 = vst [vmem:[%s14629_s29 + $0xa0] sm:$0xff] %v4533_v58  ;;  %v5739_v51 = vsub.f32 %v16862_v0, %v5738_v30  ;;  %v5750_v36 = vand.u32 4294901760, %v16888_v57  ;;  %v16914_v58 = vand.u32 4294901760, %v629_v25 }
 0x2d1   : > { %5556 = vmatpush.msrb.mxu0 %v22850_v37  ;;  %5611 = vmatpush.msrb.mxu1 %v16540_v42  ;;  %v22851_v42 = vand.u32 4294901760, %v16628_v41  ;;  %v597_v41 = vld [vmem:[%s13221_s17 + $0x930] sm:$0xff]  ;;  %v5756_v37 = vand.u32 4294901760, %v16903_v27 }
 0x2d2   : > { %5656 = vmatpush.msrb.mxu2 %v16776_v55  ;;  %5711 = vmatpush.msrb.mxu3 %v5710_v54  ;;  %v5728_v54 = vand.u32 4294901760, %v5727_v35  ;;  %v5745_v35 = vsub.f32 %v16875_v52, %v5744_v32 }
 0x2d3   : > { %5560 = vmatpush.msrb.mxu0 %v22851_v42  ;;  %5613 = vmatpush.msrb.mxu1 %v16550_v40  ;;  %v16920_v40 = vsub.f32 %v645_v18, %v16893_v5  ;;  %v16928_v42 = vand.u32 4294901760, %v613_v56  ;;  %v5751_v18 = vsub.f32 %v16888_v57, %v5750_v36 }
 0x2d4   : > { %5658 = vmatpush.msrb.mxu2 %v16787_v63  ;;  %5717 = vmatpush.msrb.mxu3 %v5716_v45  ;;  %v5734_v45 = vand.u32 4294901760, %v5733_v49  ;;  %v16940_v49 = vand.u32 4294901760, %v597_v41 }
 0x2d5   : > { %5564 = vmatpush.msrb.mxu0 %v22852_v13  ;;  %5615 = vmatpush.msrb.mxu1 %v16556_v1  ;;  %v5740_v1 = vand.u32 4294901760, %v5739_v51  ;;  %v581_v13 = vld [vmem:[%s13221_s17 + $0x8b0] sm:$0xff]  ;;  %v5757_v51 = vsub.f32 %v16903_v27, %v5756_v37 }
 0x2d6   : > { %5660 = vmatpush.msrb.mxu2 %v16806_v34  ;;  %5723 = vmatpush.msrb.mxu3 %v5722_v46  ;;  %v16938_v46 = vsub.f32 %v629_v25, %v16914_v58  ;;  %v16952_v25 = vsub.f32 %v613_v56, %v16928_v42  ;;  %v16957_v4 = vand.u32 4294901760, %v581_v13  ;;  %v22856_v56 = vand.u32 4294901760, %v16693_v39 }
 0x2d7   : > { %5568 = vmatpush.msrb.mxu0 %v22853_v29  ;;  %5617 = vmatpush.msrb.mxu1 %v16574_v15  ;;  %v5762_v15 = vand.u32 4294901760, %v16920_v40  ;;  %v22855_v29 = vand.u32 4294901760, %v16680_v21  ;;  %v5758_v21 = vand.u32 4294901760, %v5757_v51  ;;  %v22858_v51 = vand.u32 4294901760, %v16727_v60 }
 0x2d8   : > { %5662 = vmatpush.msrb.mxu2 %v16819_v62  ;;  %5729 = vmatpush.msrb.mxu3 %v5728_v54  ;;  %v5746_v54 = vand.u32 4294901760, %v5745_v35  ;;  %v5768_v35 = vand.u32 4294901760, %v16938_v46  ;;  %v16979_v39 = vsub.f32 %v581_v13, %v16957_v4 }
 0x2d9   : > { %5572 = vmatpush.msrb.mxu0 %v22854_v50  ;;  %5619 = vmatpush.msrb.mxu1 %v16578_v31  ;;  %v565_v31 = vld [vmem:[%s13221_s17 + $0x830] sm:$0xff]  ;;  %v16963_v50 = vsub.f32 %v597_v41, %v16940_v49  ;;  %v22857_v41 = vand.u32 4294901760, %v16709_v14 }
 0x2da   : > { %5664 = vmatpush.msrb.mxu2 %v16835_v38  ;;  %5735 = vmatpush.msrb.mxu3 %v5734_v45  ;;  %v5752_v45 = vand.u32 4294901760, %v5751_v18  ;;  %v16973_v18 = vand.u32 4294901760, %v565_v31  ;;  %v5786_v60 = vand.u32 4294901760, %v16979_v39 }
 0x2db   : > { %5576 = vmatpush.msrb.mxu0 %v22855_v29  ;;  %5621 = vmatpush.msrb.mxu1 %v16594_v44  ;;  %v5763_v44 = vsub.f32 %v16920_v40, %v5762_v15  ;;  %v22859_v29 = vand.u32 4294901760, %v16740_v10 }
 0x2dc   : > { %5666 = vmatpush.msrb.mxu2 %v16850_v11  ;;  %5741 = vmatpush.msrb.mxu3 %v5740_v1  ;;  %v5774_v1 = vand.u32 4294901760, %v16952_v25  ;;  %v16994_v13 = vsub.f32 %v565_v31, %v16973_v18  ;;  %v22860_v31 = vand.u32 4294901760, %v16765_v12  ;;  %v22863_v12 = vld [vmem:[#allocation19_spill] sm:$0xff] }
 0x2dd   : > { %5580 = vmatpush.msrb.mxu0 %v22856_v56  ;;  %5623 = vmatpush.msrb.mxu1 %v16614_v24  ;;  %v5769_v24 = vsub.f32 %v16938_v46, %v5768_v35  ;;  %v5764_v14 = vand.u32 4294901760, %v5763_v44  ;;  %v22861_v44 = vld [vmem:[#allocation7_spill] sm:$0xff] }
 0x2de   : > { %5668 = vmatpush.msrb.mxu2 %v16864_v26  ;;  %5747 = vmatpush.msrb.mxu3 %v5746_v54  ;;  %v5780_v54 = vand.u32 4294901760, %v16963_v50  ;;  %v5792_v56 = vand.u32 4294901760, %v16994_v13 }
 0x2df   : > { %5584 = vmatpush.msrb.mxu0 %v22857_v41  ;;  %5625 = vmatpush.msrb.mxu1 %v16624_v48  ;;  %v5775_v48 = vsub.f32 %v16952_v25, %v5774_v1  ;;  %v22862_v41 = vand.u32 4294901760, %v16771_v17  ;;  %v22867_v17 = vld [vmem:[#allocation22_spill] sm:$0xff] }
 0x2e0   : > { %5670 = vmatpush.msrb.mxu2 %v16877_v53  ;;  %5753 = vmatpush.msrb.mxu3 %v5752_v45  ;;  %v5781_v45 = vsub.f32 %v16963_v50, %v5780_v54 }
 0x2e1   : > { %5588 = vmatpush.msrb.mxu0 %v22858_v51  ;;  %5627 = vmatpush.msrb.mxu1 %v16640_v23  ;;  %v5770_v23 = vand.u32 4294901760, %v5769_v24  ;;  %v5776_v10 = vand.u32 4294901760, %v5775_v48  ;;  %v22864_v24 = vld [vmem:[#allocation21_spill] sm:$0xff]  ;;  %v22865_v51 = vld [vmem:[#allocation20_spill] sm:$0xff] }
 0x2e2   : > { %5672 = vmatpush.msrb.mxu2 %v16893_v5  ;;  %5759 = vmatpush.msrb.mxu3 %v5758_v21  ;;  %v5782_v21 = vand.u32 4294901760, %v5781_v45  ;;  %v22866_v48 = vld [vmem:[#allocation9_spill] sm:$0xff]  ;;  %v22869_v45 = vld [vmem:[#allocation10_spill] sm:$0xff] }
 0x2e3   : > { %5483 = vmatmul.f32.vlgmr.msra.gmra.mxu2 %v13564_v19  ;;  %5592 = vmatpush.msrb.mxu0 %v22859_v29 }
 0x2e4   : > { %5629 = vmatpush.msrb.mxu1 %v16650_v61  ;;  %5674 = vmatpush.msrb.mxu2 %v16914_v58  ;;  %v5787_v61 = vsub.f32 %v16979_v39, %v5786_v60 }
 0x2e5   : > { %5765 = vmatpush.msrb.mxu3 %v5764_v14  ;;  %5316 = vmatmul.f32.vlgmr.msra.gmra.mxu0 %v13645_v22 }
 0x2e6   : > { %5527 = vmatmul.f32.vlgmr.msra.gmra.mxu3 %v13594_v9  ;;  %5596 = vmatpush.msrb.mxu0 %v22860_v31  ;;  %v5788_v14 = vand.u32 4294901760, %v5787_v61  ;;  %v22870_v31 = vand.u32 4294901760, %v22864_v24  ;;  %v22873_v61 = vand.u32 4294901760, %v16800_v47 }
 0x2e7   : > { %5631 = vmatpush.msrb.mxu1 %v16666_v16  ;;  %5676 = vmatpush.msrb.mxu2 %v16928_v42  ;;  %v5793_v16 = vsub.f32 %v16994_v13, %v5792_v56 }
 0x2e8   : > { %5771 = vmatpush.msrb.mxu3 %v5770_v23  ;;  %5425 = vmatmul.f32.vlgmr.msra.gmra.mxu1 %v22861_v44  ;;  %v22868_v23 = vld [vmem:[#allocation13_spill] sm:$0xff] }
 0x2e9   : > { %5600 = vmatpush.msrb.mxu0 %v22862_v41  ;;  %5633 = vmatpush.msrb.mxu1 %v22863_v12  ;;  %v5794_v29 = vand.u32 4294901760, %v5793_v16 }
 0x2ea   : > { %5678 = vmatpush.msrb.mxu2 %v16940_v49  ;;  %5777 = vmatpush.msrb.mxu3 %v5776_v10  ;;  %v22871_v10 = vld [vmem:[#allocation8_spill] sm:$0xff] }
 0x2eb   : > { %5807 = vmatpush.msra.mxu0 %v22864_v24  ;;  %5635 = vmatpush.msrb.mxu1 %v22865_v51  ;;  %v406_v24 = vld [vmem:[%s13221_s17 + $0x338] sm:$0xff] }
 0x2ec   : > { %5680 = vmatpush.msrb.mxu2 %v16957_v4  ;;  %5783 = vmatpush.msrb.mxu3 %v5782_v21  ;;  %v22875_v21 = vand.u32 4294901760, %v16811_v28 }
 0x2ed   : > { %5488 = vmatmul.f32.gmra.mxu2 %v22866_v48  ;;  %5810 = vmatpush.msra.mxu0 %v22867_v17 }
 0x2ee   : > { %5637 = vmatpush.msrb.mxu1 %v16705_v3  ;;  %5682 = vmatpush.msrb.mxu2 %v16973_v18  ;;  %v22872_v3 = vand.u32 4294901760, %v22867_v17 }
 0x2ef   : > { %5789 = vmatpush.msrb.mxu3 %v5788_v14  ;;  %5324 = vmatmul.f32.gmra.mxu0 %v22868_v23 }
 0x2f0   : > { %5533 = vmatmul.f32.gmra.mxu3 %v22869_v45  ;;  %5813 = vmatpush.msra.mxu0 %v16800_v47 }
 0x2f1   : > { %5912 = vmatpush.msra.mxu2 %v22870_v31  ;;  %5639 = vmatpush.msrb.mxu1 %v16736_v33  ;;  %v22874_v33 = vld [vmem:[#allocation15_spill] sm:$0xff] }
 0x2f2   : > { %5795 = vmatpush.msrb.mxu3 %v5794_v29  ;;  %5429 = vmatmul.f32.gmra.mxu1 %v22871_v10 }
 0x2f3   : > { %5816 = vmatpush.msra.mxu0 %v16811_v28  ;;  %5916 = vmatpush.msra.mxu2 %v22872_v3  ;;  %v518_v28 = vld [vmem:[%s13221_s17 + $0x6b8] sm:$0xff] }
 0x2f4   : > { %5983 = vmatpush.msra.mxu3 %v16746_v7  ;;  %5641 = vmatpush.msrb.mxu1 %v16744_v6  ;;  %v22876_v6 = vld [vmem:[#allocation11_spill] sm:$0xff] }
 0x2f5   : > { %5819 = vmatpush.msra.mxu0 %v16833_v43  ;;  %5920 = vmatpush.msra.mxu2 %v22873_v61  ;;  %v390_v61 = vld [vmem:[%s13221_s17 + $0x2b8] sm:$0xff] }
 0x2f6   : > { %5865 = vmatpush.msra.mxu1 %v16746_v7  ;;  %5985 = vmatpush.msra.mxu3 %v16757_v8  ;;  %v4573_v43 = vpop.f32.mrf.mxu0 }
 0x2f7   : > { %5688 = vmatmul.f32.vlgmr.msrb.gmra.mxu2 %v22874_v33  ;;  %5822 = vmatpush.msra.mxu0 %v16848_v2  ;;  %v17109_v2 = vand.u32 4294901760, %v518_v28 }
 0x2f8   : > { %5867 = vmatpush.msra.mxu1 %v16757_v8  ;;  %5924 = vmatpush.msra.mxu2 %v22875_v21  ;;  %v550_v8 = vld [vmem:[%s13221_s17 + $0x7b8] sm:$0xff] }
 0x2f9   : > { %5987 = vmatpush.msra.mxu3 %v16776_v55  ;;  %5602 = vmatmul.f32.vlgmr.msrb.gmra.mxu0 %v22861_v44  ;;  %v4682_v7 = vpop.f32.mrf.mxu1 }
 0x2fa   : > { %5797 = vmatmul.f32.vlgmr.msrb.gmra.mxu3 %v22876_v6  ;;  %5825 = vmatpush.msra.mxu0 %v16862_v0  ;;  %v502_v0 = vld [vmem:[%s13221_s17 + $0x638] sm:$0xff] }
 0x2fb   : > { %5869 = vmatpush.msra.mxu1 %v16776_v55  ;;  %5928 = vmatpush.msra.mxu2 %v5726_v59  ;;  %v4740_v55 = vpop.f32.mrf.mxu2 }
 0x2fc   : > { %5989 = vmatpush.msra.mxu3 %v16787_v63  ;;  %5643 = vmatmul.f32.vlgmr.msrb.gmra.mxu1 %v22861_v44  ;;  %v662_v44 = vld [vmem:[%s13221_s17 + $0xb38] sm:$0xff] }
 0x2fd   : > { %5828 = vmatpush.msra.mxu0 %v16875_v52  ;;  %5871 = vmatpush.msra.mxu1 %v16787_v63  ;;  %v534_v63 = vld [vmem:[%s13221_s17 + $0x738] sm:$0xff]  ;;  %v17097_v47 = vpop.f32.mrf.mxu3 }
 0x2fe   : > { %5932 = vmatpush.msra.mxu2 %v5732_v20  ;;  %5991 = vmatpush.msra.mxu3 %v16806_v34  ;;  %v22878_v20 = vld [vmem:[#allocation6_spill] sm:$0xff] }
 0x2ff   : > { %5831 = vmatpush.msra.mxu0 %v16888_v57  ;;  %5873 = vmatpush.msra.mxu1 %v16806_v34  ;;  %v17093_v34 = vand.u32 4294901760, %v550_v8 }
 0x300   : > { %5936 = vmatpush.msra.mxu2 %v5738_v30  ;;  %5993 = vmatpush.msra.mxu3 %v16819_v62  ;;  %v4581_v59 = vpop.f32.mrf.mxu0 }
 0x301   : > { %5834 = vmatpush.msra.mxu0 %v16903_v27  ;;  %5875 = vmatpush.msra.mxu1 %v16819_v62  ;;  %v17103_v62 = vand.u32 4294901760, %v534_v63 }
 0x302   : > { %5940 = vmatpush.msra.mxu2 %v5744_v32  ;;  %5995 = vmatpush.msra.mxu3 %v16835_v38  ;;  %v17135_v32 = vsub.f32 %v518_v28, %v17109_v2  ;;  %v374_v28 = vld [vmem:[%s13221_s17 + $0x238] sm:$0xff] }
 0x303   : > { %5837 = vmatpush.msra.mxu0 %v16920_v40  ;;  %5877 = vmatpush.msra.mxu1 %v16835_v38  ;;  %v22877_v38 = vld [vmem:[#allocation18_spill] sm:$0xff]  ;;  %v17122_v52 = vsub.f32 %v534_v63, %v17103_v62  ;;  %v4686_v30 = vpop.f32.mrf.mxu1  ;;  %v22879_v40 = vld [vmem:[#allocation12_spill] sm:$0xff] }
 0x304   : > { %5944 = vmatpush.msra.mxu2 %v5750_v36  ;;  %5997 = vmatpush.msra.mxu3 %v16850_v11  ;;  %v4745_v27 = vpop.f32.mrf.mxu2  ;;  %v470_v36 = vld [vmem:[%s13221_s17 + $0x538] sm:$0xff]  ;;  %v4687_v51 = vadd.f32 %v4686_v30, %v4581_v59  ;;  %v17219_v30 = vand.u32 4294901760, %v390_v61 }
 0x305   : > { %5840 = vmatpush.msra.mxu0 %v16938_v46  ;;  %5879 = vmatpush.msra.mxu1 %v16850_v11  ;;  %v17112_v11 = vsub.f32 %v550_v8, %v17093_v34  ;;  %v454_v46 = vld [vmem:[%s13221_s17 + $0x4b8] sm:$0xff] }
 0x306   : > { %5948 = vmatpush.msra.mxu2 %v5756_v37  ;;  %5999 = vmatpush.msra.mxu3 %v16864_v26  ;;  %v22365_v37 = vand.u32 4294901760, %v17122_v52  ;;  %v4746_v59 = vadd.f32 %v4745_v27, %v4687_v51  ;;  %v17230_v27 = vand.u32 4294901760, %v374_v28  ;;  %v22882_v51 = vld [vmem:[#allocation16_spill] sm:$0xff] }
 0x307   : > { %5606 = vmatmul.f32.gmra.mxu0 %v22871_v10  ;;  %5881 = vmatpush.msra.mxu1 %v16864_v26  ;;  %v486_v26 = vld [vmem:[%s13221_s17 + $0x5b8] sm:$0xff] }
 0x308   : > { %5843 = vmatpush.msra.mxu0 %v16952_v25  ;;  %5952 = vmatpush.msra.mxu2 %v5762_v15  ;;  %v17131_v57 = vand.u32 4294901760, %v486_v26  ;;  %v17147_v15 = vand.u32 4294901760, %v470_v36  ;;  %22881 = vst [vmem:[#allocation19_spill] sm:$0xff] %v17230_v27 }
 0x309   : > { %6001 = vmatpush.msra.mxu3 %v16877_v53  ;;  %5883 = vmatpush.msra.mxu1 %v16877_v53  ;;  %v17127_v53 = vand.u32 4294901760, %v502_v0 }
 0x30a   : > { %5846 = vmatpush.msra.mxu0 %v16963_v50  ;;  %5956 = vmatpush.msra.mxu2 %v5768_v35  ;;  %v17152_v35 = vpop.f32.mrf.mxu3  ;;  %v22364_v50 = vand.u32 4294901760, %v17135_v32  ;;  %v17181_v16 = vsub.f32 %v470_v36, %v17147_v15 }
 0x30b   : > { %6003 = vmatpush.msra.mxu3 %v16893_v5  ;;  %5696 = vmatmul.f32.gmra.mxu2 %v22877_v38  ;;  %v17150_v25 = vsub.f32 %v502_v0, %v17127_v53 }
 0x30c   : > { %5849 = vmatpush.msra.mxu0 %v16979_v39  ;;  %5885 = vmatpush.msra.mxu1 %v16893_v5  ;;  %v22366_v5 = vand.u32 4294901760, %v17112_v11 }
 0x30d   : > { %5960 = vmatpush.msra.mxu2 %v5774_v1  ;;  %6005 = vmatpush.msra.mxu3 %v16914_v58  ;;  %v438_v1 = vld [vmem:[%s13221_s17 + $0x438] sm:$0xff]  ;;  %v22363_v12 = vand.u32 4294901760, %v17150_v25 }
 0x30e   : > { %5801 = vmatmul.f32.gmra.mxu3 %v22878_v20  ;;  %5852 = vmatpush.msra.mxu0 %v16994_v13  ;;  %v6081_v13 = vsub.f32 %v17122_v52, %v22365_v37  ;;  %v17177_v41 = vand.u32 4294901760, %v438_v1  ;;  %v17201_v8 = vpop.f32.mrf.mxu2 }
 0x30f   : > { %5887 = vmatpush.msra.mxu1 %v16914_v58  ;;  %5964 = vmatpush.msra.mxu2 %v5780_v54  ;;  %v4683_v58 = vadd.f32 %v4682_v7, %v4573_v43  ;;  %v17167_v54 = vand.u32 4294901760, %v454_v46  ;;  %v4900_v43 = vpop.f32.mrf.mxu1  ;;  %v17203_v7 = vand.u32 4294901760, %v406_v24  ;;  %v6093_v63 = vsub.f32 %v17150_v25, %v22363_v12  ;;  %v326_v12 = vld [vmem:[%s13221_s17 + $0xb8] sm:$0xff] }
 0x310   : > { %6007 = vmatpush.msra.mxu3 %v16928_v42  ;;  %5647 = vmatmul.f32.gmra.mxu1 %v22871_v10  ;;  %v6082_v21 = vand.u32 4294901760, %v6081_v13  ;;  %v358_v13 = vld [vmem:[%s13221_s17 + $0x1b8] sm:$0xff] }
 0x311   : > { %5855 = vmatmul.f32.vlgmr.msra.gmra.mxu0 %v22879_v40  ;;  %5889 = vmatpush.msra.mxu1 %v16928_v42  ;;  %v6075_v42 = vsub.f32 %v17112_v11, %v22366_v5  ;;  %v4741_v39 = vadd.f32 %v4740_v55, %v4683_v58  ;;  %v17196_v3 = vsub.f32 %v454_v46, %v17167_v54  ;;  %v22880_v55 = vld [vmem:[#allocation14_spill] sm:$0xff]  ;;  %v774_v40 = vld [vmem:[%s13221_s17 + $0xeb8] sm:$0xff] }
 0x312   : > { %6024 = vmatpush.msrb.mxu0 %v17093_v34  ;;  %5968 = vmatpush.msra.mxu2 %v5786_v60  ;;  %v4859_v60 = vpop.f32.mrf.mxu0  ;;  %v17223_v58 = vpop.f32.mrf.mxu3  ;;  %v742_v10 = vld [vmem:[%s13221_s17 + $0xdb8] sm:$0xff] }
 0x313   : > { %6009 = vmatpush.msra.mxu3 %v16940_v49  ;;  %5891 = vmatpush.msra.mxu1 %v16940_v49  ;;  %v17162_v49 = vsub.f32 %v486_v26, %v17131_v57  ;;  %v6076_v14 = vand.u32 4294901760, %v6075_v42  ;;  %v4785_v29 = vadd.f32 %v17097_v47, %v4741_v39  ;;  %v22360_v47 = vand.u32 4294901760, %v17181_v16 }
 0x314   : > { %6026 = vmatpush.msrb.mxu0 %v17103_v62  ;;  %5972 = vmatpush.msra.mxu2 %v5792_v56  ;;  %v422_v56 = vld [vmem:[%s13221_s17 + $0x3b8] sm:$0xff]  ;;  %v22362_v46 = vand.u32 4294901760, %v17196_v3 }
 0x315   : > { %6011 = vmatpush.msra.mxu3 %v16957_v4  ;;  %5974 = vmatmul.f32.vlgmr.msra.gmra.mxu2 %v22876_v6  ;;  %v22361_v17 = vand.u32 4294901760, %v17162_v49  ;;  %v17193_v31 = vand.u32 4294901760, %v422_v56  ;;  %v4860_v36 = vadd.f32 %v4859_v60, %v4785_v29  ;;  %v6094_v60 = vand.u32 4294901760, %v6093_v63 }
 0x316   : > { %6028 = vmatpush.msrb.mxu0 %v17109_v2  ;;  %6179 = vmatpush.msrb.mxu2 %v17112_v11  ;;  %v4791_v29 = vadd.f32 %v17152_v35, %v4746_v59  ;;  %v806_v59 = vld [vmem:[%s13221_s17 + $0xfb8] sm:$0xff] }
 0x317   : > { %5893 = vmatpush.msra.mxu1 %v16957_v4  ;;  %6013 = vmatpush.msra.mxu3 %v16973_v18  ;;  %v6087_v4 = vsub.f32 %v17135_v32, %v22364_v50  ;;  %v6099_v26 = vsub.f32 %v17162_v49, %v22361_v17  ;;  %v17227_v42 = vsub.f32 %v422_v56, %v17193_v31  ;;  %v17253_v17 = vand.u32 4294901760, %v358_v13  ;;  %v22884_v50 = vld [vmem:[#allocation17_spill] sm:$0xff] }
 0x318   : > { %6015 = vmatmul.f32.vlgmr.msra.gmra.mxu3 %v22876_v6  ;;  %6030 = vmatpush.msrb.mxu0 %v17127_v53  ;;  %v6105_v56 = vsub.f32 %v17181_v16, %v22360_v47  ;;  %v4901_v63 = vadd.f32 %v4900_v43, %v4860_v36  ;;  %v6111_v47 = vsub.f32 %v17196_v3, %v22362_v46  ;;  %v17299_v5 = vand.u32 4294901760, %v806_v59 }
 0x319   : > { %6182 = vmatpush.msrb.mxu2 %v17122_v52  ;;  %6237 = vmatpush.msrb.mxu3 %v17093_v34  ;;  %v6088_v0 = vand.u32 4294901760, %v6087_v4  ;;  %v342_v4 = vld [vmem:[%s13221_s17 + $0x138] sm:$0xff]  ;;  %22883 = vst [vmem:[#allocation21_spill] sm:$0xff] %v17253_v17  ;;  %v22368_v35 = vand.u32 4294901760, %v17227_v42  ;;  %v17262_v43 = vsub.f32 %v374_v28, %v17230_v27 }
 0x31a   : > { %5895 = vmatpush.msra.mxu1 %v16973_v18  ;;  %6032 = vmatpush.msrb.mxu0 %v17131_v57  ;;  %v17212_v18 = vsub.f32 %v438_v1, %v17177_v41  ;;  %v17233_v1 = vsub.f32 %v406_v24, %v17203_v7  ;;  %v4863_v39 = vpop.f32.mrf.mxu0  ;;  %v6100_v24 = vand.u32 4294901760, %v6099_v26  ;;  %v6106_v36 = vand.u32 4294901760, %v6105_v56  ;;  %v310_v28 = vld [vmem:[%s13221_s17 + $0x38] sm:$0xff] }
 0x31b   : > { %5899 = vmatmul.f32.vlgmr.msra.gmra.mxu1 %v22880_v55  ;;  %6185 = vmatpush.msrb.mxu2 %v17135_v32  ;;  %v4864_v37 = vadd.f32 %v4863_v39, %v4791_v29  ;;  %v6112_v56 = vand.u32 4294901760, %v6111_v47 }
 0x31c   : > { %6077 = vmatpush.msrb.mxu1 %v6076_v14  ;;  %6239 = vmatpush.msrb.mxu3 %v17103_v62  ;;  %v22367_v14 = vand.u32 4294901760, %v17212_v18  ;;  %v22885_v39 = vand.u32 4294901760, %v17233_v1 }
 0x31d   : > { %6034 = vmatpush.msrb.mxu0 %v17147_v15  ;;  %6188 = vmatpush.msrb.mxu2 %v17150_v25 }
 0x31e   : > { %6083 = vmatpush.msrb.mxu1 %v6082_v21  ;;  %6241 = vmatpush.msrb.mxu3 %v17109_v2  ;;  %v17246_v21 = vsub.f32 %v390_v61, %v17219_v30  ;;  %v17258_v61 = vand.u32 4294901760, %v342_v4  ;;  %v6117_v46 = vsub.f32 %v17212_v18, %v22367_v14  ;;  %v6123_v14 = vsub.f32 %v17227_v42, %v22368_v35 }
 0x31f   : > { %5860 = vmatmul.f32.gmra.mxu0 %v22882_v51  ;;  %5978 = vmatmul.f32.gmra.mxu2 %v22878_v20  ;;  %v17280_v51 = vsub.f32 %v358_v13, %v17253_v17  ;;  %v6129_v29 = vsub.f32 %v17233_v1, %v22885_v39  ;;  %v790_v13 = vld [vmem:[%s13221_s17 + $0xf38] sm:$0xff]  ;;  %v17297_v35 = vand.u32 4294901760, %v310_v28 }
 0x320   : > { %6036 = vmatpush.msrb.mxu0 %v17167_v54  ;;  %6089 = vmatpush.msrb.mxu1 %v6088_v0  ;;  %v22886_v39 = vand.u32 4294901760, %v17246_v21  ;;  %v17310_v38 = vand.u32 4294901760, %v790_v13 }
 0x321   : > { %6191 = vmatpush.msrb.mxu2 %v17162_v49  ;;  %6243 = vmatpush.msrb.mxu3 %v17127_v53  ;;  %v4904_v0 = vpop.f32.mrf.mxu1  ;;  %v6130_v6 = vand.u32 4294901760, %v6129_v29  ;;  %v17327_v29 = vsub.f32 %v806_v59, %v17299_v5 }
 0x322   : > { %6019 = vmatmul.f32.gmra.mxu3 %v22878_v20  ;;  %6038 = vmatpush.msrb.mxu0 %v17177_v41  ;;  %v4953_v26 = vpop.f32.mrf.mxu2  ;;  %v6135_v47 = vsub.f32 %v17246_v21, %v22886_v39  ;;  %v5112_v55 = vpop.f32.mrf.mxu0  ;;  %v22887_v39 = vand.u32 4294901760, %v17262_v43  ;;  %v17338_v59 = vsub.f32 %v790_v13, %v17310_v38  ;;  %v710_v13 = vld [vmem:[%s13221_s17 + $0xcb8] sm:$0xff] }
 0x323   : > { %6095 = vmatpush.msrb.mxu1 %v6094_v60  ;;  %6194 = vmatpush.msrb.mxu2 %v17181_v16  ;;  %v4946_v60 = vadd.f32 %v17201_v8, %v4901_v63  ;;  %v17289_v8 = vand.u32 4294901760, %v326_v12  ;;  %v6118_v63 = vand.u32 4294901760, %v6117_v46  ;;  %v6124_v46 = vand.u32 4294901760, %v6123_v14  ;;  %22888 = vst [vmem:[#allocation20_spill] sm:$0xff] %v17327_v29 }
 0x324   : > { %6245 = vmatpush.msrb.mxu3 %v17131_v57  ;;  %5905 = vmatmul.f32.gmra.mxu1 %v22884_v50  ;;  %22890 = vst [vmem:[#allocation22_spill] sm:$0xff] %v17338_v59 }
 0x325   : > { %6040 = vmatpush.msrb.mxu0 %v17193_v31  ;;  %6101 = vmatpush.msrb.mxu1 %v6100_v24  ;;  %v17282_v50 = vpop.f32.mrf.mxu3  ;;  %v17293_v24 = vsub.f32 %v342_v4, %v17258_v61  ;;  %v4905_v4 = vadd.f32 %v4904_v0, %v4864_v37  ;;  %v5055_v20 = vadd.f32 %v17223_v58, %v4946_v60  ;;  %v758_v60 = vld [vmem:[%s13221_s17 + $0xe38] sm:$0xff] }
 0x326   : > { %6197 = vmatpush.msrb.mxu2 %v17196_v3  ;;  %6247 = vmatpush.msrb.mxu3 %v17147_v15  ;;  %v6141_v37 = vsub.f32 %v17262_v43, %v22887_v39  ;;  %v17318_v0 = vsub.f32 %v326_v12, %v17289_v8  ;;  %v6136_v12 = vand.u32 4294901760, %v6135_v47 }
 0x327   : > { %6042 = vmatpush.msrb.mxu0 %v17203_v7  ;;  %6107 = vmatpush.msrb.mxu1 %v6106_v36  ;;  %v5113_v14 = vadd.f32 %v5112_v55, %v5055_v20  ;;  %v17329_v36 = vand.u32 4294901760, %v774_v40  ;;  %v4954_v39 = vadd.f32 %v4953_v26, %v4905_v4  ;;  %v22889_v20 = vand.u32 4294901760, %v17280_v51 }
 0x328   : > { %6200 = vmatpush.msrb.mxu2 %v17212_v18  ;;  %6249 = vmatpush.msrb.mxu3 %v17167_v54  ;;  %v6142_v26 = vand.u32 4294901760, %v6141_v37  ;;  %v22891_v47 = vand.u32 4294901760, %v17293_v24  ;;  %v726_v37 = vld [vmem:[%s13221_s17 + $0xd38] sm:$0xff] }
 0x329   : > { %6044 = vmatpush.msrb.mxu0 %v17219_v30  ;;  %6113 = vmatpush.msrb.mxu1 %v6112_v56  ;;  %v17324_v56 = vsub.f32 %v310_v28, %v17297_v35  ;;  %v6147_v55 = vsub.f32 %v17280_v51, %v22889_v20 }
 0x32a   : > { %6203 = vmatpush.msrb.mxu2 %v17227_v42  ;;  %6251 = vmatpush.msrb.mxu3 %v17177_v41  ;;  %v6153_v4 = vsub.f32 %v17293_v24, %v22891_v47  ;;  %v5059_v47 = vadd.f32 %v17282_v50, %v4954_v39  ;;  %v22892_v39 = vand.u32 4294901760, %v17318_v0 }
 0x32b   : > { %6046 = vmatpush.msrb.mxu0 %v17230_v27  ;;  %6119 = vmatpush.msrb.mxu1 %v6118_v63  ;;  %v17340_v63 = vand.u32 4294901760, %v758_v60 }
 0x32c   : > { %6206 = vmatpush.msrb.mxu2 %v17233_v1  ;;  %6253 = vmatpush.msrb.mxu3 %v17193_v31  ;;  %v5156_v58 = vpop.f32.mrf.mxu1  ;;  %v5231_v33 = vpop.f32.mrf.mxu2  ;;  %v6154_v50 = vand.u32 4294901760, %v6153_v4  ;;  %v6159_v23 = vsub.f32 %v17318_v0, %v22892_v39 }
 0x32d   : > { %6048 = vmatpush.msrb.mxu0 %v17253_v17  ;;  %6125 = vmatpush.msrb.mxu1 %v6124_v46  ;;  %v5157_v28 = vadd.f32 %v5156_v58, %v5113_v14  ;;  %v17353_v14 = vsub.f32 %v774_v40, %v17329_v36  ;;  %v17359_v46 = vand.u32 4294901760, %v742_v10  ;;  %v17364_v40 = vsub.f32 %v758_v60, %v17340_v63  ;;  %v694_v58 = vld [vmem:[%s13221_s17 + $0xc38] sm:$0xff] }
 0x32e   : > { %6209 = vmatpush.msrb.mxu2 %v17246_v21  ;;  %6255 = vmatpush.msrb.mxu3 %v17203_v7  ;;  %v22893_v60 = vand.u32 4294901760, %v17327_v29 }
 0x32f   : > { %6050 = vmatpush.msrb.mxu0 %v17258_v61  ;;  %6131 = vmatpush.msrb.mxu1 %v6130_v6  ;;  %v5232_v20 = vadd.f32 %v5231_v33, %v5157_v28  ;;  %v5272_v45 = vpop.f32.mrf.mxu3  ;;  %v6148_v6 = vand.u32 4294901760, %v6147_v55  ;;  %v22894_v55 = vand.u32 4294901760, %v17324_v56  ;;  %v17386_v48 = vsub.f32 %v742_v10, %v17359_v46 }
 0x330   : > { %6212 = vmatpush.msrb.mxu2 %v17262_v43  ;;  %6257 = vmatpush.msrb.mxu3 %v17219_v30  ;;  %v5117_v33 = vpop.f32.mrf.mxu0  ;;  %v6160_v10 = vand.u32 4294901760, %v6159_v23  ;;  %v22898_v4 = vand.u32 4294901760, %v17353_v14 }
 0x331   : > { %6052 = vmatpush.msrb.mxu0 %v17289_v8  ;;  %6137 = vmatpush.msrb.mxu1 %v6136_v12  ;;  %v5273_v28 = vadd.f32 %v5272_v45, %v5232_v20  ;;  %v17372_v12 = vand.u32 4294901760, %v726_v37  ;;  %v6447_v45 = vsub.f32 %v17327_v29, %v22893_v60  ;;  %v6165_v20 = vsub.f32 %v17324_v56, %v22894_v55 }
 0x332   : > { %6215 = vmatpush.msrb.mxu2 %v17280_v51  ;;  %6259 = vmatpush.msrb.mxu3 %v17230_v27  ;;  %v5118_v39 = vadd.f32 %v5117_v33, %v5059_v47  ;;  %v22895_v27 = vand.u32 4294901760, %v17112_v11  ;;  %v22896_v60 = vand.u32 4294901760, %v17338_v59  ;;  %v22897_v33 = vand.u32 4294901760, %v17122_v52 }
 0x333   : > { %6054 = vmatpush.msrb.mxu0 %v17297_v35  ;;  %6143 = vmatpush.msrb.mxu1 %v6142_v26  ;;  %v17388_v26 = vand.u32 4294901760, %v710_v13  ;;  %12756 = vst [vmem:[%s14629_s29 + $0x28] sm:$0xff] %v5273_v28  ;;  %v17401_v47 = vsub.f32 %v726_v37, %v17372_v12  ;;  %v6166_v28 = vand.u32 4294901760, %v6165_v20  ;;  %v6470_v23 = vand.u32 4294901760, %v17386_v48 }
 0x334   : > { %6218 = vmatpush.msrb.mxu2 %v17293_v24  ;;  %6261 = vmatpush.msrb.mxu3 %v17253_v17  ;;  %v6453_v55 = vsub.f32 %v17338_v59, %v22896_v60  ;;  %v678_v17 = vld [vmem:[%s13221_s17 + $0xbb8] sm:$0xff]  ;;  %v6448_v60 = vand.u32 4294901760, %v6447_v45  ;;  %v6459_v59 = vsub.f32 %v17353_v14, %v22898_v4  ;;  %v22900_v20 = vand.u32 4294901760, %v17364_v40 }
 0x335   : > { %6284 = vmatpush.msra.mxu0 %v22895_v27  ;;  %6149 = vmatpush.msrb.mxu1 %v6148_v6  ;;  %v5162_v29 = vpop.f32.mrf.mxu1  ;;  %v17403_v27 = vand.u32 4294901760, %v694_v58  ;;  %v17417_v37 = vand.u32 4294901760, %v678_v17 }
 0x336   : > { %6221 = vmatpush.msrb.mxu2 %v17318_v0  ;;  %6263 = vmatpush.msrb.mxu3 %v17258_v61  ;;  %v5163_v11 = vadd.f32 %v5162_v29, %v5118_v39  ;;  %v5235_v6 = vpop.f32.mrf.mxu2  ;;  %v17415_v29 = vsub.f32 %v710_v13, %v17388_v26  ;;  %v6454_v45 = vand.u32 4294901760, %v6453_v55  ;;  %v6465_v4 = vsub.f32 %v17364_v40, %v22900_v20 }
 0x337   : > { %6288 = vmatpush.msra.mxu0 %v22897_v33  ;;  %6155 = vmatpush.msrb.mxu1 %v6154_v50  ;;  %v22899_v50 = vand.u32 4294901760, %v17135_v32  ;;  %v6476_v13 = vand.u32 4294901760, %v17401_v47  ;;  %v17430_v32 = vand.u32 4294901760, %v662_v44  ;;  %v646_v33 = vld [vmem:[%s13221_s17 + $0xab8] sm:$0xff]  ;;  %v22901_v55 = vand.u32 4294901760, %v17150_v25 }
 0x338   : > { %6224 = vmatpush.msrb.mxu2 %v17324_v56  ;;  %6265 = vmatpush.msrb.mxu3 %v17289_v8  ;;  %v5236_v52 = vadd.f32 %v5235_v6, %v5163_v11  ;;  %v17428_v11 = vsub.f32 %v694_v58, %v17403_v27  ;;  %v6482_v58 = vand.u32 4294901760, %v17415_v29  ;;  %v22902_v20 = vand.u32 4294901760, %v17162_v49 }
 0x339   : > { %6292 = vmatpush.msra.mxu0 %v22899_v50  ;;  %v5276_v39 = vpop.f32.mrf.mxu3  ;;  %6161 = vmatpush.msrb.mxu1 %v6160_v10  ;;  %v6460_v50 = vand.u32 4294901760, %v6459_v59  ;;  %v6471_v10 = vsub.f32 %v17386_v48, %v6470_v23  ;;  %v17446_v25 = vand.u32 4294901760, %v646_v33  ;;  %v630_v59 = vld [vmem:[%s13221_s17 + $0xa38] sm:$0xff]  ;;  %v17456_v49 = vsub.f32 %v662_v44, %v17430_v32 }
 0x33a   : > { %6396 = vmatpush.msra.mxu2 %v17299_v5  ;;  %6267 = vmatpush.msrb.mxu3 %v17297_v35  ;;  %v5277_v6 = vadd.f32 %v5276_v39, %v5236_v52  ;;  %v17441_v52 = vsub.f32 %v678_v17, %v17417_v37  ;;  %v6488_v17 = vand.u32 4294901760, %v17428_v11  ;;  %v614_v39 = vld [vmem:[%s13221_s17 + $0x9b8] sm:$0xff]  ;;  %v22904_v44 = vand.u32 4294901760, %v17196_v3 }
 0x33b   : > { %6296 = vmatpush.msra.mxu0 %v22901_v55  ;;  %6167 = vmatpush.msrb.mxu1 %v6166_v28  ;;  %v6477_v28 = vsub.f32 %v17401_v47, %v6476_v13  ;;  %v22905_v3 = vand.u32 4294901760, %v17212_v18  ;;  %v22906_v18 = vand.u32 4294901760, %v17227_v42 }
 0x33c   : > { %6398 = vmatpush.msra.mxu2 %v17310_v38  ;;  %6449 = vmatpush.msra.mxu3 %v6448_v60  ;;  %v6466_v60 = vand.u32 4294901760, %v6465_v4  ;;  %12772 = vst [vmem:[%s14629_s29 + $0xa8] sm:$0xff] %v5277_v6  ;;  %v6483_v4 = vsub.f32 %v17415_v29, %v6482_v58  ;;  %v6494_v55 = vand.u32 4294901760, %v17441_v52  ;;  %v17467_v6 = vand.u32 4294901760, %v630_v59 }
 0x33d   : > { %6300 = vmatpush.msra.mxu0 %v22902_v20  ;;  %6355 = vmatpush.msra.mxu1 %v17093_v34  ;;  %v22903_v34 = vand.u32 4294901760, %v17181_v16  ;;  %v598_v16 = vld [vmem:[%s13221_s17 + $0x938] sm:$0xff]  ;;  %v6500_v20 = vand.u32 4294901760, %v17456_v49 }
 0x33e   : > { %6400 = vmatpush.msra.mxu2 %v17329_v36  ;;  %6455 = vmatpush.msra.mxu3 %v6454_v45  ;;  %v6472_v45 = vand.u32 4294901760, %v6471_v10  ;;  %v6489_v10 = vsub.f32 %v17428_v11, %v6488_v17 }
 0x33f   : > { %6304 = vmatpush.msra.mxu0 %v22903_v34  ;;  %6357 = vmatpush.msra.mxu1 %v17103_v62  ;;  %v17473_v62 = vsub.f32 %v646_v33, %v17446_v25  ;;  %v17481_v34 = vand.u32 4294901760, %v614_v39  ;;  %v6495_v33 = vsub.f32 %v17441_v52, %v6494_v55 }
 0x340   : > { %6402 = vmatpush.msra.mxu2 %v17340_v63  ;;  %6461 = vmatpush.msra.mxu3 %v6460_v50  ;;  %v6478_v50 = vand.u32 4294901760, %v6477_v28  ;;  %v17493_v28 = vand.u32 4294901760, %v598_v16 }
 0x341   : > { %6308 = vmatpush.msra.mxu0 %v22904_v44  ;;  %6359 = vmatpush.msra.mxu1 %v17109_v2  ;;  %v6484_v2 = vand.u32 4294901760, %v6483_v4  ;;  %v582_v44 = vld [vmem:[%s13221_s17 + $0x8b8] sm:$0xff]  ;;  %v6501_v4 = vsub.f32 %v17456_v49, %v6500_v20 }
 0x342   : > { %6404 = vmatpush.msra.mxu2 %v17359_v46  ;;  %6467 = vmatpush.msra.mxu3 %v6466_v60  ;;  %v17491_v60 = vsub.f32 %v630_v59, %v17467_v6  ;;  %v17505_v59 = vsub.f32 %v614_v39, %v17481_v34  ;;  %v17510_v42 = vand.u32 4294901760, %v582_v44  ;;  %v22908_v39 = vand.u32 4294901760, %v17246_v21 }
 0x343   : > { %6312 = vmatpush.msra.mxu0 %v22905_v3  ;;  %6361 = vmatpush.msra.mxu1 %v17127_v53  ;;  %v6506_v53 = vand.u32 4294901760, %v17473_v62  ;;  %v22907_v3 = vand.u32 4294901760, %v17233_v1  ;;  %v6502_v1 = vand.u32 4294901760, %v6501_v4  ;;  %v22910_v4 = vand.u32 4294901760, %v17280_v51 }
 0x344   : > { %6406 = vmatpush.msra.mxu2 %v17372_v12  ;;  %6473 = vmatpush.msra.mxu3 %v6472_v45  ;;  %v6490_v45 = vand.u32 4294901760, %v6489_v10  ;;  %v6512_v10 = vand.u32 4294901760, %v17491_v60  ;;  %v17532_v21 = vsub.f32 %v582_v44, %v17510_v42 }
 0x345   : > { %6316 = vmatpush.msra.mxu0 %v22906_v18  ;;  %6363 = vmatpush.msra.mxu1 %v17131_v57  ;;  %v566_v57 = vld [vmem:[%s13221_s17 + $0x838] sm:$0xff]  ;;  %v17516_v18 = vsub.f32 %v598_v16, %v17493_v28  ;;  %v22909_v16 = vand.u32 4294901760, %v17262_v43 }
 0x346   : > { %6408 = vmatpush.msra.mxu2 %v17388_v26  ;;  %6479 = vmatpush.msra.mxu3 %v6478_v50  ;;  %v6496_v50 = vand.u32 4294901760, %v6495_v33  ;;  %v17526_v33 = vand.u32 4294901760, %v566_v57  ;;  %v6530_v51 = vand.u32 4294901760, %v17532_v21 }
 0x347   : > { %6320 = vmatpush.msra.mxu0 %v22907_v3  ;;  %6365 = vmatpush.msra.mxu1 %v17147_v15  ;;  %v6507_v15 = vsub.f32 %v17473_v62, %v6506_v53  ;;  %v22911_v3 = vand.u32 4294901760, %v17293_v24 }
 0x348   : > { %6410 = vmatpush.msra.mxu2 %v17403_v27  ;;  %6485 = vmatpush.msra.mxu3 %v6484_v2  ;;  %v6518_v2 = vand.u32 4294901760, %v17505_v59  ;;  %v17547_v44 = vsub.f32 %v566_v57, %v17526_v33  ;;  %v22912_v57 = vand.u32 4294901760, %v17318_v0  ;;  %v22915_v0 = vld [vmem:[#allocation19_spill] sm:$0xff] }
 0x349   : > { %6324 = vmatpush.msra.mxu0 %v22908_v39  ;;  %6367 = vmatpush.msra.mxu1 %v17167_v54  ;;  %v6513_v54 = vsub.f32 %v17491_v60, %v6512_v10  ;;  %v6508_v43 = vand.u32 4294901760, %v6507_v15  ;;  %v22913_v15 = vld [vmem:[#allocation7_spill] sm:$0xff] }
 0x34a   : > { %6412 = vmatpush.msra.mxu2 %v17417_v37  ;;  %6491 = vmatpush.msra.mxu3 %v6490_v45  ;;  %v6524_v45 = vand.u32 4294901760, %v17516_v18  ;;  %v6536_v39 = vand.u32 4294901760, %v17547_v44 }
 0x34b   : > { %6328 = vmatpush.msra.mxu0 %v22909_v16  ;;  %6369 = vmatpush.msra.mxu1 %v17177_v41  ;;  %v6519_v41 = vsub.f32 %v17505_v59, %v6518_v2  ;;  %v22914_v16 = vand.u32 4294901760, %v17324_v56  ;;  %v22919_v56 = vld [vmem:[#allocation22_spill] sm:$0xff] }
 0x34c   : > { %6414 = vmatpush.msra.mxu2 %v17430_v32  ;;  %6497 = vmatpush.msra.mxu3 %v6496_v50  ;;  %v6525_v50 = vsub.f32 %v17516_v18, %v6524_v45 }
 0x34d   : > { %6332 = vmatpush.msra.mxu0 %v22910_v4  ;;  %6371 = vmatpush.msra.mxu1 %v17193_v31  ;;  %v6514_v31 = vand.u32 4294901760, %v6513_v54  ;;  %v6520_v24 = vand.u32 4294901760, %v6519_v41  ;;  %v22916_v54 = vld [vmem:[#allocation20_spill] sm:$0xff]  ;;  %v22917_v4 = vld [vmem:[#allocation21_spill] sm:$0xff] }
 0x34e   : > { %6416 = vmatpush.msra.mxu2 %v17446_v25  ;;  %6503 = vmatpush.msra.mxu3 %v6502_v1  ;;  %v6526_v1 = vand.u32 4294901760, %v6525_v50  ;;  %v22918_v41 = vld [vmem:[#allocation9_spill] sm:$0xff]  ;;  %v22921_v50 = vld [vmem:[#allocation10_spill] sm:$0xff] }
 0x34f   : > { %6227 = vmatmul.f32.vlgmr.msrb.gmra.mxu2 %v13564_v19  ;;  %6336 = vmatpush.msra.mxu0 %v22911_v3 }
 0x350   : > { %6373 = vmatpush.msra.mxu1 %v17203_v7  ;;  %6418 = vmatpush.msra.mxu2 %v17467_v6  ;;  %v6531_v7 = vsub.f32 %v17532_v21, %v6530_v51 }
 0x351   : > { %6509 = vmatpush.msra.mxu3 %v6508_v43  ;;  %6060 = vmatmul.f32.vlgmr.msrb.gmra.mxu0 %v13645_v22 }
 0x352   : > { %6271 = vmatmul.f32.vlgmr.msrb.gmra.mxu3 %v13594_v9  ;;  %6340 = vmatpush.msra.mxu0 %v22912_v57  ;;  %v6532_v43 = vand.u32 4294901760, %v6531_v7  ;;  %v22922_v57 = vand.u32 4294901760, %v22916_v54  ;;  %v22925_v7 = vand.u32 4294901760, %v17353_v14 }
 0x353   : > { %6375 = vmatpush.msra.mxu1 %v17219_v30  ;;  %6420 = vmatpush.msra.mxu2 %v17481_v34  ;;  %v6537_v30 = vsub.f32 %v17547_v44, %v6536_v39 }
 0x354   : > { %6515 = vmatpush.msra.mxu3 %v6514_v31  ;;  %6169 = vmatmul.f32.vlgmr.msrb.gmra.mxu1 %v22913_v15  ;;  %v22920_v31 = vld [vmem:[#allocation13_spill] sm:$0xff] }
 0x355   : > { %6344 = vmatpush.msra.mxu0 %v22914_v16  ;;  %6377 = vmatpush.msra.mxu1 %v22915_v0  ;;  %v6538_v3 = vand.u32 4294901760, %v6537_v30 }
 0x356   : > { %6422 = vmatpush.msra.mxu2 %v17493_v28  ;;  %6521 = vmatpush.msra.mxu3 %v6520_v24  ;;  %v22923_v24 = vld [vmem:[#allocation8_spill] sm:$0xff] }
 0x357   : > { %6551 = vmatpush.msrb.mxu0 %v22916_v54  ;;  %6379 = vmatpush.msra.mxu1 %v22917_v4  ;;  %v407_v54 = vld [vmem:[%s13221_s17 + $0x340] sm:$0xff] }
 0x358   : > { %6424 = vmatpush.msra.mxu2 %v17510_v42  ;;  %6527 = vmatpush.msra.mxu3 %v6526_v1  ;;  %v22927_v1 = vand.u32 4294901760, %v17364_v40 }
 0x359   : > { %6232 = vmatmul.f32.gmra.mxu2 %v22918_v41  ;;  %6554 = vmatpush.msrb.mxu0 %v22919_v56 }
 0x35a   : > { %6381 = vmatpush.msra.mxu1 %v17258_v61  ;;  %6426 = vmatpush.msra.mxu2 %v17526_v33  ;;  %v22924_v61 = vand.u32 4294901760, %v22919_v56 }
 0x35b   : > { %6533 = vmatpush.msra.mxu3 %v6532_v43  ;;  %6068 = vmatmul.f32.gmra.mxu0 %v22920_v31 }
 0x35c   : > { %6277 = vmatmul.f32.gmra.mxu3 %v22921_v50  ;;  %6557 = vmatpush.msrb.mxu0 %v17353_v14 }
 0x35d   : > { %6656 = vmatpush.msrb.mxu2 %v22922_v57  ;;  %6383 = vmatpush.msra.mxu1 %v17289_v8  ;;  %v22926_v8 = vld [vmem:[#allocation15_spill] sm:$0xff] }
 0x35e   : > { %6539 = vmatpush.msra.mxu3 %v6538_v3  ;;  %6173 = vmatmul.f32.gmra.mxu1 %v22923_v24 }
 0x35f   : > { %6560 = vmatpush.msrb.mxu0 %v17364_v40  ;;  %6660 = vmatpush.msrb.mxu2 %v22924_v61  ;;  %v519_v40 = vld [vmem:[%s13221_s17 + $0x6c0] sm:$0xff] }
 0x360   : > { %6727 = vmatpush.msrb.mxu3 %v17299_v5  ;;  %6385 = vmatpush.msra.mxu1 %v17297_v35  ;;  %v22928_v35 = vld [vmem:[#allocation11_spill] sm:$0xff] }
 0x361   : > { %6563 = vmatpush.msrb.mxu0 %v17386_v48  ;;  %6664 = vmatpush.msrb.mxu2 %v22925_v7  ;;  %v391_v7 = vld [vmem:[%s13221_s17 + $0x2c0] sm:$0xff] }
 0x362   : > { %6609 = vmatpush.msrb.mxu1 %v17299_v5  ;;  %6729 = vmatpush.msrb.mxu3 %v17310_v38  ;;  %v5317_v48 = vpop.f32.mrf.mxu0 }
 0x363   : > { %6432 = vmatmul.f32.vlgmr.msra.gmra.mxu2 %v22926_v8  ;;  %6566 = vmatpush.msrb.mxu0 %v17401_v47  ;;  %v17662_v47 = vand.u32 4294901760, %v519_v40 }
 0x364   : > { %6611 = vmatpush.msrb.mxu1 %v17310_v38  ;;  %6668 = vmatpush.msrb.mxu2 %v22927_v1  ;;  %v551_v38 = vld [vmem:[%s13221_s17 + $0x7c0] sm:$0xff] }
 0x365   : > { %6731 = vmatpush.msrb.mxu3 %v17329_v36  ;;  %6346 = vmatmul.f32.vlgmr.msra.gmra.mxu0 %v22913_v15  ;;  %v5426_v5 = vpop.f32.mrf.mxu1 }
 0x366   : > { %6541 = vmatmul.f32.vlgmr.msra.gmra.mxu3 %v22928_v35  ;;  %6569 = vmatpush.msrb.mxu0 %v17415_v29  ;;  %v503_v29 = vld [vmem:[%s13221_s17 + $0x640] sm:$0xff] }
 0x367   : > { %6613 = vmatpush.msrb.mxu1 %v17329_v36  ;;  %6672 = vmatpush.msrb.mxu2 %v6470_v23  ;;  %v5484_v36 = vpop.f32.mrf.mxu2 }
 0x368   : > { %6733 = vmatpush.msrb.mxu3 %v17340_v63  ;;  %6387 = vmatmul.f32.vlgmr.msra.gmra.mxu1 %v22913_v15  ;;  %v663_v15 = vld [vmem:[%s13221_s17 + $0xb40] sm:$0xff] }
 0x369   : > { %6572 = vmatpush.msrb.mxu0 %v17428_v11  ;;  %6615 = vmatpush.msrb.mxu1 %v17340_v63  ;;  %v535_v63 = vld [vmem:[%s13221_s17 + $0x740] sm:$0xff]  ;;  %v17650_v14 = vpop.f32.mrf.mxu3 }
 0x36a   : > { %6676 = vmatpush.msrb.mxu2 %v6476_v13  ;;  %6735 = vmatpush.msrb.mxu3 %v17359_v46  ;;  %v22930_v13 = vld [vmem:[#allocation6_spill] sm:$0xff] }
 0x36b   : > { %6575 = vmatpush.msrb.mxu0 %v17441_v52  ;;  %6617 = vmatpush.msrb.mxu1 %v17359_v46  ;;  %v17646_v46 = vand.u32 4294901760, %v551_v38 }
 0x36c   : > { %6680 = vmatpush.msrb.mxu2 %v6482_v58  ;;  %6737 = vmatpush.msrb.mxu3 %v17372_v12  ;;  %v5325_v23 = vpop.f32.mrf.mxu0 }
 0x36d   : > { %6578 = vmatpush.msrb.mxu0 %v17456_v49  ;;  %6619 = vmatpush.msrb.mxu1 %v17372_v12  ;;  %v17656_v12 = vand.u32 4294901760, %v535_v63 }
 0x36e   : > { %6684 = vmatpush.msrb.mxu2 %v6488_v17  ;;  %6739 = vmatpush.msrb.mxu3 %v17388_v26  ;;  %v17688_v17 = vsub.f32 %v519_v40, %v17662_v47  ;;  %v375_v40 = vld [vmem:[%s13221_s17 + $0x240] sm:$0xff] }
 0x36f   : > { %6581 = vmatpush.msrb.mxu0 %v17473_v62  ;;  %6621 = vmatpush.msrb.mxu1 %v17388_v26  ;;  %v22929_v26 = vld [vmem:[#allocation18_spill] sm:$0xff]  ;;  %v17675_v11 = vsub.f32 %v535_v63, %v17656_v12  ;;  %v5430_v58 = vpop.f32.mrf.mxu1  ;;  %v22931_v62 = vld [vmem:[#allocation12_spill] sm:$0xff] }
 0x370   : > { %6688 = vmatpush.msrb.mxu2 %v6494_v55  ;;  %6741 = vmatpush.msrb.mxu3 %v17403_v27  ;;  %v5489_v49 = vpop.f32.mrf.mxu2  ;;  %v471_v55 = vld [vmem:[%s13221_s17 + $0x540] sm:$0xff]  ;;  %v5431_v4 = vadd.f32 %v5430_v58, %v5325_v23  ;;  %v17772_v58 = vand.u32 4294901760, %v391_v7 }
 0x371   : > { %6584 = vmatpush.msrb.mxu0 %v17491_v60  ;;  %6623 = vmatpush.msrb.mxu1 %v17403_v27  ;;  %v17665_v27 = vsub.f32 %v551_v38, %v17646_v46  ;;  %v455_v60 = vld [vmem:[%s13221_s17 + $0x4c0] sm:$0xff] }
 0x372   : > { %6692 = vmatpush.msrb.mxu2 %v6500_v20  ;;  %6743 = vmatpush.msrb.mxu3 %v17417_v37  ;;  %v22384_v20 = vand.u32 4294901760, %v17675_v11  ;;  %v5490_v23 = vadd.f32 %v5489_v49, %v5431_v4  ;;  %v17783_v49 = vand.u32 4294901760, %v375_v40  ;;  %v22934_v4 = vld [vmem:[#allocation16_spill] sm:$0xff] }
 0x373   : > { %6350 = vmatmul.f32.gmra.mxu0 %v22923_v24  ;;  %6625 = vmatpush.msrb.mxu1 %v17417_v37  ;;  %v487_v37 = vld [vmem:[%s13221_s17 + $0x5c0] sm:$0xff] }
 0x374   : > { %6587 = vmatpush.msrb.mxu0 %v17505_v59  ;;  %6696 = vmatpush.msrb.mxu2 %v6506_v53  ;;  %v17684_v52 = vand.u32 4294901760, %v487_v37  ;;  %v17700_v53 = vand.u32 4294901760, %v471_v55  ;;  %22933 = vst [vmem:[#allocation19_spill] sm:$0xff] %v17783_v49 }
 0x375   : > { %6745 = vmatpush.msrb.mxu3 %v17430_v32  ;;  %6627 = vmatpush.msrb.mxu1 %v17430_v32  ;;  %v17680_v32 = vand.u32 4294901760, %v503_v29 }
 0x376   : > { %6590 = vmatpush.msrb.mxu0 %v17516_v18  ;;  %6700 = vmatpush.msrb.mxu2 %v6512_v10  ;;  %v17705_v10 = vpop.f32.mrf.mxu3  ;;  %v22383_v18 = vand.u32 4294901760, %v17688_v17  ;;  %v17734_v30 = vsub.f32 %v471_v55, %v17700_v53 }
 0x377   : > { %6747 = vmatpush.msrb.mxu3 %v17446_v25  ;;  %6440 = vmatmul.f32.gmra.mxu2 %v22929_v26  ;;  %v17703_v59 = vsub.f32 %v503_v29, %v17680_v32 }
 0x378   : > { %6593 = vmatpush.msrb.mxu0 %v17532_v21  ;;  %6629 = vmatpush.msrb.mxu1 %v17446_v25  ;;  %v22385_v25 = vand.u32 4294901760, %v17665_v27 }
 0x379   : > { %6704 = vmatpush.msrb.mxu2 %v6518_v2  ;;  %6749 = vmatpush.msrb.mxu3 %v17467_v6  ;;  %v439_v2 = vld [vmem:[%s13221_s17 + $0x440] sm:$0xff]  ;;  %v22382_v0 = vand.u32 4294901760, %v17703_v59 }
 0x37a   : > { %6545 = vmatmul.f32.gmra.mxu3 %v22930_v13  ;;  %6596 = vmatpush.msrb.mxu0 %v17547_v44  ;;  %v6825_v44 = vsub.f32 %v17675_v11, %v22384_v20  ;;  %v17730_v16 = vand.u32 4294901760, %v439_v2  ;;  %v17754_v38 = vpop.f32.mrf.mxu2 }
 0x37b   : > { %6631 = vmatpush.msrb.mxu1 %v17467_v6  ;;  %6708 = vmatpush.msrb.mxu2 %v6524_v45  ;;  %v5427_v6 = vadd.f32 %v5426_v5, %v5317_v48  ;;  %v17720_v45 = vand.u32 4294901760, %v455_v60  ;;  %v5644_v48 = vpop.f32.mrf.mxu1  ;;  %v17756_v5 = vand.u32 4294901760, %v407_v54  ;;  %v6837_v63 = vsub.f32 %v17703_v59, %v22382_v0  ;;  %v327_v0 = vld [vmem:[%s13221_s17 + $0xc0] sm:$0xff] }
 0x37c   : > { %6751 = vmatpush.msrb.mxu3 %v17481_v34  ;;  %6391 = vmatmul.f32.gmra.mxu1 %v22923_v24  ;;  %v6826_v1 = vand.u32 4294901760, %v6825_v44  ;;  %v359_v44 = vld [vmem:[%s13221_s17 + $0x1c0] sm:$0xff] }
 0x37d   : > { %6599 = vmatmul.f32.vlgmr.msrb.gmra.mxu0 %v22931_v62  ;;  %6633 = vmatpush.msrb.mxu1 %v17481_v34  ;;  %v6819_v34 = vsub.f32 %v17665_v27, %v22385_v25  ;;  %v5485_v21 = vadd.f32 %v5484_v36, %v5427_v6  ;;  %v17749_v61 = vsub.f32 %v455_v60, %v17720_v45  ;;  %v22932_v36 = vld [vmem:[#allocation14_spill] sm:$0xff] }
 0x37e   : > { %6768 = vmatpush.msra.mxu0 %v17646_v46  ;;  %6712 = vmatpush.msrb.mxu2 %v6530_v51  ;;  %v5603_v51 = vpop.f32.mrf.mxu0  ;;  %v17776_v6 = vpop.f32.mrf.mxu3  ;;  %v775_v62 = vld [vmem:[%s13221_s17 + $0xec0] sm:$0xff] }
 0x37f   : > { %6753 = vmatpush.msrb.mxu3 %v17493_v28  ;;  %6635 = vmatpush.msrb.mxu1 %v17493_v28  ;;  %v17715_v28 = vsub.f32 %v487_v37, %v17684_v52  ;;  %v6820_v43 = vand.u32 4294901760, %v6819_v34  ;;  %v5529_v3 = vadd.f32 %v17650_v14, %v5485_v21  ;;  %v22379_v14 = vand.u32 4294901760, %v17734_v30  ;;  %v743_v24 = vld [vmem:[%s13221_s17 + $0xdc0] sm:$0xff] }
 0x380   : > { %6770 = vmatpush.msra.mxu0 %v17656_v12  ;;  %6716 = vmatpush.msrb.mxu2 %v6536_v39  ;;  %v423_v39 = vld [vmem:[%s13221_s17 + $0x3c0] sm:$0xff]  ;;  %v22381_v60 = vand.u32 4294901760, %v17749_v61 }
 0x381   : > { %6755 = vmatpush.msrb.mxu3 %v17510_v42  ;;  %6718 = vmatmul.f32.vlgmr.msrb.gmra.mxu2 %v22928_v35  ;;  %v22380_v56 = vand.u32 4294901760, %v17715_v28  ;;  %v17746_v57 = vand.u32 4294901760, %v423_v39  ;;  %v5604_v55 = vadd.f32 %v5603_v51, %v5529_v3  ;;  %v6838_v51 = vand.u32 4294901760, %v6837_v63 }
 0x382   : > { %6772 = vmatpush.msra.mxu0 %v17662_v47  ;;  %6923 = vmatpush.msra.mxu2 %v17665_v27  ;;  %v5535_v3 = vadd.f32 %v17705_v10, %v5490_v23  ;;  %v807_v23 = vld [vmem:[%s13221_s17 + $0xfc0] sm:$0xff] }
 0x383   : > { %6637 = vmatpush.msrb.mxu1 %v17510_v42  ;;  %6757 = vmatpush.msrb.mxu3 %v17526_v33  ;;  %v6831_v42 = vsub.f32 %v17688_v17, %v22383_v18  ;;  %v6843_v37 = vsub.f32 %v17715_v28, %v22380_v56  ;;  %v17780_v34 = vsub.f32 %v423_v39, %v17746_v57  ;;  %v17806_v56 = vand.u32 4294901760, %v359_v44  ;;  %v22936_v18 = vld [vmem:[#allocation17_spill] sm:$0xff] }
 0x384   : > { %6759 = vmatmul.f32.vlgmr.msrb.gmra.mxu3 %v22928_v35  ;;  %6774 = vmatpush.msra.mxu0 %v17680_v32  ;;  %v6849_v39 = vsub.f32 %v17734_v30, %v22379_v14  ;;  %v5645_v63 = vadd.f32 %v5644_v48, %v5604_v55  ;;  %v6855_v14 = vsub.f32 %v17749_v61, %v22381_v60  ;;  %v17852_v25 = vand.u32 4294901760, %v807_v23 }
 0x385   : > { %6926 = vmatpush.msra.mxu2 %v17675_v11  ;;  %6981 = vmatpush.msra.mxu3 %v17646_v46  ;;  %v6832_v29 = vand.u32 4294901760, %v6831_v42  ;;  %v343_v42 = vld [vmem:[%s13221_s17 + $0x140] sm:$0xff]  ;;  %22935 = vst [vmem:[#allocation20_spill] sm:$0xff] %v17806_v56  ;;  %v22387_v10 = vand.u32 4294901760, %v17780_v34  ;;  %v17815_v48 = vsub.f32 %v375_v40, %v17783_v49 }
 0x386   : > { %6639 = vmatpush.msrb.mxu1 %v17526_v33  ;;  %6776 = vmatpush.msra.mxu0 %v17684_v52  ;;  %v17765_v33 = vsub.f32 %v439_v2, %v17730_v16  ;;  %v17786_v2 = vsub.f32 %v407_v54, %v17756_v5  ;;  %v5607_v21 = vpop.f32.mrf.mxu0  ;;  %v6844_v54 = vand.u32 4294901760, %v6843_v37  ;;  %v6850_v55 = vand.u32 4294901760, %v6849_v39  ;;  %v311_v40 = vld [vmem:[%s13221_s17 + $0x40] sm:$0xff] }
 0x387   : > { %6643 = vmatmul.f32.vlgmr.msrb.gmra.mxu1 %v22932_v36  ;;  %6929 = vmatpush.msra.mxu2 %v17688_v17  ;;  %v5608_v20 = vadd.f32 %v5607_v21, %v5535_v3  ;;  %v6856_v39 = vand.u32 4294901760, %v6855_v14 }
 0x388   : > { %6821 = vmatpush.msra.mxu1 %v6820_v43  ;;  %6983 = vmatpush.msra.mxu3 %v17656_v12  ;;  %v22386_v43 = vand.u32 4294901760, %v17765_v33  ;;  %v22937_v21 = vand.u32 4294901760, %v17786_v2 }
 0x389   : > { %6778 = vmatpush.msra.mxu0 %v17700_v53  ;;  %6932 = vmatpush.msra.mxu2 %v17703_v59 }
 0x38a   : > { %6827 = vmatpush.msra.mxu1 %v6826_v1  ;;  %6985 = vmatpush.msra.mxu3 %v17662_v47  ;;  %v17799_v1 = vsub.f32 %v391_v7, %v17772_v58  ;;  %v17811_v7 = vand.u32 4294901760, %v343_v42  ;;  %v6861_v60 = vsub.f32 %v17765_v33, %v22386_v43  ;;  %v6867_v43 = vsub.f32 %v17780_v34, %v22387_v10 }
 0x38b   : > { %6604 = vmatmul.f32.gmra.mxu0 %v22934_v4  ;;  %6722 = vmatmul.f32.gmra.mxu2 %v22930_v13  ;;  %v17833_v4 = vsub.f32 %v359_v44, %v17806_v56  ;;  %v6873_v3 = vsub.f32 %v17786_v2, %v22937_v21  ;;  %v791_v44 = vld [vmem:[%s13221_s17 + $0xf40] sm:$0xff]  ;;  %v17850_v10 = vand.u32 4294901760, %v311_v40 }
 0x38c   : > { %6780 = vmatpush.msra.mxu0 %v17720_v45  ;;  %6833 = vmatpush.msra.mxu1 %v6832_v29  ;;  %v22938_v21 = vand.u32 4294901760, %v17799_v1  ;;  %v17863_v26 = vand.u32 4294901760, %v791_v44 }
 0x38d   : > { %6935 = vmatpush.msra.mxu2 %v17715_v28  ;;  %6987 = vmatpush.msra.mxu3 %v17680_v32  ;;  %v5648_v29 = vpop.f32.mrf.mxu1  ;;  %v6874_v35 = vand.u32 4294901760, %v6873_v3  ;;  %v17880_v3 = vsub.f32 %v807_v23, %v17852_v25 }
 0x38e   : > { %6763 = vmatmul.f32.gmra.mxu3 %v22930_v13  ;;  %6782 = vmatpush.msra.mxu0 %v17730_v16  ;;  %v5697_v37 = vpop.f32.mrf.mxu2  ;;  %v6879_v14 = vsub.f32 %v17799_v1, %v22938_v21  ;;  %v5856_v36 = vpop.f32.mrf.mxu0  ;;  %v22939_v21 = vand.u32 4294901760, %v17815_v48  ;;  %v17891_v23 = vsub.f32 %v791_v44, %v17863_v26  ;;  %v711_v44 = vld [vmem:[%s13221_s17 + $0xcc0] sm:$0xff] }
 0x38f   : > { %6839 = vmatpush.msra.mxu1 %v6838_v51  ;;  %6938 = vmatpush.msra.mxu2 %v17734_v30  ;;  %v5690_v51 = vadd.f32 %v17754_v38, %v5645_v63  ;;  %v17842_v38 = vand.u32 4294901760, %v327_v0  ;;  %v6862_v63 = vand.u32 4294901760, %v6861_v60  ;;  %v6868_v60 = vand.u32 4294901760, %v6867_v43  ;;  %22940 = vst [vmem:[#allocation21_spill] sm:$0xff] %v17880_v3 }
 0x390   : > { %6989 = vmatpush.msra.mxu3 %v17684_v52  ;;  %6649 = vmatmul.f32.gmra.mxu1 %v22936_v18  ;;  %22942 = vst [vmem:[#allocation22_spill] sm:$0xff] %v17891_v23 }
 0x391   : > { %6784 = vmatpush.msra.mxu0 %v17746_v57  ;;  %6845 = vmatpush.msra.mxu1 %v6844_v54  ;;  %v17835_v18 = vpop.f32.mrf.mxu3  ;;  %v17846_v54 = vsub.f32 %v343_v42, %v17811_v7  ;;  %v5649_v42 = vadd.f32 %v5648_v29, %v5608_v20  ;;  %v5799_v13 = vadd.f32 %v17776_v6, %v5690_v51  ;;  %v759_v51 = vld [vmem:[%s13221_s17 + $0xe40] sm:$0xff] }
 0x392   : > { %6941 = vmatpush.msra.mxu2 %v17749_v61  ;;  %6991 = vmatpush.msra.mxu3 %v17700_v53  ;;  %v6885_v20 = vsub.f32 %v17815_v48, %v22939_v21  ;;  %v17871_v29 = vsub.f32 %v327_v0, %v17842_v38  ;;  %v6880_v0 = vand.u32 4294901760, %v6879_v14 }
 0x393   : > { %6786 = vmatpush.msra.mxu0 %v17756_v5  ;;  %6851 = vmatpush.msra.mxu1 %v6850_v55  ;;  %v5857_v43 = vadd.f32 %v5856_v36, %v5799_v13  ;;  %v17882_v55 = vand.u32 4294901760, %v775_v62  ;;  %v5698_v21 = vadd.f32 %v5697_v37, %v5649_v42  ;;  %v22941_v13 = vand.u32 4294901760, %v17833_v4 }
 0x394   : > { %6944 = vmatpush.msra.mxu2 %v17765_v33  ;;  %6993 = vmatpush.msra.mxu3 %v17720_v45  ;;  %v6886_v37 = vand.u32 4294901760, %v6885_v20  ;;  %v22943_v14 = vand.u32 4294901760, %v17846_v54  ;;  %v727_v20 = vld [vmem:[%s13221_s17 + $0xd40] sm:$0xff] }
 0x395   : > { %6788 = vmatpush.msra.mxu0 %v17772_v58  ;;  %6857 = vmatpush.msra.mxu1 %v6856_v39  ;;  %v17877_v39 = vsub.f32 %v311_v40, %v17850_v10  ;;  %v6891_v36 = vsub.f32 %v17833_v4, %v22941_v13 }
 0x396   : > { %6947 = vmatpush.msra.mxu2 %v17780_v34  ;;  %6995 = vmatpush.msra.mxu3 %v17730_v16  ;;  %v6897_v42 = vsub.f32 %v17846_v54, %v22943_v14  ;;  %v5803_v14 = vadd.f32 %v17835_v18, %v5698_v21  ;;  %v22944_v21 = vand.u32 4294901760, %v17871_v29 }
 0x397   : > { %6790 = vmatpush.msra.mxu0 %v17783_v49  ;;  %6863 = vmatpush.msra.mxu1 %v6862_v63  ;;  %v17893_v63 = vand.u32 4294901760, %v759_v51 }
 0x398   : > { %6950 = vmatpush.msra.mxu2 %v17786_v2  ;;  %6997 = vmatpush.msra.mxu3 %v17746_v57  ;;  %v5900_v6 = vpop.f32.mrf.mxu1  ;;  %v5975_v8 = vpop.f32.mrf.mxu2  ;;  %v6898_v18 = vand.u32 4294901760, %v6897_v42  ;;  %v6903_v31 = vsub.f32 %v17871_v29, %v22944_v21 }
 0x399   : > { %6792 = vmatpush.msra.mxu0 %v17806_v56  ;;  %6869 = vmatpush.msra.mxu1 %v6868_v60  ;;  %v5901_v40 = vadd.f32 %v5900_v6, %v5857_v43  ;;  %v17906_v43 = vsub.f32 %v775_v62, %v17882_v55  ;;  %v17912_v60 = vand.u32 4294901760, %v743_v24  ;;  %v17917_v62 = vsub.f32 %v759_v51, %v17893_v63  ;;  %v695_v6 = vld [vmem:[%s13221_s17 + $0xc40] sm:$0xff] }
 0x39a   : > { %6953 = vmatpush.msra.mxu2 %v17799_v1  ;;  %6999 = vmatpush.msra.mxu3 %v17756_v5  ;;  %v22945_v51 = vand.u32 4294901760, %v17880_v3 }
 0x39b   : > { %6794 = vmatpush.msra.mxu0 %v17811_v7  ;;  %6875 = vmatpush.msra.mxu1 %v6874_v35  ;;  %v5976_v13 = vadd.f32 %v5975_v8, %v5901_v40  ;;  %v6016_v50 = vpop.f32.mrf.mxu3  ;;  %v6892_v35 = vand.u32 4294901760, %v6891_v36  ;;  %v22946_v36 = vand.u32 4294901760, %v17877_v39  ;;  %v17939_v41 = vsub.f32 %v743_v24, %v17912_v60 }
 0x39c   : > { %6956 = vmatpush.msra.mxu2 %v17815_v48  ;;  %7001 = vmatpush.msra.mxu3 %v17772_v58  ;;  %v5861_v8 = vpop.f32.mrf.mxu0  ;;  %v6904_v24 = vand.u32 4294901760, %v6903_v31  ;;  %v22950_v42 = vand.u32 4294901760, %v17906_v43 }
 0x39d   : > { %6796 = vmatpush.msra.mxu0 %v17842_v38  ;;  %6881 = vmatpush.msra.mxu1 %v6880_v0  ;;  %v6017_v40 = vadd.f32 %v6016_v50, %v5976_v13  ;;  %v17925_v0 = vand.u32 4294901760, %v727_v20  ;;  %v7191_v50 = vsub.f32 %v17880_v3, %v22945_v51  ;;  %v6909_v13 = vsub.f32 %v17877_v39, %v22946_v36 }
 0x39e   : > { %6959 = vmatpush.msra.mxu2 %v17833_v4  ;;  %7003 = vmatpush.msra.mxu3 %v17783_v49  ;;  %v5862_v21 = vadd.f32 %v5861_v8, %v5803_v14  ;;  %v22947_v49 = vand.u32 4294901760, %v17665_v27  ;;  %v22948_v51 = vand.u32 4294901760, %v17891_v23  ;;  %v22949_v8 = vand.u32 4294901760, %v17675_v11 }
 0x39f   : > { %6798 = vmatpush.msra.mxu0 %v17850_v10  ;;  %6887 = vmatpush.msra.mxu1 %v6886_v37  ;;  %v17941_v37 = vand.u32 4294901760, %v711_v44  ;;  %12757 = vst [vmem:[%s14629_s29 + $0x30] sm:$0xff] %v6017_v40  ;;  %v17954_v14 = vsub.f32 %v727_v20, %v17925_v0  ;;  %v6910_v40 = vand.u32 4294901760, %v6909_v13  ;;  %v7214_v31 = vand.u32 4294901760, %v17939_v41 }
 0x3a0   : > { %6962 = vmatpush.msra.mxu2 %v17846_v54  ;;  %7005 = vmatpush.msra.mxu3 %v17806_v56  ;;  %v7197_v36 = vsub.f32 %v17891_v23, %v22948_v51  ;;  %v679_v56 = vld [vmem:[%s13221_s17 + $0xbc0] sm:$0xff]  ;;  %v7192_v51 = vand.u32 4294901760, %v7191_v50  ;;  %v7203_v23 = vsub.f32 %v17906_v43, %v22950_v42  ;;  %v22952_v13 = vand.u32 4294901760, %v17917_v62 }
 0x3a1   : > { %7028 = vmatpush.msrb.mxu0 %v22947_v49  ;;  %6893 = vmatpush.msra.mxu1 %v6892_v35  ;;  %v5906_v3 = vpop.f32.mrf.mxu1  ;;  %v17956_v49 = vand.u32 4294901760, %v695_v6  ;;  %v17970_v20 = vand.u32 4294901760, %v679_v56 }
 0x3a2   : > { %6965 = vmatpush.msra.mxu2 %v17871_v29  ;;  %7007 = vmatpush.msra.mxu3 %v17811_v7  ;;  %v5907_v27 = vadd.f32 %v5906_v3, %v5862_v21  ;;  %v5979_v35 = vpop.f32.mrf.mxu2  ;;  %v17968_v3 = vsub.f32 %v711_v44, %v17941_v37  ;;  %v7198_v50 = vand.u32 4294901760, %v7197_v36  ;;  %v7209_v42 = vsub.f32 %v17917_v62, %v22952_v13 }
 0x3a3   : > { %7032 = vmatpush.msrb.mxu0 %v22949_v8  ;;  %6899 = vmatpush.msra.mxu1 %v6898_v18  ;;  %v22951_v18 = vand.u32 4294901760, %v17688_v17  ;;  %v7220_v44 = vand.u32 4294901760, %v17954_v14  ;;  %v17983_v17 = vand.u32 4294901760, %v663_v15  ;;  %v647_v8 = vld [vmem:[%s13221_s17 + $0xac0] sm:$0xff]  ;;  %v22953_v36 = vand.u32 4294901760, %v17703_v59 }
 0x3a4   : > { %6968 = vmatpush.msra.mxu2 %v17877_v39  ;;  %7009 = vmatpush.msra.mxu3 %v17842_v38  ;;  %v5980_v11 = vadd.f32 %v5979_v35, %v5907_v27  ;;  %v17981_v27 = vsub.f32 %v695_v6, %v17956_v49  ;;  %v7226_v6 = vand.u32 4294901760, %v17968_v3  ;;  %v22954_v13 = vand.u32 4294901760, %v17715_v28 }
 0x3a5   : > { %7036 = vmatpush.msrb.mxu0 %v22951_v18  ;;  %v6020_v21 = vpop.f32.mrf.mxu3  ;;  %6905 = vmatpush.msra.mxu1 %v6904_v24  ;;  %v7204_v18 = vand.u32 4294901760, %v7203_v23  ;;  %v7215_v24 = vsub.f32 %v17939_v41, %v7214_v31  ;;  %v17999_v59 = vand.u32 4294901760, %v647_v8  ;;  %v631_v23 = vld [vmem:[%s13221_s17 + $0xa40] sm:$0xff]  ;;  %v18009_v28 = vsub.f32 %v663_v15, %v17983_v17 }
 0x3a6   : > { %7140 = vmatpush.msrb.mxu2 %v17852_v25  ;;  %7011 = vmatpush.msra.mxu3 %v17850_v10  ;;  %v6021_v35 = vadd.f32 %v6020_v21, %v5980_v11  ;;  %v17994_v11 = vsub.f32 %v679_v56, %v17970_v20  ;;  %v7232_v56 = vand.u32 4294901760, %v17981_v27  ;;  %v615_v21 = vld [vmem:[%s13221_s17 + $0x9c0] sm:$0xff]  ;;  %v22956_v15 = vand.u32 4294901760, %v17749_v61 }
 0x3a7   : > { %7040 = vmatpush.msrb.mxu0 %v22953_v36  ;;  %6911 = vmatpush.msra.mxu1 %v6910_v40  ;;  %v7221_v40 = vsub.f32 %v17954_v14, %v7220_v44  ;;  %v22957_v61 = vand.u32 4294901760, %v17765_v33  ;;  %v22958_v33 = vand.u32 4294901760, %v17780_v34 }
 0x3a8   : > { %7142 = vmatpush.msrb.mxu2 %v17863_v26  ;;  %7193 = vmatpush.msrb.mxu3 %v7192_v51  ;;  %v7210_v51 = vand.u32 4294901760, %v7209_v42  ;;  %12773 = vst [vmem:[%s14629_s29 + $0xb0] sm:$0xff] %v6021_v35  ;;  %v7227_v42 = vsub.f32 %v17968_v3, %v7226_v6  ;;  %v7238_v36 = vand.u32 4294901760, %v17994_v11  ;;  %v18020_v35 = vand.u32 4294901760, %v631_v23 }
 0x3a9   : > { %7044 = vmatpush.msrb.mxu0 %v22954_v13  ;;  %7099 = vmatpush.msrb.mxu1 %v17646_v46  ;;  %v22955_v46 = vand.u32 4294901760, %v17734_v30  ;;  %v599_v30 = vld [vmem:[%s13221_s17 + $0x940] sm:$0xff]  ;;  %v7244_v13 = vand.u32 4294901760, %v18009_v28 }
 0x3aa   : > { %7144 = vmatpush.msrb.mxu2 %v17882_v55  ;;  %7199 = vmatpush.msrb.mxu3 %v7198_v50  ;;  %v7216_v50 = vand.u32 4294901760, %v7215_v24  ;;  %v7233_v24 = vsub.f32 %v17981_v27, %v7232_v56 }
 0x3ab   : > { %7048 = vmatpush.msrb.mxu0 %v22955_v46  ;;  %7101 = vmatpush.msrb.mxu1 %v17656_v12  ;;  %v18026_v12 = vsub.f32 %v647_v8, %v17999_v59  ;;  %v18034_v46 = vand.u32 4294901760, %v615_v21  ;;  %v7239_v8 = vsub.f32 %v17994_v11, %v7238_v36 }
 0x3ac   : > { %7146 = vmatpush.msrb.mxu2 %v17893_v63  ;;  %7205 = vmatpush.msrb.mxu3 %v7204_v18  ;;  %v7222_v18 = vand.u32 4294901760, %v7221_v40  ;;  %v18046_v40 = vand.u32 4294901760, %v599_v30 }
 0x3ad   : > { %7052 = vmatpush.msrb.mxu0 %v22956_v15  ;;  %7103 = vmatpush.msrb.mxu1 %v17662_v47  ;;  %v7228_v47 = vand.u32 4294901760, %v7227_v42  ;;  %v583_v15 = vld [vmem:[%s13221_s17 + $0x8c0] sm:$0xff]  ;;  %v7245_v42 = vsub.f32 %v18009_v28, %v7244_v13 }
 0x3ae   : > { %7148 = vmatpush.msrb.mxu2 %v17912_v60  ;;  %7211 = vmatpush.msrb.mxu3 %v7210_v51  ;;  %v18044_v51 = vsub.f32 %v631_v23, %v18020_v35  ;;  %v18058_v23 = vsub.f32 %v615_v21, %v18034_v46  ;;  %v18063_v34 = vand.u32 4294901760, %v583_v15  ;;  %v22960_v21 = vand.u32 4294901760, %v17799_v1 }
 0x3af   : > { %7056 = vmatpush.msrb.mxu0 %v22957_v61  ;;  %7105 = vmatpush.msrb.mxu1 %v17680_v32  ;;  %v7250_v32 = vand.u32 4294901760, %v18026_v12  ;;  %v22959_v61 = vand.u32 4294901760, %v17786_v2  ;;  %v7246_v2 = vand.u32 4294901760, %v7245_v42  ;;  %v22962_v42 = vand.u32 4294901760, %v17833_v4 }
 0x3b0   : > { %7150 = vmatpush.msrb.mxu2 %v17925_v0  ;;  %7217 = vmatpush.msrb.mxu3 %v7216_v50  ;;  %v7234_v50 = vand.u32 4294901760, %v7233_v24  ;;  %v7256_v24 = vand.u32 4294901760, %v18044_v51  ;;  %v18085_v1 = vsub.f32 %v583_v15, %v18063_v34 }
 0x3b1   : > { %7060 = vmatpush.msrb.mxu0 %v22958_v33  ;;  %7107 = vmatpush.msrb.mxu1 %v17684_v52  ;;  %v567_v52 = vld [vmem:[%s13221_s17 + $0x840] sm:$0xff]  ;;  %v18069_v33 = vsub.f32 %v599_v30, %v18046_v40  ;;  %v22961_v30 = vand.u32 4294901760, %v17815_v48 }
 0x3b2   : > { %7152 = vmatpush.msrb.mxu2 %v17941_v37  ;;  %7223 = vmatpush.msrb.mxu3 %v7222_v18  ;;  %v7240_v18 = vand.u32 4294901760, %v7239_v8  ;;  %v18079_v8 = vand.u32 4294901760, %v567_v52  ;;  %v7274_v4 = vand.u32 4294901760, %v18085_v1 }
 0x3b3   : > { %7064 = vmatpush.msrb.mxu0 %v22959_v61  ;;  %7109 = vmatpush.msrb.mxu1 %v17700_v53  ;;  %v7251_v53 = vsub.f32 %v18026_v12, %v7250_v32  ;;  %v22963_v61 = vand.u32 4294901760, %v17846_v54 }
 0x3b4   : > { %7154 = vmatpush.msrb.mxu2 %v17956_v49  ;;  %7229 = vmatpush.msrb.mxu3 %v7228_v47  ;;  %v7262_v47 = vand.u32 4294901760, %v18058_v23  ;;  %v18100_v15 = vsub.f32 %v567_v52, %v18079_v8  ;;  %v22964_v52 = vand.u32 4294901760, %v17871_v29  ;;  %v22967_v29 = vld [vmem:[#allocation19_spill] sm:$0xff] }
 0x3b5   : > { %7068 = vmatpush.msrb.mxu0 %v22960_v21  ;;  %7111 = vmatpush.msrb.mxu1 %v17720_v45  ;;  %v7257_v45 = vsub.f32 %v18044_v51, %v7256_v24  ;;  %v7252_v48 = vand.u32 4294901760, %v7251_v53  ;;  %v22965_v53 = vld [vmem:[#allocation7_spill] sm:$0xff] }
 0x3b6   : > { %7156 = vmatpush.msrb.mxu2 %v17970_v20  ;;  %7235 = vmatpush.msrb.mxu3 %v7234_v50  ;;  %v7268_v50 = vand.u32 4294901760, %v18069_v33  ;;  %v7280_v21 = vand.u32 4294901760, %v18100_v15 }
 0x3b7   : > { %7072 = vmatpush.msrb.mxu0 %v22961_v30  ;;  %7113 = vmatpush.msrb.mxu1 %v17730_v16  ;;  %v7263_v16 = vsub.f32 %v18058_v23, %v7262_v47  ;;  %v22966_v30 = vand.u32 4294901760, %v17877_v39  ;;  %v22971_v39 = vld [vmem:[#allocation22_spill] sm:$0xff] }
 0x3b8   : > { %7158 = vmatpush.msrb.mxu2 %v17983_v17  ;;  %7241 = vmatpush.msrb.mxu3 %v7240_v18  ;;  %v7269_v18 = vsub.f32 %v18069_v33, %v7268_v50 }
 0x3b9   : > { %7076 = vmatpush.msrb.mxu0 %v22962_v42  ;;  %7115 = vmatpush.msrb.mxu1 %v17746_v57  ;;  %v7258_v57 = vand.u32 4294901760, %v7257_v45  ;;  %v7264_v54 = vand.u32 4294901760, %v7263_v16  ;;  %v22968_v45 = vld [vmem:[#allocation21_spill] sm:$0xff]  ;;  %v22969_v42 = vld [vmem:[#allocation20_spill] sm:$0xff] }
 0x3ba   : > { %7160 = vmatpush.msrb.mxu2 %v17999_v59  ;;  %7247 = vmatpush.msrb.mxu3 %v7246_v2  ;;  %v7270_v2 = vand.u32 4294901760, %v7269_v18  ;;  %v22970_v16 = vld [vmem:[#allocation9_spill] sm:$0xff]  ;;  %v22973_v18 = vld [vmem:[#allocation10_spill] sm:$0xff] }
 0x3bb   : > { %6971 = vmatmul.f32.vlgmr.msra.gmra.mxu2 %v13564_v19  ;;  %7080 = vmatpush.msrb.mxu0 %v22963_v61 }
 0x3bc   : > { %7117 = vmatpush.msrb.mxu1 %v17756_v5  ;;  %7162 = vmatpush.msrb.mxu2 %v18020_v35  ;;  %v7275_v5 = vsub.f32 %v18085_v1, %v7274_v4 }
 0x3bd   : > { %7253 = vmatpush.msrb.mxu3 %v7252_v48  ;;  %6804 = vmatmul.f32.vlgmr.msra.gmra.mxu0 %v13645_v22 }
 0x3be   : > { %7015 = vmatmul.f32.vlgmr.msra.gmra.mxu3 %v13594_v9  ;;  %7084 = vmatpush.msrb.mxu0 %v22964_v52  ;;  %v7276_v48 = vand.u32 4294901760, %v7275_v5  ;;  %v22974_v52 = vand.u32 4294901760, %v22968_v45  ;;  %v22977_v5 = vand.u32 4294901760, %v17906_v43 }
 0x3bf   : > { %7119 = vmatpush.msrb.mxu1 %v17772_v58  ;;  %7164 = vmatpush.msrb.mxu2 %v18034_v46  ;;  %v7281_v58 = vsub.f32 %v18100_v15, %v7280_v21 }
 0x3c0   : > { %7259 = vmatpush.msrb.mxu3 %v7258_v57  ;;  %6913 = vmatmul.f32.vlgmr.msra.gmra.mxu1 %v22965_v53  ;;  %v22972_v57 = vld [vmem:[#allocation13_spill] sm:$0xff] }
 0x3c1   : > { %7088 = vmatpush.msrb.mxu0 %v22966_v30  ;;  %7121 = vmatpush.msrb.mxu1 %v22967_v29  ;;  %v7282_v61 = vand.u32 4294901760, %v7281_v58 }
 0x3c2   : > { %7166 = vmatpush.msrb.mxu2 %v18046_v40  ;;  %7265 = vmatpush.msrb.mxu3 %v7264_v54  ;;  %v22975_v54 = vld [vmem:[#allocation8_spill] sm:$0xff] }
 0x3c3   : > { %7295 = vmatpush.msra.mxu0 %v22968_v45  ;;  %7123 = vmatpush.msrb.mxu1 %v22969_v42  ;;  %v408_v45 = vld [vmem:[%s13221_s17 + $0x348] sm:$0xff] }
 0x3c4   : > { %7168 = vmatpush.msrb.mxu2 %v18063_v34  ;;  %7271 = vmatpush.msrb.mxu3 %v7270_v2  ;;  %v22979_v2 = vand.u32 4294901760, %v17917_v62 }
 0x3c5   : > { %6976 = vmatmul.f32.gmra.mxu2 %v22970_v16  ;;  %7298 = vmatpush.msra.mxu0 %v22971_v39 }
 0x3c6   : > { %7125 = vmatpush.msrb.mxu1 %v17811_v7  ;;  %7170 = vmatpush.msrb.mxu2 %v18079_v8  ;;  %v22976_v7 = vand.u32 4294901760, %v22971_v39 }
 0x3c7   : > { %7277 = vmatpush.msrb.mxu3 %v7276_v48  ;;  %6812 = vmatmul.f32.gmra.mxu0 %v22972_v57 }
 0x3c8   : > { %7021 = vmatmul.f32.gmra.mxu3 %v22973_v18  ;;  %7301 = vmatpush.msra.mxu0 %v17906_v43 }
 0x3c9   : > { %7400 = vmatpush.msra.mxu2 %v22974_v52  ;;  %7127 = vmatpush.msrb.mxu1 %v17842_v38  ;;  %v22978_v38 = vld [vmem:[#allocation15_spill] sm:$0xff] }
 0x3ca   : > { %7283 = vmatpush.msrb.mxu3 %v7282_v61  ;;  %6917 = vmatmul.f32.gmra.mxu1 %v22975_v54 }
 0x3cb   : > { %7304 = vmatpush.msra.mxu0 %v17917_v62  ;;  %7404 = vmatpush.msra.mxu2 %v22976_v7  ;;  %v520_v62 = vld [vmem:[%s13221_s17 + $0x6c8] sm:$0xff] }
 0x3cc   : > { %7471 = vmatpush.msra.mxu3 %v17852_v25  ;;  %7129 = vmatpush.msrb.mxu1 %v17850_v10  ;;  %v22980_v10 = vld [vmem:[#allocation11_spill] sm:$0xff] }
 0x3cd   : > { %7307 = vmatpush.msra.mxu0 %v17939_v41  ;;  %7408 = vmatpush.msra.mxu2 %v22977_v5  ;;  %v392_v5 = vld [vmem:[%s13221_s17 + $0x2c8] sm:$0xff] }
 0x3ce   : > { %7353 = vmatpush.msra.mxu1 %v17852_v25  ;;  %7473 = vmatpush.msra.mxu3 %v17863_v26  ;;  %v6061_v41 = vpop.f32.mrf.mxu0 }
 0x3cf   : > { %7176 = vmatmul.f32.vlgmr.msrb.gmra.mxu2 %v22978_v38  ;;  %7310 = vmatpush.msra.mxu0 %v17954_v14  ;;  %v18215_v14 = vand.u32 4294901760, %v520_v62 }
 0x3d0   : > { %7355 = vmatpush.msra.mxu1 %v17863_v26  ;;  %7412 = vmatpush.msra.mxu2 %v22979_v2  ;;  %v552_v26 = vld [vmem:[%s13221_s17 + $0x7c8] sm:$0xff] }
 0x3d1   : > { %7475 = vmatpush.msra.mxu3 %v17882_v55  ;;  %7090 = vmatmul.f32.vlgmr.msrb.gmra.mxu0 %v22965_v53  ;;  %v6170_v25 = vpop.f32.mrf.mxu1 }
 0x3d2   : > { %7285 = vmatmul.f32.vlgmr.msrb.gmra.mxu3 %v22980_v10  ;;  %7313 = vmatpush.msra.mxu0 %v17968_v3  ;;  %v504_v3 = vld [vmem:[%s13221_s17 + $0x648] sm:$0xff] }
 0x3d3   : > { %7357 = vmatpush.msra.mxu1 %v17882_v55  ;;  %7416 = vmatpush.msra.mxu2 %v7214_v31  ;;  %v6228_v55 = vpop.f32.mrf.mxu2 }
 0x3d4   : > { %7477 = vmatpush.msra.mxu3 %v17893_v63  ;;  %7131 = vmatmul.f32.vlgmr.msrb.gmra.mxu1 %v22965_v53  ;;  %v664_v53 = vld [vmem:[%s13221_s17 + $0xb48] sm:$0xff] }
 0x3d5   : > { %7316 = vmatpush.msra.mxu0 %v17981_v27  ;;  %7359 = vmatpush.msra.mxu1 %v17893_v63  ;;  %v536_v63 = vld [vmem:[%s13221_s17 + $0x748] sm:$0xff]  ;;  %v18203_v43 = vpop.f32.mrf.mxu3 }
 0x3d6   : > { %7420 = vmatpush.msra.mxu2 %v7220_v44  ;;  %7479 = vmatpush.msra.mxu3 %v17912_v60  ;;  %v22982_v44 = vld [vmem:[#allocation6_spill] sm:$0xff] }
 0x3d7   : > { %7319 = vmatpush.msra.mxu0 %v17994_v11  ;;  %7361 = vmatpush.msra.mxu1 %v17912_v60  ;;  %v18199_v60 = vand.u32 4294901760, %v552_v26 }
 0x3d8   : > { %7424 = vmatpush.msra.mxu2 %v7226_v6  ;;  %7481 = vmatpush.msra.mxu3 %v17925_v0  ;;  %v6069_v31 = vpop.f32.mrf.mxu0 }
 0x3d9   : > { %7322 = vmatpush.msra.mxu0 %v18009_v28  ;;  %7363 = vmatpush.msra.mxu1 %v17925_v0  ;;  %v18209_v0 = vand.u32 4294901760, %v536_v63 }
 0x3da   : > { %7428 = vmatpush.msra.mxu2 %v7232_v56  ;;  %7483 = vmatpush.msra.mxu3 %v17941_v37  ;;  %v18241_v56 = vsub.f32 %v520_v62, %v18215_v14  ;;  %v376_v62 = vld [vmem:[%s13221_s17 + $0x248] sm:$0xff] }
 0x3db   : > { %7325 = vmatpush.msra.mxu0 %v18026_v12  ;;  %7365 = vmatpush.msra.mxu1 %v17941_v37  ;;  %v22981_v37 = vld [vmem:[#allocation18_spill] sm:$0xff]  ;;  %v18228_v27 = vsub.f32 %v536_v63, %v18209_v0  ;;  %v6174_v6 = vpop.f32.mrf.mxu1  ;;  %v22983_v12 = vld [vmem:[#allocation12_spill] sm:$0xff] }
 0x3dc   : > { %7432 = vmatpush.msra.mxu2 %v7238_v36  ;;  %7485 = vmatpush.msra.mxu3 %v17956_v49  ;;  %v6233_v28 = vpop.f32.mrf.mxu2  ;;  %v472_v36 = vld [vmem:[%s13221_s17 + $0x548] sm:$0xff]  ;;  %v6175_v42 = vadd.f32 %v6174_v6, %v6069_v31  ;;  %v18325_v6 = vand.u32 4294901760, %v392_v5 }
 0x3dd   : > { %7328 = vmatpush.msra.mxu0 %v18044_v51  ;;  %7367 = vmatpush.msra.mxu1 %v17956_v49  ;;  %v18218_v49 = vsub.f32 %v552_v26, %v18199_v60  ;;  %v456_v51 = vld [vmem:[%s13221_s17 + $0x4c8] sm:$0xff] }
 0x3de   : > { %7436 = vmatpush.msra.mxu2 %v7244_v13  ;;  %7487 = vmatpush.msra.mxu3 %v17970_v20  ;;  %v22403_v13 = vand.u32 4294901760, %v18228_v27  ;;  %v6234_v31 = vadd.f32 %v6233_v28, %v6175_v42  ;;  %v18336_v28 = vand.u32 4294901760, %v376_v62  ;;  %v22986_v42 = vld [vmem:[#allocation16_spill] sm:$0xff] }
 0x3df   : > { %7094 = vmatmul.f32.gmra.mxu0 %v22975_v54  ;;  %7369 = vmatpush.msra.mxu1 %v17970_v20  ;;  %v488_v20 = vld [vmem:[%s13221_s17 + $0x5c8] sm:$0xff] }
 0x3e0   : > { %7331 = vmatpush.msra.mxu0 %v18058_v23  ;;  %7440 = vmatpush.msra.mxu2 %v7250_v32  ;;  %v18237_v11 = vand.u32 4294901760, %v488_v20  ;;  %v18253_v32 = vand.u32 4294901760, %v472_v36  ;;  %22985 = vst [vmem:[#allocation19_spill] sm:$0xff] %v18336_v28 }
 0x3e1   : > { %7489 = vmatpush.msra.mxu3 %v17983_v17  ;;  %7371 = vmatpush.msra.mxu1 %v17983_v17  ;;  %v18233_v17 = vand.u32 4294901760, %v504_v3 }
 0x3e2   : > { %7334 = vmatpush.msra.mxu0 %v18069_v33  ;;  %7444 = vmatpush.msra.mxu2 %v7256_v24  ;;  %v18258_v24 = vpop.f32.mrf.mxu3  ;;  %v22402_v33 = vand.u32 4294901760, %v18241_v56  ;;  %v18287_v58 = vsub.f32 %v472_v36, %v18253_v32 }
 0x3e3   : > { %7491 = vmatpush.msra.mxu3 %v17999_v59  ;;  %7184 = vmatmul.f32.gmra.mxu2 %v22981_v37  ;;  %v18256_v23 = vsub.f32 %v504_v3, %v18233_v17 }
 0x3e4   : > { %7337 = vmatpush.msra.mxu0 %v18085_v1  ;;  %7373 = vmatpush.msra.mxu1 %v17999_v59  ;;  %v22404_v59 = vand.u32 4294901760, %v18218_v49 }
 0x3e5   : > { %7448 = vmatpush.msra.mxu2 %v7262_v47  ;;  %7493 = vmatpush.msra.mxu3 %v18020_v35  ;;  %v440_v47 = vld [vmem:[%s13221_s17 + $0x448] sm:$0xff]  ;;  %v22401_v29 = vand.u32 4294901760, %v18256_v23 }
 0x3e6   : > { %7289 = vmatmul.f32.gmra.mxu3 %v22982_v44  ;;  %7340 = vmatpush.msra.mxu0 %v18100_v15  ;;  %v7569_v15 = vsub.f32 %v18228_v27, %v22403_v13  ;;  %v18283_v30 = vand.u32 4294901760, %v440_v47  ;;  %v18307_v26 = vpop.f32.mrf.mxu2 }
 0x3e7   : > { %7375 = vmatpush.msra.mxu1 %v18020_v35  ;;  %7452 = vmatpush.msra.mxu2 %v7268_v50  ;;  %v6171_v35 = vadd.f32 %v6170_v25, %v6061_v41  ;;  %v18273_v50 = vand.u32 4294901760, %v456_v51  ;;  %v6388_v41 = vpop.f32.mrf.mxu1  ;;  %v18309_v25 = vand.u32 4294901760, %v408_v45  ;;  %v7581_v63 = vsub.f32 %v18256_v23, %v22401_v29  ;;  %v328_v29 = vld [vmem:[%s13221_s17 + $0xc8] sm:$0xff] }
 0x3e8   : > { %7495 = vmatpush.msra.mxu3 %v18034_v46  ;;  %7135 = vmatmul.f32.gmra.mxu1 %v22975_v54  ;;  %v7570_v2 = vand.u32 4294901760, %v7569_v15  ;;  %v360_v15 = vld [vmem:[%s13221_s17 + $0x1c8] sm:$0xff] }
 0x3e9   : > { %7343 = vmatmul.f32.vlgmr.msra.gmra.mxu0 %v22983_v12  ;;  %7377 = vmatpush.msra.mxu1 %v18034_v46  ;;  %v7563_v46 = vsub.f32 %v18218_v49, %v22404_v59  ;;  %v6229_v1 = vadd.f32 %v6228_v55, %v6171_v35  ;;  %v18302_v7 = vsub.f32 %v456_v51, %v18273_v50  ;;  %v22984_v55 = vld [vmem:[#allocation14_spill] sm:$0xff]  ;;  %v776_v12 = vld [vmem:[%s13221_s17 + $0xec8] sm:$0xff] }
 0x3ea   : > { %7512 = vmatpush.msrb.mxu0 %v18199_v60  ;;  %7456 = vmatpush.msra.mxu2 %v7274_v4  ;;  %v6347_v4 = vpop.f32.mrf.mxu0  ;;  %v18329_v35 = vpop.f32.mrf.mxu3  ;;  %v744_v54 = vld [vmem:[%s13221_s17 + $0xdc8] sm:$0xff] }
 0x3eb   : > { %7497 = vmatpush.msra.mxu3 %v18046_v40  ;;  %7379 = vmatpush.msra.mxu1 %v18046_v40  ;;  %v18268_v40 = vsub.f32 %v488_v20, %v18237_v11  ;;  %v7564_v48 = vand.u32 4294901760, %v7563_v46  ;;  %v6273_v61 = vadd.f32 %v18203_v43, %v6229_v1  ;;  %v22398_v43 = vand.u32 4294901760, %v18287_v58 }
 0x3ec   : > { %7514 = vmatpush.msrb.mxu0 %v18209_v0  ;;  %7460 = vmatpush.msra.mxu2 %v7280_v21  ;;  %v424_v21 = vld [vmem:[%s13221_s17 + $0x3c8] sm:$0xff]  ;;  %v22400_v51 = vand.u32 4294901760, %v18302_v7 }
 0x3ed   : > { %7499 = vmatpush.msra.mxu3 %v18063_v34  ;;  %7462 = vmatmul.f32.vlgmr.msra.gmra.mxu2 %v22980_v10  ;;  %v22399_v39 = vand.u32 4294901760, %v18268_v40  ;;  %v18299_v52 = vand.u32 4294901760, %v424_v21  ;;  %v6348_v36 = vadd.f32 %v6347_v4, %v6273_v61  ;;  %v7582_v4 = vand.u32 4294901760, %v7581_v63 }
 0x3ee   : > { %7516 = vmatpush.msrb.mxu0 %v18215_v14  ;;  %7667 = vmatpush.msrb.mxu2 %v18218_v49  ;;  %v6279_v61 = vadd.f32 %v18258_v24, %v6234_v31  ;;  %v808_v31 = vld [vmem:[%s13221_s17 + $0xfc8] sm:$0xff] }
 0x3ef   : > { %7381 = vmatpush.msra.mxu1 %v18063_v34  ;;  %7501 = vmatpush.msra.mxu3 %v18079_v8  ;;  %v7575_v34 = vsub.f32 %v18241_v56, %v22402_v33  ;;  %v7587_v20 = vsub.f32 %v18268_v40, %v22399_v39  ;;  %v18333_v46 = vsub.f32 %v424_v21, %v18299_v52  ;;  %v18359_v39 = vand.u32 4294901760, %v360_v15  ;;  %v22988_v33 = vld [vmem:[#allocation17_spill] sm:$0xff] }
 0x3f0   : > { %7503 = vmatmul.f32.vlgmr.msra.gmra.mxu3 %v22980_v10  ;;  %7518 = vmatpush.msrb.mxu0 %v18233_v17  ;;  %v7593_v21 = vsub.f32 %v18287_v58, %v22398_v43  ;;  %v6389_v63 = vadd.f32 %v6388_v41, %v6348_v36  ;;  %v7599_v43 = vsub.f32 %v18302_v7, %v22400_v51  ;;  %v18405_v59 = vand.u32 4294901760, %v808_v31 }
 0x3f1   : > { %7670 = vmatpush.msrb.mxu2 %v18228_v27  ;;  %7725 = vmatpush.msrb.mxu3 %v18199_v60  ;;  %v7576_v3 = vand.u32 4294901760, %v7575_v34  ;;  %v344_v34 = vld [vmem:[%s13221_s17 + $0x148] sm:$0xff]  ;;  %22987 = vst [vmem:[#allocation21_spill] sm:$0xff] %v18359_v39  ;;  %v22406_v24 = vand.u32 4294901760, %v18333_v46  ;;  %v18368_v41 = vsub.f32 %v376_v62, %v18336_v28 }
 0x3f2   : > { %7383 = vmatpush.msra.mxu1 %v18079_v8  ;;  %7520 = vmatpush.msrb.mxu0 %v18237_v11  ;;  %v18318_v8 = vsub.f32 %v440_v47, %v18283_v30  ;;  %v18339_v47 = vsub.f32 %v408_v45, %v18309_v25  ;;  %v6351_v1 = vpop.f32.mrf.mxu0  ;;  %v7588_v45 = vand.u32 4294901760, %v7587_v20  ;;  %v7594_v36 = vand.u32 4294901760, %v7593_v21  ;;  %v312_v62 = vld [vmem:[%s13221_s17 + $0x48] sm:$0xff] }
 0x3f3   : > { %7387 = vmatmul.f32.vlgmr.msra.gmra.mxu1 %v22984_v55  ;;  %7673 = vmatpush.msrb.mxu2 %v18241_v56  ;;  %v6352_v13 = vadd.f32 %v6351_v1, %v6279_v61  ;;  %v7600_v21 = vand.u32 4294901760, %v7599_v43 }
 0x3f4   : > { %7565 = vmatpush.msrb.mxu1 %v7564_v48  ;;  %7727 = vmatpush.msrb.mxu3 %v18209_v0  ;;  %v22405_v48 = vand.u32 4294901760, %v18318_v8  ;;  %v22989_v1 = vand.u32 4294901760, %v18339_v47 }
 0x3f5   : > { %7522 = vmatpush.msrb.mxu0 %v18253_v32  ;;  %7676 = vmatpush.msrb.mxu2 %v18256_v23 }
 0x3f6   : > { %7571 = vmatpush.msrb.mxu1 %v7570_v2  ;;  %7729 = vmatpush.msrb.mxu3 %v18215_v14  ;;  %v18352_v2 = vsub.f32 %v392_v5, %v18325_v6  ;;  %v18364_v5 = vand.u32 4294901760, %v344_v34  ;;  %v7605_v51 = vsub.f32 %v18318_v8, %v22405_v48  ;;  %v7611_v48 = vsub.f32 %v18333_v46, %v22406_v24 }
 0x3f7   : > { %7348 = vmatmul.f32.gmra.mxu0 %v22986_v42  ;;  %7466 = vmatmul.f32.gmra.mxu2 %v22982_v44  ;;  %v18386_v42 = vsub.f32 %v360_v15, %v18359_v39  ;;  %v7617_v61 = vsub.f32 %v18339_v47, %v22989_v1  ;;  %v792_v15 = vld [vmem:[%s13221_s17 + $0xf48] sm:$0xff]  ;;  %v18403_v24 = vand.u32 4294901760, %v312_v62 }
 0x3f8   : > { %7524 = vmatpush.msrb.mxu0 %v18273_v50  ;;  %7577 = vmatpush.msrb.mxu1 %v7576_v3  ;;  %v22990_v1 = vand.u32 4294901760, %v18352_v2  ;;  %v18416_v37 = vand.u32 4294901760, %v792_v15 }
 0x3f9   : > { %7679 = vmatpush.msrb.mxu2 %v18268_v40  ;;  %7731 = vmatpush.msrb.mxu3 %v18233_v17  ;;  %v6392_v3 = vpop.f32.mrf.mxu1  ;;  %v7618_v10 = vand.u32 4294901760, %v7617_v61  ;;  %v18433_v61 = vsub.f32 %v808_v31, %v18405_v59 }
 0x3fa   : > { %7507 = vmatmul.f32.gmra.mxu3 %v22982_v44  ;;  %7526 = vmatpush.msrb.mxu0 %v18283_v30  ;;  %v6441_v20 = vpop.f32.mrf.mxu2  ;;  %v7623_v43 = vsub.f32 %v18352_v2, %v22990_v1  ;;  %v6600_v55 = vpop.f32.mrf.mxu0  ;;  %v22991_v1 = vand.u32 4294901760, %v18368_v41  ;;  %v18444_v31 = vsub.f32 %v792_v15, %v18416_v37  ;;  %v712_v15 = vld [vmem:[%s13221_s17 + $0xcc8] sm:$0xff] }
 0x3fb   : > { %7583 = vmatpush.msrb.mxu1 %v7582_v4  ;;  %7682 = vmatpush.msrb.mxu2 %v18287_v58  ;;  %v6434_v4 = vadd.f32 %v18307_v26, %v6389_v63  ;;  %v18395_v26 = vand.u32 4294901760, %v328_v29  ;;  %v7606_v63 = vand.u32 4294901760, %v7605_v51  ;;  %v7612_v51 = vand.u32 4294901760, %v7611_v48  ;;  %22992 = vst [vmem:[#allocation20_spill] sm:$0xff] %v18433_v61 }
 0x3fc   : > { %7733 = vmatpush.msrb.mxu3 %v18237_v11  ;;  %7393 = vmatmul.f32.gmra.mxu1 %v22988_v33  ;;  %22994 = vst [vmem:[#allocation22_spill] sm:$0xff] %v18444_v31 }
 0x3fd   : > { %7528 = vmatpush.msrb.mxu0 %v18299_v52  ;;  %7589 = vmatpush.msrb.mxu1 %v7588_v45  ;;  %v18388_v33 = vpop.f32.mrf.mxu3  ;;  %v18399_v45 = vsub.f32 %v344_v34, %v18364_v5  ;;  %v6393_v34 = vadd.f32 %v6392_v3, %v6352_v13  ;;  %v6543_v44 = vadd.f32 %v18329_v35, %v6434_v4  ;;  %v760_v4 = vld [vmem:[%s13221_s17 + $0xe48] sm:$0xff] }
 0x3fe   : > { %7685 = vmatpush.msrb.mxu2 %v18302_v7  ;;  %7735 = vmatpush.msrb.mxu3 %v18253_v32  ;;  %v7629_v13 = vsub.f32 %v18368_v41, %v22991_v1  ;;  %v18424_v3 = vsub.f32 %v328_v29, %v18395_v26  ;;  %v7624_v29 = vand.u32 4294901760, %v7623_v43 }
 0x3ff   : > { %7530 = vmatpush.msrb.mxu0 %v18309_v25  ;;  %7595 = vmatpush.msrb.mxu1 %v7594_v36  ;;  %v6601_v48 = vadd.f32 %v6600_v55, %v6543_v44  ;;  %v18435_v36 = vand.u32 4294901760, %v776_v12  ;;  %v6442_v1 = vadd.f32 %v6441_v20, %v6393_v34  ;;  %v22993_v44 = vand.u32 4294901760, %v18386_v42 }
 0x400   : > { %7688 = vmatpush.msrb.mxu2 %v18318_v8  ;;  %7737 = vmatpush.msrb.mxu3 %v18273_v50  ;;  %v7630_v20 = vand.u32 4294901760, %v7629_v13  ;;  %v22995_v43 = vand.u32 4294901760, %v18399_v45  ;;  %v728_v13 = vld [vmem:[%s13221_s17 + $0xd48] sm:$0xff] }
 0x401   : > { %7532 = vmatpush.msrb.mxu0 %v18325_v6  ;;  %7601 = vmatpush.msrb.mxu1 %v7600_v21  ;;  %v18430_v21 = vsub.f32 %v312_v62, %v18403_v24  ;;  %v7635_v55 = vsub.f32 %v18386_v42, %v22993_v44 }
 0x402   : > { %7691 = vmatpush.msrb.mxu2 %v18333_v46  ;;  %7739 = vmatpush.msrb.mxu3 %v18283_v30  ;;  %v7641_v34 = vsub.f32 %v18399_v45, %v22995_v43  ;;  %v6547_v43 = vadd.f32 %v18388_v33, %v6442_v1  ;;  %v22996_v1 = vand.u32 4294901760, %v18424_v3 }
 0x403   : > { %7534 = vmatpush.msrb.mxu0 %v18336_v28  ;;  %7607 = vmatpush.msrb.mxu1 %v7606_v63  ;;  %v18446_v63 = vand.u32 4294901760, %v760_v4 }
 0x404   : > { %7694 = vmatpush.msrb.mxu2 %v18339_v47  ;;  %7741 = vmatpush.msrb.mxu3 %v18299_v52  ;;  %v6644_v35 = vpop.f32.mrf.mxu1  ;;  %v6719_v38 = vpop.f32.mrf.mxu2  ;;  %v7642_v33 = vand.u32 4294901760, %v7641_v34  ;;  %v7647_v57 = vsub.f32 %v18424_v3, %v22996_v1 }
 0x405   : > { %7536 = vmatpush.msrb.mxu0 %v18359_v39  ;;  %7613 = vmatpush.msrb.mxu1 %v7612_v51  ;;  %v6645_v62 = vadd.f32 %v6644_v35, %v6601_v48  ;;  %v18459_v48 = vsub.f32 %v776_v12, %v18435_v36  ;;  %v18465_v51 = vand.u32 4294901760, %v744_v54  ;;  %v18470_v12 = vsub.f32 %v760_v4, %v18446_v63  ;;  %v696_v35 = vld [vmem:[%s13221_s17 + $0xc48] sm:$0xff] }
 0x406   : > { %7697 = vmatpush.msrb.mxu2 %v18352_v2  ;;  %7743 = vmatpush.msrb.mxu3 %v18309_v25  ;;  %v22997_v4 = vand.u32 4294901760, %v18433_v61 }
 0x407   : > { %7538 = vmatpush.msrb.mxu0 %v18364_v5  ;;  %7619 = vmatpush.msrb.mxu1 %v7618_v10  ;;  %v6720_v44 = vadd.f32 %v6719_v38, %v6645_v62  ;;  %v6760_v18 = vpop.f32.mrf.mxu3  ;;  %v7636_v10 = vand.u32 4294901760, %v7635_v55  ;;  %v22998_v55 = vand.u32 4294901760, %v18430_v21  ;;  %v18492_v16 = vsub.f32 %v744_v54, %v18465_v51 }
 0x408   : > { %7700 = vmatpush.msrb.mxu2 %v18368_v41  ;;  %7745 = vmatpush.msrb.mxu3 %v18325_v6  ;;  %v6605_v38 = vpop.f32.mrf.mxu0  ;;  %v7648_v54 = vand.u32 4294901760, %v7647_v57  ;;  %v23002_v34 = vand.u32 4294901760, %v18459_v48 }
 0x409   : > { %7540 = vmatpush.msrb.mxu0 %v18395_v26  ;;  %7625 = vmatpush.msrb.mxu1 %v7624_v29  ;;  %v6761_v62 = vadd.f32 %v6760_v18, %v6720_v44  ;;  %v18478_v29 = vand.u32 4294901760, %v728_v13  ;;  %v7935_v18 = vsub.f32 %v18433_v61, %v22997_v4  ;;  %v7653_v44 = vsub.f32 %v18430_v21, %v22998_v55 }
 0x40a   : > { %7703 = vmatpush.msrb.mxu2 %v18386_v42  ;;  %7747 = vmatpush.msrb.mxu3 %v18336_v28  ;;  %v6606_v1 = vadd.f32 %v6605_v38, %v6547_v43  ;;  %v22999_v28 = vand.u32 4294901760, %v18218_v49  ;;  %v23000_v4 = vand.u32 4294901760, %v18444_v31  ;;  %v23001_v38 = vand.u32 4294901760, %v18228_v27 }
 0x40b   : > { %7542 = vmatpush.msrb.mxu0 %v18403_v24  ;;  %7631 = vmatpush.msrb.mxu1 %v7630_v20  ;;  %v18494_v20 = vand.u32 4294901760, %v712_v15  ;;  %12758 = vst [vmem:[%s14629_s29 + $0x38] sm:$0xff] %v6761_v62  ;;  %v18507_v43 = vsub.f32 %v728_v13, %v18478_v29  ;;  %v7654_v62 = vand.u32 4294901760, %v7653_v44  ;;  %v7958_v57 = vand.u32 4294901760, %v18492_v16 }
 0x40c   : > { %7706 = vmatpush.msrb.mxu2 %v18399_v45  ;;  %7749 = vmatpush.msrb.mxu3 %v18359_v39  ;;  %v7941_v55 = vsub.f32 %v18444_v31, %v23000_v4  ;;  %v680_v39 = vld [vmem:[%s13221_s17 + $0xbc8] sm:$0xff]  ;;  %v7936_v4 = vand.u32 4294901760, %v7935_v18  ;;  %v7947_v31 = vsub.f32 %v18459_v48, %v23002_v34  ;;  %v23004_v44 = vand.u32 4294901760, %v18470_v12 }
 0x40d   : > { %7772 = vmatpush.msra.mxu0 %v22999_v28  ;;  %7637 = vmatpush.msrb.mxu1 %v7636_v10  ;;  %v6650_v61 = vpop.f32.mrf.mxu1  ;;  %v18509_v28 = vand.u32 4294901760, %v696_v35  ;;  %v18523_v13 = vand.u32 4294901760, %v680_v39 }
 0x40e   : > { %7709 = vmatpush.msrb.mxu2 %v18424_v3  ;;  %7751 = vmatpush.msrb.mxu3 %v18364_v5  ;;  %v6651_v49 = vadd.f32 %v6650_v61, %v6606_v1  ;;  %v6723_v10 = vpop.f32.mrf.mxu2  ;;  %v18521_v61 = vsub.f32 %v712_v15, %v18494_v20  ;;  %v7942_v18 = vand.u32 4294901760, %v7941_v55  ;;  %v7953_v34 = vsub.f32 %v18470_v12, %v23004_v44 }
 0x40f   : > { %7776 = vmatpush.msra.mxu0 %v23001_v38  ;;  %7643 = vmatpush.msrb.mxu1 %v7642_v33  ;;  %v23003_v33 = vand.u32 4294901760, %v18241_v56  ;;  %v7964_v15 = vand.u32 4294901760, %v18507_v43  ;;  %v18536_v56 = vand.u32 4294901760, %v664_v53  ;;  %v648_v38 = vld [vmem:[%s13221_s17 + $0xac8] sm:$0xff]  ;;  %v23005_v55 = vand.u32 4294901760, %v18256_v23 }
 0x410   : > { %7712 = vmatpush.msrb.mxu2 %v18430_v21  ;;  %7753 = vmatpush.msrb.mxu3 %v18395_v26  ;;  %v6724_v27 = vadd.f32 %v6723_v10, %v6651_v49  ;;  %v18534_v49 = vsub.f32 %v696_v35, %v18509_v28  ;;  %v7970_v35 = vand.u32 4294901760, %v18521_v61  ;;  %v23006_v44 = vand.u32 4294901760, %v18268_v40 }
 0x411   : > { %7780 = vmatpush.msra.mxu0 %v23003_v33  ;;  %v6764_v1 = vpop.f32.mrf.mxu3  ;;  %7649 = vmatpush.msrb.mxu1 %v7648_v54  ;;  %v7948_v33 = vand.u32 4294901760, %v7947_v31  ;;  %v7959_v54 = vsub.f32 %v18492_v16, %v7958_v57  ;;  %v18552_v23 = vand.u32 4294901760, %v648_v38  ;;  %v632_v31 = vld [vmem:[%s13221_s17 + $0xa48] sm:$0xff]  ;;  %v18562_v40 = vsub.f32 %v664_v53, %v18536_v56 }
 0x412   : > { %7884 = vmatpush.msra.mxu2 %v18405_v59  ;;  %7755 = vmatpush.msrb.mxu3 %v18403_v24  ;;  %v6765_v10 = vadd.f32 %v6764_v1, %v6724_v27  ;;  %v18547_v27 = vsub.f32 %v680_v39, %v18523_v13  ;;  %v7976_v39 = vand.u32 4294901760, %v18534_v49  ;;  %v616_v1 = vld [vmem:[%s13221_s17 + $0x9c8] sm:$0xff]  ;;  %v23008_v53 = vand.u32 4294901760, %v18302_v7 }
 0x413   : > { %7784 = vmatpush.msra.mxu0 %v23005_v55  ;;  %7655 = vmatpush.msrb.mxu1 %v7654_v62  ;;  %v7965_v62 = vsub.f32 %v18507_v43, %v7964_v15  ;;  %v23009_v7 = vand.u32 4294901760, %v18318_v8  ;;  %v23010_v8 = vand.u32 4294901760, %v18333_v46 }
 0x414   : > { %7886 = vmatpush.msra.mxu2 %v18416_v37  ;;  %7937 = vmatpush.msra.mxu3 %v7936_v4  ;;  %v7954_v4 = vand.u32 4294901760, %v7953_v34  ;;  %12774 = vst [vmem:[%s14629_s29 + $0xb8] sm:$0xff] %v6765_v10  ;;  %v7971_v34 = vsub.f32 %v18521_v61, %v7970_v35  ;;  %v7982_v55 = vand.u32 4294901760, %v18547_v27  ;;  %v18573_v10 = vand.u32 4294901760, %v632_v31 }
 0x415   : > { %7788 = vmatpush.msra.mxu0 %v23006_v44  ;;  %7843 = vmatpush.msra.mxu1 %v18199_v60  ;;  %v23007_v60 = vand.u32 4294901760, %v18287_v58  ;;  %v600_v58 = vld [vmem:[%s13221_s17 + $0x948] sm:$0xff]  ;;  %v7988_v44 = vand.u32 4294901760, %v18562_v40 }
 0x416   : > { %7888 = vmatpush.msra.mxu2 %v18435_v36  ;;  %7943 = vmatpush.msra.mxu3 %v7942_v18  ;;  %v7960_v18 = vand.u32 4294901760, %v7959_v54  ;;  %v7977_v54 = vsub.f32 %v18534_v49, %v7976_v39 }
 0x417   : > { %7792 = vmatpush.msra.mxu0 %v23007_v60  ;;  %7845 = vmatpush.msra.mxu1 %v18209_v0  ;;  %v18579_v0 = vsub.f32 %v648_v38, %v18552_v23  ;;  %v18587_v60 = vand.u32 4294901760, %v616_v1  ;;  %v7983_v38 = vsub.f32 %v18547_v27, %v7982_v55 }
 0x418   : > { %7890 = vmatpush.msra.mxu2 %v18446_v63  ;;  %7949 = vmatpush.msra.mxu3 %v7948_v33  ;;  %v7966_v33 = vand.u32 4294901760, %v7965_v62  ;;  %v18599_v62 = vand.u32 4294901760, %v600_v58 }
 0x419   : > { %7796 = vmatpush.msra.mxu0 %v23008_v53  ;;  %7847 = vmatpush.msra.mxu1 %v18215_v14  ;;  %v7972_v14 = vand.u32 4294901760, %v7971_v34  ;;  %v584_v53 = vld [vmem:[%s13221_s17 + $0x8c8] sm:$0xff]  ;;  %v7989_v34 = vsub.f32 %v18562_v40, %v7988_v44 }
 0x41a   : > { %7892 = vmatpush.msra.mxu2 %v18465_v51  ;;  %7955 = vmatpush.msra.mxu3 %v7954_v4  ;;  %v18597_v4 = vsub.f32 %v632_v31, %v18573_v10  ;;  %v18611_v31 = vsub.f32 %v616_v1, %v18587_v60  ;;  %v18616_v46 = vand.u32 4294901760, %v584_v53  ;;  %v23012_v1 = vand.u32 4294901760, %v18352_v2 }
 0x41b   : > { %7800 = vmatpush.msra.mxu0 %v23009_v7  ;;  %7849 = vmatpush.msra.mxu1 %v18233_v17  ;;  %v7994_v17 = vand.u32 4294901760, %v18579_v0  ;;  %v23011_v7 = vand.u32 4294901760, %v18339_v47  ;;  %v7990_v47 = vand.u32 4294901760, %v7989_v34  ;;  %v23014_v34 = vand.u32 4294901760, %v18386_v42 }
 0x41c   : > { %7894 = vmatpush.msra.mxu2 %v18478_v29  ;;  %7961 = vmatpush.msra.mxu3 %v7960_v18  ;;  %v7978_v18 = vand.u32 4294901760, %v7977_v54  ;;  %v8000_v54 = vand.u32 4294901760, %v18597_v4  ;;  %v18638_v2 = vsub.f32 %v584_v53, %v18616_v46 }
 0x41d   : > { %7804 = vmatpush.msra.mxu0 %v23010_v8  ;;  %7851 = vmatpush.msra.mxu1 %v18237_v11  ;;  %v568_v11 = vld [vmem:[%s13221_s17 + $0x848] sm:$0xff]  ;;  %v18622_v8 = vsub.f32 %v600_v58, %v18599_v62  ;;  %v23013_v58 = vand.u32 4294901760, %v18368_v41 }
 0x41e   : > { %7896 = vmatpush.msra.mxu2 %v18494_v20  ;;  %7967 = vmatpush.msra.mxu3 %v7966_v33  ;;  %v7984_v33 = vand.u32 4294901760, %v7983_v38  ;;  %v18632_v38 = vand.u32 4294901760, %v568_v11  ;;  %v8018_v42 = vand.u32 4294901760, %v18638_v2 }
 0x41f   : > { %7808 = vmatpush.msra.mxu0 %v23011_v7  ;;  %7853 = vmatpush.msra.mxu1 %v18253_v32  ;;  %v7995_v32 = vsub.f32 %v18579_v0, %v7994_v17  ;;  %v23015_v7 = vand.u32 4294901760, %v18399_v45 }
 0x420   : > { %7898 = vmatpush.msra.mxu2 %v18509_v28  ;;  %7973 = vmatpush.msra.mxu3 %v7972_v14  ;;  %v8006_v14 = vand.u32 4294901760, %v18611_v31  ;;  %v18653_v53 = vsub.f32 %v568_v11, %v18632_v38  ;;  %v23016_v11 = vand.u32 4294901760, %v18424_v3  ;;  %v23019_v3 = vld [vmem:[#allocation19_spill] sm:$0xff] }
 0x421   : > { %7812 = vmatpush.msra.mxu0 %v23012_v1  ;;  %7855 = vmatpush.msra.mxu1 %v18273_v50  ;;  %v8001_v50 = vsub.f32 %v18597_v4, %v8000_v54  ;;  %v7996_v41 = vand.u32 4294901760, %v7995_v32  ;;  %v23017_v32 = vld [vmem:[#allocation7_spill] sm:$0xff] }
 0x422   : > { %7900 = vmatpush.msra.mxu2 %v18523_v13  ;;  %7979 = vmatpush.msra.mxu3 %v7978_v18  ;;  %v8012_v18 = vand.u32 4294901760, %v18622_v8  ;;  %v8024_v1 = vand.u32 4294901760, %v18653_v53 }
 0x423   : > { %7816 = vmatpush.msra.mxu0 %v23013_v58  ;;  %7857 = vmatpush.msra.mxu1 %v18283_v30  ;;  %v8007_v30 = vsub.f32 %v18611_v31, %v8006_v14  ;;  %v23018_v58 = vand.u32 4294901760, %v18430_v21  ;;  %v23023_v21 = vld [vmem:[#allocation22_spill] sm:$0xff] }
 0x424   : > { %7902 = vmatpush.msra.mxu2 %v18536_v56  ;;  %7985 = vmatpush.msra.mxu3 %v7984_v33  ;;  %v8013_v33 = vsub.f32 %v18622_v8, %v8012_v18 }
 0x425   : > { %7820 = vmatpush.msra.mxu0 %v23014_v34  ;;  %7859 = vmatpush.msra.mxu1 %v18299_v52  ;;  %v8002_v52 = vand.u32 4294901760, %v8001_v50  ;;  %v8008_v45 = vand.u32 4294901760, %v8007_v30  ;;  %v23020_v50 = vld [vmem:[#allocation20_spill] sm:$0xff]  ;;  %v23021_v34 = vld [vmem:[#allocation21_spill] sm:$0xff] }
 0x426   : > { %7904 = vmatpush.msra.mxu2 %v18552_v23  ;;  %7991 = vmatpush.msra.mxu3 %v7990_v47  ;;  %v8014_v47 = vand.u32 4294901760, %v8013_v33  ;;  %v23022_v30 = vld [vmem:[#allocation9_spill] sm:$0xff]  ;;  %v23025_v33 = vld [vmem:[#allocation10_spill] sm:$0xff] }
 0x427   : > { %7715 = vmatmul.f32.vlgmr.msrb.gmra.mxu2 %v13564_v19  ;;  %7824 = vmatpush.msra.mxu0 %v23015_v7 }
 0x428   : > { %7861 = vmatpush.msra.mxu1 %v18309_v25  ;;  %7906 = vmatpush.msra.mxu2 %v18573_v10  ;;  %v8019_v25 = vsub.f32 %v18638_v2, %v8018_v42 }
 0x429   : > { %7997 = vmatpush.msra.mxu3 %v7996_v41  ;;  %7548 = vmatmul.f32.vlgmr.msrb.gmra.mxu0 %v13645_v22 }
 0x42a   : > { %7759 = vmatmul.f32.vlgmr.msrb.gmra.mxu3 %v13594_v9  ;;  %7828 = vmatpush.msra.mxu0 %v23016_v11  ;;  %v8020_v41 = vand.u32 4294901760, %v8019_v25  ;;  %v23026_v11 = vand.u32 4294901760, %v23020_v50  ;;  %v23029_v25 = vand.u32 4294901760, %v18459_v48 }
 0x42b   : > { %7863 = vmatpush.msra.mxu1 %v18325_v6  ;;  %7908 = vmatpush.msra.mxu2 %v18587_v60  ;;  %v8025_v6 = vsub.f32 %v18653_v53, %v8024_v1 }
 0x42c   : > { %8003 = vmatpush.msra.mxu3 %v8002_v52  ;;  %7657 = vmatmul.f32.vlgmr.msrb.gmra.mxu1 %v23017_v32  ;;  %v23024_v52 = vld [vmem:[#allocation13_spill] sm:$0xff] }
 0x42d   : > { %7832 = vmatpush.msra.mxu0 %v23018_v58  ;;  %7865 = vmatpush.msra.mxu1 %v23019_v3  ;;  %v8026_v7 = vand.u32 4294901760, %v8025_v6 }
 0x42e   : > { %7910 = vmatpush.msra.mxu2 %v18599_v62  ;;  %8009 = vmatpush.msra.mxu3 %v8008_v45  ;;  %v23027_v45 = vld [vmem:[#allocation8_spill] sm:$0xff] }
 0x42f   : > { %8039 = vmatpush.msrb.mxu0 %v23020_v50  ;;  %7867 = vmatpush.msra.mxu1 %v23021_v34  ;;  %v409_v50 = vld [vmem:[%s13221_s17 + $0x350] sm:$0xff] }
 0x430   : > { %7912 = vmatpush.msra.mxu2 %v18616_v46  ;;  %8015 = vmatpush.msra.mxu3 %v8014_v47  ;;  %v23031_v47 = vand.u32 4294901760, %v18470_v12 }
 0x431   : > { %7720 = vmatmul.f32.gmra.mxu2 %v23022_v30  ;;  %8042 = vmatpush.msrb.mxu0 %v23023_v21 }
 0x432   : > { %7869 = vmatpush.msra.mxu1 %v18364_v5  ;;  %7914 = vmatpush.msra.mxu2 %v18632_v38  ;;  %v23028_v5 = vand.u32 4294901760, %v23023_v21 }
 0x433   : > { %8021 = vmatpush.msra.mxu3 %v8020_v41  ;;  %7556 = vmatmul.f32.gmra.mxu0 %v23024_v52 }
 0x434   : > { %7765 = vmatmul.f32.gmra.mxu3 %v23025_v33  ;;  %8045 = vmatpush.msrb.mxu0 %v18459_v48 }
 0x435   : > { %8144 = vmatpush.msrb.mxu2 %v23026_v11  ;;  %7871 = vmatpush.msra.mxu1 %v18395_v26  ;;  %v23030_v26 = vld [vmem:[#allocation15_spill] sm:$0xff] }
 0x436   : > { %8027 = vmatpush.msra.mxu3 %v8026_v7  ;;  %7661 = vmatmul.f32.gmra.mxu1 %v23027_v45 }
 0x437   : > { %8048 = vmatpush.msrb.mxu0 %v18470_v12  ;;  %8148 = vmatpush.msrb.mxu2 %v23028_v5  ;;  %v521_v12 = vld [vmem:[%s13221_s17 + $0x6d0] sm:$0xff] }
 0x438   : > { %8215 = vmatpush.msrb.mxu3 %v18405_v59  ;;  %7873 = vmatpush.msra.mxu1 %v18403_v24  ;;  %v23032_v24 = vld [vmem:[#allocation11_spill] sm:$0xff] }
 0x439   : > { %8051 = vmatpush.msrb.mxu0 %v18492_v16  ;;  %8152 = vmatpush.msrb.mxu2 %v23029_v25  ;;  %v393_v25 = vld [vmem:[%s13221_s17 + $0x2d0] sm:$0xff] }
 0x43a   : > { %8097 = vmatpush.msrb.mxu1 %v18405_v59  ;;  %8217 = vmatpush.msrb.mxu3 %v18416_v37  ;;  %v6805_v16 = vpop.f32.mrf.mxu0 }
 0x43b   : > { %7920 = vmatmul.f32.vlgmr.msra.gmra.mxu2 %v23030_v26  ;;  %8054 = vmatpush.msrb.mxu0 %v18507_v43  ;;  %v18768_v43 = vand.u32 4294901760, %v521_v12 }
 0x43c   : > { %8099 = vmatpush.msrb.mxu1 %v18416_v37  ;;  %8156 = vmatpush.msrb.mxu2 %v23031_v47  ;;  %v553_v37 = vld [vmem:[%s13221_s17 + $0x7d0] sm:$0xff] }
 0x43d   : > { %8219 = vmatpush.msrb.mxu3 %v18435_v36  ;;  %7834 = vmatmul.f32.vlgmr.msra.gmra.mxu0 %v23017_v32  ;;  %v6914_v59 = vpop.f32.mrf.mxu1 }
 0x43e   : > { %8029 = vmatmul.f32.vlgmr.msra.gmra.mxu3 %v23032_v24  ;;  %8057 = vmatpush.msrb.mxu0 %v18521_v61  ;;  %v505_v61 = vld [vmem:[%s13221_s17 + $0x650] sm:$0xff] }
 0x43f   : > { %8101 = vmatpush.msrb.mxu1 %v18435_v36  ;;  %8160 = vmatpush.msrb.mxu2 %v7958_v57  ;;  %v6972_v36 = vpop.f32.mrf.mxu2 }
 0x440   : > { %8221 = vmatpush.msrb.mxu3 %v18446_v63  ;;  %7875 = vmatmul.f32.vlgmr.msra.gmra.mxu1 %v23017_v32  ;;  %v665_v32 = vld [vmem:[%s13221_s17 + $0xb50] sm:$0xff] }
 0x441   : > { %8060 = vmatpush.msrb.mxu0 %v18534_v49  ;;  %8103 = vmatpush.msrb.mxu1 %v18446_v63  ;;  %v537_v63 = vld [vmem:[%s13221_s17 + $0x750] sm:$0xff]  ;;  %v18756_v48 = vpop.f32.mrf.mxu3 }
 0x442   : > { %8164 = vmatpush.msrb.mxu2 %v7964_v15  ;;  %8223 = vmatpush.msrb.mxu3 %v18465_v51  ;;  %v23034_v15 = vld [vmem:[#allocation6_spill] sm:$0xff] }
 0x443   : > { %8063 = vmatpush.msrb.mxu0 %v18547_v27  ;;  %8105 = vmatpush.msrb.mxu1 %v18465_v51  ;;  %v18752_v51 = vand.u32 4294901760, %v553_v37 }
 0x444   : > { %8168 = vmatpush.msrb.mxu2 %v7970_v35  ;;  %8225 = vmatpush.msrb.mxu3 %v18478_v29  ;;  %v6813_v57 = vpop.f32.mrf.mxu0 }
 0x445   : > { %8066 = vmatpush.msrb.mxu0 %v18562_v40  ;;  %8107 = vmatpush.msrb.mxu1 %v18478_v29  ;;  %v18762_v29 = vand.u32 4294901760, %v537_v63 }
 0x446   : > { %8172 = vmatpush.msrb.mxu2 %v7976_v39  ;;  %8227 = vmatpush.msrb.mxu3 %v18494_v20  ;;  %v18794_v39 = vsub.f32 %v521_v12, %v18768_v43  ;;  %v377_v12 = vld [vmem:[%s13221_s17 + $0x250] sm:$0xff] }
 0x447   : > { %8069 = vmatpush.msrb.mxu0 %v18579_v0  ;;  %8109 = vmatpush.msrb.mxu1 %v18494_v20  ;;  %v23033_v20 = vld [vmem:[#allocation18_spill] sm:$0xff]  ;;  %v18781_v49 = vsub.f32 %v537_v63, %v18762_v29  ;;  %v6918_v35 = vpop.f32.mrf.mxu1  ;;  %v23035_v0 = vld [vmem:[#allocation12_spill] sm:$0xff] }
 0x448   : > { %8176 = vmatpush.msrb.mxu2 %v7982_v55  ;;  %8229 = vmatpush.msrb.mxu3 %v18509_v28  ;;  %v6977_v40 = vpop.f32.mrf.mxu2  ;;  %v473_v55 = vld [vmem:[%s13221_s17 + $0x550] sm:$0xff]  ;;  %v6919_v34 = vadd.f32 %v6918_v35, %v6813_v57  ;;  %v18878_v35 = vand.u32 4294901760, %v393_v25 }
 0x449   : > { %8072 = vmatpush.msrb.mxu0 %v18597_v4  ;;  %8111 = vmatpush.msrb.mxu1 %v18509_v28  ;;  %v18771_v28 = vsub.f32 %v553_v37, %v18752_v51  ;;  %v457_v4 = vld [vmem:[%s13221_s17 + $0x4d0] sm:$0xff] }
 0x44a   : > { %8180 = vmatpush.msrb.mxu2 %v7988_v44  ;;  %8231 = vmatpush.msrb.mxu3 %v18523_v13  ;;  %v22422_v44 = vand.u32 4294901760, %v18781_v49  ;;  %v6978_v57 = vadd.f32 %v6977_v40, %v6919_v34  ;;  %v18889_v40 = vand.u32 4294901760, %v377_v12  ;;  %v23038_v34 = vld [vmem:[#allocation16_spill] sm:$0xff] }
 0x44b   : > { %7838 = vmatmul.f32.gmra.mxu0 %v23027_v45  ;;  %8113 = vmatpush.msrb.mxu1 %v18523_v13  ;;  %v489_v13 = vld [vmem:[%s13221_s17 + $0x5d0] sm:$0xff] }
 0x44c   : > { %8075 = vmatpush.msrb.mxu0 %v18611_v31  ;;  %8184 = vmatpush.msrb.mxu2 %v7994_v17  ;;  %v18790_v27 = vand.u32 4294901760, %v489_v13  ;;  %v18806_v17 = vand.u32 4294901760, %v473_v55  ;;  %23037 = vst [vmem:[#allocation19_spill] sm:$0xff] %v18889_v40 }
 0x44d   : > { %8233 = vmatpush.msrb.mxu3 %v18536_v56  ;;  %8115 = vmatpush.msrb.mxu1 %v18536_v56  ;;  %v18786_v56 = vand.u32 4294901760, %v505_v61 }
 0x44e   : > { %8078 = vmatpush.msrb.mxu0 %v18622_v8  ;;  %8188 = vmatpush.msrb.mxu2 %v8000_v54  ;;  %v18811_v54 = vpop.f32.mrf.mxu3  ;;  %v22421_v8 = vand.u32 4294901760, %v18794_v39  ;;  %v18840_v6 = vsub.f32 %v473_v55, %v18806_v17 }
 0x44f   : > { %8235 = vmatpush.msrb.mxu3 %v18552_v23  ;;  %7928 = vmatmul.f32.gmra.mxu2 %v23033_v20  ;;  %v18809_v31 = vsub.f32 %v505_v61, %v18786_v56 }
 0x450   : > { %8081 = vmatpush.msrb.mxu0 %v18638_v2  ;;  %8117 = vmatpush.msrb.mxu1 %v18552_v23  ;;  %v22423_v23 = vand.u32 4294901760, %v18771_v28 }
 0x451   : > { %8192 = vmatpush.msrb.mxu2 %v8006_v14  ;;  %8237 = vmatpush.msrb.mxu3 %v18573_v10  ;;  %v441_v14 = vld [vmem:[%s13221_s17 + $0x450] sm:$0xff]  ;;  %v22420_v3 = vand.u32 4294901760, %v18809_v31 }
 0x452   : > { %8033 = vmatmul.f32.gmra.mxu3 %v23034_v15  ;;  %8084 = vmatpush.msrb.mxu0 %v18653_v53  ;;  %v8313_v53 = vsub.f32 %v18781_v49, %v22422_v44  ;;  %v18836_v58 = vand.u32 4294901760, %v441_v14  ;;  %v18860_v37 = vpop.f32.mrf.mxu2 }
 0x453   : > { %8119 = vmatpush.msrb.mxu1 %v18573_v10  ;;  %8196 = vmatpush.msrb.mxu2 %v8012_v18  ;;  %v6915_v10 = vadd.f32 %v6914_v59, %v6805_v16  ;;  %v18826_v18 = vand.u32 4294901760, %v457_v4  ;;  %v7132_v16 = vpop.f32.mrf.mxu1  ;;  %v18862_v59 = vand.u32 4294901760, %v409_v50  ;;  %v8325_v63 = vsub.f32 %v18809_v31, %v22420_v3  ;;  %v329_v3 = vld [vmem:[%s13221_s17 + $0xd0] sm:$0xff] }
 0x454   : > { %8239 = vmatpush.msrb.mxu3 %v18587_v60  ;;  %7879 = vmatmul.f32.gmra.mxu1 %v23027_v45  ;;  %v8314_v47 = vand.u32 4294901760, %v8313_v53  ;;  %v361_v53 = vld [vmem:[%s13221_s17 + $0x1d0] sm:$0xff] }
 0x455   : > { %8087 = vmatmul.f32.vlgmr.msrb.gmra.mxu0 %v23035_v0  ;;  %8121 = vmatpush.msrb.mxu1 %v18587_v60  ;;  %v8307_v60 = vsub.f32 %v18771_v28, %v22423_v23  ;;  %v6973_v2 = vadd.f32 %v6972_v36, %v6915_v10  ;;  %v18855_v5 = vsub.f32 %v457_v4, %v18826_v18  ;;  %v23036_v36 = vld [vmem:[#allocation14_spill] sm:$0xff]  ;;  %v777_v0 = vld [vmem:[%s13221_s17 + $0xed0] sm:$0xff] }
 0x456   : > { %8256 = vmatpush.msra.mxu0 %v18752_v51  ;;  %8200 = vmatpush.msrb.mxu2 %v8018_v42  ;;  %v7091_v42 = vpop.f32.mrf.mxu0  ;;  %v18882_v10 = vpop.f32.mrf.mxu3  ;;  %v745_v45 = vld [vmem:[%s13221_s17 + $0xdd0] sm:$0xff] }
 0x457   : > { %8241 = vmatpush.msrb.mxu3 %v18599_v62  ;;  %8123 = vmatpush.msrb.mxu1 %v18599_v62  ;;  %v18821_v62 = vsub.f32 %v489_v13, %v18790_v27  ;;  %v8308_v41 = vand.u32 4294901760, %v8307_v60  ;;  %v7017_v7 = vadd.f32 %v18756_v48, %v6973_v2  ;;  %v22417_v48 = vand.u32 4294901760, %v18840_v6 }
 0x458   : > { %8258 = vmatpush.msra.mxu0 %v18762_v29  ;;  %8204 = vmatpush.msrb.mxu2 %v8024_v1  ;;  %v425_v1 = vld [vmem:[%s13221_s17 + $0x3d0] sm:$0xff]  ;;  %v22419_v4 = vand.u32 4294901760, %v18855_v5 }
 0x459   : > { %8243 = vmatpush.msrb.mxu3 %v18616_v46  ;;  %8206 = vmatmul.f32.vlgmr.msrb.gmra.mxu2 %v23032_v24  ;;  %v22418_v21 = vand.u32 4294901760, %v18821_v62  ;;  %v18852_v11 = vand.u32 4294901760, %v425_v1  ;;  %v7092_v55 = vadd.f32 %v7091_v42, %v7017_v7  ;;  %v8326_v42 = vand.u32 4294901760, %v8325_v63 }
 0x45a   : > { %8260 = vmatpush.msra.mxu0 %v18768_v43  ;;  %8411 = vmatpush.msra.mxu2 %v18771_v28  ;;  %v7023_v7 = vadd.f32 %v18811_v54, %v6978_v57  ;;  %v809_v57 = vld [vmem:[%s13221_s17 + $0xfd0] sm:$0xff] }
 0x45b   : > { %8125 = vmatpush.msrb.mxu1 %v18616_v46  ;;  %8245 = vmatpush.msrb.mxu3 %v18632_v38  ;;  %v8319_v46 = vsub.f32 %v18794_v39, %v22421_v8  ;;  %v8331_v13 = vsub.f32 %v18821_v62, %v22418_v21  ;;  %v18886_v60 = vsub.f32 %v425_v1, %v18852_v11  ;;  %v18912_v21 = vand.u32 4294901760, %v361_v53  ;;  %v23040_v8 = vld [vmem:[#allocation17_spill] sm:$0xff] }
 0x45c   : > { %8247 = vmatmul.f32.vlgmr.msrb.gmra.mxu3 %v23032_v24  ;;  %8262 = vmatpush.msra.mxu0 %v18786_v56  ;;  %v8337_v1 = vsub.f32 %v18840_v6, %v22417_v48  ;;  %v7133_v63 = vadd.f32 %v7132_v16, %v7092_v55  ;;  %v8343_v48 = vsub.f32 %v18855_v5, %v22419_v4  ;;  %v18958_v23 = vand.u32 4294901760, %v809_v57 }
 0x45d   : > { %8414 = vmatpush.msra.mxu2 %v18781_v49  ;;  %8469 = vmatpush.msra.mxu3 %v18752_v51  ;;  %v8320_v61 = vand.u32 4294901760, %v8319_v46  ;;  %v345_v46 = vld [vmem:[%s13221_s17 + $0x150] sm:$0xff]  ;;  %23039 = vst [vmem:[#allocation20_spill] sm:$0xff] %v18912_v21  ;;  %v22425_v54 = vand.u32 4294901760, %v18886_v60  ;;  %v18921_v16 = vsub.f32 %v377_v12, %v18889_v40 }
 0x45e   : > { %8127 = vmatpush.msrb.mxu1 %v18632_v38  ;;  %8264 = vmatpush.msra.mxu0 %v18790_v27  ;;  %v18871_v38 = vsub.f32 %v441_v14, %v18836_v58  ;;  %v18892_v14 = vsub.f32 %v409_v50, %v18862_v59  ;;  %v7095_v2 = vpop.f32.mrf.mxu0  ;;  %v8332_v50 = vand.u32 4294901760, %v8331_v13  ;;  %v8338_v55 = vand.u32 4294901760, %v8337_v1  ;;  %v313_v12 = vld [vmem:[%s13221_s17 + $0x50] sm:$0xff] }
 0x45f   : > { %8131 = vmatmul.f32.vlgmr.msrb.gmra.mxu1 %v23036_v36  ;;  %8417 = vmatpush.msra.mxu2 %v18794_v39  ;;  %v7096_v44 = vadd.f32 %v7095_v2, %v7023_v7  ;;  %v8344_v1 = vand.u32 4294901760, %v8343_v48 }
 0x460   : > { %8309 = vmatpush.msra.mxu1 %v8308_v41  ;;  %8471 = vmatpush.msra.mxu3 %v18762_v29  ;;  %v22424_v41 = vand.u32 4294901760, %v18871_v38  ;;  %v23041_v2 = vand.u32 4294901760, %v18892_v14 }
 0x461   : > { %8266 = vmatpush.msra.mxu0 %v18806_v17  ;;  %8420 = vmatpush.msra.mxu2 %v18809_v31 }
 0x462   : > { %8315 = vmatpush.msra.mxu1 %v8314_v47  ;;  %8473 = vmatpush.msra.mxu3 %v18768_v43  ;;  %v18905_v47 = vsub.f32 %v393_v25, %v18878_v35  ;;  %v18917_v25 = vand.u32 4294901760, %v345_v46  ;;  %v8349_v4 = vsub.f32 %v18871_v38, %v22424_v41  ;;  %v8355_v41 = vsub.f32 %v18886_v60, %v22425_v54 }
 0x463   : > { %8092 = vmatmul.f32.gmra.mxu0 %v23038_v34  ;;  %8210 = vmatmul.f32.gmra.mxu2 %v23034_v15  ;;  %v18939_v34 = vsub.f32 %v361_v53, %v18912_v21  ;;  %v8361_v7 = vsub.f32 %v18892_v14, %v23041_v2  ;;  %v793_v53 = vld [vmem:[%s13221_s17 + $0xf50] sm:$0xff]  ;;  %v18956_v54 = vand.u32 4294901760, %v313_v12 }
 0x464   : > { %8268 = vmatpush.msra.mxu0 %v18826_v18  ;;  %8321 = vmatpush.msra.mxu1 %v8320_v61  ;;  %v23042_v2 = vand.u32 4294901760, %v18905_v47  ;;  %v18969_v20 = vand.u32 4294901760, %v793_v53 }
 0x465   : > { %8423 = vmatpush.msra.mxu2 %v18821_v62  ;;  %8475 = vmatpush.msra.mxu3 %v18786_v56  ;;  %v7136_v61 = vpop.f32.mrf.mxu1  ;;  %v8362_v24 = vand.u32 4294901760, %v8361_v7  ;;  %v18986_v7 = vsub.f32 %v809_v57, %v18958_v23 }
 0x466   : > { %8251 = vmatmul.f32.gmra.mxu3 %v23034_v15  ;;  %8270 = vmatpush.msra.mxu0 %v18836_v58  ;;  %v7185_v13 = vpop.f32.mrf.mxu2  ;;  %v8367_v48 = vsub.f32 %v18905_v47, %v23042_v2  ;;  %v7344_v36 = vpop.f32.mrf.mxu0  ;;  %v23043_v2 = vand.u32 4294901760, %v18921_v16  ;;  %v18997_v57 = vsub.f32 %v793_v53, %v18969_v20  ;;  %v713_v53 = vld [vmem:[%s13221_s17 + $0xcd0] sm:$0xff] }
 0x467   : > { %8327 = vmatpush.msra.mxu1 %v8326_v42  ;;  %8426 = vmatpush.msra.mxu2 %v18840_v6  ;;  %v7178_v42 = vadd.f32 %v18860_v37, %v7133_v63  ;;  %v18948_v37 = vand.u32 4294901760, %v329_v3  ;;  %v8350_v63 = vand.u32 4294901760, %v8349_v4  ;;  %v8356_v4 = vand.u32 4294901760, %v8355_v41  ;;  %23044 = vst [vmem:[#allocation21_spill] sm:$0xff] %v18986_v7 }
 0x468   : > { %8477 = vmatpush.msra.mxu3 %v18790_v27  ;;  %8137 = vmatmul.f32.gmra.mxu1 %v23040_v8  ;;  %23046 = vst [vmem:[#allocation22_spill] sm:$0xff] %v18997_v57 }
 0x469   : > { %8272 = vmatpush.msra.mxu0 %v18852_v11  ;;  %8333 = vmatpush.msra.mxu1 %v8332_v50  ;;  %v18941_v8 = vpop.f32.mrf.mxu3  ;;  %v18952_v50 = vsub.f32 %v345_v46, %v18917_v25  ;;  %v7137_v46 = vadd.f32 %v7136_v61, %v7096_v44  ;;  %v7287_v15 = vadd.f32 %v18882_v10, %v7178_v42  ;;  %v761_v42 = vld [vmem:[%s13221_s17 + $0xe50] sm:$0xff] }
 0x46a   : > { %8429 = vmatpush.msra.mxu2 %v18855_v5  ;;  %8479 = vmatpush.msra.mxu3 %v18806_v17  ;;  %v8373_v44 = vsub.f32 %v18921_v16, %v23043_v2  ;;  %v18977_v61 = vsub.f32 %v329_v3, %v18948_v37  ;;  %v8368_v3 = vand.u32 4294901760, %v8367_v48 }
 0x46b   : > { %8274 = vmatpush.msra.mxu0 %v18862_v59  ;;  %8339 = vmatpush.msra.mxu1 %v8338_v55  ;;  %v7345_v41 = vadd.f32 %v7344_v36, %v7287_v15  ;;  %v18988_v55 = vand.u32 4294901760, %v777_v0  ;;  %v7186_v2 = vadd.f32 %v7185_v13, %v7137_v46  ;;  %v23045_v15 = vand.u32 4294901760, %v18939_v34 }
 0x46c   : > { %8432 = vmatpush.msra.mxu2 %v18871_v38  ;;  %8481 = vmatpush.msra.mxu3 %v18826_v18  ;;  %v8374_v13 = vand.u32 4294901760, %v8373_v44  ;;  %v23047_v48 = vand.u32 4294901760, %v18952_v50  ;;  %v729_v44 = vld [vmem:[%s13221_s17 + $0xd50] sm:$0xff] }
 0x46d   : > { %8276 = vmatpush.msra.mxu0 %v18878_v35  ;;  %8345 = vmatpush.msra.mxu1 %v8344_v1  ;;  %v18983_v1 = vsub.f32 %v313_v12, %v18956_v54  ;;  %v8379_v36 = vsub.f32 %v18939_v34, %v23045_v15 }
 0x46e   : > { %8435 = vmatpush.msra.mxu2 %v18886_v60  ;;  %8483 = vmatpush.msra.mxu3 %v18836_v58  ;;  %v8385_v46 = vsub.f32 %v18952_v50, %v23047_v48  ;;  %v7291_v48 = vadd.f32 %v18941_v8, %v7186_v2  ;;  %v23048_v2 = vand.u32 4294901760, %v18977_v61 }
 0x46f   : > { %8278 = vmatpush.msra.mxu0 %v18889_v40  ;;  %8351 = vmatpush.msra.mxu1 %v8350_v63  ;;  %v18999_v63 = vand.u32 4294901760, %v761_v42 }
 0x470   : > { %8438 = vmatpush.msra.mxu2 %v18892_v14  ;;  %8485 = vmatpush.msra.mxu3 %v18852_v11  ;;  %v7388_v10 = vpop.f32.mrf.mxu1  ;;  %v7463_v26 = vpop.f32.mrf.mxu2  ;;  %v8386_v8 = vand.u32 4294901760, %v8385_v46  ;;  %v8391_v52 = vsub.f32 %v18977_v61, %v23048_v2 }
 0x471   : > { %8280 = vmatpush.msra.mxu0 %v18912_v21  ;;  %8357 = vmatpush.msra.mxu1 %v8356_v4  ;;  %v7389_v12 = vadd.f32 %v7388_v10, %v7345_v41  ;;  %v19012_v41 = vsub.f32 %v777_v0, %v18988_v55  ;;  %v19018_v4 = vand.u32 4294901760, %v745_v45  ;;  %v19023_v0 = vsub.f32 %v761_v42, %v18999_v63  ;;  %v697_v10 = vld [vmem:[%s13221_s17 + $0xc50] sm:$0xff] }
 0x472   : > { %8441 = vmatpush.msra.mxu2 %v18905_v47  ;;  %8487 = vmatpush.msra.mxu3 %v18862_v59  ;;  %v23049_v42 = vand.u32 4294901760, %v18986_v7 }
 0x473   : > { %8282 = vmatpush.msra.mxu0 %v18917_v25  ;;  %8363 = vmatpush.msra.mxu1 %v8362_v24  ;;  %v7464_v15 = vadd.f32 %v7463_v26, %v7389_v12  ;;  %v7504_v33 = vpop.f32.mrf.mxu3  ;;  %v8380_v24 = vand.u32 4294901760, %v8379_v36  ;;  %v23050_v36 = vand.u32 4294901760, %v18983_v1  ;;  %v19045_v30 = vsub.f32 %v745_v45, %v19018_v4 }
 0x474   : > { %8444 = vmatpush.msra.mxu2 %v18921_v16  ;;  %8489 = vmatpush.msra.mxu3 %v18878_v35  ;;  %v7349_v26 = vpop.f32.mrf.mxu0  ;;  %v8392_v45 = vand.u32 4294901760, %v8391_v52  ;;  %v23054_v46 = vand.u32 4294901760, %v19012_v41 }
 0x475   : > { %8284 = vmatpush.msra.mxu0 %v18948_v37  ;;  %8369 = vmatpush.msra.mxu1 %v8368_v3  ;;  %v7505_v12 = vadd.f32 %v7504_v33, %v7464_v15  ;;  %v19031_v3 = vand.u32 4294901760, %v729_v44  ;;  %v8679_v33 = vsub.f32 %v18986_v7, %v23049_v42  ;;  %v8397_v15 = vsub.f32 %v18983_v1, %v23050_v36 }
 0x476   : > { %8447 = vmatpush.msra.mxu2 %v18939_v34  ;;  %8491 = vmatpush.msra.mxu3 %v18889_v40  ;;  %v7350_v2 = vadd.f32 %v7349_v26, %v7291_v48  ;;  %v23051_v40 = vand.u32 4294901760, %v18771_v28  ;;  %v23052_v42 = vand.u32 4294901760, %v18997_v57  ;;  %v23053_v26 = vand.u32 4294901760, %v18781_v49 }
 0x477   : > { %8286 = vmatpush.msra.mxu0 %v18956_v54  ;;  %8375 = vmatpush.msra.mxu1 %v8374_v13  ;;  %v19047_v13 = vand.u32 4294901760, %v713_v53  ;;  %12759 = vst [vmem:[%s14629_s29 + $0x40] sm:$0xff] %v7505_v12  ;;  %v19060_v48 = vsub.f32 %v729_v44, %v19031_v3  ;;  %v8398_v12 = vand.u32 4294901760, %v8397_v15  ;;  %v8702_v52 = vand.u32 4294901760, %v19045_v30 }
 0x478   : > { %8450 = vmatpush.msra.mxu2 %v18952_v50  ;;  %8493 = vmatpush.msra.mxu3 %v18912_v21  ;;  %v8685_v36 = vsub.f32 %v18997_v57, %v23052_v42  ;;  %v681_v21 = vld [vmem:[%s13221_s17 + $0xbd0] sm:$0xff]  ;;  %v8680_v42 = vand.u32 4294901760, %v8679_v33  ;;  %v8691_v57 = vsub.f32 %v19012_v41, %v23054_v46  ;;  %v23056_v15 = vand.u32 4294901760, %v19023_v0 }
 0x479   : > { %8516 = vmatpush.msrb.mxu0 %v23051_v40  ;;  %8381 = vmatpush.msra.mxu1 %v8380_v24  ;;  %v7394_v7 = vpop.f32.mrf.mxu1  ;;  %v19062_v40 = vand.u32 4294901760, %v697_v10  ;;  %v19076_v44 = vand.u32 4294901760, %v681_v21 }
 0x47a   : > { %8453 = vmatpush.msra.mxu2 %v18977_v61  ;;  %8495 = vmatpush.msra.mxu3 %v18917_v25  ;;  %v7395_v28 = vadd.f32 %v7394_v7, %v7350_v2  ;;  %v7467_v24 = vpop.f32.mrf.mxu2  ;;  %v19074_v7 = vsub.f32 %v713_v53, %v19047_v13  ;;  %v8686_v33 = vand.u32 4294901760, %v8685_v36  ;;  %v8697_v46 = vsub.f32 %v19023_v0, %v23056_v15 }
 0x47b   : > { %8520 = vmatpush.msrb.mxu0 %v23053_v26  ;;  %8387 = vmatpush.msra.mxu1 %v8386_v8  ;;  %v23055_v8 = vand.u32 4294901760, %v18794_v39  ;;  %v8708_v53 = vand.u32 4294901760, %v19060_v48  ;;  %v19089_v39 = vand.u32 4294901760, %v665_v32  ;;  %v649_v26 = vld [vmem:[%s13221_s17 + $0xad0] sm:$0xff]  ;;  %v23057_v36 = vand.u32 4294901760, %v18809_v31 }
 0x47c   : > { %8456 = vmatpush.msra.mxu2 %v18983_v1  ;;  %8497 = vmatpush.msra.mxu3 %v18948_v37  ;;  %v7468_v49 = vadd.f32 %v7467_v24, %v7395_v28  ;;  %v19087_v28 = vsub.f32 %v697_v10, %v19062_v40  ;;  %v8714_v10 = vand.u32 4294901760, %v19074_v7  ;;  %v23058_v15 = vand.u32 4294901760, %v18821_v62 }
 0x47d   : > { %8524 = vmatpush.msrb.mxu0 %v23055_v8  ;;  %v7508_v2 = vpop.f32.mrf.mxu3  ;;  %8393 = vmatpush.msra.mxu1 %v8392_v45  ;;  %v8692_v8 = vand.u32 4294901760, %v8691_v57  ;;  %v8703_v45 = vsub.f32 %v19045_v30, %v8702_v52  ;;  %v19105_v31 = vand.u32 4294901760, %v649_v26  ;;  %v633_v57 = vld [vmem:[%s13221_s17 + $0xa50] sm:$0xff]  ;;  %v19115_v62 = vsub.f32 %v665_v32, %v19089_v39 }
 0x47e   : > { %8628 = vmatpush.msrb.mxu2 %v18958_v23  ;;  %8499 = vmatpush.msra.mxu3 %v18956_v54  ;;  %v7509_v24 = vadd.f32 %v7508_v2, %v7468_v49  ;;  %v19100_v49 = vsub.f32 %v681_v21, %v19076_v44  ;;  %v8720_v21 = vand.u32 4294901760, %v19087_v28  ;;  %v617_v2 = vld [vmem:[%s13221_s17 + $0x9d0] sm:$0xff]  ;;  %v23060_v32 = vand.u32 4294901760, %v18855_v5 }
 0x47f   : > { %8528 = vmatpush.msrb.mxu0 %v23057_v36  ;;  %8399 = vmatpush.msra.mxu1 %v8398_v12  ;;  %v8709_v12 = vsub.f32 %v19060_v48, %v8708_v53  ;;  %v23061_v5 = vand.u32 4294901760, %v18871_v38  ;;  %v23062_v38 = vand.u32 4294901760, %v18886_v60 }
 0x480   : > { %8630 = vmatpush.msrb.mxu2 %v18969_v20  ;;  %8681 = vmatpush.msrb.mxu3 %v8680_v42  ;;  %v8698_v42 = vand.u32 4294901760, %v8697_v46  ;;  %12775 = vst [vmem:[%s14629_s29 + $0xc0] sm:$0xff] %v7509_v24  ;;  %v8715_v46 = vsub.f32 %v19074_v7, %v8714_v10  ;;  %v8726_v36 = vand.u32 4294901760, %v19100_v49  ;;  %v19126_v24 = vand.u32 4294901760, %v633_v57 }
 0x481   : > { %8532 = vmatpush.msrb.mxu0 %v23058_v15  ;;  %8587 = vmatpush.msrb.mxu1 %v18752_v51  ;;  %v23059_v51 = vand.u32 4294901760, %v18840_v6  ;;  %v601_v6 = vld [vmem:[%s13221_s17 + $0x950] sm:$0xff]  ;;  %v8732_v15 = vand.u32 4294901760, %v19115_v62 }
 0x482   : > { %8632 = vmatpush.msrb.mxu2 %v18988_v55  ;;  %8687 = vmatpush.msrb.mxu3 %v8686_v33  ;;  %v8704_v33 = vand.u32 4294901760, %v8703_v45  ;;  %v8721_v45 = vsub.f32 %v19087_v28, %v8720_v21 }
 0x483   : > { %8536 = vmatpush.msrb.mxu0 %v23059_v51  ;;  %8589 = vmatpush.msrb.mxu1 %v18762_v29  ;;  %v19132_v29 = vsub.f32 %v649_v26, %v19105_v31  ;;  %v19140_v51 = vand.u32 4294901760, %v617_v2  ;;  %v8727_v26 = vsub.f32 %v19100_v49, %v8726_v36 }
 0x484   : > { %8634 = vmatpush.msrb.mxu2 %v18999_v63  ;;  %8693 = vmatpush.msrb.mxu3 %v8692_v8  ;;  %v8710_v8 = vand.u32 4294901760, %v8709_v12  ;;  %v19152_v12 = vand.u32 4294901760, %v601_v6 }
 0x485   : > { %8540 = vmatpush.msrb.mxu0 %v23060_v32  ;;  %8591 = vmatpush.msrb.mxu1 %v18768_v43  ;;  %v8716_v43 = vand.u32 4294901760, %v8715_v46  ;;  %v585_v32 = vld [vmem:[%s13221_s17 + $0x8d0] sm:$0xff]  ;;  %v8733_v46 = vsub.f32 %v19115_v62, %v8732_v15 }
 0x486   : > { %8636 = vmatpush.msrb.mxu2 %v19018_v4  ;;  %8699 = vmatpush.msrb.mxu3 %v8698_v42  ;;  %v19150_v42 = vsub.f32 %v633_v57, %v19126_v24  ;;  %v19164_v57 = vsub.f32 %v617_v2, %v19140_v51  ;;  %v19169_v60 = vand.u32 4294901760, %v585_v32  ;;  %v23064_v2 = vand.u32 4294901760, %v18905_v47 }
 0x487   : > { %8544 = vmatpush.msrb.mxu0 %v23061_v5  ;;  %8593 = vmatpush.msrb.mxu1 %v18786_v56  ;;  %v8738_v56 = vand.u32 4294901760, %v19132_v29  ;;  %v23063_v5 = vand.u32 4294901760, %v18892_v14  ;;  %v8734_v14 = vand.u32 4294901760, %v8733_v46  ;;  %v23066_v46 = vand.u32 4294901760, %v18939_v34 }
 0x488   : > { %8638 = vmatpush.msrb.mxu2 %v19031_v3  ;;  %8705 = vmatpush.msrb.mxu3 %v8704_v33  ;;  %v8722_v33 = vand.u32 4294901760, %v8721_v45  ;;  %v8744_v45 = vand.u32 4294901760, %v19150_v42  ;;  %v19191_v47 = vsub.f32 %v585_v32, %v19169_v60 }
 0x489   : > { %8548 = vmatpush.msrb.mxu0 %v23062_v38  ;;  %8595 = vmatpush.msrb.mxu1 %v18790_v27  ;;  %v569_v27 = vld [vmem:[%s13221_s17 + $0x850] sm:$0xff]  ;;  %v19175_v38 = vsub.f32 %v601_v6, %v19152_v12  ;;  %v23065_v6 = vand.u32 4294901760, %v18921_v16 }
 0x48a   : > { %8640 = vmatpush.msrb.mxu2 %v19047_v13  ;;  %8711 = vmatpush.msrb.mxu3 %v8710_v8  ;;  %v8728_v8 = vand.u32 4294901760, %v8727_v26  ;;  %v19185_v26 = vand.u32 4294901760, %v569_v27  ;;  %v8762_v34 = vand.u32 4294901760, %v19191_v47 }
 0x48b   : > { %8552 = vmatpush.msrb.mxu0 %v23063_v5  ;;  %8597 = vmatpush.msrb.mxu1 %v18806_v17  ;;  %v8739_v17 = vsub.f32 %v19132_v29, %v8738_v56  ;;  %v23067_v5 = vand.u32 4294901760, %v18952_v50 }
 0x48c   : > { %8642 = vmatpush.msrb.mxu2 %v19062_v40  ;;  %8717 = vmatpush.msrb.mxu3 %v8716_v43  ;;  %v8750_v43 = vand.u32 4294901760, %v19164_v57  ;;  %v19206_v32 = vsub.f32 %v569_v27, %v19185_v26  ;;  %v23068_v27 = vand.u32 4294901760, %v18977_v61  ;;  %v23071_v61 = vld [vmem:[#allocation19_spill] sm:$0xff] }
 0x48d   : > { %8556 = vmatpush.msrb.mxu0 %v23064_v2  ;;  %8599 = vmatpush.msrb.mxu1 %v18826_v18  ;;  %v8745_v18 = vsub.f32 %v19150_v42, %v8744_v45  ;;  %v8740_v16 = vand.u32 4294901760, %v8739_v17  ;;  %v23069_v17 = vld [vmem:[#allocation7_spill] sm:$0xff] }
 0x48e   : > { %8644 = vmatpush.msrb.mxu2 %v19076_v44  ;;  %8723 = vmatpush.msrb.mxu3 %v8722_v33  ;;  %v8756_v33 = vand.u32 4294901760, %v19175_v38  ;;  %v8768_v2 = vand.u32 4294901760, %v19206_v32 }
 0x48f   : > { %8560 = vmatpush.msrb.mxu0 %v23065_v6  ;;  %8601 = vmatpush.msrb.mxu1 %v18836_v58  ;;  %v8751_v58 = vsub.f32 %v19164_v57, %v8750_v43  ;;  %v23070_v6 = vand.u32 4294901760, %v18983_v1  ;;  %v23075_v1 = vld [vmem:[#allocation22_spill] sm:$0xff] }
 0x490   : > { %8646 = vmatpush.msrb.mxu2 %v19089_v39  ;;  %8729 = vmatpush.msrb.mxu3 %v8728_v8  ;;  %v8757_v8 = vsub.f32 %v19175_v38, %v8756_v33 }
 0x491   : > { %8564 = vmatpush.msrb.mxu0 %v23066_v46  ;;  %8603 = vmatpush.msrb.mxu1 %v18852_v11  ;;  %v8746_v11 = vand.u32 4294901760, %v8745_v18  ;;  %v8752_v50 = vand.u32 4294901760, %v8751_v58  ;;  %v23072_v18 = vld [vmem:[#allocation21_spill] sm:$0xff]  ;;  %v23073_v46 = vld [vmem:[#allocation20_spill] sm:$0xff] }
 0x492   : > { %8648 = vmatpush.msrb.mxu2 %v19105_v31  ;;  %8735 = vmatpush.msrb.mxu3 %v8734_v14  ;;  %v8758_v14 = vand.u32 4294901760, %v8757_v8  ;;  %v23074_v58 = vld [vmem:[#allocation9_spill] sm:$0xff]  ;;  %v23077_v8 = vld [vmem:[#allocation10_spill] sm:$0xff] }
 0x493   : > { %8459 = vmatmul.f32.vlgmr.msra.gmra.mxu2 %v13564_v19  ;;  %8568 = vmatpush.msrb.mxu0 %v23067_v5 }
 0x494   : > { %8605 = vmatpush.msrb.mxu1 %v18862_v59  ;;  %8650 = vmatpush.msrb.mxu2 %v19126_v24  ;;  %v8763_v59 = vsub.f32 %v19191_v47, %v8762_v34 }
 0x495   : > { %8741 = vmatpush.msrb.mxu3 %v8740_v16  ;;  %8292 = vmatmul.f32.vlgmr.msra.gmra.mxu0 %v13645_v22 }
 0x496   : > { %8503 = vmatmul.f32.vlgmr.msra.gmra.mxu3 %v13594_v9  ;;  %8572 = vmatpush.msrb.mxu0 %v23068_v27  ;;  %v8764_v16 = vand.u32 4294901760, %v8763_v59  ;;  %v23078_v27 = vand.u32 4294901760, %v23072_v18  ;;  %v23081_v59 = vand.u32 4294901760, %v19012_v41 }
 0x497   : > { %8607 = vmatpush.msrb.mxu1 %v18878_v35  ;;  %8652 = vmatpush.msrb.mxu2 %v19140_v51  ;;  %v8769_v35 = vsub.f32 %v19206_v32, %v8768_v2 }
 0x498   : > { %8747 = vmatpush.msrb.mxu3 %v8746_v11  ;;  %8401 = vmatmul.f32.vlgmr.msra.gmra.mxu1 %v23069_v17  ;;  %v23076_v11 = vld [vmem:[#allocation13_spill] sm:$0xff] }
 0x499   : > { %8576 = vmatpush.msrb.mxu0 %v23070_v6  ;;  %8609 = vmatpush.msrb.mxu1 %v23071_v61  ;;  %v8770_v5 = vand.u32 4294901760, %v8769_v35 }
 0x49a   : > { %8654 = vmatpush.msrb.mxu2 %v19152_v12  ;;  %8753 = vmatpush.msrb.mxu3 %v8752_v50  ;;  %v23079_v50 = vld [vmem:[#allocation8_spill] sm:$0xff] }
 0x49b   : > { %8783 = vmatpush.msra.mxu0 %v23072_v18  ;;  %8611 = vmatpush.msrb.mxu1 %v23073_v46  ;;  %v410_v18 = vld [vmem:[%s13221_s17 + $0x358] sm:$0xff] }
 0x49c   : > { %8656 = vmatpush.msrb.mxu2 %v19169_v60  ;;  %8759 = vmatpush.msrb.mxu3 %v8758_v14  ;;  %v23083_v14 = vand.u32 4294901760, %v19023_v0 }
 0x49d   : > { %8464 = vmatmul.f32.gmra.mxu2 %v23074_v58  ;;  %8786 = vmatpush.msra.mxu0 %v23075_v1 }
 0x49e   : > { %8613 = vmatpush.msrb.mxu1 %v18917_v25  ;;  %8658 = vmatpush.msrb.mxu2 %v19185_v26  ;;  %v23080_v25 = vand.u32 4294901760, %v23075_v1 }
 0x49f   : > { %8765 = vmatpush.msrb.mxu3 %v8764_v16  ;;  %8300 = vmatmul.f32.gmra.mxu0 %v23076_v11 }
 0x4a0   : > { %8509 = vmatmul.f32.gmra.mxu3 %v23077_v8  ;;  %8789 = vmatpush.msra.mxu0 %v19012_v41 }
 0x4a1   : > { %8888 = vmatpush.msra.mxu2 %v23078_v27  ;;  %8615 = vmatpush.msrb.mxu1 %v18948_v37  ;;  %v23082_v37 = vld [vmem:[#allocation15_spill] sm:$0xff] }
 0x4a2   : > { %8771 = vmatpush.msrb.mxu3 %v8770_v5  ;;  %8405 = vmatmul.f32.gmra.mxu1 %v23079_v50 }
 0x4a3   : > { %8792 = vmatpush.msra.mxu0 %v19023_v0  ;;  %8892 = vmatpush.msra.mxu2 %v23080_v25  ;;  %v522_v0 = vld [vmem:[%s13221_s17 + $0x6d8] sm:$0xff] }
 0x4a4   : > { %8959 = vmatpush.msra.mxu3 %v18958_v23  ;;  %8617 = vmatpush.msrb.mxu1 %v18956_v54  ;;  %v23084_v54 = vld [vmem:[#allocation11_spill] sm:$0xff] }
 0x4a5   : > { %8795 = vmatpush.msra.mxu0 %v19045_v30  ;;  %8896 = vmatpush.msra.mxu2 %v23081_v59  ;;  %v394_v59 = vld [vmem:[%s13221_s17 + $0x2d8] sm:$0xff] }
 0x4a6   : > { %8841 = vmatpush.msra.mxu1 %v18958_v23  ;;  %8961 = vmatpush.msra.mxu3 %v18969_v20  ;;  %v7549_v30 = vpop.f32.mrf.mxu0 }
 0x4a7   : > { %8664 = vmatmul.f32.vlgmr.msrb.gmra.mxu2 %v23082_v37  ;;  %8798 = vmatpush.msra.mxu0 %v19060_v48  ;;  %v19321_v48 = vand.u32 4294901760, %v522_v0 }
 0x4a8   : > { %8843 = vmatpush.msra.mxu1 %v18969_v20  ;;  %8900 = vmatpush.msra.mxu2 %v23083_v14  ;;  %v554_v20 = vld [vmem:[%s13221_s17 + $0x7d8] sm:$0xff] }
 0x4a9   : > { %8963 = vmatpush.msra.mxu3 %v18988_v55  ;;  %8578 = vmatmul.f32.vlgmr.msrb.gmra.mxu0 %v23069_v17  ;;  %v7658_v23 = vpop.f32.mrf.mxu1 }
 0x4aa   : > { %8773 = vmatmul.f32.vlgmr.msrb.gmra.mxu3 %v23084_v54  ;;  %8801 = vmatpush.msra.mxu0 %v19074_v7  ;;  %v506_v7 = vld [vmem:[%s13221_s17 + $0x658] sm:$0xff] }
 0x4ab   : > { %8845 = vmatpush.msra.mxu1 %v18988_v55  ;;  %8904 = vmatpush.msra.mxu2 %v8702_v52  ;;  %v7716_v55 = vpop.f32.mrf.mxu2 }
 0x4ac   : > { %8965 = vmatpush.msra.mxu3 %v18999_v63  ;;  %8619 = vmatmul.f32.vlgmr.msrb.gmra.mxu1 %v23069_v17  ;;  %v666_v17 = vld [vmem:[%s13221_s17 + $0xb58] sm:$0xff] }
 0x4ad   : > { %8804 = vmatpush.msra.mxu0 %v19087_v28  ;;  %8847 = vmatpush.msra.mxu1 %v18999_v63  ;;  %v538_v63 = vld [vmem:[%s13221_s17 + $0x758] sm:$0xff]  ;;  %v19309_v41 = vpop.f32.mrf.mxu3 }
 0x4ae   : > { %8908 = vmatpush.msra.mxu2 %v8708_v53  ;;  %8967 = vmatpush.msra.mxu3 %v19018_v4  ;;  %v23086_v53 = vld [vmem:[#allocation6_spill] sm:$0xff] }
 0x4af   : > { %8807 = vmatpush.msra.mxu0 %v19100_v49  ;;  %8849 = vmatpush.msra.mxu1 %v19018_v4  ;;  %v19305_v4 = vand.u32 4294901760, %v554_v20 }
 0x4b0   : > { %8912 = vmatpush.msra.mxu2 %v8714_v10  ;;  %8969 = vmatpush.msra.mxu3 %v19031_v3  ;;  %v7557_v52 = vpop.f32.mrf.mxu0 }
 0x4b1   : > { %8810 = vmatpush.msra.mxu0 %v19115_v62  ;;  %8851 = vmatpush.msra.mxu1 %v19031_v3  ;;  %v19315_v3 = vand.u32 4294901760, %v538_v63 }
 0x4b2   : > { %8916 = vmatpush.msra.mxu2 %v8720_v21  ;;  %8971 = vmatpush.msra.mxu3 %v19047_v13  ;;  %v19347_v21 = vsub.f32 %v522_v0, %v19321_v48  ;;  %v378_v0 = vld [vmem:[%s13221_s17 + $0x258] sm:$0xff] }
 0x4b3   : > { %8813 = vmatpush.msra.mxu0 %v19132_v29  ;;  %8853 = vmatpush.msra.mxu1 %v19047_v13  ;;  %v23085_v13 = vld [vmem:[#allocation18_spill] sm:$0xff]  ;;  %v19334_v28 = vsub.f32 %v538_v63, %v19315_v3  ;;  %v7662_v10 = vpop.f32.mrf.mxu1  ;;  %v23087_v29 = vld [vmem:[#allocation12_spill] sm:$0xff] }
 0x4b4   : > { %8920 = vmatpush.msra.mxu2 %v8726_v36  ;;  %8973 = vmatpush.msra.mxu3 %v19062_v40  ;;  %v7721_v62 = vpop.f32.mrf.mxu2  ;;  %v474_v36 = vld [vmem:[%s13221_s17 + $0x558] sm:$0xff]  ;;  %v7663_v46 = vadd.f32 %v7662_v10, %v7557_v52  ;;  %v19431_v10 = vand.u32 4294901760, %v394_v59 }
 0x4b5   : > { %8816 = vmatpush.msra.mxu0 %v19150_v42  ;;  %8855 = vmatpush.msra.mxu1 %v19062_v40  ;;  %v19324_v40 = vsub.f32 %v554_v20, %v19305_v4  ;;  %v458_v42 = vld [vmem:[%s13221_s17 + $0x4d8] sm:$0xff] }
 0x4b6   : > { %8924 = vmatpush.msra.mxu2 %v8732_v15  ;;  %8975 = vmatpush.msra.mxu3 %v19076_v44  ;;  %v22441_v15 = vand.u32 4294901760, %v19334_v28  ;;  %v7722_v52 = vadd.f32 %v7721_v62, %v7663_v46  ;;  %v19442_v62 = vand.u32 4294901760, %v378_v0  ;;  %v23090_v46 = vld [vmem:[#allocation16_spill] sm:$0xff] }
 0x4b7   : > { %8582 = vmatmul.f32.gmra.mxu0 %v23079_v50  ;;  %8857 = vmatpush.msra.mxu1 %v19076_v44  ;;  %v490_v44 = vld [vmem:[%s13221_s17 + $0x5d8] sm:$0xff] }
 0x4b8   : > { %8819 = vmatpush.msra.mxu0 %v19164_v57  ;;  %8928 = vmatpush.msra.mxu2 %v8738_v56  ;;  %v19343_v49 = vand.u32 4294901760, %v490_v44  ;;  %v19359_v56 = vand.u32 4294901760, %v474_v36  ;;  %23089 = vst [vmem:[#allocation19_spill] sm:$0xff] %v19442_v62 }
 0x4b9   : > { %8977 = vmatpush.msra.mxu3 %v19089_v39  ;;  %8859 = vmatpush.msra.mxu1 %v19089_v39  ;;  %v19339_v39 = vand.u32 4294901760, %v506_v7 }
 0x4ba   : > { %8822 = vmatpush.msra.mxu0 %v19175_v38  ;;  %8932 = vmatpush.msra.mxu2 %v8744_v45  ;;  %v19364_v45 = vpop.f32.mrf.mxu3  ;;  %v22440_v38 = vand.u32 4294901760, %v19347_v21  ;;  %v19393_v35 = vsub.f32 %v474_v36, %v19359_v56 }
 0x4bb   : > { %8979 = vmatpush.msra.mxu3 %v19105_v31  ;;  %8672 = vmatmul.f32.gmra.mxu2 %v23085_v13  ;;  %v19362_v57 = vsub.f32 %v506_v7, %v19339_v39 }
 0x4bc   : > { %8825 = vmatpush.msra.mxu0 %v19191_v47  ;;  %8861 = vmatpush.msra.mxu1 %v19105_v31  ;;  %v22442_v31 = vand.u32 4294901760, %v19324_v40 }
 0x4bd   : > { %8936 = vmatpush.msra.mxu2 %v8750_v43  ;;  %8981 = vmatpush.msra.mxu3 %v19126_v24  ;;  %v442_v43 = vld [vmem:[%s13221_s17 + $0x458] sm:$0xff]  ;;  %v22439_v61 = vand.u32 4294901760, %v19362_v57 }
 0x4be   : > { %8777 = vmatmul.f32.gmra.mxu3 %v23086_v53  ;;  %8828 = vmatpush.msra.mxu0 %v19206_v32  ;;  %v9057_v32 = vsub.f32 %v19334_v28, %v22441_v15  ;;  %v19389_v6 = vand.u32 4294901760, %v442_v43  ;;  %v19413_v20 = vpop.f32.mrf.mxu2 }
 0x4bf   : > { %8863 = vmatpush.msra.mxu1 %v19126_v24  ;;  %8940 = vmatpush.msra.mxu2 %v8756_v33  ;;  %v7659_v24 = vadd.f32 %v7658_v23, %v7549_v30  ;;  %v19379_v33 = vand.u32 4294901760, %v458_v42  ;;  %v7876_v30 = vpop.f32.mrf.mxu1  ;;  %v19415_v23 = vand.u32 4294901760, %v410_v18  ;;  %v9069_v63 = vsub.f32 %v19362_v57, %v22439_v61  ;;  %v330_v61 = vld [vmem:[%s13221_s17 + $0xd8] sm:$0xff] }
 0x4c0   : > { %8983 = vmatpush.msra.mxu3 %v19140_v51  ;;  %8623 = vmatmul.f32.gmra.mxu1 %v23079_v50  ;;  %v9058_v14 = vand.u32 4294901760, %v9057_v32  ;;  %v362_v32 = vld [vmem:[%s13221_s17 + $0x1d8] sm:$0xff] }
 0x4c1   : > { %8831 = vmatmul.f32.vlgmr.msra.gmra.mxu0 %v23087_v29  ;;  %8865 = vmatpush.msra.mxu1 %v19140_v51  ;;  %v9051_v51 = vsub.f32 %v19324_v40, %v22442_v31  ;;  %v7717_v47 = vadd.f32 %v7716_v55, %v7659_v24  ;;  %v19408_v25 = vsub.f32 %v458_v42, %v19379_v33  ;;  %v23088_v55 = vld [vmem:[#allocation14_spill] sm:$0xff]  ;;  %v778_v29 = vld [vmem:[%s13221_s17 + $0xed8] sm:$0xff] }
 0x4c2   : > { %9000 = vmatpush.msrb.mxu0 %v19305_v4  ;;  %8944 = vmatpush.msra.mxu2 %v8762_v34  ;;  %v7835_v34 = vpop.f32.mrf.mxu0  ;;  %v19435_v24 = vpop.f32.mrf.mxu3  ;;  %v746_v50 = vld [vmem:[%s13221_s17 + $0xdd8] sm:$0xff] }
 0x4c3   : > { %8985 = vmatpush.msra.mxu3 %v19152_v12  ;;  %8867 = vmatpush.msra.mxu1 %v19152_v12  ;;  %v19374_v12 = vsub.f32 %v490_v44, %v19343_v49  ;;  %v9052_v16 = vand.u32 4294901760, %v9051_v51  ;;  %v7761_v5 = vadd.f32 %v19309_v41, %v7717_v47  ;;  %v22436_v41 = vand.u32 4294901760, %v19393_v35 }
 0x4c4   : > { %9002 = vmatpush.msrb.mxu0 %v19315_v3  ;;  %8948 = vmatpush.msra.mxu2 %v8768_v2  ;;  %v426_v2 = vld [vmem:[%s13221_s17 + $0x3d8] sm:$0xff]  ;;  %v22438_v42 = vand.u32 4294901760, %v19408_v25 }
 0x4c5   : > { %8987 = vmatpush.msra.mxu3 %v19169_v60  ;;  %8950 = vmatmul.f32.vlgmr.msra.gmra.mxu2 %v23084_v54  ;;  %v22437_v1 = vand.u32 4294901760, %v19374_v12  ;;  %v19405_v27 = vand.u32 4294901760, %v426_v2  ;;  %v7836_v36 = vadd.f32 %v7835_v34, %v7761_v5  ;;  %v9070_v34 = vand.u32 4294901760, %v9069_v63 }
 0x4c6   : > { %9004 = vmatpush.msrb.mxu0 %v19321_v48  ;;  %9155 = vmatpush.msrb.mxu2 %v19324_v40  ;;  %v7767_v5 = vadd.f32 %v19364_v45, %v7722_v52  ;;  %v810_v52 = vld [vmem:[%s13221_s17 + $0xfd8] sm:$0xff] }
 0x4c7   : > { %8869 = vmatpush.msra.mxu1 %v19169_v60  ;;  %8989 = vmatpush.msra.mxu3 %v19185_v26  ;;  %v9063_v60 = vsub.f32 %v19347_v21, %v22440_v38  ;;  %v9075_v44 = vsub.f32 %v19374_v12, %v22437_v1  ;;  %v19439_v51 = vsub.f32 %v426_v2, %v19405_v27  ;;  %v19465_v1 = vand.u32 4294901760, %v362_v32  ;;  %v23092_v38 = vld [vmem:[#allocation17_spill] sm:$0xff] }
 0x4c8   : > { %8991 = vmatmul.f32.vlgmr.msra.gmra.mxu3 %v23084_v54  ;;  %9006 = vmatpush.msrb.mxu0 %v19339_v39  ;;  %v9081_v2 = vsub.f32 %v19393_v35, %v22436_v41  ;;  %v7877_v63 = vadd.f32 %v7876_v30, %v7836_v36  ;;  %v9087_v41 = vsub.f32 %v19408_v25, %v22438_v42  ;;  %v19511_v31 = vand.u32 4294901760, %v810_v52 }
 0x4c9   : > { %9158 = vmatpush.msrb.mxu2 %v19334_v28  ;;  %9213 = vmatpush.msrb.mxu3 %v19305_v4  ;;  %v9064_v7 = vand.u32 4294901760, %v9063_v60  ;;  %v346_v60 = vld [vmem:[%s13221_s17 + $0x158] sm:$0xff]  ;;  %23091 = vst [vmem:[#allocation21_spill] sm:$0xff] %v19465_v1  ;;  %v22444_v45 = vand.u32 4294901760, %v19439_v51  ;;  %v19474_v30 = vsub.f32 %v378_v0, %v19442_v62 }
 0x4ca   : > { %8871 = vmatpush.msra.mxu1 %v19185_v26  ;;  %9008 = vmatpush.msrb.mxu0 %v19343_v49  ;;  %v19424_v26 = vsub.f32 %v442_v43, %v19389_v6  ;;  %v19445_v43 = vsub.f32 %v410_v18, %v19415_v23  ;;  %v7839_v47 = vpop.f32.mrf.mxu0  ;;  %v9076_v18 = vand.u32 4294901760, %v9075_v44  ;;  %v9082_v36 = vand.u32 4294901760, %v9081_v2  ;;  %v314_v0 = vld [vmem:[%s13221_s17 + $0x58] sm:$0xff] }
 0x4cb   : > { %8875 = vmatmul.f32.vlgmr.msra.gmra.mxu1 %v23088_v55  ;;  %9161 = vmatpush.msrb.mxu2 %v19347_v21  ;;  %v7840_v15 = vadd.f32 %v7839_v47, %v7767_v5  ;;  %v9088_v2 = vand.u32 4294901760, %v9087_v41 }
 0x4cc   : > { %9053 = vmatpush.msrb.mxu1 %v9052_v16  ;;  %9215 = vmatpush.msrb.mxu3 %v19315_v3  ;;  %v22443_v16 = vand.u32 4294901760, %v19424_v26  ;;  %v23093_v47 = vand.u32 4294901760, %v19445_v43 }
 0x4cd   : > { %9010 = vmatpush.msrb.mxu0 %v19359_v56  ;;  %9164 = vmatpush.msrb.mxu2 %v19362_v57 }
 0x4ce   : > { %9059 = vmatpush.msrb.mxu1 %v9058_v14  ;;  %9217 = vmatpush.msrb.mxu3 %v19321_v48  ;;  %v19458_v14 = vsub.f32 %v394_v59, %v19431_v10  ;;  %v19470_v59 = vand.u32 4294901760, %v346_v60  ;;  %v9093_v42 = vsub.f32 %v19424_v26, %v22443_v16  ;;  %v9099_v16 = vsub.f32 %v19439_v51, %v22444_v45 }
 0x4cf   : > { %8836 = vmatmul.f32.gmra.mxu0 %v23090_v46  ;;  %8954 = vmatmul.f32.gmra.mxu2 %v23086_v53  ;;  %v19492_v46 = vsub.f32 %v362_v32, %v19465_v1  ;;  %v9105_v5 = vsub.f32 %v19445_v43, %v23093_v47  ;;  %v794_v32 = vld [vmem:[%s13221_s17 + $0xf58] sm:$0xff]  ;;  %v19509_v45 = vand.u32 4294901760, %v314_v0 }
 0x4d0   : > { %9012 = vmatpush.msrb.mxu0 %v19379_v33  ;;  %9065 = vmatpush.msrb.mxu1 %v9064_v7  ;;  %v23094_v47 = vand.u32 4294901760, %v19458_v14  ;;  %v19522_v13 = vand.u32 4294901760, %v794_v32 }
 0x4d1   : > { %9167 = vmatpush.msrb.mxu2 %v19374_v12  ;;  %9219 = vmatpush.msrb.mxu3 %v19339_v39  ;;  %v7880_v7 = vpop.f32.mrf.mxu1  ;;  %v9106_v54 = vand.u32 4294901760, %v9105_v5  ;;  %v19539_v5 = vsub.f32 %v810_v52, %v19511_v31 }
 0x4d2   : > { %8995 = vmatmul.f32.gmra.mxu3 %v23086_v53  ;;  %9014 = vmatpush.msrb.mxu0 %v19389_v6  ;;  %v7929_v44 = vpop.f32.mrf.mxu2  ;;  %v9111_v41 = vsub.f32 %v19458_v14, %v23094_v47  ;;  %v8088_v55 = vpop.f32.mrf.mxu0  ;;  %v23095_v47 = vand.u32 4294901760, %v19474_v30  ;;  %v19550_v52 = vsub.f32 %v794_v32, %v19522_v13  ;;  %v714_v32 = vld [vmem:[%s13221_s17 + $0xcd8] sm:$0xff] }
 0x4d3   : > { %9071 = vmatpush.msrb.mxu1 %v9070_v34  ;;  %9170 = vmatpush.msrb.mxu2 %v19393_v35  ;;  %v7922_v34 = vadd.f32 %v19413_v20, %v7877_v63  ;;  %v19501_v20 = vand.u32 4294901760, %v330_v61  ;;  %v9094_v63 = vand.u32 4294901760, %v9093_v42  ;;  %v9100_v42 = vand.u32 4294901760, %v9099_v16  ;;  %23096 = vst [vmem:[#allocation20_spill] sm:$0xff] %v19539_v5 }
 0x4d4   : > { %9221 = vmatpush.msrb.mxu3 %v19343_v49  ;;  %8881 = vmatmul.f32.gmra.mxu1 %v23092_v38  ;;  %23098 = vst [vmem:[#allocation22_spill] sm:$0xff] %v19550_v52 }
 0x4d5   : > { %9016 = vmatpush.msrb.mxu0 %v19405_v27  ;;  %9077 = vmatpush.msrb.mxu1 %v9076_v18  ;;  %v19494_v38 = vpop.f32.mrf.mxu3  ;;  %v19505_v18 = vsub.f32 %v346_v60, %v19470_v59  ;;  %v7881_v60 = vadd.f32 %v7880_v7, %v7840_v15  ;;  %v8031_v53 = vadd.f32 %v19435_v24, %v7922_v34  ;;  %v762_v34 = vld [vmem:[%s13221_s17 + $0xe58] sm:$0xff] }
 0x4d6   : > { %9173 = vmatpush.msrb.mxu2 %v19408_v25  ;;  %9223 = vmatpush.msrb.mxu3 %v19359_v56  ;;  %v9117_v15 = vsub.f32 %v19474_v30, %v23095_v47  ;;  %v19530_v7 = vsub.f32 %v330_v61, %v19501_v20  ;;  %v9112_v61 = vand.u32 4294901760, %v9111_v41 }
 0x4d7   : > { %9018 = vmatpush.msrb.mxu0 %v19415_v23  ;;  %9083 = vmatpush.msrb.mxu1 %v9082_v36  ;;  %v8089_v16 = vadd.f32 %v8088_v55, %v8031_v53  ;;  %v19541_v36 = vand.u32 4294901760, %v778_v29  ;;  %v7930_v47 = vadd.f32 %v7929_v44, %v7881_v60  ;;  %v23097_v53 = vand.u32 4294901760, %v19492_v46 }
 0x4d8   : > { %9176 = vmatpush.msrb.mxu2 %v19424_v26  ;;  %9225 = vmatpush.msrb.mxu3 %v19379_v33  ;;  %v9118_v44 = vand.u32 4294901760, %v9117_v15  ;;  %v23099_v41 = vand.u32 4294901760, %v19505_v18  ;;  %v730_v15 = vld [vmem:[%s13221_s17 + $0xd58] sm:$0xff] }
 0x4d9   : > { %9020 = vmatpush.msrb.mxu0 %v19431_v10  ;;  %9089 = vmatpush.msrb.mxu1 %v9088_v2  ;;  %v19536_v2 = vsub.f32 %v314_v0, %v19509_v45  ;;  %v9123_v55 = vsub.f32 %v19492_v46, %v23097_v53 }
 0x4da   : > { %9179 = vmatpush.msrb.mxu2 %v19439_v51  ;;  %9227 = vmatpush.msrb.mxu3 %v19389_v6  ;;  %v9129_v60 = vsub.f32 %v19505_v18, %v23099_v41  ;;  %v8035_v41 = vadd.f32 %v19494_v38, %v7930_v47  ;;  %v23100_v47 = vand.u32 4294901760, %v19530_v7 }
 0x4db   : > { %9022 = vmatpush.msrb.mxu0 %v19442_v62  ;;  %9095 = vmatpush.msrb.mxu1 %v9094_v63  ;;  %v19552_v63 = vand.u32 4294901760, %v762_v34 }
 0x4dc   : > { %9182 = vmatpush.msrb.mxu2 %v19445_v43  ;;  %9229 = vmatpush.msrb.mxu3 %v19405_v27  ;;  %v8132_v24 = vpop.f32.mrf.mxu1  ;;  %v8207_v37 = vpop.f32.mrf.mxu2  ;;  %v9130_v38 = vand.u32 4294901760, %v9129_v60  ;;  %v9135_v11 = vsub.f32 %v19530_v7, %v23100_v47 }
 0x4dd   : > { %9024 = vmatpush.msrb.mxu0 %v19465_v1  ;;  %9101 = vmatpush.msrb.mxu1 %v9100_v42  ;;  %v8133_v0 = vadd.f32 %v8132_v24, %v8089_v16  ;;  %v19565_v16 = vsub.f32 %v778_v29, %v19541_v36  ;;  %v19571_v42 = vand.u32 4294901760, %v746_v50  ;;  %v19576_v29 = vsub.f32 %v762_v34, %v19552_v63  ;;  %v698_v24 = vld [vmem:[%s13221_s17 + $0xc58] sm:$0xff] }
 0x4de   : > { %9185 = vmatpush.msrb.mxu2 %v19458_v14  ;;  %9231 = vmatpush.msrb.mxu3 %v19415_v23  ;;  %v23101_v34 = vand.u32 4294901760, %v19539_v5 }
 0x4df   : > { %9026 = vmatpush.msrb.mxu0 %v19470_v59  ;;  %9107 = vmatpush.msrb.mxu1 %v9106_v54  ;;  %v8208_v53 = vadd.f32 %v8207_v37, %v8133_v0  ;;  %v8248_v8 = vpop.f32.mrf.mxu3  ;;  %v9124_v54 = vand.u32 4294901760, %v9123_v55  ;;  %v23102_v55 = vand.u32 4294901760, %v19536_v2  ;;  %v19598_v58 = vsub.f32 %v746_v50, %v19571_v42 }
 0x4e0   : > { %9188 = vmatpush.msrb.mxu2 %v19474_v30  ;;  %9233 = vmatpush.msrb.mxu3 %v19431_v10  ;;  %v8093_v37 = vpop.f32.mrf.mxu0  ;;  %v9136_v50 = vand.u32 4294901760, %v9135_v11  ;;  %v23106_v60 = vand.u32 4294901760, %v19565_v16 }
 0x4e1   : > { %9028 = vmatpush.msrb.mxu0 %v19501_v20  ;;  %9113 = vmatpush.msrb.mxu1 %v9112_v61  ;;  %v8249_v0 = vadd.f32 %v8248_v8, %v8208_v53  ;;  %v19584_v61 = vand.u32 4294901760, %v730_v15  ;;  %v9423_v8 = vsub.f32 %v19539_v5, %v23101_v34  ;;  %v9141_v53 = vsub.f32 %v19536_v2, %v23102_v55 }
 0x4e2   : > { %9191 = vmatpush.msrb.mxu2 %v19492_v46  ;;  %9235 = vmatpush.msrb.mxu3 %v19442_v62  ;;  %v8094_v47 = vadd.f32 %v8093_v37, %v8035_v41  ;;  %v23103_v62 = vand.u32 4294901760, %v19324_v40  ;;  %v23104_v34 = vand.u32 4294901760, %v19550_v52  ;;  %v23105_v37 = vand.u32 4294901760, %v19334_v28 }
 0x4e3   : > { %9030 = vmatpush.msrb.mxu0 %v19509_v45  ;;  %9119 = vmatpush.msrb.mxu1 %v9118_v44  ;;  %v19600_v44 = vand.u32 4294901760, %v714_v32  ;;  %12760 = vst [vmem:[%s14629_s29 + $0x48] sm:$0xff] %v8249_v0  ;;  %v19613_v41 = vsub.f32 %v730_v15, %v19584_v61  ;;  %v9142_v0 = vand.u32 4294901760, %v9141_v53  ;;  %v9446_v11 = vand.u32 4294901760, %v19598_v58 }
 0x4e4   : > { %9194 = vmatpush.msrb.mxu2 %v19505_v18  ;;  %9237 = vmatpush.msrb.mxu3 %v19465_v1  ;;  %v9429_v55 = vsub.f32 %v19550_v52, %v23104_v34  ;;  %v682_v1 = vld [vmem:[%s13221_s17 + $0xbd8] sm:$0xff]  ;;  %v9424_v34 = vand.u32 4294901760, %v9423_v8  ;;  %v9435_v52 = vsub.f32 %v19565_v16, %v23106_v60  ;;  %v23108_v53 = vand.u32 4294901760, %v19576_v29 }
 0x4e5   : > { %9260 = vmatpush.msra.mxu0 %v23103_v62  ;;  %9125 = vmatpush.msrb.mxu1 %v9124_v54  ;;  %v8138_v5 = vpop.f32.mrf.mxu1  ;;  %v19615_v62 = vand.u32 4294901760, %v698_v24  ;;  %v19629_v15 = vand.u32 4294901760, %v682_v1 }
 0x4e6   : > { %9197 = vmatpush.msrb.mxu2 %v19530_v7  ;;  %9239 = vmatpush.msrb.mxu3 %v19470_v59  ;;  %v8139_v40 = vadd.f32 %v8138_v5, %v8094_v47  ;;  %v8211_v54 = vpop.f32.mrf.mxu2  ;;  %v19627_v5 = vsub.f32 %v714_v32, %v19600_v44  ;;  %v9430_v8 = vand.u32 4294901760, %v9429_v55  ;;  %v9441_v60 = vsub.f32 %v19576_v29, %v23108_v53 }
 0x4e7   : > { %9264 = vmatpush.msra.mxu0 %v23105_v37  ;;  %9131 = vmatpush.msrb.mxu1 %v9130_v38  ;;  %v23107_v38 = vand.u32 4294901760, %v19347_v21  ;;  %v9452_v32 = vand.u32 4294901760, %v19613_v41  ;;  %v19642_v21 = vand.u32 4294901760, %v666_v17  ;;  %v650_v37 = vld [vmem:[%s13221_s17 + $0xad8] sm:$0xff]  ;;  %v23109_v55 = vand.u32 4294901760, %v19362_v57 }
 0x4e8   : > { %9200 = vmatpush.msrb.mxu2 %v19536_v2  ;;  %9241 = vmatpush.msrb.mxu3 %v19501_v20  ;;  %v8212_v28 = vadd.f32 %v8211_v54, %v8139_v40  ;;  %v19640_v40 = vsub.f32 %v698_v24, %v19615_v62  ;;  %v9458_v24 = vand.u32 4294901760, %v19627_v5  ;;  %v23110_v53 = vand.u32 4294901760, %v19374_v12 }
 0x4e9   : > { %9268 = vmatpush.msra.mxu0 %v23107_v38  ;;  %v8252_v47 = vpop.f32.mrf.mxu3  ;;  %9137 = vmatpush.msrb.mxu1 %v9136_v50  ;;  %v9436_v38 = vand.u32 4294901760, %v9435_v52  ;;  %v9447_v50 = vsub.f32 %v19598_v58, %v9446_v11  ;;  %v19658_v57 = vand.u32 4294901760, %v650_v37  ;;  %v634_v52 = vld [vmem:[%s13221_s17 + $0xa58] sm:$0xff]  ;;  %v19668_v12 = vsub.f32 %v666_v17, %v19642_v21 }
 0x4ea   : > { %9372 = vmatpush.msra.mxu2 %v19511_v31  ;;  %9243 = vmatpush.msrb.mxu3 %v19509_v45  ;;  %v8253_v54 = vadd.f32 %v8252_v47, %v8212_v28  ;;  %v19653_v28 = vsub.f32 %v682_v1, %v19629_v15  ;;  %v9464_v1 = vand.u32 4294901760, %v19640_v40  ;;  %v618_v47 = vld [vmem:[%s13221_s17 + $0x9d8] sm:$0xff]  ;;  %v23112_v17 = vand.u32 4294901760, %v19408_v25 }
 0x4eb   : > { %9272 = vmatpush.msra.mxu0 %v23109_v55  ;;  %9143 = vmatpush.msrb.mxu1 %v9142_v0  ;;  %v9453_v0 = vsub.f32 %v19613_v41, %v9452_v32  ;;  %v23113_v25 = vand.u32 4294901760, %v19424_v26  ;;  %v23114_v26 = vand.u32 4294901760, %v19439_v51 }
 0x4ec   : > { %9374 = vmatpush.msra.mxu2 %v19522_v13  ;;  %9425 = vmatpush.msra.mxu3 %v9424_v34  ;;  %v9442_v34 = vand.u32 4294901760, %v9441_v60  ;;  %12776 = vst [vmem:[%s14629_s29 + $0xc8] sm:$0xff] %v8253_v54  ;;  %v9459_v60 = vsub.f32 %v19627_v5, %v9458_v24  ;;  %v9470_v55 = vand.u32 4294901760, %v19653_v28  ;;  %v19679_v54 = vand.u32 4294901760, %v634_v52 }
 0x4ed   : > { %9276 = vmatpush.msra.mxu0 %v23110_v53  ;;  %9331 = vmatpush.msra.mxu1 %v19305_v4  ;;  %v23111_v4 = vand.u32 4294901760, %v19393_v35  ;;  %v602_v35 = vld [vmem:[%s13221_s17 + $0x958] sm:$0xff]  ;;  %v9476_v53 = vand.u32 4294901760, %v19668_v12 }
 0x4ee   : > { %9376 = vmatpush.msra.mxu2 %v19541_v36  ;;  %9431 = vmatpush.msra.mxu3 %v9430_v8  ;;  %v9448_v8 = vand.u32 4294901760, %v9447_v50  ;;  %v9465_v50 = vsub.f32 %v19640_v40, %v9464_v1 }
 0x4ef   : > { %9280 = vmatpush.msra.mxu0 %v23111_v4  ;;  %9333 = vmatpush.msra.mxu1 %v19315_v3  ;;  %v19685_v3 = vsub.f32 %v650_v37, %v19658_v57  ;;  %v19693_v4 = vand.u32 4294901760, %v618_v47  ;;  %v9471_v37 = vsub.f32 %v19653_v28, %v9470_v55 }
 0x4f0   : > { %9378 = vmatpush.msra.mxu2 %v19552_v63  ;;  %9437 = vmatpush.msra.mxu3 %v9436_v38  ;;  %v9454_v38 = vand.u32 4294901760, %v9453_v0  ;;  %v19705_v0 = vand.u32 4294901760, %v602_v35 }
 0x4f1   : > { %9284 = vmatpush.msra.mxu0 %v23112_v17  ;;  %9335 = vmatpush.msra.mxu1 %v19321_v48  ;;  %v9460_v48 = vand.u32 4294901760, %v9459_v60  ;;  %v586_v17 = vld [vmem:[%s13221_s17 + $0x8d8] sm:$0xff]  ;;  %v9477_v60 = vsub.f32 %v19668_v12, %v9476_v53 }
 0x4f2   : > { %9380 = vmatpush.msra.mxu2 %v19571_v42  ;;  %9443 = vmatpush.msra.mxu3 %v9442_v34  ;;  %v19703_v34 = vsub.f32 %v634_v52, %v19679_v54  ;;  %v19717_v52 = vsub.f32 %v618_v47, %v19693_v4  ;;  %v19722_v51 = vand.u32 4294901760, %v586_v17  ;;  %v23116_v47 = vand.u32 4294901760, %v19458_v14 }
 0x4f3   : > { %9288 = vmatpush.msra.mxu0 %v23113_v25  ;;  %9337 = vmatpush.msra.mxu1 %v19339_v39  ;;  %v9482_v39 = vand.u32 4294901760, %v19685_v3  ;;  %v23115_v25 = vand.u32 4294901760, %v19445_v43  ;;  %v9478_v43 = vand.u32 4294901760, %v9477_v60  ;;  %v23118_v60 = vand.u32 4294901760, %v19492_v46 }
 0x4f4   : > { %9382 = vmatpush.msra.mxu2 %v19584_v61  ;;  %9449 = vmatpush.msra.mxu3 %v9448_v8  ;;  %v9466_v8 = vand.u32 4294901760, %v9465_v50  ;;  %v9488_v50 = vand.u32 4294901760, %v19703_v34  ;;  %v19744_v14 = vsub.f32 %v586_v17, %v19722_v51 }
 0x4f5   : > { %9292 = vmatpush.msra.mxu0 %v23114_v26  ;;  %9339 = vmatpush.msra.mxu1 %v19343_v49  ;;  %v570_v49 = vld [vmem:[%s13221_s17 + $0x858] sm:$0xff]  ;;  %v19728_v26 = vsub.f32 %v602_v35, %v19705_v0  ;;  %v23117_v35 = vand.u32 4294901760, %v19474_v30 }
 0x4f6   : > { %9384 = vmatpush.msra.mxu2 %v19600_v44  ;;  %9455 = vmatpush.msra.mxu3 %v9454_v38  ;;  %v9472_v38 = vand.u32 4294901760, %v9471_v37  ;;  %v19738_v37 = vand.u32 4294901760, %v570_v49  ;;  %v9506_v46 = vand.u32 4294901760, %v19744_v14 }
 0x4f7   : > { %9296 = vmatpush.msra.mxu0 %v23115_v25  ;;  %9341 = vmatpush.msra.mxu1 %v19359_v56  ;;  %v9483_v56 = vsub.f32 %v19685_v3, %v9482_v39  ;;  %v23119_v25 = vand.u32 4294901760, %v19505_v18 }
 0x4f8   : > { %9386 = vmatpush.msra.mxu2 %v19615_v62  ;;  %9461 = vmatpush.msra.mxu3 %v9460_v48  ;;  %v9494_v48 = vand.u32 4294901760, %v19717_v52  ;;  %v19759_v17 = vsub.f32 %v570_v49, %v19738_v37  ;;  %v23120_v49 = vand.u32 4294901760, %v19530_v7  ;;  %v23123_v7 = vld [vmem:[#allocation19_spill] sm:$0xff] }
 0x4f9   : > { %9300 = vmatpush.msra.mxu0 %v23116_v47  ;;  %9343 = vmatpush.msra.mxu1 %v19379_v33  ;;  %v9489_v33 = vsub.f32 %v19703_v34, %v9488_v50  ;;  %v9484_v30 = vand.u32 4294901760, %v9483_v56  ;;  %v23121_v56 = vld [vmem:[#allocation7_spill] sm:$0xff] }
 0x4fa   : > { %9388 = vmatpush.msra.mxu2 %v19629_v15  ;;  %9467 = vmatpush.msra.mxu3 %v9466_v8  ;;  %v9500_v8 = vand.u32 4294901760, %v19728_v26  ;;  %v9512_v47 = vand.u32 4294901760, %v19759_v17 }
 0x4fb   : > { %9304 = vmatpush.msra.mxu0 %v23117_v35  ;;  %9345 = vmatpush.msra.mxu1 %v19389_v6  ;;  %v9495_v6 = vsub.f32 %v19717_v52, %v9494_v48  ;;  %v23122_v35 = vand.u32 4294901760, %v19536_v2  ;;  %v23127_v2 = vld [vmem:[#allocation22_spill] sm:$0xff] }
 0x4fc   : > { %9390 = vmatpush.msra.mxu2 %v19642_v21  ;;  %9473 = vmatpush.msra.mxu3 %v9472_v38  ;;  %v9501_v38 = vsub.f32 %v19728_v26, %v9500_v8 }
 0x4fd   : > { %9308 = vmatpush.msra.mxu0 %v23118_v60  ;;  %9347 = vmatpush.msra.mxu1 %v19405_v27  ;;  %v9490_v27 = vand.u32 4294901760, %v9489_v33  ;;  %v9496_v18 = vand.u32 4294901760, %v9495_v6  ;;  %v23124_v33 = vld [vmem:[#allocation20_spill] sm:$0xff]  ;;  %v23125_v60 = vld [vmem:[#allocation21_spill] sm:$0xff] }
 0x4fe   : > { %9392 = vmatpush.msra.mxu2 %v19658_v57  ;;  %9479 = vmatpush.msra.mxu3 %v9478_v43  ;;  %v9502_v43 = vand.u32 4294901760, %v9501_v38  ;;  %v23126_v6 = vld [vmem:[#allocation9_spill] sm:$0xff]  ;;  %v23129_v38 = vld [vmem:[#allocation10_spill] sm:$0xff] }
 0x4ff   : > { %9203 = vmatmul.f32.vlgmr.msrb.gmra.mxu2 %v13564_v19  ;;  %9312 = vmatpush.msra.mxu0 %v23119_v25 }
 0x500   : > { %9349 = vmatpush.msra.mxu1 %v19415_v23  ;;  %9394 = vmatpush.msra.mxu2 %v19679_v54  ;;  %v9507_v23 = vsub.f32 %v19744_v14, %v9506_v46 }
 0x501   : > { %9485 = vmatpush.msra.mxu3 %v9484_v30  ;;  %9036 = vmatmul.f32.vlgmr.msrb.gmra.mxu0 %v13645_v22 }
 0x502   : > { %9247 = vmatmul.f32.vlgmr.msrb.gmra.mxu3 %v13594_v9  ;;  %9316 = vmatpush.msra.mxu0 %v23120_v49  ;;  %v9508_v30 = vand.u32 4294901760, %v9507_v23  ;;  %v23130_v49 = vand.u32 4294901760, %v23124_v33  ;;  %v23133_v23 = vand.u32 4294901760, %v19565_v16 }
 0x503   : > { %9351 = vmatpush.msra.mxu1 %v19431_v10  ;;  %9396 = vmatpush.msra.mxu2 %v19693_v4  ;;  %v9513_v10 = vsub.f32 %v19759_v17, %v9512_v47 }
 0x504   : > { %9491 = vmatpush.msra.mxu3 %v9490_v27  ;;  %9145 = vmatmul.f32.vlgmr.msrb.gmra.mxu1 %v23121_v56  ;;  %v23128_v27 = vld [vmem:[#allocation13_spill] sm:$0xff] }
 0x505   : > { %9320 = vmatpush.msra.mxu0 %v23122_v35  ;;  %9353 = vmatpush.msra.mxu1 %v23123_v7  ;;  %v9514_v25 = vand.u32 4294901760, %v9513_v10 }
 0x506   : > { %9398 = vmatpush.msra.mxu2 %v19705_v0  ;;  %9497 = vmatpush.msra.mxu3 %v9496_v18  ;;  %v23131_v18 = vld [vmem:[#allocation8_spill] sm:$0xff] }
 0x507   : > { %9527 = vmatpush.msrb.mxu0 %v23124_v33  ;;  %9355 = vmatpush.msra.mxu1 %v23125_v60  ;;  %v411_v33 = vld [vmem:[%s13221_s17 + $0x360] sm:$0xff] }
 0x508   : > { %9400 = vmatpush.msra.mxu2 %v19722_v51  ;;  %9503 = vmatpush.msra.mxu3 %v9502_v43  ;;  %v23135_v43 = vand.u32 4294901760, %v19576_v29 }
 0x509   : > { %9208 = vmatmul.f32.gmra.mxu2 %v23126_v6  ;;  %9530 = vmatpush.msrb.mxu0 %v23127_v2 }
 0x50a   : > { %9357 = vmatpush.msra.mxu1 %v19470_v59  ;;  %9402 = vmatpush.msra.mxu2 %v19738_v37  ;;  %v23132_v59 = vand.u32 4294901760, %v23127_v2 }
 0x50b   : > { %9509 = vmatpush.msra.mxu3 %v9508_v30  ;;  %9044 = vmatmul.f32.gmra.mxu0 %v23128_v27 }
 0x50c   : > { %9253 = vmatmul.f32.gmra.mxu3 %v23129_v38  ;;  %9533 = vmatpush.msrb.mxu0 %v19565_v16 }
 0x50d   : > { %9632 = vmatpush.msrb.mxu2 %v23130_v49  ;;  %9359 = vmatpush.msra.mxu1 %v19501_v20  ;;  %v23134_v20 = vld [vmem:[#allocation15_spill] sm:$0xff] }
 0x50e   : > { %9515 = vmatpush.msra.mxu3 %v9514_v25  ;;  %9149 = vmatmul.f32.gmra.mxu1 %v23131_v18 }
 0x50f   : > { %9536 = vmatpush.msrb.mxu0 %v19576_v29  ;;  %9636 = vmatpush.msrb.mxu2 %v23132_v59  ;;  %v523_v29 = vld [vmem:[%s13221_s17 + $0x6e0] sm:$0xff] }
 0x510   : > { %9703 = vmatpush.msrb.mxu3 %v19511_v31  ;;  %9361 = vmatpush.msra.mxu1 %v19509_v45  ;;  %v23136_v45 = vld [vmem:[#allocation11_spill] sm:$0xff] }
 0x511   : > { %9539 = vmatpush.msrb.mxu0 %v19598_v58  ;;  %9640 = vmatpush.msrb.mxu2 %v23133_v23  ;;  %v395_v23 = vld [vmem:[%s13221_s17 + $0x2e0] sm:$0xff] }
 0x512   : > { %9585 = vmatpush.msrb.mxu1 %v19511_v31  ;;  %9705 = vmatpush.msrb.mxu3 %v19522_v13  ;;  %v8293_v58 = vpop.f32.mrf.mxu0 }
 0x513   : > { %9408 = vmatmul.f32.vlgmr.msra.gmra.mxu2 %v23134_v20  ;;  %9542 = vmatpush.msrb.mxu0 %v19613_v41  ;;  %v19874_v41 = vand.u32 4294901760, %v523_v29 }
 0x514   : > { %9587 = vmatpush.msrb.mxu1 %v19522_v13  ;;  %9644 = vmatpush.msrb.mxu2 %v23135_v43  ;;  %v555_v13 = vld [vmem:[%s13221_s17 + $0x7e0] sm:$0xff] }
 0x515   : > { %9707 = vmatpush.msrb.mxu3 %v19541_v36  ;;  %9322 = vmatmul.f32.vlgmr.msra.gmra.mxu0 %v23121_v56  ;;  %v8402_v31 = vpop.f32.mrf.mxu1 }
 0x516   : > { %9517 = vmatmul.f32.vlgmr.msra.gmra.mxu3 %v23136_v45  ;;  %9545 = vmatpush.msrb.mxu0 %v19627_v5  ;;  %v507_v5 = vld [vmem:[%s13221_s17 + $0x660] sm:$0xff] }
 0x517   : > { %9589 = vmatpush.msrb.mxu1 %v19541_v36  ;;  %9648 = vmatpush.msrb.mxu2 %v9446_v11  ;;  %v8460_v36 = vpop.f32.mrf.mxu2 }
 0x518   : > { %9709 = vmatpush.msrb.mxu3 %v19552_v63  ;;  %9363 = vmatmul.f32.vlgmr.msra.gmra.mxu1 %v23121_v56  ;;  %v667_v56 = vld [vmem:[%s13221_s17 + $0xb60] sm:$0xff] }
 0x519   : > { %9548 = vmatpush.msrb.mxu0 %v19640_v40  ;;  %9591 = vmatpush.msrb.mxu1 %v19552_v63  ;;  %v539_v63 = vld [vmem:[%s13221_s17 + $0x760] sm:$0xff]  ;;  %v19862_v16 = vpop.f32.mrf.mxu3 }
 0x51a   : > { %9652 = vmatpush.msrb.mxu2 %v9452_v32  ;;  %9711 = vmatpush.msrb.mxu3 %v19571_v42  ;;  %v23138_v32 = vld [vmem:[#allocation6_spill] sm:$0xff] }
 0x51b   : > { %9551 = vmatpush.msrb.mxu0 %v19653_v28  ;;  %9593 = vmatpush.msrb.mxu1 %v19571_v42  ;;  %v19858_v42 = vand.u32 4294901760, %v555_v13 }
 0x51c   : > { %9656 = vmatpush.msrb.mxu2 %v9458_v24  ;;  %9713 = vmatpush.msrb.mxu3 %v19584_v61  ;;  %v8301_v11 = vpop.f32.mrf.mxu0 }
 0x51d   : > { %9554 = vmatpush.msrb.mxu0 %v19668_v12  ;;  %9595 = vmatpush.msrb.mxu1 %v19584_v61  ;;  %v19868_v61 = vand.u32 4294901760, %v539_v63 }
 0x51e   : > { %9660 = vmatpush.msrb.mxu2 %v9464_v1  ;;  %9715 = vmatpush.msrb.mxu3 %v19600_v44  ;;  %v19900_v1 = vsub.f32 %v523_v29, %v19874_v41  ;;  %v379_v29 = vld [vmem:[%s13221_s17 + $0x260] sm:$0xff] }
 0x51f   : > { %9557 = vmatpush.msrb.mxu0 %v19685_v3  ;;  %9597 = vmatpush.msrb.mxu1 %v19600_v44  ;;  %v23137_v44 = vld [vmem:[#allocation18_spill] sm:$0xff]  ;;  %v19887_v40 = vsub.f32 %v539_v63, %v19868_v61  ;;  %v8406_v24 = vpop.f32.mrf.mxu1  ;;  %v23139_v3 = vld [vmem:[#allocation12_spill] sm:$0xff] }
 0x520   : > { %9664 = vmatpush.msrb.mxu2 %v9470_v55  ;;  %9717 = vmatpush.msrb.mxu3 %v19615_v62  ;;  %v8465_v12 = vpop.f32.mrf.mxu2  ;;  %v475_v55 = vld [vmem:[%s13221_s17 + $0x560] sm:$0xff]  ;;  %v8407_v60 = vadd.f32 %v8406_v24, %v8301_v11  ;;  %v19984_v24 = vand.u32 4294901760, %v395_v23 }
 0x521   : > { %9560 = vmatpush.msrb.mxu0 %v19703_v34  ;;  %9599 = vmatpush.msrb.mxu1 %v19615_v62  ;;  %v19877_v62 = vsub.f32 %v555_v13, %v19858_v42  ;;  %v459_v34 = vld [vmem:[%s13221_s17 + $0x4e0] sm:$0xff] }
 0x522   : > { %9668 = vmatpush.msrb.mxu2 %v9476_v53  ;;  %9719 = vmatpush.msrb.mxu3 %v19629_v15  ;;  %v22460_v53 = vand.u32 4294901760, %v19887_v40  ;;  %v8466_v11 = vadd.f32 %v8465_v12, %v8407_v60  ;;  %v19995_v12 = vand.u32 4294901760, %v379_v29  ;;  %v23142_v60 = vld [vmem:[#allocation16_spill] sm:$0xff] }
 0x523   : > { %9326 = vmatmul.f32.gmra.mxu0 %v23131_v18  ;;  %9601 = vmatpush.msrb.mxu1 %v19629_v15  ;;  %v491_v15 = vld [vmem:[%s13221_s17 + $0x5e0] sm:$0xff] }
 0x524   : > { %9563 = vmatpush.msrb.mxu0 %v19717_v52  ;;  %9672 = vmatpush.msrb.mxu2 %v9482_v39  ;;  %v19896_v28 = vand.u32 4294901760, %v491_v15  ;;  %v19912_v39 = vand.u32 4294901760, %v475_v55  ;;  %23141 = vst [vmem:[#allocation19_spill] sm:$0xff] %v19995_v12 }
 0x525   : > { %9721 = vmatpush.msrb.mxu3 %v19642_v21  ;;  %9603 = vmatpush.msrb.mxu1 %v19642_v21  ;;  %v19892_v21 = vand.u32 4294901760, %v507_v5 }
 0x526   : > { %9566 = vmatpush.msrb.mxu0 %v19728_v26  ;;  %9676 = vmatpush.msrb.mxu2 %v9488_v50  ;;  %v19917_v50 = vpop.f32.mrf.mxu3  ;;  %v22459_v26 = vand.u32 4294901760, %v19900_v1  ;;  %v19946_v10 = vsub.f32 %v475_v55, %v19912_v39 }
 0x527   : > { %9723 = vmatpush.msrb.mxu3 %v19658_v57  ;;  %9416 = vmatmul.f32.gmra.mxu2 %v23137_v44  ;;  %v19915_v52 = vsub.f32 %v507_v5, %v19892_v21 }
 0x528   : > { %9569 = vmatpush.msrb.mxu0 %v19744_v14  ;;  %9605 = vmatpush.msrb.mxu1 %v19658_v57  ;;  %v22461_v57 = vand.u32 4294901760, %v19877_v62 }
 0x529   : > { %9680 = vmatpush.msrb.mxu2 %v9494_v48  ;;  %9725 = vmatpush.msrb.mxu3 %v19679_v54  ;;  %v443_v48 = vld [vmem:[%s13221_s17 + $0x460] sm:$0xff]  ;;  %v22458_v7 = vand.u32 4294901760, %v19915_v52 }
 0x52a   : > { %9521 = vmatmul.f32.gmra.mxu3 %v23138_v32  ;;  %9572 = vmatpush.msrb.mxu0 %v19759_v17  ;;  %v9801_v17 = vsub.f32 %v19887_v40, %v22460_v53  ;;  %v19942_v35 = vand.u32 4294901760, %v443_v48  ;;  %v19966_v13 = vpop.f32.mrf.mxu2 }
 0x52b   : > { %9607 = vmatpush.msrb.mxu1 %v19679_v54  ;;  %9684 = vmatpush.msrb.mxu2 %v9500_v8  ;;  %v8403_v54 = vadd.f32 %v8402_v31, %v8293_v58  ;;  %v19932_v8 = vand.u32 4294901760, %v459_v34  ;;  %v8620_v58 = vpop.f32.mrf.mxu1  ;;  %v19968_v31 = vand.u32 4294901760, %v411_v33  ;;  %v9813_v63 = vsub.f32 %v19915_v52, %v22458_v7  ;;  %v331_v7 = vld [vmem:[%s13221_s17 + $0xe0] sm:$0xff] }
 0x52c   : > { %9727 = vmatpush.msrb.mxu3 %v19693_v4  ;;  %9367 = vmatmul.f32.gmra.mxu1 %v23131_v18  ;;  %v9802_v43 = vand.u32 4294901760, %v9801_v17  ;;  %v363_v17 = vld [vmem:[%s13221_s17 + $0x1e0] sm:$0xff] }
 0x52d   : > { %9575 = vmatmul.f32.vlgmr.msrb.gmra.mxu0 %v23139_v3  ;;  %9609 = vmatpush.msrb.mxu1 %v19693_v4  ;;  %v9795_v4 = vsub.f32 %v19877_v62, %v22461_v57  ;;  %v8461_v14 = vadd.f32 %v8460_v36, %v8403_v54  ;;  %v19961_v59 = vsub.f32 %v459_v34, %v19932_v8  ;;  %v23140_v36 = vld [vmem:[#allocation14_spill] sm:$0xff] }
 0x52e   : > { %9744 = vmatpush.msra.mxu0 %v19858_v42  ;;  %9688 = vmatpush.msrb.mxu2 %v9506_v46  ;;  %v8579_v46 = vpop.f32.mrf.mxu0  ;;  %v19988_v54 = vpop.f32.mrf.mxu3  ;;  %v779_v3 = vld [vmem:[%s13221_s17 + $0xee0] sm:$0xff] }
 0x52f   : > { %9729 = vmatpush.msrb.mxu3 %v19705_v0  ;;  %9611 = vmatpush.msrb.mxu1 %v19705_v0  ;;  %v19927_v0 = vsub.f32 %v491_v15, %v19896_v28  ;;  %v9796_v30 = vand.u32 4294901760, %v9795_v4  ;;  %v8505_v25 = vadd.f32 %v19862_v16, %v8461_v14  ;;  %v22455_v16 = vand.u32 4294901760, %v19946_v10  ;;  %v747_v18 = vld [vmem:[%s13221_s17 + $0xde0] sm:$0xff] }
 0x530   : > { %9746 = vmatpush.msra.mxu0 %v19868_v61  ;;  %9692 = vmatpush.msrb.mxu2 %v9512_v47  ;;  %v427_v47 = vld [vmem:[%s13221_s17 + $0x3e0] sm:$0xff]  ;;  %v22457_v34 = vand.u32 4294901760, %v19961_v59 }
 0x531   : > { %9731 = vmatpush.msrb.mxu3 %v19722_v51  ;;  %9694 = vmatmul.f32.vlgmr.msrb.gmra.mxu2 %v23136_v45  ;;  %v22456_v2 = vand.u32 4294901760, %v19927_v0  ;;  %v19958_v49 = vand.u32 4294901760, %v427_v47  ;;  %v8580_v55 = vadd.f32 %v8579_v46, %v8505_v25  ;;  %v9814_v46 = vand.u32 4294901760, %v9813_v63 }
 0x532   : > { %9748 = vmatpush.msra.mxu0 %v19874_v41  ;;  %9899 = vmatpush.msra.mxu2 %v19877_v62  ;;  %v8511_v25 = vadd.f32 %v19917_v50, %v8466_v11  ;;  %v811_v11 = vld [vmem:[%s13221_s17 + $0xfe0] sm:$0xff] }
 0x533   : > { %9613 = vmatpush.msrb.mxu1 %v19722_v51  ;;  %9733 = vmatpush.msrb.mxu3 %v19738_v37  ;;  %v9807_v51 = vsub.f32 %v19900_v1, %v22459_v26  ;;  %v9819_v15 = vsub.f32 %v19927_v0, %v22456_v2  ;;  %v19992_v4 = vsub.f32 %v427_v47, %v19958_v49  ;;  %v20018_v2 = vand.u32 4294901760, %v363_v17  ;;  %v23144_v26 = vld [vmem:[#allocation17_spill] sm:$0xff] }
 0x534   : > { %9735 = vmatmul.f32.vlgmr.msrb.gmra.mxu3 %v23136_v45  ;;  %9750 = vmatpush.msra.mxu0 %v19892_v21  ;;  %v9825_v47 = vsub.f32 %v19946_v10, %v22455_v16  ;;  %v8621_v63 = vadd.f32 %v8620_v58, %v8580_v55  ;;  %v9831_v16 = vsub.f32 %v19961_v59, %v22457_v34  ;;  %v20064_v57 = vand.u32 4294901760, %v811_v11 }
 0x535   : > { %9902 = vmatpush.msra.mxu2 %v19887_v40  ;;  %9957 = vmatpush.msra.mxu3 %v19858_v42  ;;  %v9808_v5 = vand.u32 4294901760, %v9807_v51  ;;  %v347_v51 = vld [vmem:[%s13221_s17 + $0x160] sm:$0xff]  ;;  %23143 = vst [vmem:[#allocation20_spill] sm:$0xff] %v20018_v2  ;;  %v22463_v50 = vand.u32 4294901760, %v19992_v4  ;;  %v20027_v58 = vsub.f32 %v379_v29, %v19995_v12 }
 0x536   : > { %9615 = vmatpush.msrb.mxu1 %v19738_v37  ;;  %9752 = vmatpush.msra.mxu0 %v19896_v28  ;;  %v19977_v37 = vsub.f32 %v443_v48, %v19942_v35  ;;  %v19998_v48 = vsub.f32 %v411_v33, %v19968_v31  ;;  %v8583_v14 = vpop.f32.mrf.mxu0  ;;  %v9820_v33 = vand.u32 4294901760, %v9819_v15  ;;  %v9826_v55 = vand.u32 4294901760, %v9825_v47  ;;  %v315_v29 = vld [vmem:[%s13221_s17 + $0x60] sm:$0xff] }
 0x537   : > { %9619 = vmatmul.f32.vlgmr.msrb.gmra.mxu1 %v23140_v36  ;;  %9905 = vmatpush.msra.mxu2 %v19900_v1  ;;  %v8584_v53 = vadd.f32 %v8583_v14, %v8511_v25  ;;  %v9832_v47 = vand.u32 4294901760, %v9831_v16 }
 0x538   : > { %9797 = vmatpush.msra.mxu1 %v9796_v30  ;;  %9959 = vmatpush.msra.mxu3 %v19868_v61  ;;  %v22462_v30 = vand.u32 4294901760, %v19977_v37  ;;  %v23145_v14 = vand.u32 4294901760, %v19998_v48 }
 0x539   : > { %9754 = vmatpush.msra.mxu0 %v19912_v39  ;;  %9908 = vmatpush.msra.mxu2 %v19915_v52 }
 0x53a   : > { %9803 = vmatpush.msra.mxu1 %v9802_v43  ;;  %9961 = vmatpush.msra.mxu3 %v19874_v41  ;;  %v20011_v43 = vsub.f32 %v395_v23, %v19984_v24  ;;  %v20023_v23 = vand.u32 4294901760, %v347_v51  ;;  %v9837_v34 = vsub.f32 %v19977_v37, %v22462_v30  ;;  %v9843_v30 = vsub.f32 %v19992_v4, %v22463_v50 }
 0x53b   : > { %9580 = vmatmul.f32.gmra.mxu0 %v23142_v60  ;;  %9698 = vmatmul.f32.gmra.mxu2 %v23138_v32  ;;  %v20045_v60 = vsub.f32 %v363_v17, %v20018_v2  ;;  %v9849_v25 = vsub.f32 %v19998_v48, %v23145_v14  ;;  %v795_v17 = vld [vmem:[%s13221_s17 + $0xf60] sm:$0xff]  ;;  %v20062_v50 = vand.u32 4294901760, %v315_v29 }
 0x53c   : > { %9756 = vmatpush.msra.mxu0 %v19932_v8  ;;  %9809 = vmatpush.msra.mxu1 %v9808_v5  ;;  %v23146_v14 = vand.u32 4294901760, %v20011_v43  ;;  %v20075_v44 = vand.u32 4294901760, %v795_v17 }
 0x53d   : > { %9911 = vmatpush.msra.mxu2 %v19927_v0  ;;  %9963 = vmatpush.msra.mxu3 %v19892_v21  ;;  %v8624_v5 = vpop.f32.mrf.mxu1  ;;  %v9850_v45 = vand.u32 4294901760, %v9849_v25  ;;  %v20092_v25 = vsub.f32 %v811_v11, %v20064_v57 }
 0x53e   : > { %9739 = vmatmul.f32.gmra.mxu3 %v23138_v32  ;;  %9758 = vmatpush.msra.mxu0 %v19942_v35  ;;  %v8673_v15 = vpop.f32.mrf.mxu2  ;;  %v9855_v16 = vsub.f32 %v20011_v43, %v23146_v14  ;;  %v8832_v36 = vpop.f32.mrf.mxu0  ;;  %v23147_v14 = vand.u32 4294901760, %v20027_v58  ;;  %v20103_v11 = vsub.f32 %v795_v17, %v20075_v44  ;;  %v715_v17 = vld [vmem:[%s13221_s17 + $0xce0] sm:$0xff] }
 0x53f   : > { %9815 = vmatpush.msra.mxu1 %v9814_v46  ;;  %9914 = vmatpush.msra.mxu2 %v19946_v10  ;;  %v8666_v46 = vadd.f32 %v19966_v13, %v8621_v63  ;;  %v20054_v13 = vand.u32 4294901760, %v331_v7  ;;  %v9838_v63 = vand.u32 4294901760, %v9837_v34  ;;  %v9844_v34 = vand.u32 4294901760, %v9843_v30  ;;  %23148 = vst [vmem:[#allocation21_spill] sm:$0xff] %v20092_v25 }
 0x540   : > { %9965 = vmatpush.msra.mxu3 %v19896_v28  ;;  %9625 = vmatmul.f32.gmra.mxu1 %v23144_v26  ;;  %23150 = vst [vmem:[#allocation22_spill] sm:$0xff] %v20103_v11 }
 0x541   : > { %9760 = vmatpush.msra.mxu0 %v19958_v49  ;;  %9821 = vmatpush.msra.mxu1 %v9820_v33  ;;  %v20047_v26 = vpop.f32.mrf.mxu3  ;;  %v20058_v33 = vsub.f32 %v347_v51, %v20023_v23  ;;  %v8625_v51 = vadd.f32 %v8624_v5, %v8584_v53  ;;  %v8775_v32 = vadd.f32 %v19988_v54, %v8666_v46  ;;  %v763_v46 = vld [vmem:[%s13221_s17 + $0xe60] sm:$0xff] }
 0x542   : > { %9917 = vmatpush.msra.mxu2 %v19961_v59  ;;  %9967 = vmatpush.msra.mxu3 %v19912_v39  ;;  %v9861_v53 = vsub.f32 %v20027_v58, %v23147_v14  ;;  %v20083_v5 = vsub.f32 %v331_v7, %v20054_v13  ;;  %v9856_v7 = vand.u32 4294901760, %v9855_v16 }
 0x543   : > { %9762 = vmatpush.msra.mxu0 %v19968_v31  ;;  %9827 = vmatpush.msra.mxu1 %v9826_v55  ;;  %v8833_v30 = vadd.f32 %v8832_v36, %v8775_v32  ;;  %v20094_v55 = vand.u32 4294901760, %v779_v3  ;;  %v8674_v14 = vadd.f32 %v8673_v15, %v8625_v51  ;;  %v23149_v32 = vand.u32 4294901760, %v20045_v60 }
 0x544   : > { %9920 = vmatpush.msra.mxu2 %v19977_v37  ;;  %9969 = vmatpush.msra.mxu3 %v19932_v8  ;;  %v9862_v15 = vand.u32 4294901760, %v9861_v53  ;;  %v23151_v16 = vand.u32 4294901760, %v20058_v33  ;;  %v731_v53 = vld [vmem:[%s13221_s17 + $0xd60] sm:$0xff] }
 0x545   : > { %9764 = vmatpush.msra.mxu0 %v19984_v24  ;;  %9833 = vmatpush.msra.mxu1 %v9832_v47  ;;  %v20089_v47 = vsub.f32 %v315_v29, %v20062_v50  ;;  %v9867_v36 = vsub.f32 %v20045_v60, %v23149_v32 }
 0x546   : > { %9923 = vmatpush.msra.mxu2 %v19992_v4  ;;  %9971 = vmatpush.msra.mxu3 %v19942_v35  ;;  %v9873_v51 = vsub.f32 %v20058_v33, %v23151_v16  ;;  %v8779_v16 = vadd.f32 %v20047_v26, %v8674_v14  ;;  %v23152_v14 = vand.u32 4294901760, %v20083_v5 }
 0x547   : > { %9766 = vmatpush.msra.mxu0 %v19995_v12  ;;  %9839 = vmatpush.msra.mxu1 %v9838_v63  ;;  %v20105_v63 = vand.u32 4294901760, %v763_v46 }
 0x548   : > { %9926 = vmatpush.msra.mxu2 %v19998_v48  ;;  %9973 = vmatpush.msra.mxu3 %v19958_v49  ;;  %v8876_v54 = vpop.f32.mrf.mxu1  ;;  %v8951_v20 = vpop.f32.mrf.mxu2  ;;  %v9874_v26 = vand.u32 4294901760, %v9873_v51  ;;  %v9879_v27 = vsub.f32 %v20083_v5, %v23152_v14 }
 0x549   : > { %9768 = vmatpush.msra.mxu0 %v20018_v2  ;;  %9845 = vmatpush.msra.mxu1 %v9844_v34  ;;  %v8877_v29 = vadd.f32 %v8876_v54, %v8833_v30  ;;  %v20118_v30 = vsub.f32 %v779_v3, %v20094_v55  ;;  %v20124_v34 = vand.u32 4294901760, %v747_v18  ;;  %v20129_v3 = vsub.f32 %v763_v46, %v20105_v63  ;;  %v699_v54 = vld [vmem:[%s13221_s17 + $0xc60] sm:$0xff] }
 0x54a   : > { %9929 = vmatpush.msra.mxu2 %v20011_v43  ;;  %9975 = vmatpush.msra.mxu3 %v19968_v31  ;;  %v23153_v46 = vand.u32 4294901760, %v20092_v25 }
 0x54b   : > { %9770 = vmatpush.msra.mxu0 %v20023_v23  ;;  %9851 = vmatpush.msra.mxu1 %v9850_v45  ;;  %v8952_v32 = vadd.f32 %v8951_v20, %v8877_v29  ;;  %v8992_v38 = vpop.f32.mrf.mxu3  ;;  %v9868_v45 = vand.u32 4294901760, %v9867_v36  ;;  %v23154_v36 = vand.u32 4294901760, %v20089_v47  ;;  %v20151_v6 = vsub.f32 %v747_v18, %v20124_v34 }
 0x54c   : > { %9932 = vmatpush.msra.mxu2 %v20027_v58  ;;  %9977 = vmatpush.msra.mxu3 %v19984_v24  ;;  %v8837_v20 = vpop.f32.mrf.mxu0  ;;  %v9880_v18 = vand.u32 4294901760, %v9879_v27  ;;  %v23158_v51 = vand.u32 4294901760, %v20118_v30 }
 0x54d   : > { %9772 = vmatpush.msra.mxu0 %v20054_v13  ;;  %9857 = vmatpush.msra.mxu1 %v9856_v7  ;;  %v8993_v29 = vadd.f32 %v8992_v38, %v8952_v32  ;;  %v20137_v7 = vand.u32 4294901760, %v731_v53  ;;  %v10167_v38 = vsub.f32 %v20092_v25, %v23153_v46  ;;  %v9885_v32 = vsub.f32 %v20089_v47, %v23154_v36 }
 0x54e   : > { %9935 = vmatpush.msra.mxu2 %v20045_v60  ;;  %9979 = vmatpush.msra.mxu3 %v19995_v12  ;;  %v8838_v14 = vadd.f32 %v8837_v20, %v8779_v16  ;;  %v23155_v12 = vand.u32 4294901760, %v19877_v62  ;;  %v23156_v46 = vand.u32 4294901760, %v20103_v11  ;;  %v23157_v20 = vand.u32 4294901760, %v19887_v40 }
 0x54f   : > { %9774 = vmatpush.msra.mxu0 %v20062_v50  ;;  %9863 = vmatpush.msra.mxu1 %v9862_v15  ;;  %v20153_v15 = vand.u32 4294901760, %v715_v17  ;;  %12761 = vst [vmem:[%s14629_s29 + $0x50] sm:$0xff] %v8993_v29  ;;  %v20166_v16 = vsub.f32 %v731_v53, %v20137_v7  ;;  %v9886_v29 = vand.u32 4294901760, %v9885_v32  ;;  %v10190_v27 = vand.u32 4294901760, %v20151_v6 }
 0x550   : > { %9938 = vmatpush.msra.mxu2 %v20058_v33  ;;  %9981 = vmatpush.msra.mxu3 %v20018_v2  ;;  %v10173_v36 = vsub.f32 %v20103_v11, %v23156_v46  ;;  %v683_v2 = vld [vmem:[%s13221_s17 + $0xbe0] sm:$0xff]  ;;  %v10168_v46 = vand.u32 4294901760, %v10167_v38  ;;  %v10179_v11 = vsub.f32 %v20118_v30, %v23158_v51  ;;  %v23160_v32 = vand.u32 4294901760, %v20129_v3 }
 0x551   : > { %10004 = vmatpush.msrb.mxu0 %v23155_v12  ;;  %9869 = vmatpush.msra.mxu1 %v9868_v45  ;;  %v8882_v25 = vpop.f32.mrf.mxu1  ;;  %v20168_v12 = vand.u32 4294901760, %v699_v54  ;;  %v20182_v53 = vand.u32 4294901760, %v683_v2 }
 0x552   : > { %9941 = vmatpush.msra.mxu2 %v20083_v5  ;;  %9983 = vmatpush.msra.mxu3 %v20023_v23  ;;  %v8883_v62 = vadd.f32 %v8882_v25, %v8838_v14  ;;  %v8955_v45 = vpop.f32.mrf.mxu2  ;;  %v20180_v25 = vsub.f32 %v715_v17, %v20153_v15  ;;  %v10174_v38 = vand.u32 4294901760, %v10173_v36  ;;  %v10185_v51 = vsub.f32 %v20129_v3, %v23160_v32 }
 0x553   : > { %10008 = vmatpush.msrb.mxu0 %v23157_v20  ;;  %9875 = vmatpush.msra.mxu1 %v9874_v26  ;;  %v23159_v26 = vand.u32 4294901760, %v19900_v1  ;;  %v10196_v17 = vand.u32 4294901760, %v20166_v16  ;;  %v20195_v1 = vand.u32 4294901760, %v667_v56  ;;  %v651_v20 = vld [vmem:[%s13221_s17 + $0xae0] sm:$0xff]  ;;  %v23161_v36 = vand.u32 4294901760, %v19915_v52 }
 0x554   : > { %9944 = vmatpush.msra.mxu2 %v20089_v47  ;;  %9985 = vmatpush.msra.mxu3 %v20054_v13  ;;  %v8956_v40 = vadd.f32 %v8955_v45, %v8883_v62  ;;  %v20193_v62 = vsub.f32 %v699_v54, %v20168_v12  ;;  %v10202_v54 = vand.u32 4294901760, %v20180_v25  ;;  %v23162_v32 = vand.u32 4294901760, %v19927_v0 }
 0x555   : > { %10012 = vmatpush.msrb.mxu0 %v23159_v26  ;;  %v8996_v14 = vpop.f32.mrf.mxu3  ;;  %9881 = vmatpush.msra.mxu1 %v9880_v18  ;;  %v10180_v26 = vand.u32 4294901760, %v10179_v11  ;;  %v10191_v18 = vsub.f32 %v20151_v6, %v10190_v27  ;;  %v20211_v52 = vand.u32 4294901760, %v651_v20  ;;  %v635_v11 = vld [vmem:[%s13221_s17 + $0xa60] sm:$0xff]  ;;  %v20221_v0 = vsub.f32 %v667_v56, %v20195_v1 }
 0x556   : > { %10116 = vmatpush.msrb.mxu2 %v20064_v57  ;;  %9987 = vmatpush.msra.mxu3 %v20062_v50  ;;  %v8997_v45 = vadd.f32 %v8996_v14, %v8956_v40  ;;  %v20206_v40 = vsub.f32 %v683_v2, %v20182_v53  ;;  %v10208_v2 = vand.u32 4294901760, %v20193_v62  ;;  %v619_v14 = vld [vmem:[%s13221_s17 + $0x9e0] sm:$0xff]  ;;  %v23164_v56 = vand.u32 4294901760, %v19961_v59 }
 0x557   : > { %10016 = vmatpush.msrb.mxu0 %v23161_v36  ;;  %9887 = vmatpush.msra.mxu1 %v9886_v29  ;;  %v10197_v29 = vsub.f32 %v20166_v16, %v10196_v17  ;;  %v23165_v59 = vand.u32 4294901760, %v19977_v37  ;;  %v23166_v37 = vand.u32 4294901760, %v19992_v4 }
 0x558   : > { %10118 = vmatpush.msrb.mxu2 %v20075_v44  ;;  %10169 = vmatpush.msrb.mxu3 %v10168_v46  ;;  %v10186_v46 = vand.u32 4294901760, %v10185_v51  ;;  %12777 = vst [vmem:[%s14629_s29 + $0xd0] sm:$0xff] %v8997_v45  ;;  %v10203_v51 = vsub.f32 %v20180_v25, %v10202_v54  ;;  %v10214_v36 = vand.u32 4294901760, %v20206_v40  ;;  %v20232_v45 = vand.u32 4294901760, %v635_v11 }
 0x559   : > { %10020 = vmatpush.msrb.mxu0 %v23162_v32  ;;  %10075 = vmatpush.msrb.mxu1 %v19858_v42  ;;  %v23163_v42 = vand.u32 4294901760, %v19946_v10  ;;  %v603_v10 = vld [vmem:[%s13221_s17 + $0x960] sm:$0xff]  ;;  %v10220_v32 = vand.u32 4294901760, %v20221_v0 }
 0x55a   : > { %10120 = vmatpush.msrb.mxu2 %v20094_v55  ;;  %10175 = vmatpush.msrb.mxu3 %v10174_v38  ;;  %v10192_v38 = vand.u32 4294901760, %v10191_v18  ;;  %v10209_v18 = vsub.f32 %v20193_v62, %v10208_v2 }
 0x55b   : > { %10024 = vmatpush.msrb.mxu0 %v23163_v42  ;;  %10077 = vmatpush.msrb.mxu1 %v19868_v61  ;;  %v20238_v61 = vsub.f32 %v651_v20, %v20211_v52  ;;  %v20246_v42 = vand.u32 4294901760, %v619_v14  ;;  %v10215_v20 = vsub.f32 %v20206_v40, %v10214_v36 }
 0x55c   : > { %10122 = vmatpush.msrb.mxu2 %v20105_v63  ;;  %10181 = vmatpush.msrb.mxu3 %v10180_v26  ;;  %v10198_v26 = vand.u32 4294901760, %v10197_v29  ;;  %v20258_v29 = vand.u32 4294901760, %v603_v10 }
 0x55d   : > { %10028 = vmatpush.msrb.mxu0 %v23164_v56  ;;  %10079 = vmatpush.msrb.mxu1 %v19874_v41  ;;  %v10204_v41 = vand.u32 4294901760, %v10203_v51  ;;  %v587_v56 = vld [vmem:[%s13221_s17 + $0x8e0] sm:$0xff]  ;;  %v10221_v51 = vsub.f32 %v20221_v0, %v10220_v32 }
 0x55e   : > { %10124 = vmatpush.msrb.mxu2 %v20124_v34  ;;  %10187 = vmatpush.msrb.mxu3 %v10186_v46  ;;  %v20256_v46 = vsub.f32 %v635_v11, %v20232_v45  ;;  %v20270_v11 = vsub.f32 %v619_v14, %v20246_v42  ;;  %v20275_v4 = vand.u32 4294901760, %v587_v56  ;;  %v23168_v14 = vand.u32 4294901760, %v20011_v43 }
 0x55f   : > { %10032 = vmatpush.msrb.mxu0 %v23165_v59  ;;  %10081 = vmatpush.msrb.mxu1 %v19892_v21  ;;  %v10226_v21 = vand.u32 4294901760, %v20238_v61  ;;  %v23167_v59 = vand.u32 4294901760, %v19998_v48  ;;  %v10222_v48 = vand.u32 4294901760, %v10221_v51  ;;  %v23170_v51 = vand.u32 4294901760, %v20045_v60 }
 0x560   : > { %10126 = vmatpush.msrb.mxu2 %v20137_v7  ;;  %10193 = vmatpush.msrb.mxu3 %v10192_v38  ;;  %v10210_v38 = vand.u32 4294901760, %v10209_v18  ;;  %v10232_v18 = vand.u32 4294901760, %v20256_v46  ;;  %v20297_v43 = vsub.f32 %v587_v56, %v20275_v4 }
 0x561   : > { %10036 = vmatpush.msrb.mxu0 %v23166_v37  ;;  %10083 = vmatpush.msrb.mxu1 %v19896_v28  ;;  %v571_v28 = vld [vmem:[%s13221_s17 + $0x860] sm:$0xff]  ;;  %v20281_v37 = vsub.f32 %v603_v10, %v20258_v29  ;;  %v23169_v10 = vand.u32 4294901760, %v20027_v58 }
 0x562   : > { %10128 = vmatpush.msrb.mxu2 %v20153_v15  ;;  %10199 = vmatpush.msrb.mxu3 %v10198_v26  ;;  %v10216_v26 = vand.u32 4294901760, %v10215_v20  ;;  %v20291_v20 = vand.u32 4294901760, %v571_v28  ;;  %v10250_v60 = vand.u32 4294901760, %v20297_v43 }
 0x563   : > { %10040 = vmatpush.msrb.mxu0 %v23167_v59  ;;  %10085 = vmatpush.msrb.mxu1 %v19912_v39  ;;  %v10227_v39 = vsub.f32 %v20238_v61, %v10226_v21  ;;  %v23171_v59 = vand.u32 4294901760, %v20058_v33 }
 0x564   : > { %10130 = vmatpush.msrb.mxu2 %v20168_v12  ;;  %10205 = vmatpush.msrb.mxu3 %v10204_v41  ;;  %v10238_v41 = vand.u32 4294901760, %v20270_v11  ;;  %v20312_v56 = vsub.f32 %v571_v28, %v20291_v20  ;;  %v23172_v28 = vand.u32 4294901760, %v20083_v5  ;;  %v23175_v5 = vld [vmem:[#allocation19_spill] sm:$0xff] }
 0x565   : > { %10044 = vmatpush.msrb.mxu0 %v23168_v14  ;;  %10087 = vmatpush.msrb.mxu1 %v19932_v8  ;;  %v10233_v8 = vsub.f32 %v20256_v46, %v10232_v18  ;;  %v10228_v58 = vand.u32 4294901760, %v10227_v39  ;;  %v23173_v39 = vld [vmem:[#allocation7_spill] sm:$0xff] }
 0x566   : > { %10132 = vmatpush.msrb.mxu2 %v20182_v53  ;;  %10211 = vmatpush.msrb.mxu3 %v10210_v38  ;;  %v10244_v38 = vand.u32 4294901760, %v20281_v37  ;;  %v10256_v14 = vand.u32 4294901760, %v20312_v56 }
 0x567   : > { %10048 = vmatpush.msrb.mxu0 %v23169_v10  ;;  %10089 = vmatpush.msrb.mxu1 %v19942_v35  ;;  %v10239_v35 = vsub.f32 %v20270_v11, %v10238_v41  ;;  %v23174_v10 = vand.u32 4294901760, %v20089_v47  ;;  %v23179_v47 = vld [vmem:[#allocation22_spill] sm:$0xff] }
 0x568   : > { %10134 = vmatpush.msrb.mxu2 %v20195_v1  ;;  %10217 = vmatpush.msrb.mxu3 %v10216_v26  ;;  %v10245_v26 = vsub.f32 %v20281_v37, %v10244_v38 }
 0x569   : > { %10052 = vmatpush.msrb.mxu0 %v23170_v51  ;;  %10091 = vmatpush.msrb.mxu1 %v19958_v49  ;;  %v10234_v49 = vand.u32 4294901760, %v10233_v8  ;;  %v10240_v33 = vand.u32 4294901760, %v10239_v35  ;;  %v23176_v8 = vld [vmem:[#allocation21_spill] sm:$0xff]  ;;  %v23177_v51 = vld [vmem:[#allocation20_spill] sm:$0xff] }
 0x56a   : > { %10136 = vmatpush.msrb.mxu2 %v20211_v52  ;;  %10223 = vmatpush.msrb.mxu3 %v10222_v48  ;;  %v10246_v48 = vand.u32 4294901760, %v10245_v26  ;;  %v23178_v35 = vld [vmem:[#allocation9_spill] sm:$0xff]  ;;  %v23181_v26 = vld [vmem:[#allocation10_spill] sm:$0xff] }
 0x56b   : > { %9947 = vmatmul.f32.vlgmr.msra.gmra.mxu2 %v13564_v19  ;;  %10056 = vmatpush.msrb.mxu0 %v23171_v59 }
 0x56c   : > { %10093 = vmatpush.msrb.mxu1 %v19968_v31  ;;  %10138 = vmatpush.msrb.mxu2 %v20232_v45  ;;  %v10251_v31 = vsub.f32 %v20297_v43, %v10250_v60 }
 0x56d   : > { %10229 = vmatpush.msrb.mxu3 %v10228_v58  ;;  %9780 = vmatmul.f32.vlgmr.msra.gmra.mxu0 %v13645_v22 }
 0x56e   : > { %9991 = vmatmul.f32.vlgmr.msra.gmra.mxu3 %v13594_v9  ;;  %10060 = vmatpush.msrb.mxu0 %v23172_v28  ;;  %v10252_v58 = vand.u32 4294901760, %v10251_v31  ;;  %v23182_v28 = vand.u32 4294901760, %v23176_v8  ;;  %v23185_v31 = vand.u32 4294901760, %v20118_v30 }
 0x56f   : > { %10095 = vmatpush.msrb.mxu1 %v19984_v24  ;;  %10140 = vmatpush.msrb.mxu2 %v20246_v42  ;;  %v10257_v24 = vsub.f32 %v20312_v56, %v10256_v14 }
 0x570   : > { %10235 = vmatpush.msrb.mxu3 %v10234_v49  ;;  %9889 = vmatmul.f32.vlgmr.msra.gmra.mxu1 %v23173_v39  ;;  %v23180_v49 = vld [vmem:[#allocation13_spill] sm:$0xff] }
 0x571   : > { %10064 = vmatpush.msrb.mxu0 %v23174_v10  ;;  %10097 = vmatpush.msrb.mxu1 %v23175_v5  ;;  %v10258_v59 = vand.u32 4294901760, %v10257_v24 }
 0x572   : > { %10142 = vmatpush.msrb.mxu2 %v20258_v29  ;;  %10241 = vmatpush.msrb.mxu3 %v10240_v33  ;;  %v23183_v33 = vld [vmem:[#allocation8_spill] sm:$0xff] }
 0x573   : > { %10271 = vmatpush.msra.mxu0 %v23176_v8  ;;  %10099 = vmatpush.msrb.mxu1 %v23177_v51  ;;  %v412_v8 = vld [vmem:[%s13221_s17 + $0x368] sm:$0xff] }
 0x574   : > { %10144 = vmatpush.msrb.mxu2 %v20275_v4  ;;  %10247 = vmatpush.msrb.mxu3 %v10246_v48  ;;  %v23187_v48 = vand.u32 4294901760, %v20129_v3 }
 0x575   : > { %9952 = vmatmul.f32.gmra.mxu2 %v23178_v35  ;;  %10274 = vmatpush.msra.mxu0 %v23179_v47 }
 0x576   : > { %10101 = vmatpush.msrb.mxu1 %v20023_v23  ;;  %10146 = vmatpush.msrb.mxu2 %v20291_v20  ;;  %v23184_v23 = vand.u32 4294901760, %v23179_v47 }
 0x577   : > { %10253 = vmatpush.msrb.mxu3 %v10252_v58  ;;  %9788 = vmatmul.f32.gmra.mxu0 %v23180_v49 }
 0x578   : > { %9997 = vmatmul.f32.gmra.mxu3 %v23181_v26  ;;  %10277 = vmatpush.msra.mxu0 %v20118_v30 }
 0x579   : > { %10376 = vmatpush.msra.mxu2 %v23182_v28  ;;  %10103 = vmatpush.msrb.mxu1 %v20054_v13  ;;  %v23186_v13 = vld [vmem:[#allocation15_spill] sm:$0xff] }
 0x57a   : > { %10259 = vmatpush.msrb.mxu3 %v10258_v59  ;;  %9893 = vmatmul.f32.gmra.mxu1 %v23183_v33 }
 0x57b   : > { %10280 = vmatpush.msra.mxu0 %v20129_v3  ;;  %10380 = vmatpush.msra.mxu2 %v23184_v23  ;;  %v524_v3 = vld [vmem:[%s13221_s17 + $0x6e8] sm:$0xff] }
 0x57c   : > { %10447 = vmatpush.msra.mxu3 %v20064_v57  ;;  %10105 = vmatpush.msrb.mxu1 %v20062_v50  ;;  %v23188_v50 = vld [vmem:[#allocation11_spill] sm:$0xff] }
 0x57d   : > { %10283 = vmatpush.msra.mxu0 %v20151_v6  ;;  %10384 = vmatpush.msra.mxu2 %v23185_v31  ;;  %v396_v31 = vld [vmem:[%s13221_s17 + $0x2e8] sm:$0xff] }
 0x57e   : > { %10329 = vmatpush.msra.mxu1 %v20064_v57  ;;  %10449 = vmatpush.msra.mxu3 %v20075_v44  ;;  %v9037_v6 = vpop.f32.mrf.mxu0 }
 0x57f   : > { %10152 = vmatmul.f32.vlgmr.msrb.gmra.mxu2 %v23186_v13  ;;  %10286 = vmatpush.msra.mxu0 %v20166_v16  ;;  %v20427_v16 = vand.u32 4294901760, %v524_v3 }
 0x580   : > { %10331 = vmatpush.msra.mxu1 %v20075_v44  ;;  %10388 = vmatpush.msra.mxu2 %v23187_v48  ;;  %v556_v44 = vld [vmem:[%s13221_s17 + $0x7e8] sm:$0xff] }
 0x581   : > { %10451 = vmatpush.msra.mxu3 %v20094_v55  ;;  %10066 = vmatmul.f32.vlgmr.msrb.gmra.mxu0 %v23173_v39  ;;  %v9146_v57 = vpop.f32.mrf.mxu1 }
 0x582   : > { %10261 = vmatmul.f32.vlgmr.msrb.gmra.mxu3 %v23188_v50  ;;  %10289 = vmatpush.msra.mxu0 %v20180_v25  ;;  %v508_v25 = vld [vmem:[%s13221_s17 + $0x668] sm:$0xff] }
 0x583   : > { %10333 = vmatpush.msra.mxu1 %v20094_v55  ;;  %10392 = vmatpush.msra.mxu2 %v10190_v27  ;;  %v9204_v55 = vpop.f32.mrf.mxu2 }
 0x584   : > { %10453 = vmatpush.msra.mxu3 %v20105_v63  ;;  %10107 = vmatmul.f32.vlgmr.msrb.gmra.mxu1 %v23173_v39  ;;  %v668_v39 = vld [vmem:[%s13221_s17 + $0xb68] sm:$0xff] }
 0x585   : > { %10292 = vmatpush.msra.mxu0 %v20193_v62  ;;  %10335 = vmatpush.msra.mxu1 %v20105_v63  ;;  %v540_v63 = vld [vmem:[%s13221_s17 + $0x768] sm:$0xff]  ;;  %v20415_v30 = vpop.f32.mrf.mxu3 }
 0x586   : > { %10396 = vmatpush.msra.mxu2 %v10196_v17  ;;  %10455 = vmatpush.msra.mxu3 %v20124_v34  ;;  %v23190_v17 = vld [vmem:[#allocation6_spill] sm:$0xff] }
 0x587   : > { %10295 = vmatpush.msra.mxu0 %v20206_v40  ;;  %10337 = vmatpush.msra.mxu1 %v20124_v34  ;;  %v20411_v34 = vand.u32 4294901760, %v556_v44 }
 0x588   : > { %10400 = vmatpush.msra.mxu2 %v10202_v54  ;;  %10457 = vmatpush.msra.mxu3 %v20137_v7  ;;  %v9045_v27 = vpop.f32.mrf.mxu0 }
 0x589   : > { %10298 = vmatpush.msra.mxu0 %v20221_v0  ;;  %10339 = vmatpush.msra.mxu1 %v20137_v7  ;;  %v20421_v7 = vand.u32 4294901760, %v540_v63 }
 0x58a   : > { %10404 = vmatpush.msra.mxu2 %v10208_v2  ;;  %10459 = vmatpush.msra.mxu3 %v20153_v15  ;;  %v20453_v2 = vsub.f32 %v524_v3, %v20427_v16  ;;  %v380_v3 = vld [vmem:[%s13221_s17 + $0x268] sm:$0xff] }
 0x58b   : > { %10301 = vmatpush.msra.mxu0 %v20238_v61  ;;  %10341 = vmatpush.msra.mxu1 %v20153_v15  ;;  %v23189_v15 = vld [vmem:[#allocation18_spill] sm:$0xff]  ;;  %v20440_v62 = vsub.f32 %v540_v63, %v20421_v7  ;;  %v9150_v54 = vpop.f32.mrf.mxu1  ;;  %v23191_v61 = vld [vmem:[#allocation12_spill] sm:$0xff] }
 0x58c   : > { %10408 = vmatpush.msra.mxu2 %v10214_v36  ;;  %10461 = vmatpush.msra.mxu3 %v20168_v12  ;;  %v9209_v0 = vpop.f32.mrf.mxu2  ;;  %v476_v36 = vld [vmem:[%s13221_s17 + $0x568] sm:$0xff]  ;;  %v9151_v51 = vadd.f32 %v9150_v54, %v9045_v27  ;;  %v20537_v54 = vand.u32 4294901760, %v396_v31 }
 0x58d   : > { %10304 = vmatpush.msra.mxu0 %v20256_v46  ;;  %10343 = vmatpush.msra.mxu1 %v20168_v12  ;;  %v20430_v12 = vsub.f32 %v556_v44, %v20411_v34  ;;  %v460_v46 = vld [vmem:[%s13221_s17 + $0x4e8] sm:$0xff] }
 0x58e   : > { %10412 = vmatpush.msra.mxu2 %v10220_v32  ;;  %10463 = vmatpush.msra.mxu3 %v20182_v53  ;;  %v22479_v32 = vand.u32 4294901760, %v20440_v62  ;;  %v9210_v27 = vadd.f32 %v9209_v0, %v9151_v51  ;;  %v20548_v0 = vand.u32 4294901760, %v380_v3  ;;  %v23194_v51 = vld [vmem:[#allocation16_spill] sm:$0xff] }
 0x58f   : > { %10070 = vmatmul.f32.gmra.mxu0 %v23183_v33  ;;  %10345 = vmatpush.msra.mxu1 %v20182_v53  ;;  %v492_v53 = vld [vmem:[%s13221_s17 + $0x5e8] sm:$0xff] }
 0x590   : > { %10307 = vmatpush.msra.mxu0 %v20270_v11  ;;  %10416 = vmatpush.msra.mxu2 %v10226_v21  ;;  %v20449_v40 = vand.u32 4294901760, %v492_v53  ;;  %v20465_v21 = vand.u32 4294901760, %v476_v36  ;;  %23193 = vst [vmem:[#allocation19_spill] sm:$0xff] %v20548_v0 }
 0x591   : > { %10465 = vmatpush.msra.mxu3 %v20195_v1  ;;  %10347 = vmatpush.msra.mxu1 %v20195_v1  ;;  %v20445_v1 = vand.u32 4294901760, %v508_v25 }
 0x592   : > { %10310 = vmatpush.msra.mxu0 %v20281_v37  ;;  %10420 = vmatpush.msra.mxu2 %v10232_v18  ;;  %v20470_v18 = vpop.f32.mrf.mxu3  ;;  %v22478_v37 = vand.u32 4294901760, %v20453_v2  ;;  %v20499_v24 = vsub.f32 %v476_v36, %v20465_v21 }
 0x593   : > { %10467 = vmatpush.msra.mxu3 %v20211_v52  ;;  %10160 = vmatmul.f32.gmra.mxu2 %v23189_v15  ;;  %v20468_v11 = vsub.f32 %v508_v25, %v20445_v1 }
 0x594   : > { %10313 = vmatpush.msra.mxu0 %v20297_v43  ;;  %10349 = vmatpush.msra.mxu1 %v20211_v52  ;;  %v22480_v52 = vand.u32 4294901760, %v20430_v12 }
 0x595   : > { %10424 = vmatpush.msra.mxu2 %v10238_v41  ;;  %10469 = vmatpush.msra.mxu3 %v20232_v45  ;;  %v444_v41 = vld [vmem:[%s13221_s17 + $0x468] sm:$0xff]  ;;  %v22477_v5 = vand.u32 4294901760, %v20468_v11 }
 0x596   : > { %10265 = vmatmul.f32.gmra.mxu3 %v23190_v17  ;;  %10316 = vmatpush.msra.mxu0 %v20312_v56  ;;  %v10545_v56 = vsub.f32 %v20440_v62, %v22479_v32  ;;  %v20495_v10 = vand.u32 4294901760, %v444_v41  ;;  %v20519_v44 = vpop.f32.mrf.mxu2 }
 0x597   : > { %10351 = vmatpush.msra.mxu1 %v20232_v45  ;;  %10428 = vmatpush.msra.mxu2 %v10244_v38  ;;  %v9147_v45 = vadd.f32 %v9146_v57, %v9037_v6  ;;  %v20485_v38 = vand.u32 4294901760, %v460_v46  ;;  %v9364_v6 = vpop.f32.mrf.mxu1  ;;  %v20521_v57 = vand.u32 4294901760, %v412_v8  ;;  %v10557_v63 = vsub.f32 %v20468_v11, %v22477_v5  ;;  %v332_v5 = vld [vmem:[%s13221_s17 + $0xe8] sm:$0xff] }
 0x598   : > { %10471 = vmatpush.msra.mxu3 %v20246_v42  ;;  %10111 = vmatmul.f32.gmra.mxu1 %v23183_v33  ;;  %v10546_v48 = vand.u32 4294901760, %v10545_v56  ;;  %v364_v56 = vld [vmem:[%s13221_s17 + $0x1e8] sm:$0xff] }
 0x599   : > { %10319 = vmatmul.f32.vlgmr.msra.gmra.mxu0 %v23191_v61  ;;  %10353 = vmatpush.msra.mxu1 %v20246_v42  ;;  %v10539_v42 = vsub.f32 %v20430_v12, %v22480_v52  ;;  %v9205_v43 = vadd.f32 %v9204_v55, %v9147_v45  ;;  %v20514_v23 = vsub.f32 %v460_v46, %v20485_v38  ;;  %v23192_v55 = vld [vmem:[#allocation14_spill] sm:$0xff]  ;;  %v780_v61 = vld [vmem:[%s13221_s17 + $0xee8] sm:$0xff] }
 0x59a   : > { %10488 = vmatpush.msrb.mxu0 %v20411_v34  ;;  %10432 = vmatpush.msra.mxu2 %v10250_v60  ;;  %v9323_v60 = vpop.f32.mrf.mxu0  ;;  %v20541_v45 = vpop.f32.mrf.mxu3  ;;  %v748_v33 = vld [vmem:[%s13221_s17 + $0xde8] sm:$0xff] }
 0x59b   : > { %10473 = vmatpush.msra.mxu3 %v20258_v29  ;;  %10355 = vmatpush.msra.mxu1 %v20258_v29  ;;  %v20480_v29 = vsub.f32 %v492_v53, %v20449_v40  ;;  %v10540_v58 = vand.u32 4294901760, %v10539_v42  ;;  %v9249_v59 = vadd.f32 %v20415_v30, %v9205_v43  ;;  %v22474_v30 = vand.u32 4294901760, %v20499_v24 }
 0x59c   : > { %10490 = vmatpush.msrb.mxu0 %v20421_v7  ;;  %10436 = vmatpush.msra.mxu2 %v10256_v14  ;;  %v428_v14 = vld [vmem:[%s13221_s17 + $0x3e8] sm:$0xff]  ;;  %v22476_v46 = vand.u32 4294901760, %v20514_v23 }
 0x59d   : > { %10475 = vmatpush.msra.mxu3 %v20275_v4  ;;  %10438 = vmatmul.f32.vlgmr.msra.gmra.mxu2 %v23188_v50  ;;  %v22475_v47 = vand.u32 4294901760, %v20480_v29  ;;  %v20511_v28 = vand.u32 4294901760, %v428_v14  ;;  %v9324_v36 = vadd.f32 %v9323_v60, %v9249_v59  ;;  %v10558_v60 = vand.u32 4294901760, %v10557_v63 }
 0x59e   : > { %10492 = vmatpush.msrb.mxu0 %v20427_v16  ;;  %10643 = vmatpush.msrb.mxu2 %v20430_v12  ;;  %v9255_v59 = vadd.f32 %v20470_v18, %v9210_v27  ;;  %v812_v27 = vld [vmem:[%s13221_s17 + $0xfe8] sm:$0xff] }
 0x59f   : > { %10357 = vmatpush.msra.mxu1 %v20275_v4  ;;  %10477 = vmatpush.msra.mxu3 %v20291_v20  ;;  %v10551_v4 = vsub.f32 %v20453_v2, %v22478_v37  ;;  %v10563_v53 = vsub.f32 %v20480_v29, %v22475_v47  ;;  %v20545_v42 = vsub.f32 %v428_v14, %v20511_v28  ;;  %v20571_v47 = vand.u32 4294901760, %v364_v56  ;;  %v23196_v37 = vld [vmem:[#allocation17_spill] sm:$0xff] }
 0x5a0   : > { %10479 = vmatmul.f32.vlgmr.msra.gmra.mxu3 %v23188_v50  ;;  %10494 = vmatpush.msrb.mxu0 %v20445_v1  ;;  %v10569_v14 = vsub.f32 %v20499_v24, %v22474_v30  ;;  %v9365_v63 = vadd.f32 %v9364_v6, %v9324_v36  ;;  %v10575_v30 = vsub.f32 %v20514_v23, %v22476_v46  ;;  %v20617_v52 = vand.u32 4294901760, %v812_v27 }
 0x5a1   : > { %10646 = vmatpush.msrb.mxu2 %v20440_v62  ;;  %10701 = vmatpush.msrb.mxu3 %v20411_v34  ;;  %v10552_v25 = vand.u32 4294901760, %v10551_v4  ;;  %v348_v4 = vld [vmem:[%s13221_s17 + $0x168] sm:$0xff]  ;;  %23195 = vst [vmem:[#allocation21_spill] sm:$0xff] %v20571_v47  ;;  %v22482_v18 = vand.u32 4294901760, %v20545_v42  ;;  %v20580_v6 = vsub.f32 %v380_v3, %v20548_v0 }
 0x5a2   : > { %10359 = vmatpush.msra.mxu1 %v20291_v20  ;;  %10496 = vmatpush.msrb.mxu0 %v20449_v40  ;;  %v20530_v20 = vsub.f32 %v444_v41, %v20495_v10  ;;  %v20551_v41 = vsub.f32 %v412_v8, %v20521_v57  ;;  %v9327_v43 = vpop.f32.mrf.mxu0  ;;  %v10564_v8 = vand.u32 4294901760, %v10563_v53  ;;  %v10570_v36 = vand.u32 4294901760, %v10569_v14  ;;  %v316_v3 = vld [vmem:[%s13221_s17 + $0x68] sm:$0xff] }
 0x5a3   : > { %10363 = vmatmul.f32.vlgmr.msra.gmra.mxu1 %v23192_v55  ;;  %10649 = vmatpush.msrb.mxu2 %v20453_v2  ;;  %v9328_v32 = vadd.f32 %v9327_v43, %v9255_v59  ;;  %v10576_v14 = vand.u32 4294901760, %v10575_v30 }
 0x5a4   : > { %10541 = vmatpush.msrb.mxu1 %v10540_v58  ;;  %10703 = vmatpush.msrb.mxu3 %v20421_v7  ;;  %v22481_v58 = vand.u32 4294901760, %v20530_v20  ;;  %v23197_v43 = vand.u32 4294901760, %v20551_v41 }
 0x5a5   : > { %10498 = vmatpush.msrb.mxu0 %v20465_v21  ;;  %10652 = vmatpush.msrb.mxu2 %v20468_v11 }
 0x5a6   : > { %10547 = vmatpush.msrb.mxu1 %v10546_v48  ;;  %10705 = vmatpush.msrb.mxu3 %v20427_v16  ;;  %v20564_v48 = vsub.f32 %v396_v31, %v20537_v54  ;;  %v20576_v31 = vand.u32 4294901760, %v348_v4  ;;  %v10581_v46 = vsub.f32 %v20530_v20, %v22481_v58  ;;  %v10587_v58 = vsub.f32 %v20545_v42, %v22482_v18 }
 0x5a7   : > { %10324 = vmatmul.f32.gmra.mxu0 %v23194_v51  ;;  %10442 = vmatmul.f32.gmra.mxu2 %v23190_v17  ;;  %v20598_v51 = vsub.f32 %v364_v56, %v20571_v47  ;;  %v10593_v59 = vsub.f32 %v20551_v41, %v23197_v43  ;;  %v796_v56 = vld [vmem:[%s13221_s17 + $0xf68] sm:$0xff]  ;;  %v20615_v18 = vand.u32 4294901760, %v316_v3 }
 0x5a8   : > { %10500 = vmatpush.msrb.mxu0 %v20485_v38  ;;  %10553 = vmatpush.msrb.mxu1 %v10552_v25  ;;  %v23198_v43 = vand.u32 4294901760, %v20564_v48  ;;  %v20628_v15 = vand.u32 4294901760, %v796_v56 }
 0x5a9   : > { %10655 = vmatpush.msrb.mxu2 %v20480_v29  ;;  %10707 = vmatpush.msrb.mxu3 %v20445_v1  ;;  %v9368_v25 = vpop.f32.mrf.mxu1  ;;  %v10594_v50 = vand.u32 4294901760, %v10593_v59  ;;  %v20645_v59 = vsub.f32 %v812_v27, %v20617_v52 }
 0x5aa   : > { %10483 = vmatmul.f32.gmra.mxu3 %v23190_v17  ;;  %10502 = vmatpush.msrb.mxu0 %v20495_v10  ;;  %v9417_v53 = vpop.f32.mrf.mxu2  ;;  %v10599_v30 = vsub.f32 %v20564_v48, %v23198_v43  ;;  %v9576_v55 = vpop.f32.mrf.mxu0  ;;  %v23199_v43 = vand.u32 4294901760, %v20580_v6  ;;  %v20656_v27 = vsub.f32 %v796_v56, %v20628_v15  ;;  %v716_v56 = vld [vmem:[%s13221_s17 + $0xce8] sm:$0xff] }
 0x5ab   : > { %10559 = vmatpush.msrb.mxu1 %v10558_v60  ;;  %10658 = vmatpush.msrb.mxu2 %v20499_v24  ;;  %v9410_v60 = vadd.f32 %v20519_v44, %v9365_v63  ;;  %v20607_v44 = vand.u32 4294901760, %v332_v5  ;;  %v10582_v63 = vand.u32 4294901760, %v10581_v46  ;;  %v10588_v46 = vand.u32 4294901760, %v10587_v58  ;;  %23200 = vst [vmem:[#allocation20_spill] sm:$0xff] %v20645_v59 }
 0x5ac   : > { %10709 = vmatpush.msrb.mxu3 %v20449_v40  ;;  %10369 = vmatmul.f32.gmra.mxu1 %v23196_v37  ;;  %23202 = vst [vmem:[#allocation22_spill] sm:$0xff] %v20656_v27 }
 0x5ad   : > { %10504 = vmatpush.msrb.mxu0 %v20511_v28  ;;  %10565 = vmatpush.msrb.mxu1 %v10564_v8  ;;  %v20600_v37 = vpop.f32.mrf.mxu3  ;;  %v20611_v8 = vsub.f32 %v348_v4, %v20576_v31  ;;  %v9369_v4 = vadd.f32 %v9368_v25, %v9328_v32  ;;  %v9519_v17 = vadd.f32 %v20541_v45, %v9410_v60  ;;  %v764_v60 = vld [vmem:[%s13221_s17 + $0xe68] sm:$0xff] }
 0x5ae   : > { %10661 = vmatpush.msrb.mxu2 %v20514_v23  ;;  %10711 = vmatpush.msrb.mxu3 %v20465_v21  ;;  %v10605_v32 = vsub.f32 %v20580_v6, %v23199_v43  ;;  %v20636_v25 = vsub.f32 %v332_v5, %v20607_v44  ;;  %v10600_v5 = vand.u32 4294901760, %v10599_v30 }
 0x5af   : > { %10506 = vmatpush.msrb.mxu0 %v20521_v57  ;;  %10571 = vmatpush.msrb.mxu1 %v10570_v36  ;;  %v9577_v58 = vadd.f32 %v9576_v55, %v9519_v17  ;;  %v20647_v36 = vand.u32 4294901760, %v780_v61  ;;  %v9418_v43 = vadd.f32 %v9417_v53, %v9369_v4  ;;  %v23201_v17 = vand.u32 4294901760, %v20598_v51 }
 0x5b0   : > { %10664 = vmatpush.msrb.mxu2 %v20530_v20  ;;  %10713 = vmatpush.msrb.mxu3 %v20485_v38  ;;  %v10606_v53 = vand.u32 4294901760, %v10605_v32  ;;  %v23203_v30 = vand.u32 4294901760, %v20611_v8  ;;  %v732_v32 = vld [vmem:[%s13221_s17 + $0xd68] sm:$0xff] }
 0x5b1   : > { %10508 = vmatpush.msrb.mxu0 %v20537_v54  ;;  %10577 = vmatpush.msrb.mxu1 %v10576_v14  ;;  %v20642_v14 = vsub.f32 %v316_v3, %v20615_v18  ;;  %v10611_v55 = vsub.f32 %v20598_v51, %v23201_v17 }
 0x5b2   : > { %10667 = vmatpush.msrb.mxu2 %v20545_v42  ;;  %10715 = vmatpush.msrb.mxu3 %v20495_v10  ;;  %v10617_v4 = vsub.f32 %v20611_v8, %v23203_v30  ;;  %v9523_v30 = vadd.f32 %v20600_v37, %v9418_v43  ;;  %v23204_v43 = vand.u32 4294901760, %v20636_v25 }
 0x5b3   : > { %10510 = vmatpush.msrb.mxu0 %v20548_v0  ;;  %10583 = vmatpush.msrb.mxu1 %v10582_v63  ;;  %v20658_v63 = vand.u32 4294901760, %v764_v60 }
 0x5b4   : > { %10670 = vmatpush.msrb.mxu2 %v20551_v41  ;;  %10717 = vmatpush.msrb.mxu3 %v20511_v28  ;;  %v9620_v45 = vpop.f32.mrf.mxu1  ;;  %v9695_v13 = vpop.f32.mrf.mxu2  ;;  %v10618_v37 = vand.u32 4294901760, %v10617_v4  ;;  %v10623_v49 = vsub.f32 %v20636_v25, %v23204_v43 }
 0x5b5   : > { %10512 = vmatpush.msrb.mxu0 %v20571_v47  ;;  %10589 = vmatpush.msrb.mxu1 %v10588_v46  ;;  %v9621_v3 = vadd.f32 %v9620_v45, %v9577_v58  ;;  %v20671_v58 = vsub.f32 %v780_v61, %v20647_v36  ;;  %v20677_v46 = vand.u32 4294901760, %v748_v33  ;;  %v20682_v61 = vsub.f32 %v764_v60, %v20658_v63  ;;  %v700_v45 = vld [vmem:[%s13221_s17 + $0xc68] sm:$0xff] }
 0x5b6   : > { %10673 = vmatpush.msrb.mxu2 %v20564_v48  ;;  %10719 = vmatpush.msrb.mxu3 %v20521_v57  ;;  %v23205_v60 = vand.u32 4294901760, %v20645_v59 }
 0x5b7   : > { %10514 = vmatpush.msrb.mxu0 %v20576_v31  ;;  %10595 = vmatpush.msrb.mxu1 %v10594_v50  ;;  %v9696_v17 = vadd.f32 %v9695_v13, %v9621_v3  ;;  %v9736_v26 = vpop.f32.mrf.mxu3  ;;  %v10612_v50 = vand.u32 4294901760, %v10611_v55  ;;  %v23206_v55 = vand.u32 4294901760, %v20642_v14  ;;  %v20704_v35 = vsub.f32 %v748_v33, %v20677_v46 }
 0x5b8   : > { %10676 = vmatpush.msrb.mxu2 %v20580_v6  ;;  %10721 = vmatpush.msrb.mxu3 %v20537_v54  ;;  %v9581_v13 = vpop.f32.mrf.mxu0  ;;  %v10624_v33 = vand.u32 4294901760, %v10623_v49  ;;  %v23210_v4 = vand.u32 4294901760, %v20671_v58 }
 0x5b9   : > { %10516 = vmatpush.msrb.mxu0 %v20607_v44  ;;  %10601 = vmatpush.msrb.mxu1 %v10600_v5  ;;  %v9737_v3 = vadd.f32 %v9736_v26, %v9696_v17  ;;  %v20690_v5 = vand.u32 4294901760, %v732_v32  ;;  %v10911_v26 = vsub.f32 %v20645_v59, %v23205_v60  ;;  %v10629_v17 = vsub.f32 %v20642_v14, %v23206_v55 }
 0x5ba   : > { %10679 = vmatpush.msrb.mxu2 %v20598_v51  ;;  %10723 = vmatpush.msrb.mxu3 %v20548_v0  ;;  %v9582_v43 = vadd.f32 %v9581_v13, %v9523_v30  ;;  %v23207_v0 = vand.u32 4294901760, %v20430_v12  ;;  %v23208_v60 = vand.u32 4294901760, %v20656_v27  ;;  %v23209_v13 = vand.u32 4294901760, %v20440_v62 }
 0x5bb   : > { %10518 = vmatpush.msrb.mxu0 %v20615_v18  ;;  %10607 = vmatpush.msrb.mxu1 %v10606_v53  ;;  %v20706_v53 = vand.u32 4294901760, %v716_v56  ;;  %12762 = vst [vmem:[%s14629_s29 + $0x58] sm:$0xff] %v9737_v3  ;;  %v20719_v30 = vsub.f32 %v732_v32, %v20690_v5  ;;  %v10630_v3 = vand.u32 4294901760, %v10629_v17  ;;  %v10934_v49 = vand.u32 4294901760, %v20704_v35 }
 0x5bc   : > { %10682 = vmatpush.msrb.mxu2 %v20611_v8  ;;  %10725 = vmatpush.msrb.mxu3 %v20571_v47  ;;  %v10917_v55 = vsub.f32 %v20656_v27, %v23208_v60  ;;  %v684_v47 = vld [vmem:[%s13221_s17 + $0xbe8] sm:$0xff]  ;;  %v10912_v60 = vand.u32 4294901760, %v10911_v26  ;;  %v10923_v27 = vsub.f32 %v20671_v58, %v23210_v4  ;;  %v23212_v17 = vand.u32 4294901760, %v20682_v61 }
 0x5bd   : > { %10748 = vmatpush.msra.mxu0 %v23207_v0  ;;  %10613 = vmatpush.msrb.mxu1 %v10612_v50  ;;  %v9626_v59 = vpop.f32.mrf.mxu1  ;;  %v20721_v0 = vand.u32 4294901760, %v700_v45  ;;  %v20735_v32 = vand.u32 4294901760, %v684_v47 }
 0x5be   : > { %10685 = vmatpush.msrb.mxu2 %v20636_v25  ;;  %10727 = vmatpush.msrb.mxu3 %v20576_v31  ;;  %v9627_v12 = vadd.f32 %v9626_v59, %v9582_v43  ;;  %v9699_v50 = vpop.f32.mrf.mxu2  ;;  %v20733_v59 = vsub.f32 %v716_v56, %v20706_v53  ;;  %v10918_v26 = vand.u32 4294901760, %v10917_v55  ;;  %v10929_v4 = vsub.f32 %v20682_v61, %v23212_v17 }
 0x5bf   : > { %10752 = vmatpush.msra.mxu0 %v23209_v13  ;;  %10619 = vmatpush.msrb.mxu1 %v10618_v37  ;;  %v23211_v37 = vand.u32 4294901760, %v20453_v2  ;;  %v10940_v56 = vand.u32 4294901760, %v20719_v30  ;;  %v20748_v2 = vand.u32 4294901760, %v668_v39  ;;  %v652_v13 = vld [vmem:[%s13221_s17 + $0xae8] sm:$0xff]  ;;  %v23213_v55 = vand.u32 4294901760, %v20468_v11 }
 0x5c0   : > { %10688 = vmatpush.msrb.mxu2 %v20642_v14  ;;  %10729 = vmatpush.msrb.mxu3 %v20607_v44  ;;  %v9700_v62 = vadd.f32 %v9699_v50, %v9627_v12  ;;  %v20746_v12 = vsub.f32 %v700_v45, %v20721_v0  ;;  %v10946_v45 = vand.u32 4294901760, %v20733_v59  ;;  %v23214_v17 = vand.u32 4294901760, %v20480_v29 }
 0x5c1   : > { %10756 = vmatpush.msra.mxu0 %v23211_v37  ;;  %v9740_v43 = vpop.f32.mrf.mxu3  ;;  %10625 = vmatpush.msrb.mxu1 %v10624_v33  ;;  %v10924_v37 = vand.u32 4294901760, %v10923_v27  ;;  %v10935_v33 = vsub.f32 %v20704_v35, %v10934_v49  ;;  %v20764_v11 = vand.u32 4294901760, %v652_v13  ;;  %v636_v27 = vld [vmem:[%s13221_s17 + $0xa68] sm:$0xff]  ;;  %v20774_v29 = vsub.f32 %v668_v39, %v20748_v2 }
 0x5c2   : > { %10860 = vmatpush.msra.mxu2 %v20617_v52  ;;  %10731 = vmatpush.msrb.mxu3 %v20615_v18  ;;  %v9741_v50 = vadd.f32 %v9740_v43, %v9700_v62  ;;  %v20759_v62 = vsub.f32 %v684_v47, %v20735_v32  ;;  %v10952_v47 = vand.u32 4294901760, %v20746_v12  ;;  %v620_v43 = vld [vmem:[%s13221_s17 + $0x9e8] sm:$0xff]  ;;  %v23216_v39 = vand.u32 4294901760, %v20514_v23 }
 0x5c3   : > { %10760 = vmatpush.msra.mxu0 %v23213_v55  ;;  %10631 = vmatpush.msrb.mxu1 %v10630_v3  ;;  %v10941_v3 = vsub.f32 %v20719_v30, %v10940_v56  ;;  %v23217_v23 = vand.u32 4294901760, %v20530_v20  ;;  %v23218_v20 = vand.u32 4294901760, %v20545_v42 }
 0x5c4   : > { %10862 = vmatpush.msra.mxu2 %v20628_v15  ;;  %10913 = vmatpush.msra.mxu3 %v10912_v60  ;;  %v10930_v60 = vand.u32 4294901760, %v10929_v4  ;;  %12778 = vst [vmem:[%s14629_s29 + $0xd8] sm:$0xff] %v9741_v50  ;;  %v10947_v4 = vsub.f32 %v20733_v59, %v10946_v45  ;;  %v10958_v55 = vand.u32 4294901760, %v20759_v62  ;;  %v20785_v50 = vand.u32 4294901760, %v636_v27 }
 0x5c5   : > { %10764 = vmatpush.msra.mxu0 %v23214_v17  ;;  %10819 = vmatpush.msra.mxu1 %v20411_v34  ;;  %v23215_v34 = vand.u32 4294901760, %v20499_v24  ;;  %v604_v24 = vld [vmem:[%s13221_s17 + $0x968] sm:$0xff]  ;;  %v10964_v17 = vand.u32 4294901760, %v20774_v29 }
 0x5c6   : > { %10864 = vmatpush.msra.mxu2 %v20647_v36  ;;  %10919 = vmatpush.msra.mxu3 %v10918_v26  ;;  %v10936_v26 = vand.u32 4294901760, %v10935_v33  ;;  %v10953_v33 = vsub.f32 %v20746_v12, %v10952_v47 }
 0x5c7   : > { %10768 = vmatpush.msra.mxu0 %v23215_v34  ;;  %10821 = vmatpush.msra.mxu1 %v20421_v7  ;;  %v20791_v7 = vsub.f32 %v652_v13, %v20764_v11  ;;  %v20799_v34 = vand.u32 4294901760, %v620_v43  ;;  %v10959_v13 = vsub.f32 %v20759_v62, %v10958_v55 }
 0x5c8   : > { %10866 = vmatpush.msra.mxu2 %v20658_v63  ;;  %10925 = vmatpush.msra.mxu3 %v10924_v37  ;;  %v10942_v37 = vand.u32 4294901760, %v10941_v3  ;;  %v20811_v3 = vand.u32 4294901760, %v604_v24 }
 0x5c9   : > { %10772 = vmatpush.msra.mxu0 %v23216_v39  ;;  %10823 = vmatpush.msra.mxu1 %v20427_v16  ;;  %v10948_v16 = vand.u32 4294901760, %v10947_v4  ;;  %v588_v39 = vld [vmem:[%s13221_s17 + $0x8e8] sm:$0xff]  ;;  %v10965_v4 = vsub.f32 %v20774_v29, %v10964_v17 }
 0x5ca   : > { %10868 = vmatpush.msra.mxu2 %v20677_v46  ;;  %10931 = vmatpush.msra.mxu3 %v10930_v60  ;;  %v20809_v60 = vsub.f32 %v636_v27, %v20785_v50  ;;  %v20823_v27 = vsub.f32 %v620_v43, %v20799_v34  ;;  %v20828_v42 = vand.u32 4294901760, %v588_v39  ;;  %v23220_v43 = vand.u32 4294901760, %v20564_v48 }
 0x5cb   : > { %10776 = vmatpush.msra.mxu0 %v23217_v23  ;;  %10825 = vmatpush.msra.mxu1 %v20445_v1  ;;  %v10970_v1 = vand.u32 4294901760, %v20791_v7  ;;  %v23219_v23 = vand.u32 4294901760, %v20551_v41  ;;  %v10966_v41 = vand.u32 4294901760, %v10965_v4  ;;  %v23222_v4 = vand.u32 4294901760, %v20598_v51 }
 0x5cc   : > { %10870 = vmatpush.msra.mxu2 %v20690_v5  ;;  %10937 = vmatpush.msra.mxu3 %v10936_v26  ;;  %v10954_v26 = vand.u32 4294901760, %v10953_v33  ;;  %v10976_v33 = vand.u32 4294901760, %v20809_v60  ;;  %v20850_v48 = vsub.f32 %v588_v39, %v20828_v42 }
 0x5cd   : > { %10780 = vmatpush.msra.mxu0 %v23218_v20  ;;  %10827 = vmatpush.msra.mxu1 %v20449_v40  ;;  %v572_v40 = vld [vmem:[%s13221_s17 + $0x868] sm:$0xff]  ;;  %v20834_v20 = vsub.f32 %v604_v24, %v20811_v3  ;;  %v23221_v24 = vand.u32 4294901760, %v20580_v6 }
 0x5ce   : > { %10872 = vmatpush.msra.mxu2 %v20706_v53  ;;  %10943 = vmatpush.msra.mxu3 %v10942_v37  ;;  %v10960_v37 = vand.u32 4294901760, %v10959_v13  ;;  %v20844_v13 = vand.u32 4294901760, %v572_v40  ;;  %v10994_v51 = vand.u32 4294901760, %v20850_v48 }
 0x5cf   : > { %10784 = vmatpush.msra.mxu0 %v23219_v23  ;;  %10829 = vmatpush.msra.mxu1 %v20465_v21  ;;  %v10971_v21 = vsub.f32 %v20791_v7, %v10970_v1  ;;  %v23223_v23 = vand.u32 4294901760, %v20611_v8 }
 0x5d0   : > { %10874 = vmatpush.msra.mxu2 %v20721_v0  ;;  %10949 = vmatpush.msra.mxu3 %v10948_v16  ;;  %v10982_v16 = vand.u32 4294901760, %v20823_v27  ;;  %v20865_v39 = vsub.f32 %v572_v40, %v20844_v13  ;;  %v23224_v40 = vand.u32 4294901760, %v20636_v25  ;;  %v23227_v25 = vld [vmem:[#allocation19_spill] sm:$0xff] }
 0x5d1   : > { %10788 = vmatpush.msra.mxu0 %v23220_v43  ;;  %10831 = vmatpush.msra.mxu1 %v20485_v38  ;;  %v10977_v38 = vsub.f32 %v20809_v60, %v10976_v33  ;;  %v10972_v6 = vand.u32 4294901760, %v10971_v21  ;;  %v23225_v21 = vld [vmem:[#allocation7_spill] sm:$0xff] }
 0x5d2   : > { %10876 = vmatpush.msra.mxu2 %v20735_v32  ;;  %10955 = vmatpush.msra.mxu3 %v10954_v26  ;;  %v10988_v26 = vand.u32 4294901760, %v20834_v20  ;;  %v11000_v43 = vand.u32 4294901760, %v20865_v39 }
 0x5d3   : > { %10792 = vmatpush.msra.mxu0 %v23221_v24  ;;  %10833 = vmatpush.msra.mxu1 %v20495_v10  ;;  %v10983_v10 = vsub.f32 %v20823_v27, %v10982_v16  ;;  %v23226_v24 = vand.u32 4294901760, %v20642_v14  ;;  %v23231_v14 = vld [vmem:[#allocation22_spill] sm:$0xff] }
 0x5d4   : > { %10878 = vmatpush.msra.mxu2 %v20748_v2  ;;  %10961 = vmatpush.msra.mxu3 %v10960_v37  ;;  %v10989_v37 = vsub.f32 %v20834_v20, %v10988_v26 }
 0x5d5   : > { %10796 = vmatpush.msra.mxu0 %v23222_v4  ;;  %10835 = vmatpush.msra.mxu1 %v20511_v28  ;;  %v10978_v28 = vand.u32 4294901760, %v10977_v38  ;;  %v10984_v8 = vand.u32 4294901760, %v10983_v10  ;;  %v23228_v38 = vld [vmem:[#allocation20_spill] sm:$0xff]  ;;  %v23229_v4 = vld [vmem:[#allocation21_spill] sm:$0xff] }
 0x5d6   : > { %10880 = vmatpush.msra.mxu2 %v20764_v11  ;;  %10967 = vmatpush.msra.mxu3 %v10966_v41  ;;  %v10990_v41 = vand.u32 4294901760, %v10989_v37  ;;  %v23230_v10 = vld [vmem:[#allocation9_spill] sm:$0xff]  ;;  %v23233_v37 = vld [vmem:[#allocation10_spill] sm:$0xff] }
 0x5d7   : > { %10691 = vmatmul.f32.vlgmr.msrb.gmra.mxu2 %v13564_v19  ;;  %10800 = vmatpush.msra.mxu0 %v23223_v23 }
 0x5d8   : > { %10837 = vmatpush.msra.mxu1 %v20521_v57  ;;  %10882 = vmatpush.msra.mxu2 %v20785_v50  ;;  %v10995_v57 = vsub.f32 %v20850_v48, %v10994_v51 }
 0x5d9   : > { %10973 = vmatpush.msra.mxu3 %v10972_v6  ;;  %10524 = vmatmul.f32.vlgmr.msrb.gmra.mxu0 %v13645_v22 }
 0x5da   : > { %10735 = vmatmul.f32.vlgmr.msrb.gmra.mxu3 %v13594_v9  ;;  %10804 = vmatpush.msra.mxu0 %v23224_v40  ;;  %v10996_v6 = vand.u32 4294901760, %v10995_v57  ;;  %v23234_v40 = vand.u32 4294901760, %v23228_v38  ;;  %v23237_v57 = vand.u32 4294901760, %v20671_v58 }
 0x5db   : > { %10839 = vmatpush.msra.mxu1 %v20537_v54  ;;  %10884 = vmatpush.msra.mxu2 %v20799_v34  ;;  %v11001_v54 = vsub.f32 %v20865_v39, %v11000_v43 }
 0x5dc   : > { %10979 = vmatpush.msra.mxu3 %v10978_v28  ;;  %10633 = vmatmul.f32.vlgmr.msrb.gmra.mxu1 %v23225_v21  ;;  %v23232_v28 = vld [vmem:[#allocation13_spill] sm:$0xff] }
 0x5dd   : > { %10808 = vmatpush.msra.mxu0 %v23226_v24  ;;  %10841 = vmatpush.msra.mxu1 %v23227_v25  ;;  %v11002_v23 = vand.u32 4294901760, %v11001_v54 }
 0x5de   : > { %10886 = vmatpush.msra.mxu2 %v20811_v3  ;;  %10985 = vmatpush.msra.mxu3 %v10984_v8  ;;  %v23235_v8 = vld [vmem:[#allocation8_spill] sm:$0xff] }
 0x5df   : > { %11015 = vmatpush.msrb.mxu0 %v23228_v38  ;;  %10843 = vmatpush.msra.mxu1 %v23229_v4  ;;  %v413_v38 = vld [vmem:[%s13221_s17 + $0x370] sm:$0xff] }
 0x5e0   : > { %10888 = vmatpush.msra.mxu2 %v20828_v42  ;;  %10991 = vmatpush.msra.mxu3 %v10990_v41  ;;  %v23239_v41 = vand.u32 4294901760, %v20682_v61 }
 0x5e1   : > { %10696 = vmatmul.f32.gmra.mxu2 %v23230_v10  ;;  %11018 = vmatpush.msrb.mxu0 %v23231_v14 }
 0x5e2   : > { %10845 = vmatpush.msra.mxu1 %v20576_v31  ;;  %10890 = vmatpush.msra.mxu2 %v20844_v13  ;;  %v23236_v31 = vand.u32 4294901760, %v23231_v14 }
 0x5e3   : > { %10997 = vmatpush.msra.mxu3 %v10996_v6  ;;  %10532 = vmatmul.f32.gmra.mxu0 %v23232_v28 }
 0x5e4   : > { %10741 = vmatmul.f32.gmra.mxu3 %v23233_v37  ;;  %11021 = vmatpush.msrb.mxu0 %v20671_v58 }
 0x5e5   : > { %11120 = vmatpush.msrb.mxu2 %v23234_v40  ;;  %10847 = vmatpush.msra.mxu1 %v20607_v44  ;;  %v23238_v44 = vld [vmem:[#allocation15_spill] sm:$0xff] }
 0x5e6   : > { %11003 = vmatpush.msra.mxu3 %v11002_v23  ;;  %10637 = vmatmul.f32.gmra.mxu1 %v23235_v8 }
 0x5e7   : > { %11024 = vmatpush.msrb.mxu0 %v20682_v61  ;;  %11124 = vmatpush.msrb.mxu2 %v23236_v31  ;;  %v525_v61 = vld [vmem:[%s13221_s17 + $0x6f0] sm:$0xff] }
 0x5e8   : > { %11191 = vmatpush.msrb.mxu3 %v20617_v52  ;;  %10849 = vmatpush.msra.mxu1 %v20615_v18  ;;  %v23240_v18 = vld [vmem:[#allocation11_spill] sm:$0xff] }
 0x5e9   : > { %11027 = vmatpush.msrb.mxu0 %v20704_v35  ;;  %11128 = vmatpush.msrb.mxu2 %v23237_v57  ;;  %v397_v57 = vld [vmem:[%s13221_s17 + $0x2f0] sm:$0xff] }
 0x5ea   : > { %11073 = vmatpush.msrb.mxu1 %v20617_v52  ;;  %11193 = vmatpush.msrb.mxu3 %v20628_v15  ;;  %v9781_v35 = vpop.f32.mrf.mxu0 }
 0x5eb   : > { %10896 = vmatmul.f32.vlgmr.msra.gmra.mxu2 %v23238_v44  ;;  %11030 = vmatpush.msrb.mxu0 %v20719_v30  ;;  %v20980_v30 = vand.u32 4294901760, %v525_v61 }
 0x5ec   : > { %11075 = vmatpush.msrb.mxu1 %v20628_v15  ;;  %11132 = vmatpush.msrb.mxu2 %v23239_v41  ;;  %v557_v15 = vld [vmem:[%s13221_s17 + $0x7f0] sm:$0xff] }
 0x5ed   : > { %11195 = vmatpush.msrb.mxu3 %v20647_v36  ;;  %10810 = vmatmul.f32.vlgmr.msra.gmra.mxu0 %v23225_v21  ;;  %v9890_v52 = vpop.f32.mrf.mxu1 }
 0x5ee   : > { %11005 = vmatmul.f32.vlgmr.msra.gmra.mxu3 %v23240_v18  ;;  %11033 = vmatpush.msrb.mxu0 %v20733_v59  ;;  %v509_v59 = vld [vmem:[%s13221_s17 + $0x670] sm:$0xff] }
 0x5ef   : > { %11077 = vmatpush.msrb.mxu1 %v20647_v36  ;;  %11136 = vmatpush.msrb.mxu2 %v10934_v49  ;;  %v9948_v36 = vpop.f32.mrf.mxu2 }
 0x5f0   : > { %11197 = vmatpush.msrb.mxu3 %v20658_v63  ;;  %10851 = vmatmul.f32.vlgmr.msra.gmra.mxu1 %v23225_v21  ;;  %v669_v21 = vld [vmem:[%s13221_s17 + $0xb70] sm:$0xff] }
 0x5f1   : > { %11036 = vmatpush.msrb.mxu0 %v20746_v12  ;;  %11079 = vmatpush.msrb.mxu1 %v20658_v63  ;;  %v541_v63 = vld [vmem:[%s13221_s17 + $0x770] sm:$0xff]  ;;  %v20968_v58 = vpop.f32.mrf.mxu3 }
 0x5f2   : > { %11140 = vmatpush.msrb.mxu2 %v10940_v56  ;;  %11199 = vmatpush.msrb.mxu3 %v20677_v46  ;;  %v23242_v56 = vld [vmem:[#allocation6_spill] sm:$0xff] }
 0x5f3   : > { %11039 = vmatpush.msrb.mxu0 %v20759_v62  ;;  %11081 = vmatpush.msrb.mxu1 %v20677_v46  ;;  %v20964_v46 = vand.u32 4294901760, %v557_v15 }
 0x5f4   : > { %11144 = vmatpush.msrb.mxu2 %v10946_v45  ;;  %11201 = vmatpush.msrb.mxu3 %v20690_v5  ;;  %v9789_v49 = vpop.f32.mrf.mxu0 }
 0x5f5   : > { %11042 = vmatpush.msrb.mxu0 %v20774_v29  ;;  %11083 = vmatpush.msrb.mxu1 %v20690_v5  ;;  %v20974_v5 = vand.u32 4294901760, %v541_v63 }
 0x5f6   : > { %11148 = vmatpush.msrb.mxu2 %v10952_v47  ;;  %11203 = vmatpush.msrb.mxu3 %v20706_v53  ;;  %v21006_v47 = vsub.f32 %v525_v61, %v20980_v30  ;;  %v381_v61 = vld [vmem:[%s13221_s17 + $0x270] sm:$0xff] }
 0x5f7   : > { %11045 = vmatpush.msrb.mxu0 %v20791_v7  ;;  %11085 = vmatpush.msrb.mxu1 %v20706_v53  ;;  %v23241_v53 = vld [vmem:[#allocation18_spill] sm:$0xff]  ;;  %v20993_v12 = vsub.f32 %v541_v63, %v20974_v5  ;;  %v9894_v45 = vpop.f32.mrf.mxu1  ;;  %v23243_v7 = vld [vmem:[#allocation12_spill] sm:$0xff] }
 0x5f8   : > { %11152 = vmatpush.msrb.mxu2 %v10958_v55  ;;  %11205 = vmatpush.msrb.mxu3 %v20721_v0  ;;  %v9953_v29 = vpop.f32.mrf.mxu2  ;;  %v477_v55 = vld [vmem:[%s13221_s17 + $0x570] sm:$0xff]  ;;  %v9895_v4 = vadd.f32 %v9894_v45, %v9789_v49  ;;  %v21090_v45 = vand.u32 4294901760, %v397_v57 }
 0x5f9   : > { %11048 = vmatpush.msrb.mxu0 %v20809_v60  ;;  %11087 = vmatpush.msrb.mxu1 %v20721_v0  ;;  %v20983_v0 = vsub.f32 %v557_v15, %v20964_v46  ;;  %v461_v60 = vld [vmem:[%s13221_s17 + $0x4f0] sm:$0xff] }
 0x5fa   : > { %11156 = vmatpush.msrb.mxu2 %v10964_v17  ;;  %11207 = vmatpush.msrb.mxu3 %v20735_v32  ;;  %v22498_v17 = vand.u32 4294901760, %v20993_v12  ;;  %v9954_v49 = vadd.f32 %v9953_v29, %v9895_v4  ;;  %v21101_v29 = vand.u32 4294901760, %v381_v61  ;;  %v23246_v4 = vld [vmem:[#allocation16_spill] sm:$0xff] }
 0x5fb   : > { %10814 = vmatmul.f32.gmra.mxu0 %v23235_v8  ;;  %11089 = vmatpush.msrb.mxu1 %v20735_v32  ;;  %v493_v32 = vld [vmem:[%s13221_s17 + $0x5f0] sm:$0xff] }
 0x5fc   : > { %11051 = vmatpush.msrb.mxu0 %v20823_v27  ;;  %11160 = vmatpush.msrb.mxu2 %v10970_v1  ;;  %v21002_v62 = vand.u32 4294901760, %v493_v32  ;;  %v21018_v1 = vand.u32 4294901760, %v477_v55  ;;  %23245 = vst [vmem:[#allocation19_spill] sm:$0xff] %v21101_v29 }
 0x5fd   : > { %11209 = vmatpush.msrb.mxu3 %v20748_v2  ;;  %11091 = vmatpush.msrb.mxu1 %v20748_v2  ;;  %v20998_v2 = vand.u32 4294901760, %v509_v59 }
 0x5fe   : > { %11054 = vmatpush.msrb.mxu0 %v20834_v20  ;;  %11164 = vmatpush.msrb.mxu2 %v10976_v33  ;;  %v21023_v33 = vpop.f32.mrf.mxu3  ;;  %v22497_v20 = vand.u32 4294901760, %v21006_v47  ;;  %v21052_v54 = vsub.f32 %v477_v55, %v21018_v1 }
 0x5ff   : > { %11211 = vmatpush.msrb.mxu3 %v20764_v11  ;;  %10904 = vmatmul.f32.gmra.mxu2 %v23241_v53  ;;  %v21021_v27 = vsub.f32 %v509_v59, %v20998_v2 }
 0x600   : > { %11057 = vmatpush.msrb.mxu0 %v20850_v48  ;;  %11093 = vmatpush.msrb.mxu1 %v20764_v11  ;;  %v22499_v11 = vand.u32 4294901760, %v20983_v0 }
 0x601   : > { %11168 = vmatpush.msrb.mxu2 %v10982_v16  ;;  %11213 = vmatpush.msrb.mxu3 %v20785_v50  ;;  %v445_v16 = vld [vmem:[%s13221_s17 + $0x470] sm:$0xff]  ;;  %v22496_v25 = vand.u32 4294901760, %v21021_v27 }
 0x602   : > { %11009 = vmatmul.f32.gmra.mxu3 %v23242_v56  ;;  %11060 = vmatpush.msrb.mxu0 %v20865_v39  ;;  %v11289_v39 = vsub.f32 %v20993_v12, %v22498_v17  ;;  %v21048_v24 = vand.u32 4294901760, %v445_v16  ;;  %v21072_v15 = vpop.f32.mrf.mxu2 }
 0x603   : > { %11095 = vmatpush.msrb.mxu1 %v20785_v50  ;;  %11172 = vmatpush.msrb.mxu2 %v10988_v26  ;;  %v9891_v50 = vadd.f32 %v9890_v52, %v9781_v35  ;;  %v21038_v26 = vand.u32 4294901760, %v461_v60  ;;  %v10108_v35 = vpop.f32.mrf.mxu1  ;;  %v21074_v52 = vand.u32 4294901760, %v413_v38  ;;  %v11301_v63 = vsub.f32 %v21021_v27, %v22496_v25  ;;  %v333_v25 = vld [vmem:[%s13221_s17 + $0xf0] sm:$0xff] }
 0x604   : > { %11215 = vmatpush.msrb.mxu3 %v20799_v34  ;;  %10855 = vmatmul.f32.gmra.mxu1 %v23235_v8  ;;  %v11290_v41 = vand.u32 4294901760, %v11289_v39  ;;  %v365_v39 = vld [vmem:[%s13221_s17 + $0x1f0] sm:$0xff] }
 0x605   : > { %11063 = vmatmul.f32.vlgmr.msrb.gmra.mxu0 %v23243_v7  ;;  %11097 = vmatpush.msrb.mxu1 %v20799_v34  ;;  %v11283_v34 = vsub.f32 %v20983_v0, %v22499_v11  ;;  %v9949_v48 = vadd.f32 %v9948_v36, %v9891_v50  ;;  %v21067_v31 = vsub.f32 %v461_v60, %v21038_v26  ;;  %v23244_v36 = vld [vmem:[#allocation14_spill] sm:$0xff]  ;;  %v781_v7 = vld [vmem:[%s13221_s17 + $0xef0] sm:$0xff] }
 0x606   : > { %11232 = vmatpush.msra.mxu0 %v20964_v46  ;;  %11176 = vmatpush.msrb.mxu2 %v10994_v51  ;;  %v10067_v51 = vpop.f32.mrf.mxu0  ;;  %v21094_v50 = vpop.f32.mrf.mxu3  ;;  %v749_v8 = vld [vmem:[%s13221_s17 + $0xdf0] sm:$0xff] }
 0x607   : > { %11217 = vmatpush.msrb.mxu3 %v20811_v3  ;;  %11099 = vmatpush.msrb.mxu1 %v20811_v3  ;;  %v21033_v3 = vsub.f32 %v493_v32, %v21002_v62  ;;  %v11284_v6 = vand.u32 4294901760, %v11283_v34  ;;  %v9993_v23 = vadd.f32 %v20968_v58, %v9949_v48  ;;  %v22493_v58 = vand.u32 4294901760, %v21052_v54 }
 0x608   : > { %11234 = vmatpush.msra.mxu0 %v20974_v5  ;;  %11180 = vmatpush.msrb.mxu2 %v11000_v43  ;;  %v429_v43 = vld [vmem:[%s13221_s17 + $0x3f0] sm:$0xff]  ;;  %v22495_v60 = vand.u32 4294901760, %v21067_v31 }
 0x609   : > { %11219 = vmatpush.msrb.mxu3 %v20828_v42  ;;  %11182 = vmatmul.f32.vlgmr.msrb.gmra.mxu2 %v23240_v18  ;;  %v22494_v14 = vand.u32 4294901760, %v21033_v3  ;;  %v21064_v40 = vand.u32 4294901760, %v429_v43  ;;  %v10068_v55 = vadd.f32 %v10067_v51, %v9993_v23  ;;  %v11302_v51 = vand.u32 4294901760, %v11301_v63 }
 0x60a   : > { %11236 = vmatpush.msra.mxu0 %v20980_v30  ;;  %11387 = vmatpush.msra.mxu2 %v20983_v0  ;;  %v9999_v23 = vadd.f32 %v21023_v33, %v9954_v49  ;;  %v813_v49 = vld [vmem:[%s13221_s17 + $0xff0] sm:$0xff] }
 0x60b   : > { %11101 = vmatpush.msrb.mxu1 %v20828_v42  ;;  %11221 = vmatpush.msrb.mxu3 %v20844_v13  ;;  %v11295_v42 = vsub.f32 %v21006_v47, %v22497_v20  ;;  %v11307_v32 = vsub.f32 %v21033_v3, %v22494_v14  ;;  %v21098_v34 = vsub.f32 %v429_v43, %v21064_v40  ;;  %v21124_v14 = vand.u32 4294901760, %v365_v39  ;;  %v23248_v20 = vld [vmem:[#allocation17_spill] sm:$0xff] }
 0x60c   : > { %11223 = vmatmul.f32.vlgmr.msrb.gmra.mxu3 %v23240_v18  ;;  %11238 = vmatpush.msra.mxu0 %v20998_v2  ;;  %v11313_v43 = vsub.f32 %v21052_v54, %v22493_v58  ;;  %v10109_v63 = vadd.f32 %v10108_v35, %v10068_v55  ;;  %v11319_v58 = vsub.f32 %v21067_v31, %v22495_v60  ;;  %v21170_v11 = vand.u32 4294901760, %v813_v49 }
 0x60d   : > { %11390 = vmatpush.msra.mxu2 %v20993_v12  ;;  %11445 = vmatpush.msra.mxu3 %v20964_v46  ;;  %v11296_v59 = vand.u32 4294901760, %v11295_v42  ;;  %v349_v42 = vld [vmem:[%s13221_s17 + $0x170] sm:$0xff]  ;;  %23247 = vst [vmem:[#allocation20_spill] sm:$0xff] %v21124_v14  ;;  %v22501_v33 = vand.u32 4294901760, %v21098_v34  ;;  %v21133_v35 = vsub.f32 %v381_v61, %v21101_v29 }
 0x60e   : > { %11103 = vmatpush.msrb.mxu1 %v20844_v13  ;;  %11240 = vmatpush.msra.mxu0 %v21002_v62  ;;  %v21083_v13 = vsub.f32 %v445_v16, %v21048_v24  ;;  %v21104_v16 = vsub.f32 %v413_v38, %v21074_v52  ;;  %v10071_v48 = vpop.f32.mrf.mxu0  ;;  %v11308_v38 = vand.u32 4294901760, %v11307_v32  ;;  %v11314_v55 = vand.u32 4294901760, %v11313_v43  ;;  %v317_v61 = vld [vmem:[%s13221_s17 + $0x70] sm:$0xff] }
 0x60f   : > { %11107 = vmatmul.f32.vlgmr.msrb.gmra.mxu1 %v23244_v36  ;;  %11393 = vmatpush.msra.mxu2 %v21006_v47  ;;  %v10072_v17 = vadd.f32 %v10071_v48, %v9999_v23  ;;  %v11320_v43 = vand.u32 4294901760, %v11319_v58 }
 0x610   : > { %11285 = vmatpush.msra.mxu1 %v11284_v6  ;;  %11447 = vmatpush.msra.mxu3 %v20974_v5  ;;  %v22500_v6 = vand.u32 4294901760, %v21083_v13  ;;  %v23249_v48 = vand.u32 4294901760, %v21104_v16 }
 0x611   : > { %11242 = vmatpush.msra.mxu0 %v21018_v1  ;;  %11396 = vmatpush.msra.mxu2 %v21021_v27 }
 0x612   : > { %11291 = vmatpush.msra.mxu1 %v11290_v41  ;;  %11449 = vmatpush.msra.mxu3 %v20980_v30  ;;  %v21117_v41 = vsub.f32 %v397_v57, %v21090_v45  ;;  %v21129_v57 = vand.u32 4294901760, %v349_v42  ;;  %v11325_v60 = vsub.f32 %v21083_v13, %v22500_v6  ;;  %v11331_v6 = vsub.f32 %v21098_v34, %v22501_v33 }
 0x613   : > { %11068 = vmatmul.f32.gmra.mxu0 %v23246_v4  ;;  %11186 = vmatmul.f32.gmra.mxu2 %v23242_v56  ;;  %v21151_v4 = vsub.f32 %v365_v39, %v21124_v14  ;;  %v11337_v23 = vsub.f32 %v21104_v16, %v23249_v48  ;;  %v797_v39 = vld [vmem:[%s13221_s17 + $0xf70] sm:$0xff]  ;;  %v21168_v33 = vand.u32 4294901760, %v317_v61 }
 0x614   : > { %11244 = vmatpush.msra.mxu0 %v21038_v26  ;;  %11297 = vmatpush.msra.mxu1 %v11296_v59  ;;  %v23250_v48 = vand.u32 4294901760, %v21117_v41  ;;  %v21181_v53 = vand.u32 4294901760, %v797_v39 }
 0x615   : > { %11399 = vmatpush.msra.mxu2 %v21033_v3  ;;  %11451 = vmatpush.msra.mxu3 %v20998_v2  ;;  %v10112_v59 = vpop.f32.mrf.mxu1  ;;  %v11338_v18 = vand.u32 4294901760, %v11337_v23  ;;  %v21198_v23 = vsub.f32 %v813_v49, %v21170_v11 }
 0x616   : > { %11227 = vmatmul.f32.gmra.mxu3 %v23242_v56  ;;  %11246 = vmatpush.msra.mxu0 %v21048_v24  ;;  %v10161_v32 = vpop.f32.mrf.mxu2  ;;  %v11343_v58 = vsub.f32 %v21117_v41, %v23250_v48  ;;  %v10320_v36 = vpop.f32.mrf.mxu0  ;;  %v23251_v48 = vand.u32 4294901760, %v21133_v35  ;;  %v21209_v49 = vsub.f32 %v797_v39, %v21181_v53  ;;  %v717_v39 = vld [vmem:[%s13221_s17 + $0xcf0] sm:$0xff] }
 0x617   : > { %11303 = vmatpush.msra.mxu1 %v11302_v51  ;;  %11402 = vmatpush.msra.mxu2 %v21052_v54  ;;  %v10154_v51 = vadd.f32 %v21072_v15, %v10109_v63  ;;  %v21160_v15 = vand.u32 4294901760, %v333_v25  ;;  %v11326_v63 = vand.u32 4294901760, %v11325_v60  ;;  %v11332_v60 = vand.u32 4294901760, %v11331_v6  ;;  %23252 = vst [vmem:[#allocation21_spill] sm:$0xff] %v21198_v23 }
 0x618   : > { %11453 = vmatpush.msra.mxu3 %v21002_v62  ;;  %11113 = vmatmul.f32.gmra.mxu1 %v23248_v20  ;;  %23254 = vst [vmem:[#allocation22_spill] sm:$0xff] %v21209_v49 }
 0x619   : > { %11248 = vmatpush.msra.mxu0 %v21064_v40  ;;  %11309 = vmatpush.msra.mxu1 %v11308_v38  ;;  %v21153_v20 = vpop.f32.mrf.mxu3  ;;  %v21164_v38 = vsub.f32 %v349_v42, %v21129_v57  ;;  %v10113_v42 = vadd.f32 %v10112_v59, %v10072_v17  ;;  %v10263_v56 = vadd.f32 %v21094_v50, %v10154_v51  ;;  %v765_v51 = vld [vmem:[%s13221_s17 + $0xe70] sm:$0xff] }
 0x61a   : > { %11405 = vmatpush.msra.mxu2 %v21067_v31  ;;  %11455 = vmatpush.msra.mxu3 %v21018_v1  ;;  %v11349_v17 = vsub.f32 %v21133_v35, %v23251_v48  ;;  %v21189_v59 = vsub.f32 %v333_v25, %v21160_v15  ;;  %v11344_v25 = vand.u32 4294901760, %v11343_v58 }
 0x61b   : > { %11250 = vmatpush.msra.mxu0 %v21074_v52  ;;  %11315 = vmatpush.msra.mxu1 %v11314_v55  ;;  %v10321_v6 = vadd.f32 %v10320_v36, %v10263_v56  ;;  %v21200_v55 = vand.u32 4294901760, %v781_v7  ;;  %v10162_v48 = vadd.f32 %v10161_v32, %v10113_v42  ;;  %v23253_v56 = vand.u32 4294901760, %v21151_v4 }
 0x61c   : > { %11408 = vmatpush.msra.mxu2 %v21083_v13  ;;  %11457 = vmatpush.msra.mxu3 %v21038_v26  ;;  %v11350_v32 = vand.u32 4294901760, %v11349_v17  ;;  %v23255_v58 = vand.u32 4294901760, %v21164_v38  ;;  %v733_v17 = vld [vmem:[%s13221_s17 + $0xd70] sm:$0xff] }
 0x61d   : > { %11252 = vmatpush.msra.mxu0 %v21090_v45  ;;  %11321 = vmatpush.msra.mxu1 %v11320_v43  ;;  %v21195_v43 = vsub.f32 %v317_v61, %v21168_v33  ;;  %v11355_v36 = vsub.f32 %v21151_v4, %v23253_v56 }
 0x61e   : > { %11411 = vmatpush.msra.mxu2 %v21098_v34  ;;  %11459 = vmatpush.msra.mxu3 %v21048_v24  ;;  %v11361_v42 = vsub.f32 %v21164_v38, %v23255_v58  ;;  %v10267_v58 = vadd.f32 %v21153_v20, %v10162_v48  ;;  %v23256_v48 = vand.u32 4294901760, %v21189_v59 }
 0x61f   : > { %11254 = vmatpush.msra.mxu0 %v21101_v29  ;;  %11327 = vmatpush.msra.mxu1 %v11326_v63  ;;  %v21211_v63 = vand.u32 4294901760, %v765_v51 }
 0x620   : > { %11414 = vmatpush.msra.mxu2 %v21104_v16  ;;  %11461 = vmatpush.msra.mxu3 %v21064_v40  ;;  %v10364_v50 = vpop.f32.mrf.mxu1  ;;  %v10439_v44 = vpop.f32.mrf.mxu2  ;;  %v11362_v20 = vand.u32 4294901760, %v11361_v42  ;;  %v11367_v28 = vsub.f32 %v21189_v59, %v23256_v48 }
 0x621   : > { %11256 = vmatpush.msra.mxu0 %v21124_v14  ;;  %11333 = vmatpush.msra.mxu1 %v11332_v60  ;;  %v10365_v61 = vadd.f32 %v10364_v50, %v10321_v6  ;;  %v21224_v6 = vsub.f32 %v781_v7, %v21200_v55  ;;  %v21230_v60 = vand.u32 4294901760, %v749_v8  ;;  %v21235_v7 = vsub.f32 %v765_v51, %v21211_v63  ;;  %v701_v50 = vld [vmem:[%s13221_s17 + $0xc70] sm:$0xff] }
 0x622   : > { %11417 = vmatpush.msra.mxu2 %v21117_v41  ;;  %11463 = vmatpush.msra.mxu3 %v21074_v52  ;;  %v23257_v51 = vand.u32 4294901760, %v21198_v23 }
 0x623   : > { %11258 = vmatpush.msra.mxu0 %v21129_v57  ;;  %11339 = vmatpush.msra.mxu1 %v11338_v18  ;;  %v10440_v56 = vadd.f32 %v10439_v44, %v10365_v61  ;;  %v10480_v37 = vpop.f32.mrf.mxu3  ;;  %v11356_v18 = vand.u32 4294901760, %v11355_v36  ;;  %v23258_v36 = vand.u32 4294901760, %v21195_v43  ;;  %v21257_v10 = vsub.f32 %v749_v8, %v21230_v60 }
 0x624   : > { %11420 = vmatpush.msra.mxu2 %v21133_v35  ;;  %11465 = vmatpush.msra.mxu3 %v21090_v45  ;;  %v10325_v44 = vpop.f32.mrf.mxu0  ;;  %v11368_v8 = vand.u32 4294901760, %v11367_v28  ;;  %v23262_v42 = vand.u32 4294901760, %v21224_v6 }
 0x625   : > { %11260 = vmatpush.msra.mxu0 %v21160_v15  ;;  %11345 = vmatpush.msra.mxu1 %v11344_v25  ;;  %v10481_v61 = vadd.f32 %v10480_v37, %v10440_v56  ;;  %v21243_v25 = vand.u32 4294901760, %v733_v17  ;;  %v11655_v37 = vsub.f32 %v21198_v23, %v23257_v51  ;;  %v11373_v56 = vsub.f32 %v21195_v43, %v23258_v36 }
 0x626   : > { %11423 = vmatpush.msra.mxu2 %v21151_v4  ;;  %11467 = vmatpush.msra.mxu3 %v21101_v29  ;;  %v10326_v48 = vadd.f32 %v10325_v44, %v10267_v58  ;;  %v23259_v29 = vand.u32 4294901760, %v20983_v0  ;;  %v23260_v51 = vand.u32 4294901760, %v21209_v49  ;;  %v23261_v44 = vand.u32 4294901760, %v20993_v12 }
 0x627   : > { %11262 = vmatpush.msra.mxu0 %v21168_v33  ;;  %11351 = vmatpush.msra.mxu1 %v11350_v32  ;;  %v21259_v32 = vand.u32 4294901760, %v717_v39  ;;  %12763 = vst [vmem:[%s14629_s29 + $0x60] sm:$0xff] %v10481_v61  ;;  %v21272_v58 = vsub.f32 %v733_v17, %v21243_v25  ;;  %v11374_v61 = vand.u32 4294901760, %v11373_v56  ;;  %v11678_v28 = vand.u32 4294901760, %v21257_v10 }
 0x628   : > { %11426 = vmatpush.msra.mxu2 %v21164_v38  ;;  %11469 = vmatpush.msra.mxu3 %v21124_v14  ;;  %v11661_v36 = vsub.f32 %v21209_v49, %v23260_v51  ;;  %v685_v14 = vld [vmem:[%s13221_s17 + $0xbf0] sm:$0xff]  ;;  %v11656_v51 = vand.u32 4294901760, %v11655_v37  ;;  %v11667_v49 = vsub.f32 %v21224_v6, %v23262_v42  ;;  %v23264_v56 = vand.u32 4294901760, %v21235_v7 }
 0x629   : > { %11492 = vmatpush.msrb.mxu0 %v23259_v29  ;;  %11357 = vmatpush.msra.mxu1 %v11356_v18  ;;  %v10370_v23 = vpop.f32.mrf.mxu1  ;;  %v21274_v29 = vand.u32 4294901760, %v701_v50  ;;  %v21288_v17 = vand.u32 4294901760, %v685_v14 }
 0x62a   : > { %11429 = vmatpush.msra.mxu2 %v21189_v59  ;;  %11471 = vmatpush.msra.mxu3 %v21129_v57  ;;  %v10371_v0 = vadd.f32 %v10370_v23, %v10326_v48  ;;  %v10443_v18 = vpop.f32.mrf.mxu2  ;;  %v21286_v23 = vsub.f32 %v717_v39, %v21259_v32  ;;  %v11662_v37 = vand.u32 4294901760, %v11661_v36  ;;  %v11673_v42 = vsub.f32 %v21235_v7, %v23264_v56 }
 0x62b   : > { %11496 = vmatpush.msrb.mxu0 %v23261_v44  ;;  %11363 = vmatpush.msra.mxu1 %v11362_v20  ;;  %v23263_v20 = vand.u32 4294901760, %v21006_v47  ;;  %v11684_v39 = vand.u32 4294901760, %v21272_v58  ;;  %v21301_v47 = vand.u32 4294901760, %v669_v21  ;;  %v653_v44 = vld [vmem:[%s13221_s17 + $0xaf0] sm:$0xff]  ;;  %v23265_v36 = vand.u32 4294901760, %v21021_v27 }
 0x62c   : > { %11432 = vmatpush.msra.mxu2 %v21195_v43  ;;  %11473 = vmatpush.msra.mxu3 %v21160_v15  ;;  %v10444_v12 = vadd.f32 %v10443_v18, %v10371_v0  ;;  %v21299_v0 = vsub.f32 %v701_v50, %v21274_v29  ;;  %v11690_v50 = vand.u32 4294901760, %v21286_v23  ;;  %v23266_v56 = vand.u32 4294901760, %v21033_v3 }
 0x62d   : > { %11500 = vmatpush.msrb.mxu0 %v23263_v20  ;;  %v10484_v48 = vpop.f32.mrf.mxu3  ;;  %11369 = vmatpush.msra.mxu1 %v11368_v8  ;;  %v11668_v20 = vand.u32 4294901760, %v11667_v49  ;;  %v11679_v8 = vsub.f32 %v21257_v10, %v11678_v28  ;;  %v21317_v27 = vand.u32 4294901760, %v653_v44  ;;  %v637_v49 = vld [vmem:[%s13221_s17 + $0xa70] sm:$0xff]  ;;  %v21327_v3 = vsub.f32 %v669_v21, %v21301_v47 }
 0x62e   : > { %11604 = vmatpush.msrb.mxu2 %v21170_v11  ;;  %11475 = vmatpush.msra.mxu3 %v21168_v33  ;;  %v10485_v18 = vadd.f32 %v10484_v48, %v10444_v12  ;;  %v21312_v12 = vsub.f32 %v685_v14, %v21288_v17  ;;  %v11696_v14 = vand.u32 4294901760, %v21299_v0  ;;  %v621_v48 = vld [vmem:[%s13221_s17 + $0x9f0] sm:$0xff]  ;;  %v23268_v21 = vand.u32 4294901760, %v21067_v31 }
 0x62f   : > { %11504 = vmatpush.msrb.mxu0 %v23265_v36  ;;  %11375 = vmatpush.msra.mxu1 %v11374_v61  ;;  %v11685_v61 = vsub.f32 %v21272_v58, %v11684_v39  ;;  %v23269_v31 = vand.u32 4294901760, %v21083_v13  ;;  %v23270_v13 = vand.u32 4294901760, %v21098_v34 }
 0x630   : > { %11606 = vmatpush.msrb.mxu2 %v21181_v53  ;;  %11657 = vmatpush.msrb.mxu3 %v11656_v51  ;;  %v11674_v51 = vand.u32 4294901760, %v11673_v42  ;;  %12779 = vst [vmem:[%s14629_s29 + $0xe0] sm:$0xff] %v10485_v18  ;;  %v11691_v42 = vsub.f32 %v21286_v23, %v11690_v50  ;;  %v11702_v36 = vand.u32 4294901760, %v21312_v12  ;;  %v21338_v18 = vand.u32 4294901760, %v637_v49 }
 0x631   : > { %11508 = vmatpush.msrb.mxu0 %v23266_v56  ;;  %11563 = vmatpush.msrb.mxu1 %v20964_v46  ;;  %v23267_v46 = vand.u32 4294901760, %v21052_v54  ;;  %v605_v54 = vld [vmem:[%s13221_s17 + $0x970] sm:$0xff]  ;;  %v11708_v56 = vand.u32 4294901760, %v21327_v3 }
 0x632   : > { %11608 = vmatpush.msrb.mxu2 %v21200_v55  ;;  %11663 = vmatpush.msrb.mxu3 %v11662_v37  ;;  %v11680_v37 = vand.u32 4294901760, %v11679_v8  ;;  %v11697_v8 = vsub.f32 %v21299_v0, %v11696_v14 }
 0x633   : > { %11512 = vmatpush.msrb.mxu0 %v23267_v46  ;;  %11565 = vmatpush.msrb.mxu1 %v20974_v5  ;;  %v21344_v5 = vsub.f32 %v653_v44, %v21317_v27  ;;  %v21352_v46 = vand.u32 4294901760, %v621_v48  ;;  %v11703_v44 = vsub.f32 %v21312_v12, %v11702_v36 }
 0x634   : > { %11610 = vmatpush.msrb.mxu2 %v21211_v63  ;;  %11669 = vmatpush.msrb.mxu3 %v11668_v20  ;;  %v11686_v20 = vand.u32 4294901760, %v11685_v61  ;;  %v21364_v61 = vand.u32 4294901760, %v605_v54 }
 0x635   : > { %11516 = vmatpush.msrb.mxu0 %v23268_v21  ;;  %11567 = vmatpush.msrb.mxu1 %v20980_v30  ;;  %v11692_v30 = vand.u32 4294901760, %v11691_v42  ;;  %v589_v21 = vld [vmem:[%s13221_s17 + $0x8f0] sm:$0xff]  ;;  %v11709_v42 = vsub.f32 %v21327_v3, %v11708_v56 }
 0x636   : > { %11612 = vmatpush.msrb.mxu2 %v21230_v60  ;;  %11675 = vmatpush.msrb.mxu3 %v11674_v51  ;;  %v21362_v51 = vsub.f32 %v637_v49, %v21338_v18  ;;  %v21376_v49 = vsub.f32 %v621_v48, %v21352_v46  ;;  %v21381_v34 = vand.u32 4294901760, %v589_v21  ;;  %v23272_v48 = vand.u32 4294901760, %v21117_v41 }
 0x637   : > { %11520 = vmatpush.msrb.mxu0 %v23269_v31  ;;  %11569 = vmatpush.msrb.mxu1 %v20998_v2  ;;  %v11714_v2 = vand.u32 4294901760, %v21344_v5  ;;  %v23271_v31 = vand.u32 4294901760, %v21104_v16  ;;  %v11710_v16 = vand.u32 4294901760, %v11709_v42  ;;  %v23274_v42 = vand.u32 4294901760, %v21151_v4 }
 0x638   : > { %11614 = vmatpush.msrb.mxu2 %v21243_v25  ;;  %11681 = vmatpush.msrb.mxu3 %v11680_v37  ;;  %v11698_v37 = vand.u32 4294901760, %v11697_v8  ;;  %v11720_v8 = vand.u32 4294901760, %v21362_v51  ;;  %v21403_v41 = vsub.f32 %v589_v21, %v21381_v34 }
 0x639   : > { %11524 = vmatpush.msrb.mxu0 %v23270_v13  ;;  %11571 = vmatpush.msrb.mxu1 %v21002_v62  ;;  %v573_v62 = vld [vmem:[%s13221_s17 + $0x870] sm:$0xff]  ;;  %v21387_v13 = vsub.f32 %v605_v54, %v21364_v61  ;;  %v23273_v54 = vand.u32 4294901760, %v21133_v35 }
 0x63a   : > { %11616 = vmatpush.msrb.mxu2 %v21259_v32  ;;  %11687 = vmatpush.msrb.mxu3 %v11686_v20  ;;  %v11704_v20 = vand.u32 4294901760, %v11703_v44  ;;  %v21397_v44 = vand.u32 4294901760, %v573_v62  ;;  %v11738_v4 = vand.u32 4294901760, %v21403_v41 }
 0x63b   : > { %11528 = vmatpush.msrb.mxu0 %v23271_v31  ;;  %11573 = vmatpush.msrb.mxu1 %v21018_v1  ;;  %v11715_v1 = vsub.f32 %v21344_v5, %v11714_v2  ;;  %v23275_v31 = vand.u32 4294901760, %v21164_v38 }
 0x63c   : > { %11618 = vmatpush.msrb.mxu2 %v21274_v29  ;;  %11693 = vmatpush.msrb.mxu3 %v11692_v30  ;;  %v11726_v30 = vand.u32 4294901760, %v21376_v49  ;;  %v21418_v21 = vsub.f32 %v573_v62, %v21397_v44  ;;  %v23276_v62 = vand.u32 4294901760, %v21189_v59  ;;  %v23279_v59 = vld [vmem:[#allocation19_spill] sm:$0xff] }
 0x63d   : > { %11532 = vmatpush.msrb.mxu0 %v23272_v48  ;;  %11575 = vmatpush.msrb.mxu1 %v21038_v26  ;;  %v11721_v26 = vsub.f32 %v21362_v51, %v11720_v8  ;;  %v11716_v35 = vand.u32 4294901760, %v11715_v1  ;;  %v23277_v1 = vld [vmem:[#allocation7_spill] sm:$0xff] }
 0x63e   : > { %11620 = vmatpush.msrb.mxu2 %v21288_v17  ;;  %11699 = vmatpush.msrb.mxu3 %v11698_v37  ;;  %v11732_v37 = vand.u32 4294901760, %v21387_v13  ;;  %v11744_v48 = vand.u32 4294901760, %v21418_v21 }
 0x63f   : > { %11536 = vmatpush.msrb.mxu0 %v23273_v54  ;;  %11577 = vmatpush.msrb.mxu1 %v21048_v24  ;;  %v11727_v24 = vsub.f32 %v21376_v49, %v11726_v30  ;;  %v23278_v54 = vand.u32 4294901760, %v21195_v43  ;;  %v23283_v43 = vld [vmem:[#allocation22_spill] sm:$0xff] }
 0x640   : > { %11622 = vmatpush.msrb.mxu2 %v21301_v47  ;;  %11705 = vmatpush.msrb.mxu3 %v11704_v20  ;;  %v11733_v20 = vsub.f32 %v21387_v13, %v11732_v37 }
 0x641   : > { %11540 = vmatpush.msrb.mxu0 %v23274_v42  ;;  %11579 = vmatpush.msrb.mxu1 %v21064_v40  ;;  %v11722_v40 = vand.u32 4294901760, %v11721_v26  ;;  %v11728_v38 = vand.u32 4294901760, %v11727_v24  ;;  %v23280_v26 = vld [vmem:[#allocation21_spill] sm:$0xff]  ;;  %v23281_v42 = vld [vmem:[#allocation20_spill] sm:$0xff] }
 0x642   : > { %11624 = vmatpush.msrb.mxu2 %v21317_v27  ;;  %11711 = vmatpush.msrb.mxu3 %v11710_v16  ;;  %v11734_v16 = vand.u32 4294901760, %v11733_v20  ;;  %v23282_v24 = vld [vmem:[#allocation9_spill] sm:$0xff]  ;;  %v23285_v20 = vld [vmem:[#allocation10_spill] sm:$0xff] }
 0x643   : > { %11435 = vmatmul.f32.vlgmr.msra.gmra.mxu2 %v13564_v19  ;;  %11544 = vmatpush.msrb.mxu0 %v23275_v31 }
 0x644   : > { %11581 = vmatpush.msrb.mxu1 %v21074_v52  ;;  %11626 = vmatpush.msrb.mxu2 %v21338_v18  ;;  %v11739_v52 = vsub.f32 %v21403_v41, %v11738_v4 }
 0x645   : > { %11717 = vmatpush.msrb.mxu3 %v11716_v35  ;;  %11268 = vmatmul.f32.vlgmr.msra.gmra.mxu0 %v13645_v22 }
 0x646   : > { %11479 = vmatmul.f32.vlgmr.msra.gmra.mxu3 %v13594_v9  ;;  %11548 = vmatpush.msrb.mxu0 %v23276_v62  ;;  %v11740_v35 = vand.u32 4294901760, %v11739_v52  ;;  %v23286_v62 = vand.u32 4294901760, %v23280_v26  ;;  %v23289_v52 = vand.u32 4294901760, %v21224_v6 }
 0x647   : > { %11583 = vmatpush.msrb.mxu1 %v21090_v45  ;;  %11628 = vmatpush.msrb.mxu2 %v21352_v46  ;;  %v11745_v45 = vsub.f32 %v21418_v21, %v11744_v48 }
 0x648   : > { %11723 = vmatpush.msrb.mxu3 %v11722_v40  ;;  %11377 = vmatmul.f32.vlgmr.msra.gmra.mxu1 %v23277_v1  ;;  %v23284_v40 = vld [vmem:[#allocation13_spill] sm:$0xff] }
 0x649   : > { %11552 = vmatpush.msrb.mxu0 %v23278_v54  ;;  %11585 = vmatpush.msrb.mxu1 %v23279_v59  ;;  %v11746_v31 = vand.u32 4294901760, %v11745_v45 }
 0x64a   : > { %11630 = vmatpush.msrb.mxu2 %v21364_v61  ;;  %11729 = vmatpush.msrb.mxu3 %v11728_v38  ;;  %v23287_v38 = vld [vmem:[#allocation8_spill] sm:$0xff] }
 0x64b   : > { %11759 = vmatpush.msra.mxu0 %v23280_v26  ;;  %11587 = vmatpush.msrb.mxu1 %v23281_v42  ;;  %v414_v26 = vld [vmem:[%s13221_s17 + $0x378] sm:$0xff] }
 0x64c   : > { %11632 = vmatpush.msrb.mxu2 %v21381_v34  ;;  %11735 = vmatpush.msrb.mxu3 %v11734_v16  ;;  %v23291_v16 = vand.u32 4294901760, %v21235_v7 }
 0x64d   : > { %11440 = vmatmul.f32.gmra.mxu2 %v23282_v24  ;;  %11762 = vmatpush.msra.mxu0 %v23283_v43 }
 0x64e   : > { %11589 = vmatpush.msrb.mxu1 %v21129_v57  ;;  %11634 = vmatpush.msrb.mxu2 %v21397_v44  ;;  %v23288_v57 = vand.u32 4294901760, %v23283_v43 }
 0x64f   : > { %11741 = vmatpush.msrb.mxu3 %v11740_v35  ;;  %11276 = vmatmul.f32.gmra.mxu0 %v23284_v40  ;;  %v718_v40 = vld [vmem:[%s13221_s17 + $0xcf8] sm:$0xff] }
 0x650   : > { %11485 = vmatmul.f32.gmra.mxu3 %v23285_v20  ;;  %11765 = vmatpush.msra.mxu0 %v21224_v6 }
 0x651   : > { %11864 = vmatpush.msra.mxu2 %v23286_v62  ;;  %11591 = vmatpush.msrb.mxu1 %v21160_v15  ;;  %v23290_v15 = vld [vmem:[#allocation15_spill] sm:$0xff] }
 0x652   : > { %11747 = vmatpush.msrb.mxu3 %v11746_v31  ;;  %11381 = vmatmul.f32.gmra.mxu1 %v23287_v38 }
 0x653   : > { %11768 = vmatpush.msra.mxu0 %v21235_v7  ;;  %11868 = vmatpush.msra.mxu2 %v23288_v57  ;;  %v526_v7 = vld [vmem:[%s13221_s17 + $0x6f8] sm:$0xff] }
 0x654   : > { %11935 = vmatpush.msra.mxu3 %v21170_v11  ;;  %11593 = vmatpush.msrb.mxu1 %v21168_v33  ;;  %v23292_v33 = vld [vmem:[#allocation11_spill] sm:$0xff] }
 0x655   : > { %11771 = vmatpush.msra.mxu0 %v21257_v10  ;;  %11872 = vmatpush.msra.mxu2 %v23289_v52  ;;  %v398_v52 = vld [vmem:[%s13221_s17 + $0x2f8] sm:$0xff] }
 0x656   : > { %11817 = vmatpush.msra.mxu1 %v21170_v11  ;;  %11937 = vmatpush.msra.mxu3 %v21181_v53  ;;  %v10525_v10 = vpop.f32.mrf.mxu0 }
 0x657   : > { %11640 = vmatmul.f32.vlgmr.msrb.gmra.mxu2 %v23290_v15  ;;  %11774 = vmatpush.msra.mxu0 %v21272_v58  ;;  %v21533_v58 = vand.u32 4294901760, %v526_v7 }
 0x658   : > { %11819 = vmatpush.msra.mxu1 %v21181_v53  ;;  %11876 = vmatpush.msra.mxu2 %v23291_v16  ;;  %v558_v53 = vld [vmem:[%s13221_s17 + $0x7f8] sm:$0xff] }
 0x659   : > { %11939 = vmatpush.msra.mxu3 %v21200_v55  ;;  %11554 = vmatmul.f32.vlgmr.msrb.gmra.mxu0 %v23277_v1  ;;  %v10634_v11 = vpop.f32.mrf.mxu1 }
 0x65a   : > { %11749 = vmatmul.f32.vlgmr.msrb.gmra.mxu3 %v23292_v33  ;;  %11777 = vmatpush.msra.mxu0 %v21286_v23  ;;  %v510_v23 = vld [vmem:[%s13221_s17 + $0x678] sm:$0xff] }
 0x65b   : > { %11821 = vmatpush.msra.mxu1 %v21200_v55  ;;  %11880 = vmatpush.msra.mxu2 %v11678_v28  ;;  %v10692_v55 = vpop.f32.mrf.mxu2 }
 0x65c   : > { %11941 = vmatpush.msra.mxu3 %v21211_v63  ;;  %11595 = vmatmul.f32.vlgmr.msrb.gmra.mxu1 %v23277_v1 }
 0x65d   : > { %11780 = vmatpush.msra.mxu0 %v21299_v0  ;;  %11823 = vmatpush.msra.mxu1 %v21211_v63  ;;  %v542_v63 = vld [vmem:[%s13221_s17 + $0x778] sm:$0xff]  ;;  %v21521_v6 = vpop.f32.mrf.mxu3 }
 0x65e   : > { %11884 = vmatpush.msra.mxu2 %v11684_v39  ;;  %11943 = vmatpush.msra.mxu3 %v21230_v60  ;;  %v494_v0 = vld [vmem:[%s13221_s17 + $0x5f8] sm:$0xff] }
 0x65f   : > { %11783 = vmatpush.msra.mxu0 %v21312_v12  ;;  %11825 = vmatpush.msra.mxu1 %v21230_v60  ;;  %v21517_v60 = vand.u32 4294901760, %v558_v53 }
 0x660   : > { %11888 = vmatpush.msra.mxu2 %v11690_v50  ;;  %11945 = vmatpush.msra.mxu3 %v21243_v25  ;;  %v10533_v28 = vpop.f32.mrf.mxu0 }
 0x661   : > { %11786 = vmatpush.msra.mxu0 %v21327_v3  ;;  %11827 = vmatpush.msra.mxu1 %v21243_v25  ;;  %v21527_v25 = vand.u32 4294901760, %v542_v63  ;;  %v478_v3 = vld [vmem:[%s13221_s17 + $0x578] sm:$0xff] }
 0x662   : > { %11892 = vmatpush.msra.mxu2 %v11696_v14  ;;  %11947 = vmatpush.msra.mxu3 %v21259_v32 }
 0x663   : > { %11789 = vmatpush.msra.mxu0 %v21344_v5  ;;  %11829 = vmatpush.msra.mxu1 %v21259_v32  ;;  %v23293_v32 = vld [vmem:[#allocation18_spill] sm:$0xff]  ;;  %v21545_v39 = vsub.f32 %v542_v63, %v21527_v25  ;;  %v10638_v50 = vpop.f32.mrf.mxu1  ;;  %v21562_v5 = vand.u32 4294901760, %v494_v0 }
 0x664   : > { %11896 = vmatpush.msra.mxu2 %v11702_v36  ;;  %11949 = vmatpush.msra.mxu3 %v21274_v29  ;;  %v10697_v14 = vpop.f32.mrf.mxu2  ;;  %v10635_v36 = vadd.f32 %v10634_v11, %v10525_v10  ;;  %v10639_v42 = vadd.f32 %v10638_v50, %v10533_v28  ;;  %v21627_v11 = vand.u32 4294901760, %v414_v26 }
 0x665   : > { %11792 = vmatpush.msra.mxu0 %v21362_v51  ;;  %11831 = vmatpush.msra.mxu1 %v21274_v29  ;;  %v21536_v29 = vsub.f32 %v558_v53, %v21517_v60  ;;  %v462_v51 = vld [vmem:[%s13221_s17 + $0x4f8] sm:$0xff] }
 0x666   : > { %11900 = vmatpush.msra.mxu2 %v11708_v56  ;;  %11951 = vmatpush.msra.mxu3 %v21288_v17  ;;  %v22517_v56 = vand.u32 4294901760, %v21545_v39  ;;  %v10698_v28 = vadd.f32 %v10697_v14, %v10639_v42 }
 0x667   : > { %11558 = vmatmul.f32.gmra.mxu0 %v23287_v38  ;;  %11833 = vmatpush.msra.mxu1 %v21288_v17  ;;  %v23294_v17 = vld [vmem:[#allocation6_spill] sm:$0xff]  ;;  %v22518_v12 = vand.u32 4294901760, %v21536_v29 }
 0x668   : > { %11795 = vmatpush.msra.mxu0 %v21376_v49  ;;  %11904 = vmatpush.msra.mxu2 %v11714_v2  ;;  %v21571_v2 = vand.u32 4294901760, %v478_v3 }
 0x669   : > { %11953 = vmatpush.msra.mxu3 %v21301_v47  ;;  %11835 = vmatpush.msra.mxu1 %v21301_v47  ;;  %v21551_v47 = vand.u32 4294901760, %v510_v23 }
 0x66a   : > { %11798 = vmatpush.msra.mxu0 %v21387_v13  ;;  %11908 = vmatpush.msra.mxu2 %v11720_v8  ;;  %v12027_v8 = vsub.f32 %v21536_v29, %v22518_v12  ;;  %v21605_v45 = vsub.f32 %v478_v3, %v21571_v2 }
 0x66b   : > { %11955 = vmatpush.msra.mxu3 %v21317_v27  ;;  %11648 = vmatmul.f32.gmra.mxu2 %v23293_v32  ;;  %v21574_v49 = vsub.f32 %v510_v23, %v21551_v47 }
 0x66c   : > { %11801 = vmatpush.msra.mxu0 %v21403_v41  ;;  %11837 = vmatpush.msra.mxu1 %v21317_v27  ;;  %v21557_v27 = vsub.f32 %v526_v7, %v21533_v58  ;;  %v21588_v41 = vand.u32 4294901760, %v462_v51  ;;  %v12028_v35 = vand.u32 4294901760, %v12027_v8  ;;  %v382_v7 = vld [vmem:[%s13221_s17 + $0x278] sm:$0xff] }
 0x66d   : > { %11912 = vmatpush.msra.mxu2 %v11726_v30  ;;  %11957 = vmatpush.msra.mxu3 %v21338_v18  ;;  %v446_v30 = vld [vmem:[%s13221_s17 + $0x478] sm:$0xff]  ;;  %v22515_v59 = vand.u32 4294901760, %v21574_v49  ;;  %v10852_v10 = vpop.f32.mrf.mxu1  ;;  %v21654_v8 = vand.u32 4294901760, %v382_v7 }
 0x66e   : > { %11753 = vmatmul.f32.gmra.mxu3 %v23294_v17  ;;  %11804 = vmatpush.msra.mxu0 %v21418_v21  ;;  %v22516_v13 = vand.u32 4294901760, %v21557_v27  ;;  %v430_v21 = vld [vmem:[%s13221_s17 + $0x3f8] sm:$0xff]  ;;  %v21601_v54 = vand.u32 4294901760, %v446_v30  ;;  %v21620_v57 = vsub.f32 %v462_v51, %v21588_v41  ;;  %v21625_v53 = vpop.f32.mrf.mxu2 }
 0x66f   : > { %11839 = vmatpush.msra.mxu1 %v21338_v18  ;;  %11916 = vmatpush.msra.mxu2 %v11732_v37  ;;  %v23295_v18 = vld [vmem:[#allocation12_spill] sm:$0xff]  ;;  %v21591_v37 = vsub.f32 %v494_v0, %v21562_v5  ;;  %v21613_v43 = vand.u32 4294901760, %v430_v21  ;;  %v12045_v63 = vsub.f32 %v21574_v49, %v22515_v59  ;;  %v21640_v0 = vand.u32 4294901760, %v398_v52  ;;  %23298 = vst [vmem:[#allocation19_spill] sm:$0xff] %v21654_v8 }
 0x670   : > { %11959 = vmatpush.msra.mxu3 %v21352_v46  ;;  %11599 = vmatmul.f32.gmra.mxu1 %v23287_v38  ;;  %v22514_v14 = vand.u32 4294901760, %v21620_v57  ;;  %v750_v38 = vld [vmem:[%s13221_s17 + $0xdf8] sm:$0xff] }
 0x671   : > { %11807 = vmatmul.f32.vlgmr.msra.gmra.mxu0 %v23295_v18  ;;  %11841 = vmatpush.msra.mxu1 %v21352_v46  ;;  %v21576_v46 = vpop.f32.mrf.mxu3  ;;  %v22513_v62 = vand.u32 4294901760, %v21591_v37  ;;  %23297 = vst [vmem:[#allocation7_spill] sm:$0xff] %v21640_v0  ;;  %v21643_v50 = vsub.f32 %v430_v21, %v21613_v43  ;;  %v366_v21 = vld [vmem:[%s13221_s17 + $0x1f8] sm:$0xff]  ;;  %v21783_v20 = vand.u32 4294901760, %v750_v38 }
 0x672   : > { %11976 = vmatpush.msrb.mxu0 %v21517_v60  ;;  %11920 = vmatpush.msra.mxu2 %v11738_v4  ;;  %v12033_v4 = vsub.f32 %v21545_v39, %v22517_v56 }
 0x673   : > { %11961 = vmatpush.msra.mxu3 %v21364_v61  ;;  %11843 = vmatpush.msra.mxu1 %v21364_v61  ;;  %v10693_v61 = vadd.f32 %v10692_v55, %v10635_v36  ;;  %v23296_v55 = vld [vmem:[#allocation14_spill] sm:$0xff]  ;;  %v12051_v36 = vsub.f32 %v21591_v37, %v22513_v62  ;;  %v12063_v62 = vsub.f32 %v21620_v57, %v22514_v14 }
 0x674   : > { %11978 = vmatpush.msrb.mxu0 %v21527_v25  ;;  %11924 = vmatpush.msra.mxu2 %v11744_v48  ;;  %v10811_v48 = vpop.f32.mrf.mxu0  ;;  %v12034_v16 = vand.u32 4294901760, %v12033_v4  ;;  %v23299_v4 = vld [vmem:[#allocation16_spill] sm:$0xff]  ;;  %v21810_v24 = vsub.f32 %v750_v38, %v21783_v20 }
 0x675   : > { %11963 = vmatpush.msra.mxu3 %v21381_v34  ;;  %11926 = vmatmul.f32.vlgmr.msra.gmra.mxu2 %v23292_v33  ;;  %v10737_v31 = vadd.f32 %v21521_v6, %v10693_v61  ;;  %v22512_v6 = vand.u32 4294901760, %v21605_v45 }
 0x676   : > { %11980 = vmatpush.msrb.mxu0 %v21533_v58  ;;  %12131 = vmatpush.msrb.mxu2 %v21536_v29 }
 0x677   : > { %11845 = vmatpush.msra.mxu1 %v21381_v34  ;;  %11965 = vmatpush.msra.mxu3 %v21397_v44  ;;  %v12039_v34 = vsub.f32 %v21557_v27, %v22516_v13  ;;  %v10812_v3 = vadd.f32 %v10811_v48, %v10737_v31  ;;  %v12046_v48 = vand.u32 4294901760, %v12045_v63  ;;  %v12057_v42 = vsub.f32 %v21605_v45, %v22512_v6  ;;  %v23301_v13 = vld [vmem:[#allocation17_spill] sm:$0xff] }
 0x678   : > { %11967 = vmatmul.f32.vlgmr.msra.gmra.mxu3 %v23292_v33  ;;  %11982 = vmatpush.msrb.mxu0 %v21551_v47  ;;  %v10743_v31 = vadd.f32 %v21576_v46, %v10698_v28  ;;  %v12052_v6 = vand.u32 4294901760, %v12051_v36  ;;  %v21678_v46 = vand.u32 4294901760, %v366_v21 }
 0x679   : > { %12134 = vmatpush.msrb.mxu2 %v21545_v39  ;;  %12189 = vmatpush.msrb.mxu3 %v21517_v60  ;;  %v12040_v23 = vand.u32 4294901760, %v12039_v34  ;;  %v21650_v51 = vpop.f32.mrf.mxu3  ;;  %v350_v34 = vld [vmem:[%s13221_s17 + $0x178] sm:$0xff]  ;;  %v10853_v63 = vadd.f32 %v10852_v10, %v10812_v3  ;;  %v12058_v14 = vand.u32 4294901760, %v12057_v42 }
 0x67a   : > { %11847 = vmatpush.msra.mxu1 %v21397_v44  ;;  %11984 = vmatpush.msrb.mxu0 %v21562_v5  ;;  %v21636_v44 = vsub.f32 %v446_v30, %v21601_v54  ;;  %v21657_v30 = vsub.f32 %v414_v26, %v21627_v11  ;;  %v22520_v26 = vand.u32 4294901760, %v21643_v50  ;;  %v21682_v28 = vand.u32 4294901760, %v350_v34  ;;  %v334_v10 = vld [vmem:[%s13221_s17 + $0xf8] sm:$0xff] }
 0x67b   : > { %11851 = vmatmul.f32.vlgmr.msra.gmra.mxu1 %v23296_v55  ;;  %12137 = vmatpush.msrb.mxu2 %v21557_v27  ;;  %v10898_v42 = vadd.f32 %v21625_v53, %v10853_v63  ;;  %v798_v53 = vld [vmem:[%s13221_s17 + $0xf78] sm:$0xff] }
 0x67c   : > { %12029 = vmatpush.msrb.mxu1 %v12028_v35  ;;  %12191 = vmatpush.msrb.mxu3 %v21527_v25  ;;  %v10815_v61 = vpop.f32.mrf.mxu0  ;;  %v22519_v35 = vand.u32 4294901760, %v21636_v44  ;;  %23300 = vst [vmem:[#allocation21_spill] sm:$0xff] %v21682_v28  ;;  %v21737_v33 = vand.u32 4294901760, %v798_v53 }
 0x67d   : > { %11986 = vmatpush.msrb.mxu0 %v21571_v2  ;;  %12140 = vmatpush.msrb.mxu2 %v21574_v49  ;;  %v10816_v56 = vadd.f32 %v10815_v61, %v10743_v31  ;;  %v23302_v31 = vand.u32 4294901760, %v21657_v30  ;;  %v11007_v32 = vadd.f32 %v21650_v51, %v10898_v42 }
 0x67e   : > { %12035 = vmatpush.msrb.mxu1 %v12034_v16  ;;  %12193 = vmatpush.msrb.mxu3 %v21533_v58  ;;  %v21671_v16 = vsub.f32 %v398_v52, %v21640_v0  ;;  %v12069_v59 = vsub.f32 %v21636_v44, %v22519_v35  ;;  %v814_v52 = vld [vmem:[%s13221_s17 + $0xff8] sm:$0xff]  ;;  %v12064_v35 = vand.u32 4294901760, %v12063_v62  ;;  %v21717_v62 = vsub.f32 %v350_v34, %v21682_v28 }
 0x67f   : > { %11812 = vmatmul.f32.gmra.mxu0 %v23299_v4  ;;  %11930 = vmatmul.f32.gmra.mxu2 %v23294_v17  ;;  %v21703_v4 = vand.u32 4294901760, %v334_v10  ;;  %v21723_v12 = vand.u32 4294901760, %v814_v52 }
 0x680   : > { %11988 = vmatpush.msrb.mxu0 %v21588_v41  ;;  %12041 = vmatpush.msrb.mxu1 %v12040_v23  ;;  %v21686_v23 = vsub.f32 %v382_v7, %v21654_v8  ;;  %v12075_v7 = vsub.f32 %v21643_v50, %v22520_v26  ;;  %v12081_v26 = vsub.f32 %v21657_v30, %v23302_v31  ;;  %v23303_v31 = vand.u32 4294901760, %v21671_v16 }
 0x681   : > { %12143 = vmatpush.msrb.mxu2 %v21591_v37  ;;  %12195 = vmatpush.msrb.mxu3 %v21551_v47  ;;  %v10856_v3 = vpop.f32.mrf.mxu1  ;;  %v21750_v42 = vsub.f32 %v814_v52, %v21723_v12 }
 0x682   : > { %11971 = vmatmul.f32.gmra.mxu3 %v23294_v17  ;;  %11990 = vmatpush.msrb.mxu0 %v21601_v54  ;;  %v10905_v36 = vpop.f32.mrf.mxu2  ;;  %v12076_v55 = vand.u32 4294901760, %v12075_v7  ;;  %v10857_v34 = vadd.f32 %v10856_v3, %v10816_v56  ;;  %v782_v17 = vld [vmem:[%s13221_s17 + $0xef8] sm:$0xff]  ;;  %v12082_v56 = vand.u32 4294901760, %v12081_v26  ;;  %v23304_v3 = vand.u32 4294901760, %v21686_v23 }
 0x683   : > { %12047 = vmatpush.msrb.mxu1 %v12046_v48  ;;  %12146 = vmatpush.msrb.mxu2 %v21605_v45  ;;  %v318_v48 = vld [vmem:[%s13221_s17 + $0x78] sm:$0xff]  ;;  %23305 = vst [vmem:[#allocation20_spill] sm:$0xff] %v21750_v42 }
 0x684   : > { %12197 = vmatpush.msrb.mxu3 %v21562_v5  ;;  %11857 = vmatmul.f32.gmra.mxu1 %v23301_v13  ;;  %v21706_v13 = vsub.f32 %v366_v21, %v21678_v46  ;;  %v12070_v21 = vand.u32 4294901760, %v12069_v59  ;;  %v21721_v63 = vand.u32 4294901760, %v318_v48  ;;  %v11064_v18 = vpop.f32.mrf.mxu0  ;;  %v12093_v51 = vsub.f32 %v21686_v23, %v23304_v3  ;;  %v766_v26 = vld [vmem:[%s13221_s17 + $0xe78] sm:$0xff] }
 0x685   : > { %11992 = vmatpush.msrb.mxu0 %v21613_v43  ;;  %12053 = vmatpush.msrb.mxu1 %v12052_v6  ;;  %v21708_v61 = vpop.f32.mrf.mxu3  ;;  %v12087_v6 = vsub.f32 %v21671_v16, %v23303_v31  ;;  %v21752_v31 = vand.u32 4294901760, %v782_v17  ;;  %v10906_v7 = vadd.f32 %v10905_v36, %v10857_v34  ;;  %v21771_v34 = vand.u32 4294901760, %v766_v26 }
 0x686   : > { %12149 = vmatpush.msrb.mxu2 %v21620_v57  ;;  %12199 = vmatpush.msrb.mxu3 %v21571_v2  ;;  %v12094_v36 = vand.u32 4294901760, %v12093_v51  ;;  %v734_v51 = vld [vmem:[%s13221_s17 + $0xd78] sm:$0xff] }
 0x687   : > { %11994 = vmatpush.msrb.mxu0 %v21627_v11  ;;  %12059 = vmatpush.msrb.mxu1 %v12058_v14  ;;  %v21735_v14 = vsub.f32 %v334_v10, %v21703_v4  ;;  %v21747_v10 = vsub.f32 %v318_v48, %v21721_v63  ;;  %v12088_v3 = vand.u32 4294901760, %v12087_v6  ;;  %v21763_v48 = vsub.f32 %v798_v53, %v21737_v33 }
 0x688   : > { %12152 = vmatpush.msrb.mxu2 %v21636_v44  ;;  %12201 = vmatpush.msrb.mxu3 %v21588_v41  ;;  %v23307_v6 = vand.u32 4294901760, %v21717_v62 }
 0x689   : > { %11996 = vmatpush.msrb.mxu0 %v21640_v0  ;;  %12065 = vmatpush.msrb.mxu1 %v12064_v35  ;;  %v11065_v35 = vadd.f32 %v11064_v18, %v11007_v32  ;;  %v23306_v32 = vand.u32 4294901760, %v21706_v13  ;;  %v23308_v53 = vand.u32 4294901760, %v21735_v14 }
 0x68a   : > { %12155 = vmatpush.msrb.mxu2 %v21643_v50  ;;  %12203 = vmatpush.msrb.mxu3 %v21601_v54 }
 0x68b   : > { %11998 = vmatpush.msrb.mxu0 %v21654_v8  ;;  %12071 = vmatpush.msrb.mxu1 %v12070_v21  ;;  %v12099_v18 = vsub.f32 %v21706_v13, %v23306_v32 }
 0x68c   : > { %12158 = vmatpush.msrb.mxu2 %v21657_v30  ;;  %12205 = vmatpush.msrb.mxu3 %v21613_v43  ;;  %v11108_v59 = vpop.f32.mrf.mxu1  ;;  %v11183_v15 = vpop.f32.mrf.mxu2 }
 0x68d   : > { %12000 = vmatpush.msrb.mxu0 %v21678_v46  ;;  %12077 = vmatpush.msrb.mxu1 %v12076_v55  ;;  %v11109_v21 = vadd.f32 %v11108_v59, %v11065_v35  ;;  %v12105_v55 = vsub.f32 %v21717_v62, %v23307_v6  ;;  %v21777_v59 = vsub.f32 %v782_v17, %v21752_v31 }
 0x68e   : > { %12161 = vmatpush.msrb.mxu2 %v21671_v16  ;;  %12207 = vmatpush.msrb.mxu3 %v21627_v11  ;;  %v11011_v6 = vadd.f32 %v21708_v61, %v10906_v7  ;;  %v12111_v17 = vsub.f32 %v21735_v14, %v23308_v53  ;;  %v21794_v7 = vsub.f32 %v766_v26, %v21771_v34  ;;  %v23310_v53 = vand.u32 4294901760, %v21747_v10 }
 0x68f   : > { %12002 = vmatpush.msrb.mxu0 %v21682_v28  ;;  %12083 = vmatpush.msrb.mxu1 %v12082_v56  ;;  %v11184_v35 = vadd.f32 %v11183_v15, %v11109_v21  ;;  %v11224_v52 = vpop.f32.mrf.mxu3  ;;  %v12100_v56 = vand.u32 4294901760, %v12099_v18  ;;  %v12106_v61 = vand.u32 4294901760, %v12105_v55  ;;  %v23309_v18 = vand.u32 4294901760, %v21750_v42  ;;  %v702_v15 = vld [vmem:[%s13221_s17 + $0xc78] sm:$0xff] }
 0x690   : > { %12164 = vmatpush.msrb.mxu2 %v21686_v23  ;;  %12209 = vmatpush.msrb.mxu3 %v21640_v0  ;;  %v11069_v21 = vpop.f32.mrf.mxu0  ;;  %v686_v0 = vld [vmem:[%s13221_s17 + $0xbf8] sm:$0xff] }
 0x691   : > { %12004 = vmatpush.msrb.mxu0 %v21703_v4  ;;  %12089 = vmatpush.msrb.mxu1 %v12088_v3  ;;  %v11225_v32 = vadd.f32 %v11224_v52, %v11184_v35  ;;  %v21796_v3 = vand.u32 4294901760, %v734_v51  ;;  %v12399_v52 = vsub.f32 %v21750_v42, %v23309_v18  ;;  %v12117_v35 = vsub.f32 %v21747_v10, %v23310_v53 }
 0x692   : > { %12167 = vmatpush.msrb.mxu2 %v21706_v13  ;;  %12211 = vmatpush.msrb.mxu3 %v21654_v8  ;;  %v11070_v26 = vadd.f32 %v11069_v21, %v11011_v6  ;;  %v23311_v8 = vand.u32 4294901760, %v21536_v29  ;;  %v12112_v18 = vand.u32 4294901760, %v12111_v17  ;;  %v23312_v53 = vand.u32 4294901760, %v21763_v48 }
 0x693   : > { %12006 = vmatpush.msrb.mxu0 %v21721_v63  ;;  %12095 = vmatpush.msrb.mxu1 %v12094_v36  ;;  %v21812_v36 = vand.u32 4294901760, %v718_v40  ;;  %12764 = vst [vmem:[%s14629_s29 + $0x68] sm:$0xff] %v11225_v32  ;;  %v21825_v6 = vsub.f32 %v734_v51, %v21796_v3  ;;  %v23313_v17 = vand.u32 4294901760, %v21545_v39  ;;  %v12400_v32 = vand.u32 4294901760, %v12399_v52  ;;  %v670_v39 = vld [vmem:[%s13221_s17 + $0xb78] sm:$0xff] }
 0x694   : > { %12170 = vmatpush.msrb.mxu2 %v21717_v62  ;;  %12213 = vmatpush.msrb.mxu3 %v21678_v46  ;;  %v12405_v55 = vsub.f32 %v21763_v48, %v23312_v53  ;;  %v12118_v21 = vand.u32 4294901760, %v12117_v35  ;;  %v23314_v53 = vand.u32 4294901760, %v21777_v59  ;;  %v12422_v51 = vand.u32 4294901760, %v21810_v24 }
 0x695   : > { %12236 = vmatpush.msra.mxu0 %v23311_v8  ;;  %12101 = vmatpush.msrb.mxu1 %v12100_v56  ;;  %v11114_v42 = vpop.f32.mrf.mxu1  ;;  %v21827_v8 = vand.u32 4294901760, %v702_v15  ;;  %v21840_v38 = vand.u32 4294901760, %v686_v0 }
 0x696   : > { %12173 = vmatpush.msrb.mxu2 %v21735_v14  ;;  %12215 = vmatpush.msrb.mxu3 %v21682_v28  ;;  %v11115_v29 = vadd.f32 %v11114_v42, %v11070_v26  ;;  %v11187_v56 = vpop.f32.mrf.mxu2  ;;  %v12411_v28 = vsub.f32 %v21777_v59, %v23314_v53  ;;  %v21838_v42 = vsub.f32 %v718_v40, %v21812_v36  ;;  %v12406_v52 = vand.u32 4294901760, %v12405_v55 }
 0x697   : > { %12240 = vmatpush.msra.mxu0 %v23313_v17  ;;  %12107 = vmatpush.msrb.mxu1 %v12106_v61  ;;  %v23315_v61 = vand.u32 4294901760, %v21557_v27  ;;  %v23316_v17 = vand.u32 4294901760, %v21794_v7  ;;  %v23317_v27 = vand.u32 4294901760, %v21574_v49  ;;  %v23318_v49 = vand.u32 4294901760, %v21591_v37  ;;  %v622_v37 = vld [vmem:[%s13221_s17 + $0x9f8] sm:$0xff] }
 0x698   : > { %12176 = vmatpush.msrb.mxu2 %v21747_v10  ;;  %12217 = vmatpush.msrb.mxu3 %v21703_v4  ;;  %v11188_v26 = vadd.f32 %v11187_v56, %v11115_v29  ;;  %v12428_v29 = vand.u32 4294901760, %v21825_v6  ;;  %v21852_v56 = vsub.f32 %v702_v15, %v21827_v8  ;;  %v12412_v55 = vand.u32 4294901760, %v12411_v28  ;;  %v638_v28 = vld [vmem:[%s13221_s17 + $0xa78] sm:$0xff] }
 0x699   : > { %12244 = vmatpush.msra.mxu0 %v23315_v61  ;;  %v11228_v35 = vpop.f32.mrf.mxu3  ;;  %12113 = vmatpush.msrb.mxu1 %v12112_v18  ;;  %v12417_v40 = vsub.f32 %v21794_v7, %v23316_v17  ;;  %v21857_v18 = vand.u32 4294901760, %v670_v39  ;;  %v654_v61 = vld [vmem:[%s13221_s17 + $0xaf8] sm:$0xff]  ;;  %v12423_v17 = vsub.f32 %v21810_v24, %v12422_v51  ;;  %v12434_v15 = vand.u32 4294901760, %v21838_v42 }
 0x69a   : > { %12348 = vmatpush.msra.mxu2 %v21723_v12  ;;  %12219 = vmatpush.msrb.mxu3 %v21721_v63  ;;  %v11229_v53 = vadd.f32 %v11228_v35, %v11188_v26  ;;  %v21865_v26 = vsub.f32 %v686_v0, %v21840_v38  ;;  %v12440_v35 = vand.u32 4294901760, %v21852_v56  ;;  %v23319_v0 = vand.u32 4294901760, %v21605_v45 }
 0x69b   : > { %12248 = vmatpush.msra.mxu0 %v23317_v27  ;;  %12119 = vmatpush.msrb.mxu1 %v12118_v21  ;;  %v12429_v21 = vsub.f32 %v21825_v6, %v12428_v29  ;;  %v21877_v27 = vand.u32 4294901760, %v654_v61  ;;  %v23320_v45 = vand.u32 4294901760, %v21620_v57  ;;  %v23321_v57 = vand.u32 4294901760, %v21636_v44  ;;  %v590_v44 = vld [vmem:[%s13221_s17 + $0x8f8] sm:$0xff] }
 0x69c   : > { %12350 = vmatpush.msra.mxu2 %v21737_v33  ;;  %12401 = vmatpush.msra.mxu3 %v12400_v32  ;;  %v12418_v32 = vand.u32 4294901760, %v12417_v40  ;;  %12780 = vst [vmem:[%s14629_s29 + $0xe8] sm:$0xff] %v11229_v53  ;;  %v12435_v40 = vsub.f32 %v21838_v42, %v12434_v15  ;;  %v12446_v53 = vand.u32 4294901760, %v21865_v26 }
 0x69d   : > { %12252 = vmatpush.msra.mxu0 %v23318_v49  ;;  %12307 = vmatpush.msra.mxu1 %v21517_v60  ;;  %v21883_v60 = vsub.f32 %v670_v39, %v21857_v18  ;;  %v21891_v49 = vand.u32 4294901760, %v638_v28  ;;  %v12441_v39 = vsub.f32 %v21852_v56, %v12440_v35 }
 0x69e   : > { %12352 = vmatpush.msra.mxu2 %v21752_v31  ;;  %12407 = vmatpush.msra.mxu3 %v12406_v52  ;;  %v12424_v52 = vand.u32 4294901760, %v12423_v17  ;;  %v21903_v17 = vand.u32 4294901760, %v622_v37 }
 0x69f   : > { %12256 = vmatpush.msra.mxu0 %v23319_v0  ;;  %12309 = vmatpush.msra.mxu1 %v21527_v25  ;;  %v12430_v25 = vand.u32 4294901760, %v12429_v21  ;;  %v606_v0 = vld [vmem:[%s13221_s17 + $0x978] sm:$0xff]  ;;  %v21915_v21 = vsub.f32 %v638_v28, %v21891_v49  ;;  %v23323_v28 = vand.u32 4294901760, %v21657_v30 }
 0x6a0   : > { %12354 = vmatpush.msra.mxu2 %v21771_v34  ;;  %12413 = vmatpush.msra.mxu3 %v12412_v55  ;;  %v21901_v55 = vsub.f32 %v654_v61, %v21877_v27  ;;  %v12447_v61 = vsub.f32 %v21865_v26, %v12446_v53 }
 0x6a1   : > { %12260 = vmatpush.msra.mxu0 %v23320_v45  ;;  %12311 = vmatpush.msra.mxu1 %v21533_v58  ;;  %v12452_v58 = vand.u32 4294901760, %v21883_v60  ;;  %v23322_v45 = vand.u32 4294901760, %v21643_v50  ;;  %v574_v50 = vld [vmem:[%s13221_s17 + $0x878] sm:$0xff] }
 0x6a2   : > { %12356 = vmatpush.msra.mxu2 %v21783_v20  ;;  %12419 = vmatpush.msra.mxu3 %v12418_v32  ;;  %v12436_v32 = vand.u32 4294901760, %v12435_v40  ;;  %v12458_v40 = vand.u32 4294901760, %v21901_v55 }
 0x6a3   : > { %12264 = vmatpush.msra.mxu0 %v23321_v57  ;;  %12313 = vmatpush.msra.mxu1 %v21551_v47  ;;  %v21920_v47 = vand.u32 4294901760, %v606_v0  ;;  %v21926_v57 = vsub.f32 %v622_v37, %v21903_v17  ;;  %v23324_v37 = vand.u32 4294901760, %v21671_v16 }
 0x6a4   : > { %12358 = vmatpush.msra.mxu2 %v21796_v3  ;;  %12425 = vmatpush.msra.mxu3 %v12424_v52  ;;  %v12442_v52 = vand.u32 4294901760, %v12441_v39  ;;  %v12464_v39 = vand.u32 4294901760, %v21915_v21  ;;  %v12459_v30 = vsub.f32 %v21901_v55, %v12458_v40 }
 0x6a5   : > { %12268 = vmatpush.msra.mxu0 %v23322_v45  ;;  %12315 = vmatpush.msra.mxu1 %v21562_v5  ;;  %v12453_v5 = vsub.f32 %v21883_v60, %v12452_v58  ;;  %v21937_v45 = vand.u32 4294901760, %v590_v44 }
 0x6a6   : > { %12360 = vmatpush.msra.mxu2 %v21812_v36  ;;  %12431 = vmatpush.msra.mxu3 %v12430_v25  ;;  %v12448_v25 = vand.u32 4294901760, %v12447_v61  ;;  %v21950_v61 = vand.u32 4294901760, %v574_v50  ;;  %v12465_v16 = vsub.f32 %v21915_v21, %v12464_v39 }
 0x6a7   : > { %12272 = vmatpush.msra.mxu0 %v23323_v28  ;;  %12317 = vmatpush.msra.mxu1 %v21571_v2  ;;  %v21943_v2 = vsub.f32 %v606_v0, %v21920_v47  ;;  %v23325_v28 = vand.u32 4294901760, %v21686_v23  ;;  %v21960_v0 = vsub.f32 %v590_v44, %v21937_v45 }
 0x6a8   : > { %12362 = vmatpush.msra.mxu2 %v21827_v8  ;;  %12437 = vmatpush.msra.mxu3 %v12436_v32  ;;  %v12470_v32 = vand.u32 4294901760, %v21926_v57 }
 0x6a9   : > { %12276 = vmatpush.msra.mxu0 %v23324_v37  ;;  %12319 = vmatpush.msra.mxu1 %v21588_v41  ;;  %v12454_v41 = vand.u32 4294901760, %v12453_v5  ;;  %v12476_v23 = vand.u32 4294901760, %v21943_v2  ;;  %v23330_v37 = vand.u32 4294901760, %v21747_v10 }
 0x6aa   : > { %12364 = vmatpush.msra.mxu2 %v21840_v38  ;;  %12443 = vmatpush.msra.mxu3 %v12442_v52  ;;  %v23326_v52 = vand.u32 4294901760, %v21706_v13  ;;  %v12471_v5 = vsub.f32 %v21926_v57, %v12470_v32  ;;  %v12466_v13 = vand.u32 4294901760, %v12465_v16  ;;  %v23333_v16 = vld [vmem:[#allocation9_spill] sm:$0xff] }
 0x6ab   : > { %12280 = vmatpush.msra.mxu0 %v23325_v28  ;;  %12321 = vmatpush.msra.mxu1 %v21601_v54  ;;  %v12460_v54 = vand.u32 4294901760, %v12459_v30  ;;  %v12477_v44 = vsub.f32 %v21943_v2, %v12476_v23  ;;  %v23331_v30 = vld [vmem:[#allocation19_spill] sm:$0xff] }
 0x6ac   : > { %12366 = vmatpush.msra.mxu2 %v21857_v18  ;;  %12449 = vmatpush.msra.mxu3 %v12448_v25  ;;  %v21972_v25 = vsub.f32 %v574_v50, %v21950_v61  ;;  %v23329_v50 = vld [vmem:[#allocation7_spill] sm:$0xff] }
 0x6ad   : > { %12179 = vmatmul.f32.vlgmr.msrb.gmra.mxu2 %v13564_v19  ;;  %12284 = vmatpush.msra.mxu0 %v23326_v52  ;;  %v23327_v19 = vand.u32 4294901760, %v21717_v62  ;;  %v23328_v62 = vand.u32 4294901760, %v21735_v14  ;;  %v12478_v28 = vand.u32 4294901760, %v12477_v44  ;;  %v23334_v52 = vld [vmem:[#allocation13_spill] sm:$0xff]  ;;  %v23339_v44 = vand.u32 4294901760, %v21763_v48 }
 0x6ae   : > { %12323 = vmatpush.msra.mxu1 %v21613_v43  ;;  %12368 = vmatpush.msra.mxu2 %v21877_v27  ;;  %v12482_v43 = vand.u32 4294901760, %v21960_v0 }
 0x6af   : > { %12455 = vmatpush.msra.mxu3 %v12454_v41  ;;  %12012 = vmatmul.f32.vlgmr.msrb.gmra.mxu0 %v13645_v22  ;;  %v12472_v22 = vand.u32 4294901760, %v12471_v5  ;;  %v23332_v41 = vld [vmem:[#allocation20_spill] sm:$0xff] }
 0x6b0   : > { %12223 = vmatmul.f32.vlgmr.msrb.gmra.mxu3 %v13594_v9  ;;  %12288 = vmatpush.msra.mxu0 %v23327_v19  ;;  %v12488_v9 = vand.u32 4294901760, %v21972_v25  ;;  %v23336_v19 = vld [vmem:[#allocation21_spill] sm:$0xff] }
 0x6b1   : > { %12325 = vmatpush.msra.mxu1 %v21627_v11  ;;  %12370 = vmatpush.msra.mxu2 %v21891_v49  ;;  %v12483_v11 = vsub.f32 %v21960_v0, %v12482_v43 }
 0x6b2   : > { %12461 = vmatpush.msra.mxu3 %v12460_v54  ;;  %12121 = vmatmul.f32.vlgmr.msrb.gmra.mxu1 %v23277_v1  ;;  %v12489_v14 = vsub.f32 %v21972_v25, %v12488_v9  ;;  %v23335_v54 = vld [vmem:[#allocation10_spill] sm:$0xff] }
 0x6b3   : > { %12292 = vmatpush.msra.mxu0 %v23328_v62  ;;  %12327 = vmatpush.msra.mxu1 %v23329_v50  ;;  %v12484_v10 = vand.u32 4294901760, %v12483_v11 }
 0x6b4   : > { %12372 = vmatpush.msra.mxu2 %v21903_v17  ;;  %12467 = vmatpush.msra.mxu3 %v12466_v13  ;;  %v12490_v5 = vand.u32 4294901760, %v12489_v14  ;;  %v23338_v13 = vld [vmem:[#allocation8_spill] sm:$0xff] }
 0x6b5   : > { %12296 = vmatpush.msra.mxu0 %v23330_v37  ;;  %12329 = vmatpush.msra.mxu1 %v23331_v30 }
 0x6b6   : > { %12374 = vmatpush.msra.mxu2 %v21920_v47  ;;  %12473 = vmatpush.msra.mxu3 %v12472_v22  ;;  %v23340_v22 = vand.u32 4294901760, %v21777_v59 }
 0x6b7   : > { %12503 = vmatpush.msrb.mxu0 %v23332_v41  ;;  %12184 = vmatmul.f32.gmra.mxu2 %v23333_v16 }
 0x6b8   : > { %12331 = vmatpush.msra.mxu1 %v21678_v46  ;;  %12376 = vmatpush.msra.mxu2 %v21937_v45  ;;  %v23337_v46 = vand.u32 4294901760, %v23332_v41 }
 0x6b9   : > { %12479 = vmatpush.msra.mxu3 %v12478_v28  ;;  %12506 = vmatpush.msrb.mxu0 %v21763_v48  ;;  %v23342_v48 = vand.u32 4294901760, %v21794_v7 }
 0x6ba   : > { %12020 = vmatmul.f32.gmra.mxu0 %v23334_v52  ;;  %12229 = vmatmul.f32.gmra.mxu3 %v23335_v54 }
 0x6bb   : > { %12333 = vmatpush.msra.mxu1 %v23336_v19  ;;  %12378 = vmatpush.msra.mxu2 %v21950_v61 }
 0x6bc   : > { %12485 = vmatpush.msra.mxu3 %v12484_v10  ;;  %12509 = vmatpush.msrb.mxu0 %v21777_v59 }
 0x6bd   : > { %12608 = vmatpush.msrb.mxu2 %v23337_v46  ;;  %12125 = vmatmul.f32.gmra.mxu1 %v23338_v13 }
 0x6be   : > { %12335 = vmatpush.msra.mxu1 %v21703_v4  ;;  %12491 = vmatpush.msra.mxu3 %v12490_v5  ;;  %v23341_v4 = vld [vmem:[#allocation15_spill] sm:$0xff] }
 0x6bf   : > { %12512 = vmatpush.msrb.mxu0 %v21794_v7  ;;  %12612 = vmatpush.msrb.mxu2 %v23339_v44 }
 0x6c0   : > { %12679 = vmatpush.msrb.mxu3 %v21723_v12  ;;  %12337 = vmatpush.msra.mxu1 %v21721_v63  ;;  %v23343_v63 = vld [vmem:[#allocation11_spill] sm:$0xff] }
 0x6c1   : > { %12515 = vmatpush.msrb.mxu0 %v21810_v24  ;;  %12616 = vmatpush.msrb.mxu2 %v23340_v22  ;;  %v23344_v24 = vld [vmem:[#allocation18_spill] sm:$0xff] }
 0x6c2   : > { %12561 = vmatpush.msrb.mxu1 %v21723_v12  ;;  %12681 = vmatpush.msrb.mxu3 %v21737_v33 }
 0x6c3   : > { %12384 = vmatmul.f32.vlgmr.msra.gmra.mxu2 %v23341_v4  ;;  %12518 = vmatpush.msrb.mxu0 %v21825_v6 }
 0x6c4   : > { %12563 = vmatpush.msrb.mxu1 %v21737_v33  ;;  %12620 = vmatpush.msrb.mxu2 %v23342_v48 }
 0x6c5   : > { %12683 = vmatpush.msrb.mxu3 %v21752_v31  ;;  %12298 = vmatmul.f32.vlgmr.msra.gmra.mxu0 %v23277_v1  ;;  %v11378_v33 = vpop.f32.mrf.mxu1 }
 0x6c6   : > { %12493 = vmatmul.f32.vlgmr.msra.gmra.mxu3 %v23343_v63  ;;  %12521 = vmatpush.msrb.mxu0 %v21838_v42  ;;  %v11436_v12 = vpop.f32.mrf.mxu2  ;;  %v23347_v42 = vld [vmem:[#allocation14_spill] sm:$0xff] }
 0x6c7   : > { %12565 = vmatpush.msrb.mxu1 %v21752_v31  ;;  %12624 = vmatpush.msrb.mxu2 %v12422_v51 }
 0x6c8   : > { %12685 = vmatpush.msrb.mxu3 %v21771_v34  ;;  %12339 = vmatmul.f32.vlgmr.msra.gmra.mxu1 %v23277_v1  ;;  %v11269_v1 = vpop.f32.mrf.mxu0 }
 0x6c9   : > { %12524 = vmatpush.msrb.mxu0 %v21852_v56  ;;  %12567 = vmatpush.msrb.mxu1 %v21771_v34  ;;  %v11480_v31 = vpop.f32.mrf.mxu3  ;;  %v23348_v56 = vld [vmem:[#allocation16_spill] sm:$0xff] }
 0x6ca   : > { %12628 = vmatpush.msrb.mxu2 %v12428_v29  ;;  %12687 = vmatpush.msrb.mxu3 %v21783_v20 }
 0x6cb   : > { %12527 = vmatpush.msrb.mxu0 %v21865_v26  ;;  %12569 = vmatpush.msrb.mxu1 %v21783_v20  ;;  %v23345_v20 = vld [vmem:[#allocation6_spill] sm:$0xff] }
 0x6cc   : > { %12632 = vmatpush.msrb.mxu2 %v12434_v15  ;;  %12689 = vmatpush.msrb.mxu3 %v21796_v3 }
 0x6cd   : > { %12392 = vmatmul.f32.gmra.mxu2 %v23344_v24  ;;  %12530 = vmatpush.msrb.mxu0 %v21883_v60 }
 0x6ce   : > { %12571 = vmatpush.msrb.mxu1 %v21796_v3  ;;  %12636 = vmatpush.msrb.mxu2 %v12440_v35  ;;  %v11379_v3 = vadd.f32 %v11378_v33, %v11269_v1 }
 0x6cf   : > { %12691 = vmatpush.msrb.mxu3 %v21812_v36  ;;  %12302 = vmatmul.f32.gmra.mxu0 %v23338_v13  ;;  %v11382_v59 = vpop.f32.mrf.mxu1 }
 0x6d0   : > { %12497 = vmatmul.f32.gmra.mxu3 %v23345_v20  ;;  %12533 = vmatpush.msrb.mxu0 %v21901_v55  ;;  %v11277_v34 = vpop.f32.mrf.mxu0  ;;  %v11441_v7 = vpop.f32.mrf.mxu2  ;;  %v11437_v6 = vadd.f32 %v11436_v12, %v11379_v3 }
 0x6d1   : > { %12573 = vmatpush.msrb.mxu1 %v21812_v36  ;;  %12640 = vmatpush.msrb.mxu2 %v12446_v53  ;;  %v23346_v36 = vld [vmem:[#allocation12_spill] sm:$0xff]  ;;  %v11383_v51 = vadd.f32 %v11382_v59, %v11277_v34 }
 0x6d2   : > { %12693 = vmatpush.msrb.mxu3 %v21827_v8  ;;  %12343 = vmatmul.f32.gmra.mxu1 %v23338_v13  ;;  %v11481_v29 = vadd.f32 %v11480_v31, %v11437_v6 }
 0x6d3   : > { %12536 = vmatpush.msrb.mxu0 %v21915_v21  ;;  %12575 = vmatpush.msrb.mxu1 %v21827_v8  ;;  %v11442_v26 = vadd.f32 %v11441_v7, %v11383_v51 }
 0x6d4   : > { %12644 = vmatpush.msrb.mxu2 %v12452_v58  ;;  %12695 = vmatpush.msrb.mxu3 %v21840_v38 }
 0x6d5   : > { %12539 = vmatpush.msrb.mxu0 %v21926_v57  ;;  %12577 = vmatpush.msrb.mxu1 %v21840_v38  ;;  %v11486_v38 = vpop.f32.mrf.mxu3 }
 0x6d6   : > { %12648 = vmatpush.msrb.mxu2 %v12458_v40  ;;  %12697 = vmatpush.msrb.mxu3 %v21857_v18  ;;  %v11487_v53 = vadd.f32 %v11486_v38, %v11442_v26 }
 0x6d7   : > { %12542 = vmatpush.msrb.mxu0 %v21943_v2  ;;  %12579 = vmatpush.msrb.mxu1 %v21857_v18 }
 0x6d8   : > { %12652 = vmatpush.msrb.mxu2 %v12464_v39  ;;  %12699 = vmatpush.msrb.mxu3 %v21877_v27  ;;  %v11555_v8 = vpop.f32.mrf.mxu0 }
 0x6d9   : > { %12545 = vmatpush.msrb.mxu0 %v21960_v0  ;;  %12581 = vmatpush.msrb.mxu1 %v21877_v27  ;;  %v11596_v18 = vpop.f32.mrf.mxu1  ;;  %v11556_v35 = vadd.f32 %v11555_v8, %v11481_v29 }
 0x6da   : > { %12656 = vmatpush.msrb.mxu2 %v12470_v32  ;;  %12701 = vmatpush.msrb.mxu3 %v21891_v49  ;;  %v11641_v15 = vpop.f32.mrf.mxu2 }
 0x6db   : > { %12548 = vmatpush.msrb.mxu0 %v21972_v25  ;;  %12583 = vmatpush.msrb.mxu1 %v21891_v49  ;;  %v23349_v49 = vld [vmem:[#allocation17_spill] sm:$0xff]  ;;  %v11597_v55 = vadd.f32 %v11596_v18, %v11556_v35 }
 0x6dc   : > { %12660 = vmatpush.msrb.mxu2 %v12476_v23  ;;  %12703 = vmatpush.msrb.mxu3 %v21903_v17 }
 0x6dd   : > { %12551 = vmatmul.f32.vlgmr.msrb.gmra.mxu0 %v23346_v36  ;;  %12585 = vmatpush.msrb.mxu1 %v21903_v17  ;;  %v11750_v27 = vpop.f32.mrf.mxu3 }
 0x6de   : > { %12664 = vmatpush.msrb.mxu2 %v12482_v43  ;;  %12705 = vmatpush.msrb.mxu3 %v21920_v47 }
 0x6df   : > { %12587 = vmatpush.msrb.mxu1 %v21920_v47  ;;  %v11642_v47 = vadd.f32 %v11641_v15, %v11597_v55 }
 0x6e0   : > { %12668 = vmatpush.msrb.mxu2 %v12488_v9  ;;  %12707 = vmatpush.msrb.mxu3 %v21937_v45 }
 0x6e1   : > { %12670 = vmatmul.f32.vlgmr.msrb.gmra.mxu2 %v23343_v63  ;;  %12589 = vmatpush.msrb.mxu1 %v21937_v45  ;;  %v11751_v45 = vadd.f32 %v11750_v27, %v11642_v47 }
 0x6e2   : > { %12709 = vmatpush.msrb.mxu3 %v21950_v61 }
 0x6e3   : > { %12711 = vmatmul.f32.vlgmr.msrb.gmra.mxu3 %v23343_v63  ;;  %12591 = vmatpush.msrb.mxu1 %v21950_v61 }
 0x6e4   : > { %12595 = vmatmul.f32.vlgmr.msrb.gmra.mxu1 %v23347_v42  ;;  %v11559_v60 = vpop.f32.mrf.mxu0 }
 0x6e5   : > { %12556 = vmatmul.f32.gmra.mxu0 %v23348_v56  ;;  %v11560_v21 = vadd.f32 %v11559_v60, %v11487_v53 }
 0x6e9   : > { %12674 = vmatmul.f32.gmra.mxu2 %v23345_v20 }
 0x6eb   : > { %12715 = vmatmul.f32.gmra.mxu3 %v23345_v20 }
 0x6ec   : > { %12601 = vmatmul.f32.gmra.mxu1 %v23349_v49 }
 0x6ed   : > { %v11600_v17 = vpop.f32.mrf.mxu1 }
 0x6ee   : > { %v11649_v58 = vpop.f32.mrf.mxu2  ;;  %v11601_v57 = vadd.f32 %v11600_v17, %v11560_v21  ;;  %v11808_v39 = vpop.f32.mrf.mxu0 }
 0x6ef   : > { %v11809_v2 = vadd.f32 %v11808_v39, %v11751_v45  ;;  %v12808_v45 = vld [vmem:[%s14629_s29] sm:$0xff] (%p13202_p9) }
 0x6f0   : > { %v11650_v32 = vadd.f32 %v11649_v58, %v11601_v57  ;;  %12809 = vst [vmem:[%s22118_s5] sm:$0xff] (%p13202_p9), %v12808_v45 }
 0x6f1   : > { %v11754_v40 = vpop.f32.mrf.mxu3 }
 0x6f2   : > { %v11755_v9 = vadd.f32 %v11754_v40, %v11650_v32  ;;  %v12812_v32 = vld [vmem:[%s14629_s29 + $0x10] sm:$0xff] (%p13202_p9) }
 0x6f3   : > { %12813 = vst [vmem:[%s22118_s5 + $0x10] sm:$0xff] (%p13202_p9), %v12812_v32 }
 0x6f8   : > { %v11852_v61 = vpop.f32.mrf.mxu1  ;;  %v11927_v0 = vpop.f32.mrf.mxu2 }
 0x6f9   : > { %v11853_v23 = vadd.f32 %v11852_v61, %v11809_v2  ;;  %v12810_v2 = vld [vmem:[%s14629_s29 + $0x8] sm:$0xff] (%p13202_p9)  ;;  %v12814_v61 = vld [vmem:[%s14629_s29 + $0x18] sm:$0xff] (%p13202_p9) }
 0x6fa   : > { %12811 = vst [vmem:[%s22118_s5 + $0x8] sm:$0xff] (%p13202_p9), %v12810_v2 }
 0x6fb   : > { %v11928_v25 = vadd.f32 %v11927_v0, %v11853_v23  ;;  %v11968_v43 = vpop.f32.mrf.mxu3  ;;  %v12816_v0 = vld [vmem:[%s14629_s29 + $0x20] sm:$0xff] (%p13202_p9)  ;;  %v12818_v23 = vld [vmem:[%s14629_s29 + $0x28] sm:$0xff] (%p13202_p9)  ;;  %12815 = vst [vmem:[%s22118_s5 + $0x18] sm:$0xff] (%p13202_p9), %v12814_v61 }
 0x6fc   : > { %v11813_v62 = vpop.f32.mrf.mxu0  ;;  %12817 = vst [vmem:[%s22118_s5 + $0x20] sm:$0xff] (%p13202_p9), %v12816_v0 }
 0x6fd   : > { %v11969_v50 = vadd.f32 %v11968_v43, %v11928_v25  ;;  %v11814_v11 = vadd.f32 %v11813_v62, %v11755_v9  ;;  %v12820_v25 = vld [vmem:[%s14629_s29 + $0x30] sm:$0xff] (%p13202_p9)  ;;  %v12822_v43 = vld [vmem:[%s14629_s29 + $0x38] sm:$0xff] (%p13202_p9)  ;;  %12819 = vst [vmem:[%s22118_s5 + $0x28] sm:$0xff] (%p13202_p9), %v12818_v23  ;;  %v12824_v9 = vld [vmem:[%s14629_s29 + $0x40] sm:$0xff] (%p13202_p9) }
 0x6fe   : > { %12821 = vst [vmem:[%s22118_s5 + $0x30] sm:$0xff] (%p13202_p9), %v12820_v25  ;;  %v12826_v62 = vld [vmem:[%s14629_s29 + $0x48] sm:$0xff] (%p13202_p9) }
 0x6ff   : > { %12765 = vst [vmem:[%s14629_s29 + $0x70] sm:$0xff] %v11969_v50  ;;  %v12828_v50 = vld [vmem:[%s14629_s29 + $0x50] sm:$0xff] (%p13202_p9) }
 0x700   : > { %12823 = vst [vmem:[%s22118_s5 + $0x38] sm:$0xff] (%p13202_p9), %v12822_v43 }
 0x701   : > { %v11858_v37 = vpop.f32.mrf.mxu1  ;;  %12825 = vst [vmem:[%s22118_s5 + $0x40] sm:$0xff] (%p13202_p9), %v12824_v9 }
 0x702   : > { %v11859_v30 = vadd.f32 %v11858_v37, %v11814_v11  ;;  %v11931_v28 = vpop.f32.mrf.mxu2  ;;  %v12830_v11 = vld [vmem:[%s14629_s29 + $0x58] sm:$0xff] (%p13202_p9)  ;;  %12827 = vst [vmem:[%s22118_s5 + $0x48] sm:$0xff] (%p13202_p9), %v12826_v62  ;;  %v12832_v37 = vld [vmem:[%s14629_s29 + $0x60] sm:$0xff] (%p13202_p9) }
 0x703   : > { %12829 = vst [vmem:[%s22118_s5 + $0x50] sm:$0xff] (%p13202_p9), %v12828_v50 }
 0x704   : > { %v11932_v14 = vadd.f32 %v11931_v28, %v11859_v30  ;;  %v12834_v30 = vld [vmem:[%s14629_s29 + $0x68] sm:$0xff] (%p13202_p9)  ;;  %12831 = vst [vmem:[%s22118_s5 + $0x58] sm:$0xff] (%p13202_p9), %v12830_v11 }
 0x705   : > { %v11972_v41 = vpop.f32.mrf.mxu3  ;;  %12833 = vst [vmem:[%s22118_s5 + $0x60] sm:$0xff] (%p13202_p9), %v12832_v37 }
 0x706   : > { %v11973_v16 = vadd.f32 %v11972_v41, %v11932_v14  ;;  %v12836_v28 = vld [vmem:[%s14629_s29 + $0x70] sm:$0xff] (%p13202_p9)  ;;  %12835 = vst [vmem:[%s22118_s5 + $0x68] sm:$0xff] (%p13202_p9), %v12834_v30  ;;  %v12840_v41 = vld [vmem:[%s14629_s29 + $0x80] sm:$0xff] (%p13202_p9) }
 0x707   : > { %12837 = vst [vmem:[%s22118_s5 + $0x70] sm:$0xff] (%p13202_p9), %v12836_v28 }
 0x708   : > { %12781 = vst [vmem:[%s14629_s29 + $0xf0] sm:$0xff] %v11973_v16  ;;  %v12842_v16 = vld [vmem:[%s14629_s29 + $0x88] sm:$0xff] (%p13202_p9) }
 0x709   : > { %12841 = vst [vmem:[%s22118_s5 + $0x180] sm:$0xff] (%p13202_p9), %v12840_v41 }
 0x70a   : > { %12843 = vst [vmem:[%s22118_s5 + $0x188] sm:$0xff] (%p13202_p9), %v12842_v16 }
 0x72c   : > { %v12013_v10 = vpop.f32.mrf.mxu0 }
 0x72f   : > { %v12122_v52 = vpop.f32.mrf.mxu1 }
 0x730   : > { %v12180_v54 = vpop.f32.mrf.mxu2  ;;  %v12123_v13 = vadd.f32 %v12122_v52, %v12013_v10  ;;  %v12844_v10 = vld [vmem:[%s14629_s29 + $0x90] sm:$0xff] (%p13202_p9)  ;;  %v12846_v52 = vld [vmem:[%s14629_s29 + $0x98] sm:$0xff] (%p13202_p9) }
 0x731   : > { %12845 = vst [vmem:[%s22118_s5 + $0x190] sm:$0xff] (%p13202_p9), %v12844_v10 }
 0x732   : > { %v12181_v4 = vadd.f32 %v12180_v54, %v12123_v13  ;;  %v12848_v54 = vld [vmem:[%s14629_s29 + $0xa0] sm:$0xff] (%p13202_p9)  ;;  %12847 = vst [vmem:[%s22118_s5 + $0x198] sm:$0xff] (%p13202_p9), %v12846_v52 }
 0x733   : > { %v12224_v19 = vpop.f32.mrf.mxu3  ;;  %12849 = vst [vmem:[%s22118_s5 + $0x1a0] sm:$0xff] (%p13202_p9), %v12848_v54  ;;  %v12856_v13 = vld [vmem:[%s14629_s29 + $0xc0] sm:$0xff] (%p13202_p9) }
 0x734   : > { %v12225_v63 = vadd.f32 %v12224_v19, %v12181_v4  ;;  %v12852_v19 = vld [vmem:[%s14629_s29 + $0xb0] sm:$0xff] (%p13202_p9)  ;;  %12857 = vst [vmem:[%s22118_s5 + $0x1c0] sm:$0xff] (%p13202_p9), %v12856_v13  ;;  %v12862_v4 = vld [vmem:[%s14629_s29 + $0xd8] sm:$0xff] (%p13202_p9) }
 0x735   : > { %12853 = vst [vmem:[%s22118_s5 + $0x1b0] sm:$0xff] (%p13202_p9), %v12852_v19 }
 0x736   : > { %12863 = vst [vmem:[%s22118_s5 + $0x1d8] sm:$0xff] (%p13202_p9), %v12862_v4 }
 0x737   : > { %v12021_v5 = vpop.f32.mrf.mxu0 }
 0x73a   : > { %v12126_v46 = vpop.f32.mrf.mxu1  ;;  %v12185_v44 = vpop.f32.mrf.mxu2 }
 0x73b   : > { %v12127_v24 = vadd.f32 %v12126_v46, %v12021_v5  ;;  %v12850_v5 = vld [vmem:[%s14629_s29 + $0xa8] sm:$0xff] (%p13202_p9)  ;;  %v12854_v46 = vld [vmem:[%s14629_s29 + $0xb8] sm:$0xff] (%p13202_p9) }
 0x73c   : > { %12851 = vst [vmem:[%s22118_s5 + $0x1a8] sm:$0xff] (%p13202_p9), %v12850_v5 }
 0x73d   : > { %v12230_v48 = vpop.f32.mrf.mxu3  ;;  %v12186_v20 = vadd.f32 %v12185_v44, %v12127_v24  ;;  %v12858_v44 = vld [vmem:[%s14629_s29 + $0xc8] sm:$0xff] (%p13202_p9)  ;;  %12855 = vst [vmem:[%s22118_s5 + $0x1b8] sm:$0xff] (%p13202_p9), %v12854_v46  ;;  %v12868_v24 = vld [vmem:[%s14629_s29 + $0xf0] sm:$0xff] (%p13202_p9) }
 0x73e   : > { %12859 = vst [vmem:[%s22118_s5 + $0x1c8] sm:$0xff] (%p13202_p9), %v12858_v44 }
 0x73f   : > { %v12231_v59 = vadd.f32 %v12230_v48, %v12186_v20  ;;  %v12864_v48 = vld [vmem:[%s14629_s29 + $0xe0] sm:$0xff] (%p13202_p9)  ;;  %12869 = vst [vmem:[%s22118_s5 + $0x1f0] sm:$0xff] (%p13202_p9), %v12868_v24 }
 0x740   : > { %12865 = vst [vmem:[%s22118_s5 + $0x1e0] sm:$0xff] (%p13202_p9), %v12864_v48 }
 0x742   : > { %v12299_v22 = vpop.f32.mrf.mxu0 }
 0x743   : > { %v12300_v33 = vadd.f32 %v12299_v22, %v12225_v63  ;;  %v12860_v22 = vld [vmem:[%s14629_s29 + $0xd0] sm:$0xff] (%p13202_p9)  ;;  %v12866_v63 = vld [vmem:[%s14629_s29 + $0xe8] sm:$0xff] (%p13202_p9) }
 0x744   : > { %12861 = vst [vmem:[%s22118_s5 + $0x1d0] sm:$0xff] (%p13202_p9), %v12860_v22 }
 0x745   : > { %v12340_v1 = vpop.f32.mrf.mxu1  ;;  %12867 = vst [vmem:[%s22118_s5 + $0x1e8] sm:$0xff] (%p13202_p9), %v12866_v63 }
 0x746   : > { %v12385_v12 = vpop.f32.mrf.mxu2  ;;  %v12341_v7 = vadd.f32 %v12340_v1, %v12300_v33 }
 0x748   : > { %v12386_v36 = vadd.f32 %v12385_v12, %v12341_v7 }
 0x749   : > { %v12494_v34 = vpop.f32.mrf.mxu3 }
 0x74a   : > { %v12495_v51 = vadd.f32 %v12494_v34, %v12386_v36 }
 0x74c   : > { %v12303_v31 = vpop.f32.mrf.mxu0 }
 0x74d   : > { %v12304_v38 = vadd.f32 %v12303_v31, %v12231_v59 }
 0x74f   : > { %v12344_v3 = vpop.f32.mrf.mxu1 }
 0x750   : > { %v12393_v8 = vpop.f32.mrf.mxu2  ;;  %v12345_v42 = vadd.f32 %v12344_v3, %v12304_v38 }
 0x752   : > { %v12394_v15 = vadd.f32 %v12393_v8, %v12345_v42 }
 0x753   : > { %v12498_v29 = vpop.f32.mrf.mxu3 }
 0x754   : > { %v12499_v53 = vadd.f32 %v12498_v29, %v12394_v15 }
 0x75a   : > { %v12552_v6 = vpop.f32.mrf.mxu0 }
 0x75b   : > { %v12553_v56 = vadd.f32 %v12552_v6, %v12495_v51 }
 0x761   : > { %v12596_v18 = vpop.f32.mrf.mxu1 }
 0x762   : > { %v12597_v26 = vadd.f32 %v12596_v18, %v12553_v56  ;;  %v12557_v27 = vpop.f32.mrf.mxu0 }
 0x763   : > { %v12558_v17 = vadd.f32 %v12557_v27, %v12499_v53 }
 0x764   : > { %v12671_v35 = vpop.f32.mrf.mxu2 }
 0x765   : > { %v12672_v60 = vadd.f32 %v12671_v35, %v12597_v26 }
 0x766   : > { %v12712_v49 = vpop.f32.mrf.mxu3 }
 0x767   : > { %v12713_v55 = vadd.f32 %v12712_v49, %v12672_v60 }
 0x769   : > { %v12602_v58 = vpop.f32.mrf.mxu1  ;;  %12766 = vst [vmem:[%s14629_s29 + $0x78] sm:$0xff] %v12713_v55 }
 0x76a   : > { %v12603_v21 = vadd.f32 %v12602_v58, %v12558_v17 }
 0x76c   : > { %v12675_v47 = vpop.f32.mrf.mxu2 }
 0x76d   : > { %v12676_v40 = vadd.f32 %v12675_v47, %v12603_v21  ;;  %12789 = sbr.rel (!%p13202_p9) target bundleno = 1914 (0x77a), region = 40 }
 0x76e   : > { %v12716_v57 = vpop.f32.mrf.mxu3 }
 0x76f   : > { %v12717_v39 = vadd.f32 %v12716_v57, %v12676_v40 }
 0x770   : > { %v12838_v14 = vld [vmem:[%s14629_s29 + $0x78] sm:$0xff] (%p13202_p9) }
 0x771   : > { %12782 = vst [vmem:[%s14629_s29 + $0xf8] sm:$0xff] %v12717_v39 }
 0x772   : > { %12839 = vst [vmem:[%s22118_s5 + $0x78] sm:$0xff] %v12838_v14 }
 0x778   : > { %v12870_v1 = vld [vmem:[%s14629_s29 + $0xf8] sm:$0xff] }
 0x779   : > { %12871 = vst [vmem:[%s22118_s5 + $0x1f8] sm:$0xff] %v12870_v1 }
 0x77a PF: > { %s15_s14 = sadd.s32 1, %s13132_s14   ;;  %s23350_s9 = smov %s13116_s10 }
 0x77b   : > { %p12_p1 = scmp.ge.s32.totalorder %s15_s14, 5   ;;  %s23351_s10 = smov %s13120_s11 }
 0x77c   : > { %s23352_s11 = smov %s13200_s21  ;;  %s23353_s12 = smov %s13128_s13 }
 0x77d   : > { %s23354_s13 = smov %s23356_s16  ;;  %14 = sbr.rel (!%p12_p1) target bundleno = 4 (0x4), region = 98 }
 0x782   :  { %12887 = vsyncpa [#allocation3], 1 }
 0x783   :  { %12889 = vsyncpa [#allocation3 + $0x1], 1 }

</bundles_post_ra>
